<compile_context>
chip_gen: v5e
topology: v5e:2x2
jax: 0.10.0
libtpu: 0.0.40
codegen_flags: <defaults>
</compile_context>

<pallas_src>
import functools

import jax
import jax.numpy as jnp
from jax.experimental import pallas as pl
from jax.experimental.pallas import tpu as pltpu

FC1_IN = 32 * 16 * 16      # 8192
FC1_OUT = 600
FC1_OUT_PAD = 640          # pad to a multiple of 128 once, at prepare time
FC2_OUT = 9


# ---------------------------------------------------------------------------
# Fused dense kernel: out = relu?(x @ w + b).  Grid = (N tiles, K tiles); the
# f32 output block is constant along K, so it acts as the accumulator.
# ---------------------------------------------------------------------------
def _dense_kernel(x_ref, w_ref, b_ref, o_ref, *, relu):
    @pl.when(pl.program_id(1) == 0)
    def _():
        o_ref[...] = jnp.zeros_like(o_ref)

    o_ref[...] += jnp.dot(x_ref[...], w_ref[...],
                          preferred_element_type=jnp.float32)

    @pl.when(pl.program_id(1) == pl.num_programs(1) - 1)
    def _():
        r = o_ref[...] + b_ref[...]
        if relu:
            r = jnp.maximum(r, 0.0)
        o_ref[...] = r


def dense(x, w, b, *, tk, tn, relu=False):
    """x: (M, K) bf16, w: (K, Np) bf16, b: (1, Np) f32 -> (M, Np) f32."""
    M, K = x.shape
    K2, Np = w.shape
    assert K == K2 and K % tk == 0 and Np % tn == 0

    return pl.pallas_call(
        functools.partial(_dense_kernel, relu=relu),
        out_shape=jax.ShapeDtypeStruct((M, Np), jnp.float32),
        grid_spec=pltpu.PrefetchScalarGridSpec(
            num_scalar_prefetch=0,
            grid=(Np // tn, K // tk),
            in_specs=[
                pl.BlockSpec((M, tk), lambda j, k: (0, k)),
                pl.BlockSpec((tk, tn), lambda j, k: (k, j)),
                pl.BlockSpec((1, tn), lambda j, k: (0, j)),
            ],
            out_specs=pl.BlockSpec((M, tn), lambda j, k: (0, j)),
        ),
        compiler_params=pltpu.CompilerParams(
            dimension_semantics=("parallel", "arbitrary")),
    )(x, w, b)


# ---------------------------------------------------------------------------
# Conv2d (valid, stride 1) + bias + ReLU as a per-image GEMM with lane-dense
# output: out[n] = relu(W (Cout,K) @ patches[n] (K, Ho*Wo) + b).
# ---------------------------------------------------------------------------
def _conv_kernel(p_ref, w_ref, b_ref, o_ref):
    acc = jnp.dot(w_ref[...], p_ref[0],
                  preferred_element_type=jnp.float32)          # (Cout, M)
    acc = jnp.maximum(acc + b_ref[...], 0.0)                   # bias/ReLU in f32
    o_ref[0] = acc.astype(o_ref.dtype)


def _im2col_nchw(x, KH, KW):
    """x: (N, Cin, H, W) -> patches (N, Cin*KH*KW, Ho*Wo); K order = (cin, ki, kj),
    which matches the reshape of a PyTorch (Cout, Cin, KH, KW) weight."""
    # TODO(synk): the patch matrix is still materialized by XLA glue (slices +
    # stack); an in-kernel im2col would need lane/sublane shifts that are not
    # worth the lowering risk at this size.
    N, Cin, H, W = x.shape
    Ho, Wo = H - KH + 1, W - KW + 1
    slices = []
    for ki in range(KH):
        for kj in range(KW):
            slices.append(x[:, :, ki:ki + Ho, kj:kj + Wo])     # (N, Cin, Ho, Wo)
    p = jnp.stack(slices, axis=2)                              # (N, Cin, KH*KW, Ho, Wo)
    p = p.reshape(N, Cin * KH * KW, Ho * Wo)
    return p, Ho, Wo


def conv2d_relu_nchw(x, w_mat, b_col, KH, KW):
    """x: (N, Cin, H, W) bf16; w_mat: (Cout, Cin*KH*KW) bf16; b_col: (Cout, 1) f32."""
    N = x.shape[0]
    Cout, K = w_mat.shape
    p, Ho, Wo = _im2col_nchw(x, KH, KW)                        # (N, K, M) bf16
    M = Ho * Wo

    out = pl.pallas_call(
        _conv_kernel,
        out_shape=jax.ShapeDtypeStruct((N, Cout, M), jnp.bfloat16),
        grid_spec=pltpu.PrefetchScalarGridSpec(
            num_scalar_prefetch=0,
            grid=(N,),
            in_specs=[
                pl.BlockSpec((1, K, M), lambda n: (n, 0, 0)),
                pl.BlockSpec((Cout, K), lambda n: (0, 0)),
                pl.BlockSpec((Cout, 1), lambda n: (0, 0)),
            ],
            out_specs=pl.BlockSpec((1, Cout, M), lambda n: (n, 0, 0)),
        ),
        compiler_params=pltpu.CompilerParams(
            dimension_semantics=("parallel",)),
    )(p, w_mat, b_col)
    return out.reshape(N, Cout, Ho, Wo)


# ---------------------------------------------------------------------------
# 2x2 max-pool (stride 2), NCHW.  The four strided views are reshaped to
# (N*C, Ho*Wo) so the elementwise max kernel is lane-dense, tiled over rows.
# ---------------------------------------------------------------------------
def _max4_kernel(a_ref, b_ref, c_ref, d_ref, o_ref):
    o_ref[...] = jnp.maximum(
        jnp.maximum(a_ref[...], b_ref[...]),
        jnp.maximum(c_ref[...], d_ref[...]),
    )


def maxpool2x2_nchw(x):
    """x: (N, C, H, W), H and W even -> (N, C, H//2, W//2)."""
    N, C, H, W = x.shape
    Hh, Wh = H // 2, W // 2
    R, L = N * C, Hh * Wh
    views = [x[:, :, i::2, j::2].reshape(R, L) for i in (0, 1) for j in (0, 1)]

    tr = R if R <= 256 else 256
    spec = pl.BlockSpec((tr, L), lambda r: (r, 0))
    out = pl.pallas_call(
        _max4_kernel,
        out_shape=jax.ShapeDtypeStruct((R, L), x.dtype),
        grid_spec=pltpu.PrefetchScalarGridSpec(
            num_scalar_prefetch=0,
            grid=(pl.cdiv(R, tr),),
            in_specs=[spec, spec, spec, spec],
            out_specs=spec,
        ),
        compiler_params=pltpu.CompilerParams(
            dimension_semantics=("parallel",)),
    )(*views)
    return out.reshape(N, C, Hh, Wh)


# ---------------------------------------------------------------------------
# Parameter preparation (runs ONCE): reshape / transpose / pad / cast weights.
# ---------------------------------------------------------------------------
def prepare_params(params):
    bf = lambda a: a.astype(jnp.bfloat16)
    pad_n = FC1_OUT_PAD - FC1_OUT
    pp = {}
    # Conv weights: (Cout, Cin, KH, KW) -> (Cout, Cin*KH*KW); bias -> (Cout, 1) f32.
    pp["conv1_w"] = bf(params["conv1_w"].reshape(16, -1))
    pp["conv1_b"] = params["conv1_b"].reshape(-1, 1).astype(jnp.float32)
    pp["conv3_w"] = bf(params["conv3_w"].reshape(32, -1))
    pp["conv3_b"] = params["conv3_b"].reshape(-1, 1).astype(jnp.float32)
    # fc1: PyTorch (out,in) -> (in,out), pad 600 -> 640 output features (zeros).
    pp["fc1_w"] = bf(jnp.pad(params["fc1_w"].T, ((0, 0), (0, pad_n))))
    pp["fc1_b"] = jnp.pad(params["fc1_b"], (0, pad_n)).reshape(1, -1).astype(jnp.float32)
    # fc1_5: (9,600) -> (600,9), pad K 600 -> 640 with zero rows (matches fc1 pad).
    pp["fc15_w"] = bf(jnp.pad(params["fc15_w"].T, ((0, pad_n), (0, 0))))
    pp["fc15_b"] = params["fc15_b"].reshape(1, -1).astype(jnp.float32)
    return pp


# ---------------------------------------------------------------------------
# Full forward pass of Layers_2 (input NCHW, PyTorch semantics).
# ---------------------------------------------------------------------------
def layers2_forward(x_nchw, pp):
    x = x_nchw.astype(jnp.bfloat16)                                   # (N, 3, 74, 74)
    x = conv2d_relu_nchw(x, pp["conv1_w"], pp["conv1_b"], 7, 7)       # (N, 16, 68, 68)
    x = maxpool2x2_nchw(x)                                            # (N, 16, 34, 34)
    x = conv2d_relu_nchw(x, pp["conv3_w"], pp["conv3_b"], 3, 3)       # (N, 32, 32, 32)
    x = maxpool2x2_nchw(x)                                            # (N, 32, 16, 16)
    N = x.shape[0]
    x = x.reshape(N, FC1_IN)           # NCHW flatten == PyTorch x.view(-1, 32*16*16)
    x = dense(x, pp["fc1_w"], pp["fc1_b"], tk=2048, tn=FC1_OUT_PAD, relu=True)  # (N, 640)
    x = x.astype(jnp.bfloat16)         # padded cols are relu(0)=0; zero rows in fc15_w
    x = dense(x, pp["fc15_w"], pp["fc15_b"], tk=FC1_OUT_PAD, tn=FC2_OUT, relu=False)
    return x                                                          # (N, 9) f32


def init_params(key):
    """Deterministic PyTorch-like init: U(-1/sqrt(fan_in), 1/sqrt(fan_in))."""
    ks = jax.random.split(key, 8)

    def uni(k, shape, fan_in):
        bound = 1.0 / jnp.sqrt(float(fan_in))
        return jax.random.uniform(k, shape, jnp.float32, -bound, bound)

    return {
        "conv1_w": uni(ks[0], (16, 3, 7, 7), 3 * 7 * 7),
        "conv1_b": uni(ks[1], (16,), 3 * 7 * 7),
        "conv3_w": uni(ks[2], (32, 16, 3, 3), 16 * 3 * 3),
        "conv3_b": uni(ks[3], (32,), 16 * 3 * 3),
        "fc1_w": uni(ks[4], (FC1_OUT, FC1_IN), FC1_IN),
        "fc1_b": uni(ks[5], (FC1_OUT,), FC1_IN),
        "fc15_w": uni(ks[6], (FC2_OUT, FC1_OUT), FC1_OUT),
        "fc15_b": uni(ks[7], (FC2_OUT,), FC1_OUT),
    }


if __name__ == "__main__":
    key = jax.random.PRNGKey(0)
    k_x, k_p = jax.random.split(key)

    # Spatial size 74 is forced by fc1's hard-coded 32*16*16 input size:
    # 74 -conv7-> 68 -pool-> 34 -conv3-> 32 -pool-> 16.
    x = jax.random.normal(k_x, (2, 3, 74, 74), jnp.float32)
    params = init_params(k_p)
    pp = prepare_params(params)          # one-time weight reshape/pad/cast

    fwd = jax.jit(layers2_forward)
    out = fwd(x, pp)
    out = jax.block_until_ready(out)
    assert out.shape == (2, FC2_OUT), out.shape
    assert out.dtype == jnp.float32
    print("KERNEL_OK")
</pallas_src>

<mosaic_0001>
module attributes {stable_mosaic.version = 11 : i64} {
  func.func @_conv_kernel(%arg0: i32, %arg1: memref<1x147x4624xbf16, #tpu.memory_space<vmem>>, %arg2: memref<16x147xbf16, #tpu.memory_space<vmem>>, %arg3: memref<16x1xf32, #tpu.memory_space<vmem>>, %arg4: memref<1x16x4624xbf16, #tpu.memory_space<vmem>>) attributes {dimension_semantics = [#tpu.dimension_semantics<parallel>], iteration_bounds = array<i64: 2>, scalar_prefetch = 0 : i64, scratch_operands = 0 : i64, tpu.core_type = #tpu.core_type<tc>, window_params = [{transform_indices = @transform_0, window_bounds = array<i64: 1, 147, 4624>}, {pipeline_mode = #tpu.pipeline_mode<synchronous>, transform_indices = @transform_1, window_bounds = array<i64: 16, 147>}, {pipeline_mode = #tpu.pipeline_mode<synchronous>, transform_indices = @transform_2, window_bounds = array<i64: 16, 1>}, {transform_indices = @transform_3, window_bounds = array<i64: 1, 16, 4624>}]} {
    %c0 = arith.constant 0 : index
    %c0_0 = arith.constant 0 : index
    %0 = vector.load %arg2[%c0, %c0_0] : memref<16x147xbf16, #tpu.memory_space<vmem>>, vector<16x147xbf16>
    %c0_1 = arith.constant 0 : index
    %c0_2 = arith.constant 0 : index
    %c0_3 = arith.constant 0 : index
    %1 = vector.load %arg1[%c0_1, %c0_2, %c0_3] : memref<1x147x4624xbf16, #tpu.memory_space<vmem>>, vector<1x147x4624xbf16>
    %2 = vector.shape_cast %1 : vector<1x147x4624xbf16> to vector<147x4624xbf16>
    %cst = arith.constant dense<0.000000e+00> : vector<16x4624xf32>
    %3 = tpu.matmul %0, %2, %cst {dimension_numbers = #tpu.dot_dimension_numbers<[1], [0], [0], [1], [0, 0, 1, 1], [], []>} : vector<16x147xbf16>, vector<147x4624xbf16>, vector<16x4624xf32> -> vector<16x4624xf32>
    %c0_4 = arith.constant 0 : index
    %c0_5 = arith.constant 0 : index
    %4 = vector.load %arg3[%c0_4, %c0_5] : memref<16x1xf32, #tpu.memory_space<vmem>>, vector<16x1xf32>
    %5 = vector.broadcast %4 : vector<16x1xf32> to vector<16x4624xf32>
    %6 = arith.addf %3, %5 : vector<16x4624xf32>
    %cst_6 = arith.constant 0.000000e+00 : f32
    %7 = vector.broadcast %cst_6 : f32 to vector<16x4624xf32>
    %8 = arith.maximumf %6, %7 : vector<16x4624xf32>
    %9 = arith.truncf %8 : vector<16x4624xf32> to vector<16x4624xbf16>
    %c0_7 = arith.constant 0 : index
    %c0_8 = arith.constant 0 : index
    %c0_9 = arith.constant 0 : index
    %10 = vector.load %arg4[%c0_7, %c0_8, %c0_9] : memref<1x16x4624xbf16, #tpu.memory_space<vmem>>, vector<1x16x4624xbf16>
    %11 = vector.shape_cast %10 : vector<1x16x4624xbf16> to vector<16x4624xbf16>
    %12 = vector.shape_cast %9 : vector<16x4624xbf16> to vector<1x16x4624xbf16>
    tpu.vector_store %arg4[%c0_7, %c0_8, %c0_9], %12 {strides = array<i32>} : memref<1x16x4624xbf16, #tpu.memory_space<vmem>>, vector<1x16x4624xbf16>,
    return
  }
  func.func @transform_0(%arg0: i32) -> (i32, i32, i32) {
    %c0_i32 = arith.constant 0 : i32
    %c0_i32_0 = arith.constant 0 : i32
    %c0_i32_1 = arith.constant 0 : i32
    return %arg0, %c0_i32, %c0_i32_0 : i32, i32, i32
  }
  func.func @transform_1(%arg0: i32) -> (i32, i32) {
    %c0_i32 = arith.constant 0 : i32
    %c0_i32_0 = arith.constant 0 : i32
    %c0_i32_1 = arith.constant 0 : i32
    return %c0_i32, %c0_i32_0 : i32, i32
  }
  func.func @transform_2(%arg0: i32) -> (i32, i32) {
    %c0_i32 = arith.constant 0 : i32
    %c0_i32_0 = arith.constant 0 : i32
    %c0_i32_1 = arith.constant 0 : i32
    return %c0_i32, %c0_i32_0 : i32, i32
  }
  func.func @transform_3(%arg0: i32) -> (i32, i32, i32) {
    %c0_i32 = arith.constant 0 : i32
    %c0_i32_0 = arith.constant 0 : i32
    %c0_i32_1 = arith.constant 0 : i32
    return %arg0, %c0_i32, %c0_i32_0 : i32, i32, i32
  }
}

module attributes {stable_mosaic.version = 11 : i64} {
  func.func @_max4_kernel(%arg0: i32, %arg1: memref<32x1156xbf16, #tpu.memory_space<vmem>>, %arg2: memref<32x1156xbf16, #tpu.memory_space<vmem>>, %arg3: memref<32x1156xbf16, #tpu.memory_space<vmem>>, %arg4: memref<32x1156xbf16, #tpu.memory_space<vmem>>, %arg5: memref<32x1156xbf16, #tpu.memory_space<vmem>>) attributes {dimension_semantics = [#tpu.dimension_semantics<parallel>], iteration_bounds = array<i64: 1>, scalar_prefetch = 0 : i64, scratch_operands = 0 : i64, tpu.core_type = #tpu.core_type<tc>, window_params = [{transform_indices = @transform_0, window_bounds = array<i64: 32, 1156>}, {transform_indices = @transform_1, window_bounds = array<i64: 32, 1156>}, {transform_indices = @transform_2, window_bounds = array<i64: 32, 1156>}, {transform_indices = @transform_3, window_bounds = array<i64: 32, 1156>}, {transform_indices = @transform_4, window_bounds = array<i64: 32, 1156>}]} {
    %c0 = arith.constant 0 : index
    %c0_0 = arith.constant 0 : index
    %0 = vector.load %arg1[%c0, %c0_0] : memref<32x1156xbf16, #tpu.memory_space<vmem>>, vector<32x1156xbf16>
    %c0_1 = arith.constant 0 : index
    %c0_2 = arith.constant 0 : index
    %1 = vector.load %arg2[%c0_1, %c0_2] : memref<32x1156xbf16, #tpu.memory_space<vmem>>, vector<32x1156xbf16>
    %2 = arith.maximumf %0, %1 : vector<32x1156xbf16>
    %c0_3 = arith.constant 0 : index
    %c0_4 = arith.constant 0 : index
    %3 = vector.load %arg3[%c0_3, %c0_4] : memref<32x1156xbf16, #tpu.memory_space<vmem>>, vector<32x1156xbf16>
    %c0_5 = arith.constant 0 : index
    %c0_6 = arith.constant 0 : index
    %4 = vector.load %arg4[%c0_5, %c0_6] : memref<32x1156xbf16, #tpu.memory_space<vmem>>, vector<32x1156xbf16>
    %5 = arith.maximumf %3, %4 : vector<32x1156xbf16>
    %6 = arith.maximumf %2, %5 : vector<32x1156xbf16>
    %c0_7 = arith.constant 0 : index
    %c0_8 = arith.constant 0 : index
    %7 = vector.load %arg5[%c0_7, %c0_8] : memref<32x1156xbf16, #tpu.memory_space<vmem>>, vector<32x1156xbf16>
    tpu.vector_store %arg5[%c0_7, %c0_8], %6 {strides = array<i32>} : memref<32x1156xbf16, #tpu.memory_space<vmem>>, vector<32x1156xbf16>,
    return
  }
  func.func @transform_0(%arg0: i32) -> (i32, i32) {
    %c0_i32 = arith.constant 0 : i32
    %c0_i32_0 = arith.constant 0 : i32
    return %arg0, %c0_i32 : i32, i32
  }
  func.func @transform_1(%arg0: i32) -> (i32, i32) {
    %c0_i32 = arith.constant 0 : i32
    %c0_i32_0 = arith.constant 0 : i32
    return %arg0, %c0_i32 : i32, i32
  }
  func.func @transform_2(%arg0: i32) -> (i32, i32) {
    %c0_i32 = arith.constant 0 : i32
    %c0_i32_0 = arith.constant 0 : i32
    return %arg0, %c0_i32 : i32, i32
  }
  func.func @transform_3(%arg0: i32) -> (i32, i32) {
    %c0_i32 = arith.constant 0 : i32
    %c0_i32_0 = arith.constant 0 : i32
    return %arg0, %c0_i32 : i32, i32
  }
  func.func @transform_4(%arg0: i32) -> (i32, i32) {
    %c0_i32 = arith.constant 0 : i32
    %c0_i32_0 = arith.constant 0 : i32
    return %arg0, %c0_i32 : i32, i32
  }
}

module attributes {stable_mosaic.version = 11 : i64} {
  func.func @_conv_kernel(%arg0: i32, %arg1: memref<1x144x1024xbf16, #tpu.memory_space<vmem>>, %arg2: memref<32x144xbf16, #tpu.memory_space<vmem>>, %arg3: memref<32x1xf32, #tpu.memory_space<vmem>>, %arg4: memref<1x32x1024xbf16, #tpu.memory_space<vmem>>) attributes {dimension_semantics = [#tpu.dimension_semantics<parallel>], iteration_bounds = array<i64: 2>, scalar_prefetch = 0 : i64, scratch_operands = 0 : i64, tpu.core_type = #tpu.core_type<tc>, window_params = [{transform_indices = @transform_0, window_bounds = array<i64: 1, 144, 1024>}, {pipeline_mode = #tpu.pipeline_mode<synchronous>, transform_indices = @transform_1, window_bounds = array<i64: 32, 144>}, {pipeline_mode = #tpu.pipeline_mode<synchronous>, transform_indices = @transform_2, window_bounds = array<i64: 32, 1>}, {transform_indices = @transform_3, window_bounds = array<i64: 1, 32, 1024>}]} {
    %c0 = arith.constant 0 : index
    %c0_0 = arith.constant 0 : index
    %0 = vector.load %arg2[%c0, %c0_0] : memref<32x144xbf16, #tpu.memory_space<vmem>>, vector<32x144xbf16>
    %c0_1 = arith.constant 0 : index
    %c0_2 = arith.constant 0 : index
    %c0_3 = arith.constant 0 : index
    %1 = vector.load %arg1[%c0_1, %c0_2, %c0_3] : memref<1x144x1024xbf16, #tpu.memory_space<vmem>>, vector<1x144x1024xbf16>
    %2 = vector.shape_cast %1 : vector<1x144x1024xbf16> to vector<144x1024xbf16>
    %cst = arith.constant dense<0.000000e+00> : vector<32x1024xf32>
    %3 = tpu.matmul %0, %2, %cst {dimension_numbers = #tpu.dot_dimension_numbers<[1], [0], [0], [1], [0, 0, 1, 1], [], []>} : vector<32x144xbf16>, vector<144x1024xbf16>, vector<32x1024xf32> -> vector<32x1024xf32>
    %c0_4 = arith.constant 0 : index
    %c0_5 = arith.constant 0 : index
    %4 = vector.load %arg3[%c0_4, %c0_5] : memref<32x1xf32, #tpu.memory_space<vmem>>, vector<32x1xf32>
    %5 = vector.broadcast %4 : vector<32x1xf32> to vector<32x1024xf32>
    %6 = arith.addf %3, %5 : vector<32x1024xf32>
    %cst_6 = arith.constant 0.000000e+00 : f32
    %7 = vector.broadcast %cst_6 : f32 to vector<32x1024xf32>
    %8 = arith.maximumf %6, %7 : vector<32x1024xf32>
    %9 = arith.truncf %8 : vector<32x1024xf32> to vector<32x1024xbf16>
    %c0_7 = arith.constant 0 : index
    %c0_8 = arith.constant 0 : index
    %c0_9 = arith.constant 0 : index
    %10 = vector.load %arg4[%c0_7, %c0_8, %c0_9] : memref<1x32x1024xbf16, #tpu.memory_space<vmem>>, vector<1x32x1024xbf16>
    %11 = vector.shape_cast %10 : vector<1x32x1024xbf16> to vector<32x1024xbf16>
    %12 = vector.shape_cast %9 : vector<32x1024xbf16> to vector<1x32x1024xbf16>
    tpu.vector_store %arg4[%c0_7, %c0_8, %c0_9], %12 {strides = array<i32>} : memref<1x32x1024xbf16, #tpu.memory_space<vmem>>, vector<1x32x1024xbf16>,
    return
  }
  func.func @transform_0(%arg0: i32) -> (i32, i32, i32) {
    %c0_i32 = arith.constant 0 : i32
    %c0_i32_0 = arith.constant 0 : i32
    %c0_i32_1 = arith.constant 0 : i32
    return %arg0, %c0_i32, %c0_i32_0 : i32, i32, i32
  }
  func.func @transform_1(%arg0: i32) -> (i32, i32) {
    %c0_i32 = arith.constant 0 : i32
    %c0_i32_0 = arith.constant 0 : i32
    %c0_i32_1 = arith.constant 0 : i32
    return %c0_i32, %c0_i32_0 : i32, i32
  }
  func.func @transform_2(%arg0: i32) -> (i32, i32) {
    %c0_i32 = arith.constant 0 : i32
    %c0_i32_0 = arith.constant 0 : i32
    %c0_i32_1 = arith.constant 0 : i32
    return %c0_i32, %c0_i32_0 : i32, i32
  }
  func.func @transform_3(%arg0: i32) -> (i32, i32, i32) {
    %c0_i32 = arith.constant 0 : i32
    %c0_i32_0 = arith.constant 0 : i32
    %c0_i32_1 = arith.constant 0 : i32
    return %arg0, %c0_i32, %c0_i32_0 : i32, i32, i32
  }
}

module attributes {stable_mosaic.version = 11 : i64} {
  func.func @_max4_kernel(%arg0: i32, %arg1: memref<64x256xbf16, #tpu.memory_space<vmem>>, %arg2: memref<64x256xbf16, #tpu.memory_space<vmem>>, %arg3: memref<64x256xbf16, #tpu.memory_space<vmem>>, %arg4: memref<64x256xbf16, #tpu.memory_space<vmem>>, %arg5: memref<64x256xbf16, #tpu.memory_space<vmem>>) attributes {dimension_semantics = [#tpu.dimension_semantics<parallel>], iteration_bounds = array<i64: 1>, scalar_prefetch = 0 : i64, scratch_operands = 0 : i64, tpu.core_type = #tpu.core_type<tc>, window_params = [{transform_indices = @transform_0, window_bounds = array<i64: 64, 256>}, {transform_indices = @transform_1, window_bounds = array<i64: 64, 256>}, {transform_indices = @transform_2, window_bounds = array<i64: 64, 256>}, {transform_indices = @transform_3, window_bounds = array<i64: 64, 256>}, {transform_indices = @transform_4, window_bounds = array<i64: 64, 256>}]} {
    %c0 = arith.constant 0 : index
    %c0_0 = arith.constant 0 : index
    %0 = vector.load %arg1[%c0, %c0_0] : memref<64x256xbf16, #tpu.memory_space<vmem>>, vector<64x256xbf16>
    %c0_1 = arith.constant 0 : index
    %c0_2 = arith.constant 0 : index
    %1 = vector.load %arg2[%c0_1, %c0_2] : memref<64x256xbf16, #tpu.memory_space<vmem>>, vector<64x256xbf16>
    %2 = arith.maximumf %0, %1 : vector<64x256xbf16>
    %c0_3 = arith.constant 0 : index
    %c0_4 = arith.constant 0 : index
    %3 = vector.load %arg3[%c0_3, %c0_4] : memref<64x256xbf16, #tpu.memory_space<vmem>>, vector<64x256xbf16>
    %c0_5 = arith.constant 0 : index
    %c0_6 = arith.constant 0 : index
    %4 = vector.load %arg4[%c0_5, %c0_6] : memref<64x256xbf16, #tpu.memory_space<vmem>>, vector<64x256xbf16>
    %5 = arith.maximumf %3, %4 : vector<64x256xbf16>
    %6 = arith.maximumf %2, %5 : vector<64x256xbf16>
    %c0_7 = arith.constant 0 : index
    %c0_8 = arith.constant 0 : index
    %7 = vector.load %arg5[%c0_7, %c0_8] : memref<64x256xbf16, #tpu.memory_space<vmem>>, vector<64x256xbf16>
    tpu.vector_store %arg5[%c0_7, %c0_8], %6 {strides = array<i32>} : memref<64x256xbf16, #tpu.memory_space<vmem>>, vector<64x256xbf16>,
    return
  }
  func.func @transform_0(%arg0: i32) -> (i32, i32) {
    %c0_i32 = arith.constant 0 : i32
    %c0_i32_0 = arith.constant 0 : i32
    return %arg0, %c0_i32 : i32, i32
  }
  func.func @transform_1(%arg0: i32) -> (i32, i32) {
    %c0_i32 = arith.constant 0 : i32
    %c0_i32_0 = arith.constant 0 : i32
    return %arg0, %c0_i32 : i32, i32
  }
  func.func @transform_2(%arg0: i32) -> (i32, i32) {
    %c0_i32 = arith.constant 0 : i32
    %c0_i32_0 = arith.constant 0 : i32
    return %arg0, %c0_i32 : i32, i32
  }
  func.func @transform_3(%arg0: i32) -> (i32, i32) {
    %c0_i32 = arith.constant 0 : i32
    %c0_i32_0 = arith.constant 0 : i32
    return %arg0, %c0_i32 : i32, i32
  }
  func.func @transform_4(%arg0: i32) -> (i32, i32) {
    %c0_i32 = arith.constant 0 : i32
    %c0_i32_0 = arith.constant 0 : i32
    return %arg0, %c0_i32 : i32, i32
  }
}

module attributes {stable_mosaic.version = 11 : i64} {
  func.func @_dense_kernel(%arg0: i32, %arg1: i32, %arg2: memref<2x2048xbf16, #tpu.memory_space<vmem>>, %arg3: memref<2048x640xbf16, #tpu.memory_space<vmem>>, %arg4: memref<1x640xf32, #tpu.memory_space<vmem>>, %arg5: memref<2x640xf32, #tpu.memory_space<vmem>>) attributes {dimension_semantics = [#tpu.dimension_semantics<parallel>, #tpu.dimension_semantics<arbitrary>], iteration_bounds = array<i64: 1, 4>, scalar_prefetch = 0 : i64, scratch_operands = 0 : i64, tpu.core_type = #tpu.core_type<tc>, window_params = [{transform_indices = @transform_0, window_bounds = array<i64: 2, 2048>}, {transform_indices = @transform_1, window_bounds = array<i64: 2048, 640>}, {transform_indices = @transform_2, window_bounds = array<i64: 1, 640>}, {transform_indices = @transform_3, window_bounds = array<i64: 2, 640>}]} {
    %c0_i32 = arith.constant 0 : i32
    %0 = arith.cmpi eq, %arg1, %c0_i32 : i32
    %1 = arith.extui %0 : i1 to i32
    %c0_i32_0 = arith.constant 0 : i32
    %2 = arith.cmpi ne, %1, %c0_i32_0 : i32
    scf.if %2 {
      %cst_9 = arith.constant 0.000000e+00 : f32
      %12 = vector.broadcast %cst_9 : f32 to vector<2x640xf32>
      %c0_10 = arith.constant 0 : index
      %c0_11 = arith.constant 0 : index
      %13 = vector.load %arg5[%c0_10, %c0_11] : memref<2x640xf32, #tpu.memory_space<vmem>>, vector<2x640xf32>
      tpu.vector_store %arg5[%c0_10, %c0_11], %12 {strides = array<i32>} : memref<2x640xf32, #tpu.memory_space<vmem>>, vector<2x640xf32>,
    } else {
    }
    %c0 = arith.constant 0 : index
    %c0_1 = arith.constant 0 : index
    %3 = vector.load %arg5[%c0, %c0_1] : memref<2x640xf32, #tpu.memory_space<vmem>>, vector<2x640xf32>
    %c0_2 = arith.constant 0 : index
    %c0_3 = arith.constant 0 : index
    %4 = vector.load %arg2[%c0_2, %c0_3] : memref<2x2048xbf16, #tpu.memory_space<vmem>>, vector<2x2048xbf16>
    %c0_4 = arith.constant 0 : index
    %c0_5 = arith.constant 0 : index
    %5 = vector.load %arg3[%c0_4, %c0_5] : memref<2048x640xbf16, #tpu.memory_space<vmem>>, vector<2048x640xbf16>
    %cst = arith.constant dense<0.000000e+00> : vector<2x640xf32>
    %6 = tpu.matmul %4, %5, %cst {dimension_numbers = #tpu.dot_dimension_numbers<[1], [0], [0], [1], [0, 0, 1, 1], [], []>} : vector<2x2048xbf16>, vector<2048x640xbf16>, vector<2x640xf32> -> vector<2x640xf32>
    %7 = arith.addf %3, %6 : vector<2x640xf32>
    %c0_6 = arith.constant 0 : index
    %c0_7 = arith.constant 0 : index
    %8 = vector.load %arg5[%c0_6, %c0_7] : memref<2x640xf32, #tpu.memory_space<vmem>>, vector<2x640xf32>
    tpu.vector_store %arg5[%c0_6, %c0_7], %7 {strides = array<i32>} : memref<2x640xf32, #tpu.memory_space<vmem>>, vector<2x640xf32>,
    %c3_i32 = arith.constant 3 : i32
    %9 = arith.cmpi eq, %arg1, %c3_i32 : i32
    %10 = arith.extui %9 : i1 to i32
    %c0_i32_8 = arith.constant 0 : i32
    %11 = arith.cmpi ne, %10, %c0_i32_8 : i32
    scf.if %11 {
      %c0_9 = arith.constant 0 : index
      %c0_10 = arith.constant 0 : index
      %12 = vector.load %arg5[%c0_9, %c0_10] : memref<2x640xf32, #tpu.memory_space<vmem>>, vector<2x640xf32>
      %c0_11 = arith.constant 0 : index
      %c0_12 = arith.constant 0 : index
      %13 = vector.load %arg4[%c0_11, %c0_12] : memref<1x640xf32, #tpu.memory_space<vmem>>, vector<1x640xf32>
      %14 = vector.broadcast %13 : vector<1x640xf32> to vector<2x640xf32>
      %15 = arith.addf %12, %14 : vector<2x640xf32>
      %cst_13 = arith.constant 0.000000e+00 : f32
      %16 = vector.broadcast %cst_13 : f32 to vector<2x640xf32>
      %17 = arith.maximumf %15, %16 : vector<2x640xf32>
      %c0_14 = arith.constant 0 : index
      %c0_15 = arith.constant 0 : index
      %18 = vector.load %arg5[%c0_14, %c0_15] : memref<2x640xf32, #tpu.memory_space<vmem>>, vector<2x640xf32>
      tpu.vector_store %arg5[%c0_14, %c0_15], %17 {strides = array<i32>} : memref<2x640xf32, #tpu.memory_space<vmem>>, vector<2x640xf32>,
    } else {
    }
    return
  }
  func.func @transform_0(%arg0: i32, %arg1: i32) -> (i32, i32) {
    %c0_i32 = arith.constant 0 : i32
    %c0_i32_0 = arith.constant 0 : i32
    return %c0_i32, %arg1 : i32, i32
  }
  func.func @transform_1(%arg0: i32, %arg1: i32) -> (i32, i32) {
    %c0_i32 = arith.constant 0 : i32
    return %arg1, %arg0 : i32, i32
  }
  func.func @transform_2(%arg0: i32, %arg1: i32) -> (i32, i32) {
    %c0_i32 = arith.constant 0 : i32
    %c0_i32_0 = arith.constant 0 : i32
    return %c0_i32, %arg0 : i32, i32
  }
  func.func @transform_3(%arg0: i32, %arg1: i32) -> (i32, i32) {
    %c0_i32 = arith.constant 0 : i32
    %c0_i32_0 = arith.constant 0 : i32
    return %c0_i32, %arg0 : i32, i32
  }
}

module attributes {stable_mosaic.version = 11 : i64} {
  func.func @_dense_kernel(%arg0: i32, %arg1: i32, %arg2: memref<2x640xbf16, #tpu.memory_space<vmem>>, %arg3: memref<640x9xbf16, #tpu.memory_space<vmem>>, %arg4: memref<1x9xf32, #tpu.memory_space<vmem>>, %arg5: memref<2x9xf32, #tpu.memory_space<vmem>>) attributes {dimension_semantics = [#tpu.dimension_semantics<parallel>, #tpu.dimension_semantics<arbitrary>], iteration_bounds = array<i64: 1, 1>, scalar_prefetch = 0 : i64, scratch_operands = 0 : i64, tpu.core_type = #tpu.core_type<tc>, window_params = [{transform_indices = @transform_0, window_bounds = array<i64: 2, 640>}, {transform_indices = @transform_1, window_bounds = array<i64: 640, 9>}, {transform_indices = @transform_2, window_bounds = array<i64: 1, 9>}, {transform_indices = @transform_3, window_bounds = array<i64: 2, 9>}]} {
    %c0_i32 = arith.constant 0 : i32
    %0 = arith.cmpi eq, %arg1, %c0_i32 : i32
    %1 = arith.extui %0 : i1 to i32
    %c0_i32_0 = arith.constant 0 : i32
    %2 = arith.cmpi ne, %1, %c0_i32_0 : i32
    scf.if %2 {
      %cst_10 = arith.constant 0.000000e+00 : f32
      %12 = vector.broadcast %cst_10 : f32 to vector<2x9xf32>
      %c0_11 = arith.constant 0 : index
      %c0_12 = arith.constant 0 : index
      %13 = vector.load %arg5[%c0_11, %c0_12] : memref<2x9xf32, #tpu.memory_space<vmem>>, vector<2x9xf32>
      tpu.vector_store %arg5[%c0_11, %c0_12], %12 {strides = array<i32>} : memref<2x9xf32, #tpu.memory_space<vmem>>, vector<2x9xf32>,
    } else {
    }
    %c0 = arith.constant 0 : index
    %c0_1 = arith.constant 0 : index
    %3 = vector.load %arg5[%c0, %c0_1] : memref<2x9xf32, #tpu.memory_space<vmem>>, vector<2x9xf32>
    %c0_2 = arith.constant 0 : index
    %c0_3 = arith.constant 0 : index
    %4 = vector.load %arg2[%c0_2, %c0_3] : memref<2x640xbf16, #tpu.memory_space<vmem>>, vector<2x640xbf16>
    %c0_4 = arith.constant 0 : index
    %c0_5 = arith.constant 0 : index
    %5 = vector.load %arg3[%c0_4, %c0_5] : memref<640x9xbf16, #tpu.memory_space<vmem>>, vector<640x9xbf16>
    %cst = arith.constant dense<0.000000e+00> : vector<2x9xf32>
    %6 = tpu.matmul %4, %5, %cst {dimension_numbers = #tpu.dot_dimension_numbers<[1], [0], [0], [1], [0, 0, 1, 1], [], []>} : vector<2x640xbf16>, vector<640x9xbf16>, vector<2x9xf32> -> vector<2x9xf32>
    %7 = arith.addf %3, %6 : vector<2x9xf32>
    %c0_6 = arith.constant 0 : index
    %c0_7 = arith.constant 0 : index
    %8 = vector.load %arg5[%c0_6, %c0_7] : memref<2x9xf32, #tpu.memory_space<vmem>>, vector<2x9xf32>
    tpu.vector_store %arg5[%c0_6, %c0_7], %7 {strides = array<i32>} : memref<2x9xf32, #tpu.memory_space<vmem>>, vector<2x9xf32>,
    %c0_i32_8 = arith.constant 0 : i32
    %9 = arith.cmpi eq, %arg1, %c0_i32_8 : i32
    %10 = arith.extui %9 : i1 to i32
    %c0_i32_9 = arith.constant 0 : i32
    %11 = arith.cmpi ne, %10, %c0_i32_9 : i32
    scf.if %11 {
      %c0_10 = arith.constant 0 : index
      %c0_11 = arith.constant 0 : index
      %12 = vector.load %arg5[%c0_10, %c0_11] : memref<2x9xf32, #tpu.memory_space<vmem>>, vector<2x9xf32>
      %c0_12 = arith.constant 0 : index
      %c0_13 = arith.constant 0 : index
      %13 = vector.load %arg4[%c0_12, %c0_13] : memref<1x9xf32, #tpu.memory_space<vmem>>, vector<1x9xf32>
      %14 = vector.broadcast %13 : vector<1x9xf32> to vector<2x9xf32>
      %15 = arith.addf %12, %14 : vector<2x9xf32>
      %c0_14 = arith.constant 0 : index
      %c0_15 = arith.constant 0 : index
      %16 = vector.load %arg5[%c0_14, %c0_15] : memref<2x9xf32, #tpu.memory_space<vmem>>, vector<2x9xf32>
      tpu.vector_store %arg5[%c0_14, %c0_15], %15 {strides = array<i32>} : memref<2x9xf32, #tpu.memory_space<vmem>>, vector<2x9xf32>,
    } else {
    }
    return
  }
  func.func @transform_0(%arg0: i32, %arg1: i32) -> (i32, i32) {
    %c0_i32 = arith.constant 0 : i32
    %c0_i32_0 = arith.constant 0 : i32
    return %c0_i32, %arg1 : i32, i32
  }
  func.func @transform_1(%arg0: i32, %arg1: i32) -> (i32, i32) {
    %c0_i32 = arith.constant 0 : i32
    return %arg1, %arg0 : i32, i32
  }
  func.func @transform_2(%arg0: i32, %arg1: i32) -> (i32, i32) {
    %c0_i32 = arith.constant 0 : i32
    %c0_i32_0 = arith.constant 0 : i32
    return %c0_i32, %arg0 : i32, i32
  }
  func.func @transform_3(%arg0: i32, %arg1: i32) -> (i32, i32) {
    %c0_i32 = arith.constant 0 : i32
    %c0_i32_0 = arith.constant 0 : i32
    return %c0_i32, %arg0 : i32, i32
  }
}

</mosaic_0001>

<bundles_post_ra>
// kernel: layers2_forward.6
= control target key start
LH: loop header
LB: loop body
LE: loop exit
PB: predicated region body
PF: predicated region fallthrough
CT: control target
= control target key end

     0   :  { %s5448_s12 = smov 0   ;;  %s6533_s0 = inlined_call_operand.vmem [shape: bf16[2,147,4624], index: 0, kind: input, shape index: {}]   ;;  %s6534_s1 = inlined_call_operand.vmem [shape: bf16[16,147], index: 1, kind: input, shape index: {}]   ;;  %s6535_s2 = inlined_call_operand.vmem [shape: f32[16,1], index: 2, kind: input, shape index: {}]   ;;  %s6536_s3 = inlined_call_operand.vmem [shape: bf16[2,16,4624], index: 3, kind: output, shape index: {}]  }
   0x1 LB: > { %s3684_s13 = sadd.s32 4294967295, %s5424_s12   ;;  %p3688_p0 = scmp.ge.s32.totalorder %s5424_s12, 1  ;;  %s5424_s12 = sphi %s5448_s12, %s13_s12  }
   0x2   : > { %p137_p1 = scmp.lt.s32.totalorder %s5424_s12, 3 }
   0x4   : > { %p138_p2 = pnand %p3688_p0, %p137_p1 }
   0x5   : > { %p161_p3 = scmp.lt.s32.totalorder (!%p138_p2), %s3684_s13, 1 }
   0x6   : > { %141 = sbr.rel (%p138_p2) target bundleno = 552 (0x228), region = 32 }
   0xb   : > { %s6538_s13 = smov (!%p161_p3, %s3684_s13), 1  ;;  %vm2327_vm0 = vcmask 1040384   ;;  %vm2328_vm1 = vcmask 1041408   ;;  %v5426_v0 = vmov 65535   ;;  %v5070_v38 = vld [vmem:[%s6534_s1 + $0x4] sm:$0xf] }
   0xc   : > { %s5405_s14 = smul.u32 2812, %s6538_s13  ;;  %v2329_v1 = vsel %vm2327_vm0, 4294967295, %v5426_v0  ;;  %v3695_v44 = vld [vmem:[%s6534_s1 + $0x8] sm:$0xf0]  ;;  %vm2323_vm2 = vcmask 154624   ;;  %vm3608_vm3 = vcmask 125952  }
   0xd   : > { %v5474_v15 = vsel %vm2328_vm1, %v2329_v1, 0  ;;  %v5508_v54 = vor.u32 %v5070_v38, %v3695_v44  ;;  %v5071_v44 = vld [vmem:[%s6534_s1 + $0x4] sm:$0xf0]  ;;  %s5406_s30 = smul.u32 296, %s6538_s13 }
   0xe   : > { %s5462_s17 = scalar_lea.vmem %s6533_s0, %s5405_s14 }
   0xf   : > { %v4737_v2 = vld [vmem:[%s5462_s17 + $0x818] sm:$0xf]  ;;  %v5349_v3 = vld [vmem:[%s5462_s17 + $0x8a8] sm:$0xf0]  ;;  %v5331_v4 = vld [vmem:[%s5462_s17 + $0x81c] sm:$0xf]  ;;  %s5985_s6 = scalar_lea.vmem %s6536_s3, %s5406_s30 }
  0x10   : > { %v4738_v5 = vor.u32 %v5349_v3, %v4737_v2  ;;  %v4739_v6 = vld [vmem:[%s5462_s17 + $0x8ac] sm:$0xf0]  ;;  %v5312_v8 = vld [vmem:[%s5462_s17 + $0x780] sm:$0xf0]  ;;  %v516_v10 = vld [vmem:[%s5462_s17 + $0xa68] sm:$0x33] }
  0x11   : > { %v4589_v7 = vld [vmem:[%s5462_s17 + $0x6f0] sm:$0xf]  ;;  %v4742_v9 = vor.u32 %v5331_v4, %v4739_v6  ;;  %v5294_v11 = vld [vmem:[%s5462_s17 + $0x6f4] sm:$0xf]  ;;  %v4591_v12 = vld [vmem:[%s5462_s17 + $0x784] sm:$0xf0]  ;;  %v1583_v14 = vunpack.c.l.b16 %v516_v10  ;;  %v1584_v16 = vunpack.c.h.b16 %v516_v10 }
  0x12   : > { %2442 = vmatpush.bf16.msra.mxu0 %v4738_v5  ;;  %v4590_v13 = vor.u32 %v5312_v8, %v4589_v7  ;;  %v4594_v17 = vor.u32 %v5294_v11, %v4591_v12  ;;  %v4441_v18 = vld [vmem:[%s5462_s17 + $0x5c8] sm:$0xf]  ;;  %v5275_v19 = vld [vmem:[%s5462_s17 + $0x658] sm:$0xf0]  ;;  %v4885_v20 = vld [vmem:[%s5462_s17 + $0x940] sm:$0xf] }
  0x13   : > { %2470 = vmatpush.bf16.msra.mxu2 %v4742_v9  ;;  %v1953_v21 = vpack.c.b16 %v1583_v14, %v1583_v14  ;;  %v1954_v22 = vpack.c.b16 %v1584_v16, %v1584_v16  ;;  %v5386_v23 = vld [vmem:[%s5462_s17 + $0x9d0] sm:$0xf0]  ;;  %v5257_v24 = vld [vmem:[%s5462_s17 + $0x5cc] sm:$0xf]  ;;  %v4443_v25 = vld [vmem:[%s5462_s17 + $0x65c] sm:$0xf0]  ;;  %v4442_v31 = vor.u32 %v5275_v19, %v4441_v18 }
  0x14   : > { %v5368_v26 = vld [vmem:[%s5462_s17 + $0x944] sm:$0xf]  ;;  %v4887_v27 = vld [vmem:[%s5462_s17 + $0x9d4] sm:$0xf0]  ;;  %v5485_v28 = vld [vmem:[%s5462_s17 + $0xa70] sm:$0x33]  ;;  %v4446_v35 = vor.u32 %v5257_v24, %v4443_v25  ;;  %v4886_v39 = vor.u32 %v5386_v23, %v4885_v20 }
  0x15   : > { %v2332_v29 = vand.u32 %v5474_v15, %v1953_v21  ;;  %v2335_v30 = vand.u32 %v5474_v15, %v1954_v22  ;;  %v4745_v32 = vld [vmem:[%s5462_s17 + $0x820] sm:$0xf]  ;;  %v5350_v33 = vld [vmem:[%s5462_s17 + $0x8b0] sm:$0xf0]  ;;  %v1585_v34 = vunpack.c.l.b16 %v5485_v28  ;;  %v4890_v40 = vor.u32 %v5368_v26, %v4887_v27  ;;  %v5220_v42 = vld [vmem:[%s5462_s17 + $0x4a4] sm:$0xf] }
  0x16   : > { %2443 = vmatpush.bf16.msra.mxu0 %v4590_v13  ;;  %v4293_v36 = vld [vmem:[%s5462_s17 + $0x4a0] sm:$0xf]  ;;  %v5238_v37 = vld [vmem:[%s5462_s17 + $0x530] sm:$0xf0]  ;;  %v4295_v43 = vld [vmem:[%s5462_s17 + $0x534] sm:$0xf0]  ;;  %v4746_v45 = vor.u32 %v5350_v33, %v4745_v32  ;;  %v1586_v22 = vunpack.c.h.b16 %v5485_v28 }
  0x17   : > { %2471 = vmatpush.bf16.msra.mxu2 %v4594_v17  ;;  %2462 = vmatpush.bf16.msra.mxu1 %v2332_v29  ;;  %v1955_v41 = vpack.c.b16 %v1585_v34, %v1585_v34  ;;  %v4597_v46 = vld [vmem:[%s5462_s17 + $0x6f8] sm:$0xf]  ;;  %v5313_v47 = vld [vmem:[%s5462_s17 + $0x788] sm:$0xf0]  ;;  %v4294_v49 = vor.u32 %v5238_v37, %v4293_v36  ;;  %v4893_v50 = vld [vmem:[%s5462_s17 + $0x948] sm:$0xf]  ;;  %v4298_v53 = vor.u32 %v5220_v42, %v4295_v43 }
  0x18   : > { %2490 = vmatpush.bf16.msra.mxu3 %v2335_v30  ;;  %v5387_v51 = vld [vmem:[%s5462_s17 + $0x9d8] sm:$0xf0]  ;;  %v5332_v52 = vld [vmem:[%s5462_s17 + $0x824] sm:$0xf]  ;;  %v4747_v55 = vld [vmem:[%s5462_s17 + $0x8b4] sm:$0xf0]  ;;  %v4598_v60 = vor.u32 %v5313_v47, %v4597_v46 }
  0x19   : > { %v2338_v48 = vand.u32 %v5474_v15, %v1955_v41  ;;  %v4145_v56 = vld [vmem:[%s5462_s17 + $0x378] sm:$0xf]  ;;  %v5201_v57 = vld [vmem:[%s5462_s17 + $0x408] sm:$0xf0]  ;;  %v5183_v58 = vld [vmem:[%s5462_s17 + $0x37c] sm:$0xf]  ;;  %v4894_v61 = vor.u32 %v5387_v51, %v4893_v50  ;;  %v4750_v62 = vor.u32 %v5332_v52, %v4747_v55 }
  0x1a   : > { %2444 = vmatpush.bf16.msra.mxu0 %v4442_v31  ;;  %v4147_v59 = vld [vmem:[%s5462_s17 + $0x40c] sm:$0xf0]  ;;  %v4146_v63 = vor.u32 %v5201_v57, %v4145_v56  ;;  %v5276_v1 = vld [vmem:[%s5462_s17 + $0x660] sm:$0xf0]  ;;  %v5295_v2 = vld [vmem:[%s5462_s17 + $0x6fc] sm:$0xf] }
  0x1b   : > { %2472 = vmatpush.bf16.msra.mxu2 %v4446_v35  ;;  %2463 = vmatpush.bf16.msra.mxu1 %v4886_v39  ;;  %v4449_v0 = vld [vmem:[%s5462_s17 + $0x5d0] sm:$0xf]  ;;  %v4150_v3 = vor.u32 %v5183_v58, %v4147_v59  ;;  %v5164_v6 = vld [vmem:[%s5462_s17 + $0x2e0] sm:$0xf0]  ;;  %v5146_v7 = vld [vmem:[%s5462_s17 + $0x254] sm:$0xf]  ;;  %v1956_v35 = vpack.c.b16 %v1586_v22, %v1586_v22 }
  0x1c   : > { %2491 = vmatpush.bf16.msra.mxu3 %v4890_v40  ;;  %v4599_v4 = vld [vmem:[%s5462_s17 + $0x78c] sm:$0xf0]  ;;  %v3999_v8 = vld [vmem:[%s5462_s17 + $0x2e4] sm:$0xf0]  ;;  %v4450_v9 = vor.u32 %v5276_v1, %v4449_v0  ;;  %v5239_v13 = vld [vmem:[%s5462_s17 + $0x538] sm:$0xf0] }
  0x1d   : > { %v3997_v5 = vld [vmem:[%s5462_s17 + $0x250] sm:$0xf]  ;;  %v4602_v10 = vor.u32 %v5295_v2, %v4599_v4  ;;  %v4301_v12 = vld [vmem:[%s5462_s17 + $0x4a8] sm:$0xf]  ;;  %v5258_v14 = vld [vmem:[%s5462_s17 + $0x5d4] sm:$0xf]  ;;  %v4002_v16 = vor.u32 %v5146_v7, %v3999_v8  ;;  %v2341_v50 = vand.u32 %v5474_v15, %v1956_v35 }
  0x1e   : > { %2445 = vmatpush.bf16.msra.mxu0 %v4294_v49  ;;  %5031 = vmatmul.msk.bf16.vlgmr.msra.gmra.mxu1 %vm2323_vm2, %v5508_v54  ;;  %v3998_v11 = vor.u32 %v5164_v6, %v3997_v5  ;;  %v4451_v17 = vld [vmem:[%s5462_s17 + $0x664] sm:$0xf0]  ;;  %v5127_v19 = vld [vmem:[%s5462_s17 + $0x1b8] sm:$0xf0]  ;;  %v5109_v20 = vld [vmem:[%s5462_s17 + $0x12c] sm:$0xf]  ;;  %v4302_v23 = vor.u32 %v5239_v13, %v4301_v12 }
  0x1f   : > { %2498 = vmatpush.bf16.msrb.mxu1 %v4746_v45  ;;  %2473 = vmatpush.bf16.msra.mxu2 %v4298_v53  ;;  %v3849_v18 = vld [vmem:[%s5462_s17 + $0x128] sm:$0xf]  ;;  %v3851_v21 = vld [vmem:[%s5462_s17 + $0x1bc] sm:$0xf0]  ;;  %v4454_v24 = vor.u32 %v5258_v14, %v4451_v17  ;;  %v5202_v27 = vld [vmem:[%s5462_s17 + $0x410] sm:$0xf0] }
  0x20   : > { %2518 = vmatpush.bf16.msrb.mxu3 %v2338_v48  ;;  %v3850_v25 = vor.u32 %v5127_v19, %v3849_v18  ;;  %v4153_v26 = vld [vmem:[%s5462_s17 + $0x380] sm:$0xf]  ;;  %v5221_v29 = vld [vmem:[%s5462_s17 + $0x4ac] sm:$0xf]  ;;  %v3854_v30 = vor.u32 %v5109_v20, %v3851_v21  ;;  %v5090_v33 = vld [vmem:[%s5462_s17 + $0x90] sm:$0xf0] }
  0x21   : > { %5032 = vmatmul.msk.bf16.vlgmr.msra.gmra.mxu3 %vm2323_vm2, %v5508_v54  ;;  %v4303_v31 = vld [vmem:[%s5462_s17 + $0x53c] sm:$0xf0]  ;;  %v5072_v28 = vld [vmem:[%s5462_s17 + $0x4] sm:$0xf]  ;;  %v3703_v34 = vld [vmem:[%s5462_s17 + $0x94] sm:$0xf0]  ;;  %v4154_v36 = vor.u32 %v5202_v27, %v4153_v26 }
  0x22   : > { %2446 = vmatpush.bf16.msra.mxu0 %v4146_v63  ;;  %v3701_v32 = vld [vmem:[%s5462_s17] sm:$0xf]  ;;  %v4005_v37 = vld [vmem:[%s5462_s17 + $0x258] sm:$0xf]  ;;  %v4753_v38 = vld [vmem:[%s5462_s17 + $0x828] sm:$0xf]  ;;  %v4306_v40 = vor.u32 %v5221_v29, %v4303_v31  ;;  %v3706_v45 = vor.u32 %v5072_v28, %v3703_v34 }
  0x23   : > { %2499 = vmatpush.bf16.msrb.mxu1 %v4598_v60  ;;  %2474 = vmatpush.bf16.msra.mxu2 %v4150_v3  ;;  %v5351_v39 = vld [vmem:[%s5462_s17 + $0x8b8] sm:$0xf0]  ;;  %v3702_v41 = vor.u32 %v5090_v33, %v3701_v32  ;;  %v5165_v42 = vld [vmem:[%s5462_s17 + $0x2e8] sm:$0xf0]  ;;  %v3693_v43 = vld [vmem:[%s6534_s1] sm:$0xf] }
  0x24   : > { %2519 = vmatpush.bf16.msrb.mxu3 %v4894_v61  ;;  %v5184_v46 = vld [vmem:[%s5462_s17 + $0x384] sm:$0xf]  ;;  %v4155_v47 = vld [vmem:[%s5462_s17 + $0x414] sm:$0xf0]  ;;  %v4754_v49 = vor.u32 %v5351_v39, %v4753_v38  ;;  %v3857_v51 = vld [vmem:[%s5462_s17 + $0x130] sm:$0xf]  ;;  %v4006_v56 = vor.u32 %v5165_v42, %v4005_v37  ;;  %v5563_v57 = vor.u32 %v5071_v44, %v3693_v43 }
  0x25   : > { %v535_v48 = vld [vmem:[%s6535_s2] sm:$0xff]  ;;  %v5427_v55 = vmov 0   ;;  %v5314_v58 = vld [vmem:[%s5462_s17 + $0x790] sm:$0xf0]  ;;  %v5369_v59 = vld [vmem:[%s5462_s17 + $0x94c] sm:$0xf]  ;;  %v4158_v61 = vor.u32 %v5184_v46, %v4155_v47 }
  0x26   : > { %2447 = vmatpush.bf16.msra.mxu0 %v3998_v11  ;;  %v5128_v52 = vld [vmem:[%s5462_s17 + $0x1c0] sm:$0xf0]  ;;  %v4605_v53 = vld [vmem:[%s5462_s17 + $0x700] sm:$0xf]  ;;  %5417 = vset.pattern.permute.xlu0 %v5427_v55  ;;  %v518_v0 = vld [vmem:[%s5462_s17 + $0xa78] sm:$0x33] }
  0x27   : > { %2500 = vmatpush.bf16.msrb.mxu1 %v4450_v9  ;;  %2475 = vmatpush.bf16.msra.mxu2 %v4002_v16  ;;  %v4895_v60 = vld [vmem:[%s5462_s17 + $0x9dc] sm:$0xf0]  ;;  %v5147_v1 = vld [vmem:[%s5462_s17 + $0x25c] sm:$0xf]  ;;  %v4007_v2 = vld [vmem:[%s5462_s17 + $0x2ec] sm:$0xf0]  ;;  %v1587_v3 = vunpack.c.l.b16 %v518_v0  ;;  %v4606_v4 = vor.u32 %v5314_v58, %v4605_v53  ;;  %v3858_v6 = vor.u32 %v5128_v52, %v3857_v51  ;;  %v1588_v20 = vunpack.c.h.b16 %v518_v0 }
  0x28   : > { %2526 = vmatpush.bf16.msra.mxu3 %v4750_v62  ;;  %539 = vperm.xlu0 %5417, %v535_v48   ;;  %v5333_v62 = vld [vmem:[%s5462_s17 + $0x82c] sm:$0xf]  ;;  %v4755_v63 = vld [vmem:[%s5462_s17 + $0x8bc] sm:$0xf0]  ;;  %v4898_v5 = vor.u32 %v5369_v59, %v4895_v60  ;;  %v3709_v8 = vld [vmem:[%s5462_s17 + $0x8] sm:$0xf]  ;;  %v4010_v11 = vor.u32 %v5147_v1, %v4007_v2 }
  0x29   : > { %v4758_v7 = vor.u32 %v5333_v62, %v4755_v63  ;;  %v4457_v9 = vld [vmem:[%s5462_s17 + $0x5d8] sm:$0xf]  ;;  %v5091_v12 = vld [vmem:[%s5462_s17 + $0x98] sm:$0xf0]  ;;  %v5296_v13 = vld [vmem:[%s5462_s17 + $0x704] sm:$0xf]  ;;  %v1957_v16 = vpack.c.b16 %v1587_v3, %v1587_v3  ;;  %v1958_v34 = vpack.c.b16 %v1588_v20, %v1588_v20 }
  0x2a   : > { %2448 = vmatpush.bf16.msra.mxu0 %v3850_v25  ;;  %v4607_v14 = vld [vmem:[%s5462_s17 + $0x794] sm:$0xf0]  ;;  %v5110_v17 = vld [vmem:[%s5462_s17 + $0x134] sm:$0xf]  ;;  %v3859_v18 = vld [vmem:[%s5462_s17 + $0x1c4] sm:$0xf0]  ;;  %v3710_v22 = vor.u32 %v5091_v12, %v3709_v8 }
  0x2b   : > { %2501 = vmatpush.bf16.msrb.mxu1 %v4302_v23  ;;  %2476 = vmatpush.bf16.msra.mxu2 %v3854_v30  ;;  %v536_v19 = vld [vmem:[%s6535_s2 + $0x8] sm:$0xff]  ;;  %v4610_v23 = vor.u32 %v5296_v13, %v4607_v14  ;;  %v5240_v25 = vld [vmem:[%s5462_s17 + $0x540] sm:$0xf0]  ;;  %v3862_v26 = vor.u32 %v5110_v17, %v3859_v18  ;;  %v5259_v29 = vld [vmem:[%s5462_s17 + $0x5dc] sm:$0xf]  ;;  %v2344_v31 = vand.u32 %v5474_v15, %v1957_v16 }
  0x2c   : > { %2527 = vmatpush.bf16.msra.mxu3 %v4602_v10  ;;  %v5277_v10 = vld [vmem:[%s5462_s17 + $0x668] sm:$0xf0]  ;;  %v4459_v30 = vld [vmem:[%s5462_s17 + $0x66c] sm:$0xf0]  ;;  %v3711_v32 = vld [vmem:[%s5462_s17 + $0x9c] sm:$0xf0]  ;;  %v2347_v47 = vand.u32 %v5474_v15, %v1958_v34 }
  0x2d   : > { %v4458_v21 = vor.u32 %v5277_v10, %v4457_v9  ;;  %v5073_v27 = vld [vmem:[%s5462_s17 + $0xc] sm:$0xf]  ;;  %v4901_v33 = vld [vmem:[%s5462_s17 + $0x950] sm:$0xf]  ;;  %v5388_v28 = vld [vmem:[%s5462_s17 + $0x9e0] sm:$0xf0]  ;;  %v4462_v38 = vor.u32 %v5259_v29, %v4459_v30 }
  0x2e   : > { %2449 = vmatpush.bf16.msra.mxu0 %v3702_v41  ;;  %v5352_v37 = vld [vmem:[%s5462_s17 + $0x8c0] sm:$0xf0]  ;;  %v4161_v39 = vld [vmem:[%s5462_s17 + $0x388] sm:$0xf]  ;;  %v3714_v41 = vor.u32 %v5073_v27, %v3711_v32  ;;  %v5222_v42 = vld [vmem:[%s5462_s17 + $0x4b4] sm:$0xf]  ;;  %v4902_v44 = vor.u32 %v5388_v28, %v4901_v33 }
  0x2f   : > { %2502 = vmatpush.bf16.msrb.mxu1 %v4154_v36  ;;  %2477 = vmatpush.bf16.msra.mxu2 %v3706_v45  ;;  %v4761_v36 = vld [vmem:[%s5462_s17 + $0x830] sm:$0xf]  ;;  %v4311_v43 = vld [vmem:[%s5462_s17 + $0x544] sm:$0xf0]  ;;  %v4013_v53 = vld [vmem:[%s5462_s17 + $0x260] sm:$0xf] }
  0x30   : > { %2528 = vmatpush.bf16.msra.mxu3 %v4454_v24  ;;  %v4309_v24 = vld [vmem:[%s5462_s17 + $0x4b0] sm:$0xf]  ;;  %544 = vperm.xlu0 %5417, %v536_v19   ;;  %v4762_v45 = vor.u32 %v5352_v37, %v4761_v36  ;;  %v4613_v46 = vld [vmem:[%s5462_s17 + $0x708] sm:$0xf]  ;;  %v4314_v52 = vor.u32 %v5222_v42, %v4311_v43  ;;  %v5166_v55 = vld [vmem:[%s5462_s17 + $0x2f0] sm:$0xf0] }
  0x31   : > { %5033 = vmatmul.msk.bf16.vlgmr.msrb.gmra.mxu3 %vm2323_vm2, %v5508_v54  ;;  %2450 = vmatmul.bf16.vlgmr.msra.gmra.mxu0 %v5563_v57  ;;  %v4310_v35 = vor.u32 %v5240_v25, %v4309_v24  ;;  %v4903_v51 = vld [vmem:[%s5462_s17 + $0x9e4] sm:$0xf0]  ;;  %v4163_v58 = vld [vmem:[%s5462_s17 + $0x41c] sm:$0xf0]  ;;  %v4014_v62 = vor.u32 %v5166_v55, %v4013_v53  ;;  %v5278_v0 = vld [vmem:[%s5462_s17 + $0x670] sm:$0xf0] }
  0x32   : > { %2546 = vmatpush.bf16.msrb.mxu0 %v2341_v50  ;;  %2478 = vmatmul.bf16.vlgmr.msra.gmra.mxu2 %v5563_v57  ;;  %v5370_v50 = vld [vmem:[%s5462_s17 + $0x954] sm:$0xf]  ;;  %v519_v59 = vld [vmem:[%s5462_s17 + $0xa80] sm:$0x33]  ;;  %v3865_v2 = vld [vmem:[%s5462_s17 + $0x138] sm:$0xf] }
  0x33   : > { %2554 = vmatpush.bf16.msrb.mxu2 %v4754_v49  ;;  %2503 = vmatpush.bf16.msrb.mxu1 %v4006_v56  ;;  %v5315_v49 = vld [vmem:[%s5462_s17 + $0x798] sm:$0xf0]  ;;  %v5185_v56 = vld [vmem:[%s5462_s17 + $0x38c] sm:$0xf]  ;;  %v4465_v63 = vld [vmem:[%s5462_s17 + $0x5e0] sm:$0xf] }
  0x34   : > { %2529 = vmatpush.bf16.msra.mxu3 %v4306_v40  ;;  %v5203_v40 = vld [vmem:[%s5462_s17 + $0x418] sm:$0xf0]  ;;  %v4614_v60 = vor.u32 %v5315_v49, %v4613_v46  ;;  %v4166_v1 = vor.u32 %v5185_v56, %v4163_v58  ;;  %v5129_v3 = vld [vmem:[%s5462_s17 + $0x1c8] sm:$0xf0]  ;;  %v4317_v9 = vld [vmem:[%s5462_s17 + $0x4b8] sm:$0xf] }
  0x35   : > { %v4162_v48 = vor.u32 %v5203_v40, %v4161_v39  ;;  %v3866_v8 = vor.u32 %v5129_v3, %v3865_v2  ;;  %v5241_v10 = vld [vmem:[%s5462_s17 + $0x548] sm:$0xf0]  ;;  %v3717_v12 = vld [vmem:[%s5462_s17 + $0x10] sm:$0xf]  ;;  %v5092_v13 = vld [vmem:[%s5462_s17 + $0xa0] sm:$0xf0] }
  0x36   : > { %2547 = vmatpush.bf16.msrb.mxu0 %v4898_v5  ;;  %v5148_v5 = vld [vmem:[%s5462_s17 + $0x264] sm:$0xf]  ;;  %v5334_v16 = vld [vmem:[%s5462_s17 + $0x834] sm:$0xf]  ;;  %v4763_v17 = vld [vmem:[%s5462_s17 + $0x8c4] sm:$0xf0]  ;;  %v4318_v18 = vor.u32 %v5241_v10, %v4317_v9 }
  0x37   : > { %2555 = vmatpush.bf16.msrb.mxu2 %v4606_v4  ;;  %2504 = vmatpush.bf16.msrb.mxu1 %v3858_v6  ;;  %v1589_v4 = vunpack.c.l.b16 %v519_v59  ;;  %v4015_v6 = vld [vmem:[%s5462_s17 + $0x2f4] sm:$0xf0]  ;;  %v5111_v19 = vld [vmem:[%s5462_s17 + $0x13c] sm:$0xf]  ;;  %v3867_v20 = vld [vmem:[%s5462_s17 + $0x1cc] sm:$0xf0]  ;;  %v4766_v25 = vor.u32 %v5334_v16, %v4763_v17 }
  0x38   : > { %2530 = vmatpush.bf16.msra.mxu3 %v4158_v61  ;;  %v4906_v61 = vor.u32 %v5370_v50, %v4903_v51  ;;  %v5204_v24 = vld [vmem:[%s5462_s17 + $0x420] sm:$0xf0]  ;;  %v5297_v27 = vld [vmem:[%s5462_s17 + $0x70c] sm:$0xf]  ;;  %v4615_v29 = vld [vmem:[%s5462_s17 + $0x79c] sm:$0xf0]  ;;  %v3870_v30 = vor.u32 %v5111_v19, %v3867_v20 }
  0x39   : > { %v1959_v14 = vpack.c.b16 %v1589_v4, %v1589_v4  ;;  %v5389_v32 = vld [vmem:[%s5462_s17 + $0x9e8] sm:$0xf0]  ;;  %v4769_v33 = vld [vmem:[%s5462_s17 + $0x838] sm:$0xf]  ;;  %v3719_v36 = vld [vmem:[%s5462_s17 + $0xa4] sm:$0xf0]  ;;  %v4618_v40 = vor.u32 %v5297_v27, %v4615_v29 }
  0x3a   : > { %2582 = vmatpush.bf16.msra.mxu0 %v4758_v7  ;;  %v4466_v7 = vor.u32 %v5278_v0, %v4465_v63  ;;  %v5353_v34 = vld [vmem:[%s5462_s17 + $0x8c8] sm:$0xf0]  ;;  %v5167_v39 = vld [vmem:[%s5462_s17 + $0x2f8] sm:$0xf0]  ;;  %v4467_v46 = vld [vmem:[%s5462_s17 + $0x674] sm:$0xf0] }
  0x3b   : > { %2556 = vmatpush.bf16.msrb.mxu2 %v4458_v21  ;;  %2505 = vmatpush.bf16.msrb.mxu1 %v3710_v22  ;;  %v1590_v21 = vunpack.c.h.b16 %v519_v59  ;;  %v3718_v22 = vor.u32 %v5092_v13, %v3717_v12  ;;  %v5647_v42 = vld [vmem:[%s5462_s17 + $0xa88] sm:$0x33]  ;;  %v4770_v43 = vor.u32 %v5353_v34, %v4769_v33  ;;  %v3873_v49 = vld [vmem:[%s5462_s17 + $0x140] sm:$0xf]  ;;  %v4621_v50 = vld [vmem:[%s5462_s17 + $0x710] sm:$0xf] }
  0x3c   : > { %2531 = vmatpush.bf16.msra.mxu3 %v4010_v11  ;;  %v4018_v11 = vor.u32 %v5148_v5, %v4015_v6  ;;  %v5316_v51 = vld [vmem:[%s5462_s17 + $0x7a0] sm:$0xf0]  ;;  %v5371_v53 = vld [vmem:[%s5462_s17 + $0x95c] sm:$0xf]  ;;  %v4911_v55 = vld [vmem:[%s5462_s17 + $0x9ec] sm:$0xf0]  ;;  %v1591_v56 = vunpack.c.l.b16 %v5647_v42 }
  0x3d   : > { %v1960_v37 = vpack.c.b16 %v1590_v21, %v1590_v21  ;;  %v5335_v59 = vld [vmem:[%s5462_s17 + $0x83c] sm:$0xf]  ;;  %v4319_v63 = vld [vmem:[%s5462_s17 + $0x54c] sm:$0xf0]  ;;  %v4473_v2 = vld [vmem:[%s5462_s17 + $0x5e8] sm:$0xf] }
  0x3e   : > { %2583 = vmatpush.bf16.msra.mxu0 %v4610_v23  ;;  %2506 = vmatmul.bf16.vlgmr.msrb.gmra.mxu1 %v5563_v57  ;;  %v4169_v23 = vld [vmem:[%s5462_s17 + $0x390] sm:$0xf]  ;;  %v5279_v3 = vld [vmem:[%s5462_s17 + $0x678] sm:$0xf0]  ;;  %v3725_v5 = vld [vmem:[%s5462_s17 + $0x18] sm:$0xf] }
  0x3f   : > { %2574 = vmatpush.bf16.msra.mxu1 %v2344_v31  ;;  %2557 = vmatpush.bf16.msrb.mxu2 %v4310_v35  ;;  %v4909_v31 = vld [vmem:[%s5462_s17 + $0x958] sm:$0xf]  ;;  %v4170_v28 = vor.u32 %v5204_v24, %v4169_v23  ;;  %v5074_v35 = vld [vmem:[%s5462_s17 + $0x14] sm:$0xf]  ;;  %v5093_v6 = vld [vmem:[%s5462_s17 + $0xa8] sm:$0xf0]  ;;  %v4474_v10 = vor.u32 %v5279_v3, %v4473_v2 }
  0x40   : > { %2532 = vmatpush.bf16.msra.mxu3 %v3862_v26  ;;  %v2350_v26 = vand.u32 %v5474_v15, %v1959_v14  ;;  %v5186_v9 = vld [vmem:[%s5462_s17 + $0x394] sm:$0xf]  ;;  %v4623_v13 = vld [vmem:[%s5462_s17 + $0x7a4] sm:$0xf0]  ;;  %v3726_v14 = vor.u32 %v5093_v6, %v3725_v5  ;;  %v4325_v16 = vld [vmem:[%s5462_s17 + $0x4c0] sm:$0xf] }
  0x41   : > { %5034 = vmatmul.msk.bf16.vlgmr.msrb.gmra.mxu0 %vm2323_vm2, %v5508_v54  ;;  %v5298_v12 = vld [vmem:[%s5462_s17 + $0x714] sm:$0xf]  ;;  %v5149_v19 = vld [vmem:[%s5462_s17 + $0x26c] sm:$0xf]  ;;  %v4917_v23 = vld [vmem:[%s5462_s17 + $0x960] sm:$0xf] }
  0x42   : > { %2584 = vmatpush.bf16.msra.mxu0 %v4462_v38  ;;  %v4021_v38 = vld [vmem:[%s5462_s17 + $0x268] sm:$0xf]  ;;  %v5242_v17 = vld [vmem:[%s5462_s17 + $0x550] sm:$0xf0]  ;;  %v4626_v21 = vor.u32 %v5298_v12, %v4623_v13  ;;  %v5261_v29 = vld [vmem:[%s5462_s17 + $0x5ec] sm:$0xf] }
  0x43   : > { %2575 = vmatpush.bf16.msra.mxu1 %v4902_v44  ;;  %2558 = vmatpush.bf16.msrb.mxu2 %v4162_v48  ;;  %v3722_v44 = vor.u32 %v5074_v35, %v3719_v36  ;;  %v2353_v48 = vand.u32 %v5474_v15, %v1960_v37  ;;  %v5390_v24 = vld [vmem:[%s5462_s17 + $0x9f0] sm:$0xf0]  ;;  %v5112_v35 = vld [vmem:[%s5462_s17 + $0x144] sm:$0xf]  ;;  %v3875_v36 = vld [vmem:[%s5462_s17 + $0x1d4] sm:$0xf0] }
  0x44   : > { %2533 = vmatpush.bf16.msra.mxu3 %v3714_v41  ;;  %v4910_v41 = vor.u32 %v5389_v32, %v4909_v31  ;;  %v5354_v27 = vld [vmem:[%s5462_s17 + $0x8d0] sm:$0xf0]  ;;  %v4177_v31 = vld [vmem:[%s5462_s17 + $0x398] sm:$0xf]  ;;  %v5205_v32 = vld [vmem:[%s5462_s17 + $0x428] sm:$0xf0]  ;;  %v4918_v33 = vor.u32 %v5390_v24, %v4917_v23 }
  0x45   : > { %v4333_v5 = vld [vmem:[%s5462_s17 + $0x4c8] sm:$0xf]  ;;  %v5243_v6 = vld [vmem:[%s5462_s17 + $0x558] sm:$0xf0]  ;;  %v3733_v12 = vld [vmem:[%s5462_s17 + $0x20] sm:$0xf] }
  0x46   : > { %2585 = vmatpush.bf16.msra.mxu0 %v4314_v52  ;;  %v5130_v52 = vld [vmem:[%s5462_s17 + $0x1d0] sm:$0xf0]  ;;  %v5113_v23 = vld [vmem:[%s5462_s17 + $0x14c] sm:$0xf]  ;;  %v3883_v24 = vld [vmem:[%s5462_s17 + $0x1dc] sm:$0xf0] }
  0x47   : > { %2602 = vmatpush.bf16.msrb.mxu1 %v2347_v47  ;;  %2534 = vmatmul.bf16.vlgmr.msra.gmra.mxu3 %v5563_v57  ;;  %v4022_v47 = vor.u32 %v5167_v39, %v4021_v38  ;;  %v3874_v0 = vor.u32 %v5130_v52, %v3873_v49  ;;  %v4178_v38 = vor.u32 %v5205_v32, %v4177_v31  ;;  %v4629_v39 = vld [vmem:[%s5462_s17 + $0x718] sm:$0xf]  ;;  %v5075_v49 = vld [vmem:[%s5462_s17 + $0x1c] sm:$0xf]  ;;  %v3727_v52 = vld [vmem:[%s5462_s17 + $0xac] sm:$0xf0] }
  0x48   : > { %2610 = vmatpush.bf16.msrb.mxu3 %v4762_v45  ;;  %2559 = vmatpush.bf16.msrb.mxu2 %v4014_v62  ;;  %v5260_v45 = vld [vmem:[%s5462_s17 + $0x5e4] sm:$0xf]  ;;  %v5223_v62 = vld [vmem:[%s5462_s17 + $0x4bc] sm:$0xf]  ;;  %v5094_v13 = vld [vmem:[%s5462_s17 + $0xb0] sm:$0xf0] }
  0x49   : > { %v4470_v58 = vor.u32 %v5260_v45, %v4467_v46  ;;  %v4029_v45 = vld [vmem:[%s5462_s17 + $0x270] sm:$0xf]  ;;  %v5168_v46 = vld [vmem:[%s5462_s17 + $0x300] sm:$0xf0]  ;;  %v4925_v31 = vld [vmem:[%s5462_s17 + $0x968] sm:$0xf] }
  0x4a   : > { %2586 = vmatpush.bf16.msra.mxu0 %v4166_v1  ;;  %v4914_v1 = vor.u32 %v5371_v53, %v4911_v55  ;;  %v4481_v55 = vld [vmem:[%s5462_s17 + $0x5f0] sm:$0xf]  ;;  %v5391_v32 = vld [vmem:[%s5462_s17 + $0x9f8] sm:$0xf0] }
  0x4b   : > { %2603 = vmatpush.bf16.msrb.mxu1 %v4906_v61  ;;  %v4622_v61 = vor.u32 %v5316_v51, %v4621_v50  ;;  %v4030_v51 = vor.u32 %v5168_v46, %v4029_v45  ;;  %v4483_v45 = vld [vmem:[%s5462_s17 + $0x684] sm:$0xf0] }
  0x4c   : > { %2611 = vmatpush.bf16.msrb.mxu3 %v4614_v60  ;;  %2560 = vmatpush.bf16.msrb.mxu2 %v3866_v8  ;;  %v4771_v60 = vld [vmem:[%s5462_s17 + $0x8cc] sm:$0xf0]  ;;  %v4322_v8 = vor.u32 %v5223_v62, %v4319_v63  ;;  %v3730_v63 = vor.u32 %v5075_v49, %v3727_v52 }
  0x4d   : > { %v4774_v4 = vor.u32 %v5335_v59, %v4771_v60  ;;  %v4179_v59 = vld [vmem:[%s5462_s17 + $0x42c] sm:$0xf0]  ;;  %v3881_v60 = vld [vmem:[%s5462_s17 + $0x148] sm:$0xf] }
  0x4e   : > { %2587 = vmatpush.bf16.msra.mxu0 %v4018_v11  ;;  %5035 = vmatmul.msk.bf16.vlgmr.msra.gmra.mxu1 %vm2323_vm2, %v5508_v54  ;;  %v4171_v11 = vld [vmem:[%s5462_s17 + $0x424] sm:$0xf0] }
  0x4f   : > { %2638 = vmatpush.bf16.msra.mxu1 %v4766_v25  ;;  %v4174_v20 = vor.u32 %v5186_v9, %v4171_v11  ;;  %v4326_v25 = vor.u32 %v5242_v17, %v4325_v16  ;;  %v4031_v9 = vld [vmem:[%s5462_s17 + $0x304] sm:$0xf0]  ;;  %v4779_v11 = vld [vmem:[%s5462_s17 + $0x8d4] sm:$0xf0]  ;;  %v4334_v16 = vor.u32 %v5243_v6, %v4333_v5 }
  0x50   : > { %2612 = vmatpush.bf16.msrb.mxu3 %v4466_v7  ;;  %2561 = vmatpush.bf16.msrb.mxu2 %v3718_v22  ;;  %v1961_v7 = vpack.c.b16 %v1591_v56, %v1591_v56  ;;  %v4023_v22 = vld [vmem:[%s5462_s17 + $0x2fc] sm:$0xf0]  ;;  %v5280_v56 = vld [vmem:[%s5462_s17 + $0x680] sm:$0xf0] }
  0x52   : > { %2588 = vmatpush.bf16.msra.mxu0 %v3870_v30  ;;  %v4475_v30 = vld [vmem:[%s5462_s17 + $0x67c] sm:$0xf0] }
  0x53   : > { %2562 = vmatmul.bf16.vlgmr.msrb.gmra.mxu2 %v5563_v57  ;;  %2639 = vmatpush.bf16.msra.mxu1 %v4618_v40  ;;  %v4478_v37 = vor.u32 %v5261_v29, %v4475_v30  ;;  %v5317_v40 = vld [vmem:[%s5462_s17 + $0x7a8] sm:$0xf0]  ;;  %v4631_v29 = vld [vmem:[%s5462_s17 + $0x7ac] sm:$0xf0] }
  0x54   : > { %2613 = vmatpush.bf16.msrb.mxu3 %v4318_v18  ;;  %2630 = vmatpush.bf16.msra.mxu2 %v2350_v26  ;;  %v2356_v18 = vand.u32 %v5474_v15, %v1961_v7  ;;  %v4777_v26 = vld [vmem:[%s5462_s17 + $0x840] sm:$0xf] }
  0x55   : > { %v4778_v34 = vor.u32 %v5354_v27, %v4777_v26  ;;  %v5299_v27 = vld [vmem:[%s5462_s17 + $0x71c] sm:$0xf] }
  0x56   : > { %2589 = vmatpush.bf16.msra.mxu0 %v3722_v44  ;;  %v4327_v44 = vld [vmem:[%s5462_s17 + $0x554] sm:$0xf0] }
  0x57   : > { %2640 = vmatpush.bf16.msra.mxu1 %v4470_v58  ;;  %v5187_v58 = vld [vmem:[%s5462_s17 + $0x39c] sm:$0xf] }
  0x58   : > { %2614 = vmatpush.bf16.msrb.mxu3 %v4170_v28  ;;  %2631 = vmatpush.bf16.msra.mxu2 %v4910_v41  ;;  %v4026_v28 = vor.u32 %v5149_v19, %v4023_v22  ;;  %v5224_v41 = vld [vmem:[%s5462_s17 + $0x4c4] sm:$0xf]  ;;  %v4182_v3 = vor.u32 %v5187_v58, %v4179_v59  ;;  %v4185_v19 = vld [vmem:[%s5462_s17 + $0x3a0] sm:$0xf]  ;;  %v3734_v22 = vor.u32 %v5094_v13, %v3733_v12  ;;  %v5373_v59 = vld [vmem:[%s5462_s17 + $0x96c] sm:$0xf] }
  0x59   : > { %2590 = vmatmul.bf16.vlgmr.msra.gmra.mxu0 %v5563_v57  ;;  %v4330_v50 = vor.u32 %v5224_v41, %v4327_v44  ;;  %v5743_v41 = vld [vmem:[%s5462_s17 + $0xa98] sm:$0x33]  ;;  %v5262_v44 = vld [vmem:[%s5462_s17 + $0x5f4] sm:$0xf]  ;;  %v4335_v58 = vld [vmem:[%s5462_s17 + $0x55c] sm:$0xf0] }
  0x5a   : > { %2658 = vmatpush.bf16.msrb.mxu0 %v2353_v48  ;;  %v4630_v48 = vor.u32 %v5317_v40, %v4629_v39  ;;  %v3735_v39 = vld [vmem:[%s5462_s17 + $0xb4] sm:$0xf0]  ;;  %v1595_v52 = vunpack.c.l.b16 %v5743_v41  ;;  %v5300_v13 = vld [vmem:[%s5462_s17 + $0x724] sm:$0xf] }
  0x5b   : > { %2641 = vmatpush.bf16.msra.mxu1 %v4322_v8  ;;  %v5150_v8 = vld [vmem:[%s5462_s17 + $0x274] sm:$0xf] }
  0x5c   : > { %2666 = vmatpush.bf16.msrb.mxu2 %v4770_v43  ;;  %2615 = vmatpush.bf16.msrb.mxu3 %v4022_v47  ;;  %v1592_v43 = vunpack.c.h.b16 %v5647_v42  ;;  %v3878_v47 = vor.u32 %v5112_v35, %v3875_v36  ;;  %v5702_v42 = vld [vmem:[%s5462_s17 + $0xa90] sm:$0x33]  ;;  %v4785_v35 = vld [vmem:[%s5462_s17 + $0x848] sm:$0xf]  ;;  %v5355_v36 = vld [vmem:[%s5462_s17 + $0x8d8] sm:$0xf0]  ;;  %v1965_v5 = vpack.c.b16 %v1595_v52, %v1595_v52 }
  0x5d   : > { %v1593_v62 = vunpack.c.l.b16 %v5702_v42 }
  0x5e   : > { %2659 = vmatpush.bf16.msrb.mxu0 %v4914_v1  ;;  %5036 = vmatmul.msk.bf16.vlgmr.msrb.gmra.mxu1 %vm2323_vm2, %v5508_v54  ;;  %v1962_v53 = vpack.c.b16 %v1592_v43, %v1592_v43  ;;  %v5372_v1 = vld [vmem:[%s5462_s17 + $0x964] sm:$0xf]  ;;  %v4926_v43 = vor.u32 %v5391_v32, %v4925_v31  ;;  %v4193_v32 = vld [vmem:[%s5462_s17 + $0x3a8] sm:$0xf] }
  0x5f   : > { %2642 = vmatpush.bf16.msra.mxu1 %v4174_v20  ;;  %v5206_v20 = vld [vmem:[%s5462_s17 + $0x430] sm:$0xf0] }
  0x60   : > { %2667 = vmatpush.bf16.msrb.mxu2 %v4622_v61  ;;  %2616 = vmatpush.bf16.msrb.mxu3 %v3874_v0  ;;  %v5131_v61 = vld [vmem:[%s5462_s17 + $0x1d8] sm:$0xf0]  ;;  %v4482_v0 = vor.u32 %v5280_v56, %v4481_v55  ;;  %v2359_v2 = vand.u32 %v5474_v15, %v1962_v53  ;;  %v4186_v30 = vor.u32 %v5206_v20, %v4185_v19  ;;  %v5225_v56 = vld [vmem:[%s5462_s17 + $0x4cc] sm:$0xf] }
  0x61   : > { %v3882_v7 = vor.u32 %v5131_v61, %v3881_v60  ;;  %v4486_v53 = vor.u32 %v5262_v44, %v4483_v45  ;;  %v4927_v60 = vld [vmem:[%s5462_s17 + $0x9fc] sm:$0xf0]  ;;  %v4338_v6 = vor.u32 %v5225_v56, %v4335_v58  ;;  %v5151_v20 = vld [vmem:[%s5462_s17 + $0x27c] sm:$0xf]  ;;  %v5226_v44 = vld [vmem:[%s5462_s17 + $0x4d4] sm:$0xf] }
  0x62   : > { %2694 = vmatpush.bf16.msra.mxu0 %v4774_v4  ;;  %v4919_v4 = vld [vmem:[%s5462_s17 + $0x9f4] sm:$0xf0]  ;;  %v4343_v45 = vld [vmem:[%s5462_s17 + $0x564] sm:$0xf0]  ;;  %v5189_v58 = vld [vmem:[%s5462_s17 + $0x3ac] sm:$0xf] }
  0x63   : > { %5037 = vmatmul.msk.bf16.vlgmr.msra.gmra.mxu2 %vm2323_vm2, %v5508_v54  ;;  %2643 = vmatpush.bf16.msra.mxu1 %v4026_v28  ;;  %v4922_v17 = vor.u32 %v5372_v1, %v4919_v4  ;;  %v3886_v28 = vor.u32 %v5113_v23, %v3883_v24  ;;  %v3741_v1 = vld [vmem:[%s5462_s17 + $0x28] sm:$0xf]  ;;  %v5281_v4 = vld [vmem:[%s5462_s17 + $0x688] sm:$0xf0]  ;;  %v4039_v24 = vld [vmem:[%s5462_s17 + $0x30c] sm:$0xf0] }
  0x64   : > { %2668 = vmatpush.bf16.msrb.mxu2 %v4474_v10  ;;  %2617 = vmatpush.bf16.msrb.mxu3 %v3726_v14  ;;  %v5336_v10 = vld [vmem:[%s5462_s17 + $0x844] sm:$0xf]  ;;  %v1963_v14 = vpack.c.b16 %v1593_v62, %v1593_v62 }
  0x66   : > { %2695 = vmatpush.bf16.msra.mxu0 %v4626_v21  ;;  %v4782_v21 = vor.u32 %v5336_v10, %v4779_v11  ;;  %v2362_v26 = vand.u32 %v5474_v15, %v1963_v14  ;;  %v4187_v10 = vld [vmem:[%s5462_s17 + $0x434] sm:$0xf0] }
  0x67   : > { %2618 = vmatmul.bf16.vlgmr.msrb.gmra.mxu3 %v5563_v57  ;;  %2644 = vmatpush.bf16.msra.mxu1 %v3878_v47  ;;  %v4786_v47 = vor.u32 %v5355_v36, %v4785_v35  ;;  %v4639_v14 = vld [vmem:[%s5462_s17 + $0x7b4] sm:$0xf0]  ;;  %v5114_v35 = vld [vmem:[%s5462_s17 + $0x154] sm:$0xf] }
  0x68   : > { %2686 = vmatpush.bf16.msra.mxu3 %v2356_v18  ;;  %2669 = vmatpush.bf16.msrb.mxu2 %v4326_v25  ;;  %v4034_v18 = vor.u32 %v5150_v8, %v4031_v9  ;;  %v1594_v25 = vunpack.c.h.b16 %v5702_v42  ;;  %v5132_v42 = vld [vmem:[%s5462_s17 + $0x1e0] sm:$0xf0]  ;;  %v4642_v23 = vor.u32 %v5300_v13, %v4639_v14 }
  0x69   : > { %5038 = vmatmul.msk.bf16.vlgmr.msrb.gmra.mxu0 %vm2323_vm2, %v5508_v54  ;;  %v5188_v9 = vld [vmem:[%s5462_s17 + $0x3a4] sm:$0xf] }
  0x6a   : > { %2696 = vmatpush.bf16.msra.mxu0 %v4478_v37  ;;  %v4634_v37 = vor.u32 %v5299_v27, %v4631_v29  ;;  %v1964_v40 = vpack.c.b16 %v1594_v25, %v1594_v25  ;;  %v4190_v19 = vor.u32 %v5188_v9, %v4187_v10  ;;  %v4793_v25 = vld [vmem:[%s5462_s17 + $0x850] sm:$0xf]  ;;  %v5263_v29 = vld [vmem:[%s5462_s17 + $0x5fc] sm:$0xf]  ;;  %v4047_v9 = vld [vmem:[%s5462_s17 + $0x314] sm:$0xf0] }
  0x6b   : > { %2645 = vmatpush.bf16.msra.mxu1 %v3730_v63  ;;  %v5337_v63 = vld [vmem:[%s5462_s17 + $0x84c] sm:$0xf]  ;;  %v5338_v10 = vld [vmem:[%s5462_s17 + $0x854] sm:$0xf]  ;;  %v5096_v13 = vld [vmem:[%s5462_s17 + $0xc0] sm:$0xf0] }
  0x6c   : > { %2687 = vmatpush.bf16.msra.mxu3 %v4918_v33  ;;  %2670 = vmatpush.bf16.msrb.mxu2 %v4178_v38  ;;  %v4037_v33 = vld [vmem:[%s5462_s17 + $0x278] sm:$0xf]  ;;  %v5076_v38 = vld [vmem:[%s5462_s17 + $0x24] sm:$0xf]  ;;  %v2365_v55 = vand.u32 %v5474_v15, %v1964_v40  ;;  %v1596_v40 = vunpack.c.h.b16 %v5743_v41 }
  0x6d   : > { %v3738_v49 = vor.u32 %v5076_v38, %v3735_v39  ;;  %v4645_v38 = vld [vmem:[%s5462_s17 + $0x728] sm:$0xf]  ;;  %v5319_v39 = vld [vmem:[%s5462_s17 + $0x7b8] sm:$0xf0] }
  0x6e   : > { %2697 = vmatpush.bf16.msra.mxu0 %v4330_v50  ;;  %2646 = vmatmul.bf16.vlgmr.msra.gmra.mxu1 %v5563_v57  ;;  %v4637_v50 = vld [vmem:[%s5462_s17 + $0x720] sm:$0xf]  ;;  %v1966_v52 = vpack.c.b16 %v1596_v40, %v1596_v40 }
  0x6f   : > { %2714 = vmatpush.bf16.msrb.mxu1 %v2359_v2  ;;  %v5095_v2 = vld [vmem:[%s5462_s17 + $0xb8] sm:$0xf0] }
  0x70   : > { %2722 = vmatpush.bf16.msrb.mxu3 %v4778_v34  ;;  %2671 = vmatpush.bf16.msrb.mxu2 %v4030_v51  ;;  %v5169_v34 = vld [vmem:[%s5462_s17 + $0x308] sm:$0xf0]  ;;  %v5318_v51 = vld [vmem:[%s5462_s17 + $0x7b0] sm:$0xf0]  ;;  %v3742_v11 = vor.u32 %v5095_v2, %v3741_v1  ;;  %v2371_v2 = vand.u32 %v5474_v15, %v1966_v52 }
  0x71   : > { %v4038_v46 = vor.u32 %v5169_v34, %v4037_v33  ;;  %v4638_v62 = vor.u32 %v5318_v51, %v4637_v50  ;;  %v5207_v33 = vld [vmem:[%s5462_s17 + $0x438] sm:$0xf0]  ;;  %v4346_v50 = vor.u32 %v5226_v44, %v4343_v45  ;;  %v3743_v51 = vld [vmem:[%s5462_s17 + $0xbc] sm:$0xf0]  ;;  %v5374_v1 = vld [vmem:[%s5462_s17 + $0x974] sm:$0xf] }
  0x72   : > { %2698 = vmatpush.bf16.msra.mxu0 %v4182_v3  ;;  %v4489_v3 = vld [vmem:[%s5462_s17 + $0x5f8] sm:$0xf]  ;;  %v5264_v45 = vld [vmem:[%s5462_s17 + $0x604] sm:$0xf] }
  0x73   : > { %2715 = vmatpush.bf16.msrb.mxu1 %v4922_v17  ;;  %v4490_v12 = vor.u32 %v5281_v4, %v4489_v3  ;;  %v4341_v17 = vld [vmem:[%s5462_s17 + $0x4d0] sm:$0xf]  ;;  %v4935_v4 = vld [vmem:[%s5462_s17 + $0xa04] sm:$0xf0] }
  0x74   : > { %2723 = vmatpush.bf16.msrb.mxu3 %v4630_v48  ;;  %2672 = vmatpush.bf16.msrb.mxu2 %v3882_v7  ;;  %v3889_v48 = vld [vmem:[%s5462_s17 + $0x150] sm:$0xf]  ;;  %v4930_v7 = vor.u32 %v5373_v59, %v4927_v60  ;;  %v4195_v59 = vld [vmem:[%s5462_s17 + $0x43c] sm:$0xf0]  ;;  %v3897_v60 = vld [vmem:[%s5462_s17 + $0x158] sm:$0xf] }
  0x75   : > { %v3890_v61 = vor.u32 %v5132_v42, %v3889_v48  ;;  %v4646_v48 = vor.u32 %v5319_v39, %v4645_v38  ;;  %v5800_v42 = vld [vmem:[%s5462_s17 + $0xaa0] sm:$0x33]  ;;  %v4198_v3 = vor.u32 %v5189_v58, %v4195_v59  ;;  %v5078_v38 = vld [vmem:[%s5462_s17 + $0x34] sm:$0xf]  ;;  %v3751_v39 = vld [vmem:[%s5462_s17 + $0xc4] sm:$0xf0] }
  0x76   : > { %2699 = vmatpush.bf16.msra.mxu0 %v4034_v18  ;;  %v5244_v18 = vld [vmem:[%s5462_s17 + $0x560] sm:$0xf0]  ;;  %v4351_v58 = vld [vmem:[%s5462_s17 + $0x56c] sm:$0xf0]  ;;  %v5375_v59 = vld [vmem:[%s5462_s17 + $0x97c] sm:$0xf] }
  0x77   : > { %2750 = vmatpush.bf16.msra.mxu1 %v4782_v21  ;;  %5039 = vmatmul.msk.bf16.vlgmr.msra.gmra.mxu3 %vm2323_vm2, %v5508_v54  ;;  %v4933_v21 = vld [vmem:[%s5462_s17 + $0x970] sm:$0xf]  ;;  %v4342_v27 = vor.u32 %v5244_v18, %v4341_v17  ;;  %v4938_v17 = vor.u32 %v5374_v1, %v4935_v4  ;;  %v3757_v1 = vld [vmem:[%s5462_s17 + $0x38] sm:$0xf] }
  0x78   : > { %2724 = vmatpush.bf16.msrb.mxu3 %v4482_v0  ;;  %2673 = vmatpush.bf16.msrb.mxu2 %v3734_v22  ;;  %v4787_v0 = vld [vmem:[%s5462_s17 + $0x8dc] sm:$0xf0]  ;;  %v5392_v22 = vld [vmem:[%s5462_s17 + $0xa00] sm:$0xf0] }
  0x79   : > { %v4790_v8 = vor.u32 %v5337_v63, %v4787_v0  ;;  %v4934_v31 = vor.u32 %v5392_v22, %v4933_v21 }
  0x7a   : > { %2700 = vmatpush.bf16.msra.mxu0 %v3886_v28  ;;  %v4042_v28 = vor.u32 %v5151_v20, %v4039_v24  ;;  %v5208_v20 = vld [vmem:[%s5462_s17 + $0x440] sm:$0xf0]  ;;  %v3899_v24 = vld [vmem:[%s5462_s17 + $0x1ec] sm:$0xf0] }
  0x7b   : > { %2674 = vmatmul.bf16.vlgmr.msrb.gmra.mxu2 %v5563_v57  ;;  %2751 = vmatpush.bf16.msra.mxu1 %v4634_v37  ;;  %v3891_v37 = vld [vmem:[%s5462_s17 + $0x1e4] sm:$0xf0] }
  0x7c   : > { %2725 = vmatpush.bf16.msrb.mxu3 %v4334_v16  ;;  %2742 = vmatpush.bf16.msra.mxu2 %v2362_v26  ;;  %v2368_v16 = vand.u32 %v5474_v15, %v1965_v5  ;;  %v5356_v26 = vld [vmem:[%s5462_s17 + $0x8e0] sm:$0xf0]  ;;  %v3894_v41 = vor.u32 %v5114_v35, %v3891_v37  ;;  %v4349_v5 = vld [vmem:[%s5462_s17 + $0x4d8] sm:$0xf] }
  0x7d   : > { %v4794_v34 = vor.u32 %v5356_v26, %v4793_v25  ;;  %v1598_v25 = vunpack.c.h.b16 %v5800_v42  ;;  %v4801_v35 = vld [vmem:[%s5462_s17 + $0x858] sm:$0xf] }
  0x7e   : > { %2701 = vmatpush.bf16.msra.mxu0 %v3738_v49  ;;  %5040 = vmatmul.msk.bf16.vlgmr.msrb.gmra.mxu1 %vm2323_vm2, %v5508_v54  ;;  %v5077_v49 = vld [vmem:[%s5462_s17 + $0x2c] sm:$0xf] }
  0x7f   : > { %2752 = vmatpush.bf16.msra.mxu1 %v4486_v53  ;;  %v4497_v53 = vld [vmem:[%s5462_s17 + $0x600] sm:$0xf]  ;;  %v3746_v63 = vor.u32 %v5077_v49, %v3743_v51  ;;  %v1968_v40 = vpack.c.b16 %v1598_v25, %v1598_v25 }
  0x80   : > { %2726 = vmatpush.bf16.msrb.mxu3 %v4186_v30  ;;  %2743 = vmatpush.bf16.msra.mxu2 %v4926_v43  ;;  %v4491_v30 = vld [vmem:[%s5462_s17 + $0x68c] sm:$0xf0]  ;;  %v4194_v43 = vor.u32 %v5207_v33, %v4193_v32  ;;  %v5393_v32 = vld [vmem:[%s5462_s17 + $0xa08] sm:$0xf0]  ;;  %v4053_v33 = vld [vmem:[%s5462_s17 + $0x288] sm:$0xf] }
  0x81   : > { %2702 = vmatmul.bf16.vlgmr.msra.gmra.mxu0 %v5563_v57  ;;  %v4494_v36 = vor.u32 %v5263_v29, %v4491_v30  ;;  %v4647_v29 = vld [vmem:[%s5462_s17 + $0x7bc] sm:$0xf0]  ;;  %v2377_v52 = vand.u32 %v5474_v15, %v1968_v40 }
  0x82   : > { %2770 = vmatpush.bf16.msrb.mxu0 %v2365_v55  ;;  %v5282_v55 = vld [vmem:[%s5462_s17 + $0x690] sm:$0xf0]  ;;  %v3905_v49 = vld [vmem:[%s5462_s17 + $0x160] sm:$0xf] }
  0x83   : > { %2753 = vmatpush.bf16.msra.mxu1 %v4338_v6  ;;  %v4498_v0 = vor.u32 %v5282_v55, %v4497_v53  ;;  %v5245_v6 = vld [vmem:[%s5462_s17 + $0x568] sm:$0xf0]  ;;  %v4653_v53 = vld [vmem:[%s5462_s17 + $0x730] sm:$0xf]  ;;  %v5320_v55 = vld [vmem:[%s5462_s17 + $0x7c0] sm:$0xf0] }
  0x84   : > { %2727 = vmatpush.bf16.msrb.mxu3 %v4038_v46  ;;  %2778 = vmatpush.bf16.msrb.mxu2 %v4786_v47  ;;  %v4045_v46 = vld [vmem:[%s5462_s17 + $0x280] sm:$0xf]  ;;  %v5170_v47 = vld [vmem:[%s5462_s17 + $0x310] sm:$0xf0] }
  0x85   : > { %v4046_v56 = vor.u32 %v5170_v47, %v4045_v46  ;;  %v4499_v46 = vld [vmem:[%s5462_s17 + $0x694] sm:$0xf0]  ;;  %v4809_v25 = vld [vmem:[%s5462_s17 + $0x860] sm:$0xf] }
  0x86   : > { %2771 = vmatpush.bf16.msrb.mxu0 %v4930_v7  ;;  %v4502_v51 = vor.u32 %v5264_v45, %v4499_v46  ;;  %v5228_v45 = vld [vmem:[%s5462_s17 + $0x4e4] sm:$0xf]  ;;  %v4359_v46 = vld [vmem:[%s5462_s17 + $0x574] sm:$0xf0] }
  0x87   : > { %2754 = vmatpush.bf16.msra.mxu1 %v4190_v19  ;;  %v4201_v19 = vld [vmem:[%s5462_s17 + $0x3b0] sm:$0xf] }
  0x88   : > { %2728 = vmatpush.bf16.msrb.mxu3 %v3890_v61  ;;  %2779 = vmatpush.bf16.msrb.mxu2 %v4638_v62  ;;  %v5133_v61 = vld [vmem:[%s5462_s17 + $0x1e8] sm:$0xf0]  ;;  %v1597_v62 = vunpack.c.l.b16 %v5800_v42  ;;  %v4202_v30 = vor.u32 %v5208_v20, %v4201_v19  ;;  %v5134_v42 = vld [vmem:[%s5462_s17 + $0x1f0] sm:$0xf0]  ;;  %v4949_v20 = vld [vmem:[%s5462_s17 + $0x980] sm:$0xf] }
  0x89   : > { %v3898_v7 = vor.u32 %v5133_v61, %v3897_v60  ;;  %v4943_v60 = vld [vmem:[%s5462_s17 + $0xa0c] sm:$0xf0]  ;;  %v3906_v61 = vor.u32 %v5134_v42, %v3905_v49  ;;  %v5246_v19 = vld [vmem:[%s5462_s17 + $0x570] sm:$0xf0]  ;;  %v5172_v49 = vld [vmem:[%s5462_s17 + $0x320] sm:$0xf0] }
  0x8a   : > { %2806 = vmatpush.bf16.msra.mxu0 %v4790_v8  ;;  %v5152_v8 = vld [vmem:[%s5462_s17 + $0x284] sm:$0xf]  ;;  %v1967_v14 = vpack.c.b16 %v1597_v62, %v1597_v62  ;;  %v5339_v62 = vld [vmem:[%s5462_s17 + $0x85c] sm:$0xf] }
  0x8b   : > { %5041 = vmatmul.msk.bf16.vlgmr.msra.gmra.mxu2 %vm2323_vm2, %v5508_v54  ;;  %2755 = vmatpush.bf16.msra.mxu1 %v4042_v28  ;;  %v4050_v18 = vor.u32 %v5152_v8, %v4047_v9  ;;  %v5190_v9 = vld [vmem:[%s5462_s17 + $0x3b4] sm:$0xf] }
  0x8c   : > { %2729 = vmatpush.bf16.msrb.mxu3 %v3742_v11  ;;  %2780 = vmatpush.bf16.msrb.mxu2 %v4490_v12  ;;  %v4795_v11 = vld [vmem:[%s5462_s17 + $0x8e4] sm:$0xf0]  ;;  %v3749_v12 = vld [vmem:[%s5462_s17 + $0x30] sm:$0xf]  ;;  %v2374_v26 = vand.u32 %v5474_v15, %v1967_v14 }
  0x8d   : > { %v4798_v21 = vor.u32 %v5338_v10, %v4795_v11  ;;  %v3750_v22 = vor.u32 %v5096_v13, %v3749_v12  ;;  %v4203_v10 = vld [vmem:[%s5462_s17 + $0x444] sm:$0xf0]  ;;  %v5302_v12 = vld [vmem:[%s5462_s17 + $0x734] sm:$0xf] }
  0x8e   : > { %2807 = vmatpush.bf16.msra.mxu0 %v4642_v23  ;;  %v5115_v23 = vld [vmem:[%s5462_s17 + $0x15c] sm:$0xf]  ;;  %v4655_v13 = vld [vmem:[%s5462_s17 + $0x7c4] sm:$0xf0] }
  0x8f   : > { %2730 = vmatmul.bf16.vlgmr.msrb.gmra.mxu3 %v5563_v57  ;;  %2756 = vmatpush.bf16.msra.mxu1 %v3894_v41  ;;  %v3902_v28 = vor.u32 %v5115_v23, %v3899_v24  ;;  %v5153_v23 = vld [vmem:[%s5462_s17 + $0x28c] sm:$0xf]  ;;  %v4055_v24 = vld [vmem:[%s5462_s17 + $0x31c] sm:$0xf0] }
  0x90   : > { %2798 = vmatpush.bf16.msra.mxu3 %v2368_v16  ;;  %2781 = vmatpush.bf16.msrb.mxu2 %v4342_v27  ;;  %v4350_v16 = vor.u32 %v5245_v6, %v4349_v5  ;;  %v5301_v27 = vld [vmem:[%s5462_s17 + $0x72c] sm:$0xf]  ;;  %v4946_v5 = vor.u32 %v5375_v59, %v4943_v60  ;;  %v4505_v6 = vld [vmem:[%s5462_s17 + $0x608] sm:$0xf]  ;;  %v5191_v60 = vld [vmem:[%s5462_s17 + $0x3bc] sm:$0xf] }
  0x91   : > { %5042 = vmatmul.msk.bf16.vlgmr.msrb.gmra.mxu0 %vm2323_vm2, %v5508_v54  ;;  %v4650_v37 = vor.u32 %v5301_v27, %v4647_v29  ;;  %v5265_v27 = vld [vmem:[%s5462_s17 + $0x60c] sm:$0xf]  ;;  %v4507_v29 = vld [vmem:[%s5462_s17 + $0x69c] sm:$0xf0] }
  0x92   : > { %2808 = vmatpush.bf16.msra.mxu0 %v4494_v36  ;;  %v5357_v36 = vld [vmem:[%s5462_s17 + $0x8e8] sm:$0xf0] }
  0x93   : > { %2757 = vmatpush.bf16.msra.mxu1 %v3746_v63  ;;  %v4802_v41 = vor.u32 %v5357_v36, %v4801_v35  ;;  %v4803_v63 = vld [vmem:[%s5462_s17 + $0x8ec] sm:$0xf0]  ;;  %v4510_v36 = vor.u32 %v5265_v27, %v4507_v29  ;;  %v5210_v27 = vld [vmem:[%s5462_s17 + $0x450] sm:$0xf0] }
  0x94   : > { %2799 = vmatpush.bf16.msra.mxu3 %v4934_v31  ;;  %2782 = vmatpush.bf16.msrb.mxu2 %v4194_v43  ;;  %v4941_v31 = vld [vmem:[%s5462_s17 + $0x978] sm:$0xf]  ;;  %v5841_v43 = vld [vmem:[%s5462_s17 + $0xaa8] sm:$0x33]  ;;  %v4806_v8 = vor.u32 %v5339_v62, %v4803_v63 }
  0x95   : > { %v4942_v44 = vor.u32 %v5393_v32, %v4941_v31  ;;  %v4058_v32 = vor.u32 %v5153_v23, %v4055_v24  ;;  %v1600_v40 = vunpack.c.h.b16 %v5841_v43  ;;  %v3913_v63 = vld [vmem:[%s5462_s17 + $0x168] sm:$0xf] }
  0x96   : > { %2809 = vmatpush.bf16.msra.mxu0 %v4346_v50  ;;  %2758 = vmatmul.bf16.vlgmr.msra.gmra.mxu1 %v5563_v57  ;;  %v1599_v50 = vunpack.c.l.b16 %v5841_v43  ;;  %v4061_v43 = vld [vmem:[%s5462_s17 + $0x290] sm:$0xf] }
  0x97   : > { %2826 = vmatpush.bf16.msrb.mxu1 %v2371_v2  ;;  %v5097_v2 = vld [vmem:[%s5462_s17 + $0xc8] sm:$0xf0]  ;;  %v4062_v59 = vor.u32 %v5172_v49, %v4061_v43  ;;  %v5080_v49 = vld [vmem:[%s5462_s17 + $0x44] sm:$0xf] }
  0x98   : > { %2834 = vmatpush.bf16.msrb.mxu3 %v4794_v34  ;;  %2783 = vmatpush.bf16.msrb.mxu2 %v4046_v56  ;;  %v5171_v34 = vld [vmem:[%s5462_s17 + $0x318] sm:$0xf0]  ;;  %v3758_v11 = vor.u32 %v5097_v2, %v3757_v1 }
  0x99   : > { %v4054_v47 = vor.u32 %v5171_v34, %v4053_v33  ;;  %v5227_v56 = vld [vmem:[%s5462_s17 + $0x4dc] sm:$0xf]  ;;  %v4209_v33 = vld [vmem:[%s5462_s17 + $0x3b8] sm:$0xf] }
  0x9a   : > { %2810 = vmatpush.bf16.msra.mxu0 %v4198_v3  ;;  %v1969_v3 = vpack.c.b16 %v1599_v50, %v1599_v50  ;;  %v4354_v4 = vor.u32 %v5227_v56, %v4351_v58  ;;  %v4362_v50 = vor.u32 %v5228_v45, %v4359_v46  ;;  %v4513_v56 = vld [vmem:[%s5462_s17 + $0x610] sm:$0xf]  ;;  %v5284_v58 = vld [vmem:[%s5462_s17 + $0x6a0] sm:$0xf0]  ;;  %v5173_v46 = vld [vmem:[%s5462_s17 + $0x328] sm:$0xf0] }
  0x9b   : > { %2827 = vmatpush.bf16.msrb.mxu1 %v4938_v17  ;;  %v4357_v17 = vld [vmem:[%s5462_s17 + $0x4e0] sm:$0xf] }
  0x9c   : > { %2835 = vmatpush.bf16.msrb.mxu3 %v4646_v48  ;;  %2784 = vmatpush.bf16.msrb.mxu2 %v3898_v7  ;;  %v3754_v48 = vor.u32 %v5078_v38, %v3751_v39  ;;  %v5283_v7 = vld [vmem:[%s5462_s17 + $0x698] sm:$0xf0]  ;;  %v3907_v38 = vld [vmem:[%s5462_s17 + $0x1f4] sm:$0xf0] }
  0x9d   : > { %v4506_v14 = vor.u32 %v5283_v7, %v4505_v6  ;;  %v4661_v39 = vld [vmem:[%s5462_s17 + $0x738] sm:$0xf] }
  0x9e   : > { %2811 = vmatpush.bf16.msra.mxu0 %v4050_v18  ;;  %v4206_v18 = vor.u32 %v5190_v9, %v4203_v10  ;;  %v4951_v6 = vld [vmem:[%s5462_s17 + $0xa14] sm:$0xf0]  ;;  %v5247_v9 = vld [vmem:[%s5462_s17 + $0x578] sm:$0xf0]  ;;  %v5154_v10 = vld [vmem:[%s5462_s17 + $0x294] sm:$0xf] }
  0x9f   : > { %2862 = vmatpush.bf16.msra.mxu1 %v4798_v21  ;;  %5043 = vmatmul.msk.bf16.vlgmr.msra.gmra.mxu3 %vm2323_vm2, %v5508_v54  ;;  %v5394_v21 = vld [vmem:[%s5462_s17 + $0xa10] sm:$0xf0] }
  0xa0   : > { %2836 = vmatpush.bf16.msrb.mxu3 %v4498_v0  ;;  %2785 = vmatpush.bf16.msrb.mxu2 %v3750_v22  ;;  %v4654_v0 = vor.u32 %v5320_v55, %v4653_v53  ;;  %v4658_v22 = vor.u32 %v5302_v12, %v4655_v13  ;;  %v4950_v31 = vor.u32 %v5394_v21, %v4949_v20  ;;  %v5903_v55 = vld [vmem:[%s5462_s17 + $0xab0] sm:$0x33]  ;;  %v4063_v12 = vld [vmem:[%s5462_s17 + $0x324] sm:$0xf0]  ;;  %v5340_v13 = vld [vmem:[%s5462_s17 + $0x864] sm:$0xf] }
  0xa1   : > { %v1970_v53 = vpack.c.b16 %v1600_v40, %v1600_v40  ;;  %v1601_v1 = vunpack.c.l.b16 %v5903_v55  ;;  %v4066_v24 = vor.u32 %v5154_v10, %v4063_v12  ;;  %v5395_v40 = vld [vmem:[%s5462_s17 + $0xa18] sm:$0xf0]  ;;  %v5377_v12 = vld [vmem:[%s5462_s17 + $0x98c] sm:$0xf] }
  0xa2   : > { %2812 = vmatpush.bf16.msra.mxu0 %v3902_v28  ;;  %v5209_v28 = vld [vmem:[%s5462_s17 + $0x448] sm:$0xf0] }
  0xa3   : > { %2786 = vmatmul.bf16.vlgmr.msrb.gmra.mxu2 %v5563_v57  ;;  %2863 = vmatpush.bf16.msra.mxu1 %v4650_v37  ;;  %v5116_v37 = vld [vmem:[%s5462_s17 + $0x164] sm:$0xf] }
  0xa4   : > { %2837 = vmatpush.bf16.msrb.mxu3 %v4350_v16  ;;  %2854 = vmatpush.bf16.msra.mxu2 %v2374_v26  ;;  %v2380_v16 = vand.u32 %v5474_v15, %v1969_v3  ;;  %v5358_v26 = vld [vmem:[%s5462_s17 + $0x8f0] sm:$0xf0]  ;;  %v5885_v34 = vpop.f32.mrf.mxu3  ;;  %v2383_v3 = vand.u32 %v5474_v15, %v1970_v53 }
  0xa5   : > { %v4810_v35 = vor.u32 %v5358_v26, %v4809_v25  ;;  %v4217_v26 = vld [vmem:[%s5462_s17 + $0x3c0] sm:$0xf] }
  0xa6   : > { %2813 = vmatpush.bf16.msra.mxu0 %v3754_v48  ;;  %5044 = vmatmul.msk.bf16.vlgmr.msrb.gmra.mxu1 %vm2323_vm2, %v5508_v54  ;;  %v5896_v48 = vpop.f32.mrf.mxu1 }
  0xa7   : > { %2864 = vmatpush.bf16.msra.mxu1 %v4502_v51  ;;  %v5079_v51 = vld [vmem:[%s5462_s17 + $0x3c] sm:$0xf] }
  0xa8   : > { %2838 = vmatpush.bf16.msrb.mxu3 %v4202_v30  ;;  %2855 = vmatpush.bf16.msra.mxu2 %v4942_v44  ;;  %v4358_v30 = vor.u32 %v5246_v19, %v4357_v17  ;;  %v5321_v44 = vld [vmem:[%s5462_s17 + $0x7c8] sm:$0xf0]  ;;  %v3765_v17 = vld [vmem:[%s5462_s17 + $0x40] sm:$0xf]  ;;  %v1971_v19 = vpack.c.b16 %v1601_v1, %v1601_v1  ;;  %v5136_v1 = vld [vmem:[%s5462_s17 + $0x200] sm:$0xf0] }
  0xa9   : > { %2814 = vmatmul.bf16.vlgmr.msra.gmra.mxu0 %v5563_v57  ;;  %v4662_v42 = vor.u32 %v5321_v44, %v4661_v39  ;;  %v4957_v39 = vld [vmem:[%s5462_s17 + $0x988] sm:$0xf]  ;;  %v4069_v44 = vld [vmem:[%s5462_s17 + $0x298] sm:$0xf] }
  0xaa   : > { %2882 = vmatpush.bf16.msrb.mxu0 %v2377_v52  ;;  %v3759_v52 = vld [vmem:[%s5462_s17 + $0xcc] sm:$0xf0]  ;;  %v4958_v53 = vor.u32 %v5395_v40, %v4957_v39 }
  0xab   : > { %2865 = vmatpush.bf16.msra.mxu1 %v4354_v4  ;;  %v3762_v62 = vor.u32 %v5079_v51, %v3759_v52  ;;  %v4514_v4 = vor.u32 %v5284_v58, %v4513_v56  ;;  %v5954_v51 = vld [vmem:[%s5462_s17 + $0xab8] sm:$0x33]  ;;  %v4515_v56 = vld [vmem:[%s5462_s17 + $0x6a4] sm:$0xf0] }
  0xac   : > { %2839 = vmatpush.bf16.msrb.mxu3 %v4054_v47  ;;  %2890 = vmatpush.bf16.msrb.mxu2 %v4802_v41  ;;  %v4210_v47 = vor.u32 %v5209_v28, %v4209_v33  ;;  %v3910_v41 = vor.u32 %v5116_v37, %v3907_v38  ;;  %v5912_v2 = vpop.f32.mrf.mxu3  ;;  %v2386_v33 = vand.u32 %v5474_v15, %v1971_v19  ;;  %v5303_v28 = vld [vmem:[%s5462_s17 + $0x73c] sm:$0xf] }
  0xad   : > { %v4218_v38 = vor.u32 %v5210_v27, %v4217_v26 }
  0xae   : > { %2883 = vmatpush.bf16.msrb.mxu0 %v4946_v5  ;;  %v5376_v5 = vld [vmem:[%s5462_s17 + $0x984] sm:$0xf]  ;;  %v2451_v20 = vpop.f32.mrf.mxu0  ;;  %v5929_v23 = vpop.f32.mrf.mxu1 }
  0xaf   : > { %2866 = vmatpush.bf16.msra.mxu1 %v4206_v18  ;;  %v5098_v18 = vld [vmem:[%s5462_s17 + $0xd0] sm:$0xf0]  ;;  %v4954_v21 = vor.u32 %v5376_v5, %v4951_v6 }
  0xb0   : > { %2840 = vmatpush.bf16.msrb.mxu3 %v3906_v61  ;;  %2891 = vmatpush.bf16.msrb.mxu2 %v4654_v0  ;;  %v4211_v61 = vld [vmem:[%s5462_s17 + $0x44c] sm:$0xf0]  ;;  %v5135_v0 = vld [vmem:[%s5462_s17 + $0x1f8] sm:$0xf0]  ;;  %v3766_v29 = vor.u32 %v5098_v18, %v3765_v17 }
  0xb1   : > { %v4214_v7 = vor.u32 %v5191_v60, %v4211_v61  ;;  %v4070_v60 = vor.u32 %v5173_v46, %v4069_v44  ;;  %v5304_v44 = vld [vmem:[%s5462_s17 + $0x744] sm:$0xf] }
  0xb2   : > { %2918 = vmatpush.bf16.msra.mxu0 %v4806_v8  ;;  %v4365_v8 = vld [vmem:[%s5462_s17 + $0x4e8] sm:$0xf] }
  0xb3   : > { %5045 = vmatmul.msk.bf16.vlgmr.msra.gmra.mxu2 %vm2323_vm2, %v5508_v54  ;;  %2867 = vmatpush.bf16.msra.mxu1 %v4058_v32  ;;  %v1602_v32 = vunpack.c.h.b16 %v5903_v55  ;;  %v5266_v55 = vld [vmem:[%s5462_s17 + $0x614] sm:$0xf] }
  0xb4   : > { %2841 = vmatpush.bf16.msrb.mxu3 %v3758_v11  ;;  %2892 = vmatpush.bf16.msrb.mxu2 %v4506_v14  ;;  %v3914_v11 = vor.u32 %v5135_v0, %v3913_v63  ;;  %v4811_v14 = vld [vmem:[%s5462_s17 + $0x8f4] sm:$0xf0]  ;;  %v5941_v37 = vpop.f32.mrf.mxu3  ;;  %v4518_v5 = vor.u32 %v5266_v55, %v4515_v56  ;;  %v5396_v55 = vld [vmem:[%s5462_s17 + $0xa20] sm:$0xf0] }
  0xb5   : > { %v4814_v25 = vor.u32 %v5340_v13, %v4811_v14  ;;  %v2479_v52 = vpop.f32.mrf.mxu2  ;;  %v4959_v13 = vld [vmem:[%s5462_s17 + $0xa1c] sm:$0xf0] }
  0xb6   : > { %2919 = vmatpush.bf16.msra.mxu0 %v4658_v22  ;;  %v4366_v22 = vor.u32 %v5247_v9, %v4365_v8  ;;  %v2453_v63 = vpop.f32.mrf.mxu0  ;;  %v5322_v8 = vld [vmem:[%s5462_s17 + $0x7d0] sm:$0xf0]  ;;  %v5229_v9 = vld [vmem:[%s5462_s17 + $0x4ec] sm:$0xf] }
  0xb7   : > { %2842 = vmatmul.bf16.vlgmr.msrb.gmra.mxu3 %v5563_v57  ;;  %2868 = vmatpush.bf16.msra.mxu1 %v3910_v41  ;;  %v5359_v41 = vld [vmem:[%s5462_s17 + $0x8f8] sm:$0xf0] }
  0xb8   : > { %2910 = vmatpush.bf16.msra.mxu3 %v2380_v16  ;;  %2893 = vmatpush.bf16.msrb.mxu2 %v4358_v30  ;;  %v5925_v16 = vpop.permute.xlu0 %539  ;;  %v5117_v30 = vld [vmem:[%s5462_s17 + $0x16c] sm:$0xf] }
  0xb9   : > { %5046 = vmatmul.msk.bf16.vlgmr.msrb.gmra.mxu0 %vm2323_vm2, %v5508_v54 }
  0xba   : > { %2920 = vmatpush.bf16.msra.mxu0 %v4510_v36  ;;  %v2452_v36 = vadd.f32 %v2451_v20, %v5925_v16  ;;  %v5341_v20 = vld [vmem:[%s5462_s17 + $0x86c] sm:$0xf] }
  0xbb   : > { %2869 = vmatpush.bf16.msra.mxu1 %v3762_v62  ;;  %v2507_v10 = vpop.f32.mrf.mxu1 }
  0xbc   : > { %2911 = vmatpush.bf16.msra.mxu3 %v4950_v31  ;;  %2894 = vmatpush.bf16.msrb.mxu2 %v4210_v47  ;;  %v3915_v31 = vld [vmem:[%s5462_s17 + $0x1fc] sm:$0xf0]  ;;  %v4817_v47 = vld [vmem:[%s5462_s17 + $0x868] sm:$0xf]  ;;  %v2466_v58 = vadd.f32 %v5896_v48, %v2452_v36  ;;  %v3921_v48 = vld [vmem:[%s5462_s17 + $0x170] sm:$0xf]  ;;  %v5976_v18 = vpop.f32.mrf.mxu3  ;;  %v2508_v46 = vadd.f32 %v2507_v10, %v5925_v16 }
  0xbd   : > { %v3918_v45 = vor.u32 %v5117_v30, %v3915_v31  ;;  %v4818_v61 = vor.u32 %v5359_v41, %v4817_v47  ;;  %v3922_v19 = vor.u32 %v5136_v1, %v3921_v48  ;;  %v4962_v30 = vor.u32 %v5377_v12, %v4959_v13  ;;  %v4521_v31 = vld [vmem:[%s5462_s17 + $0x618] sm:$0xf]  ;;  %v4523_v48 = vld [vmem:[%s5462_s17 + $0x6ac] sm:$0xf0]  ;;  %v5118_v10 = vld [vmem:[%s5462_s17 + $0x174] sm:$0xf] }
  0xbe   : > { %2921 = vmatpush.bf16.msra.mxu0 %v4362_v50  ;;  %2870 = vmatmul.bf16.vlgmr.msra.gmra.mxu1 %v5563_v57  ;;  %v1972_v50 = vpack.c.b16 %v1602_v32, %v1602_v32  ;;  %v3478_v14 = vmax.f32 %v2466_v58, 0.0  ;;  %v5285_v32 = vld [vmem:[%s5462_s17 + $0x6a8] sm:$0xf0]  ;;  %v4219_v36 = vld [vmem:[%s5462_s17 + $0x454] sm:$0xf0]  ;;  %v2522_v1 = vadd.f32 %v5941_v37, %v2508_v46 }
  0xbf   : > { %2938 = vmatpush.bf16.msrb.mxu1 %v2383_v3  ;;  %v1603_v3 = vunpack.c.l.b16 %v5954_v51  ;;  %v4522_v47 = vor.u32 %v5285_v32, %v4521_v31  ;;  %v5193_v46 = vld [vmem:[%s5462_s17 + $0x3cc] sm:$0xf] }
  0xc0   : > { %2946 = vmatpush.bf16.msrb.mxu3 %v4810_v35  ;;  %2895 = vmatpush.bf16.msrb.mxu2 %v4062_v59  ;;  %v4663_v35 = vld [vmem:[%s5462_s17 + $0x7cc] sm:$0xf0]  ;;  %v2480_v59 = vadd.f32 %v2479_v52, %v5925_v16  ;;  %v5962_v62 = vpop.permute.xlu0 %544  ;;  %v2389_v6 = vand.u32 %v5474_v15, %v1972_v50  ;;  %v5155_v52 = vld [vmem:[%s5462_s17 + $0x29c] sm:$0xf] }
  0xc1   : > { %v4666_v43 = vor.u32 %v5303_v28, %v4663_v35  ;;  %v1973_v26 = vpack.c.b16 %v1603_v3, %v1603_v3  ;;  %v5192_v35 = vld [vmem:[%s5462_s17 + $0x3c4] sm:$0xf] }
  0xc2   : > { %2922 = vmatpush.bf16.msra.mxu0 %v4214_v7  ;;  %v4669_v7 = vld [vmem:[%s5462_s17 + $0x740] sm:$0xf]  ;;  %v4222_v50 = vor.u32 %v5192_v35, %v4219_v36 }
  0xc3   : > { %2939 = vmatpush.bf16.msrb.mxu1 %v4954_v21  ;;  %v4819_v21 = vld [vmem:[%s5462_s17 + $0x8fc] sm:$0xf0]  ;;  %v2392_v41 = vand.u32 %v5474_v15, %v1973_v26  ;;  %v2509_v56 = vpop.f32.mrf.mxu1  ;;  %v5174_v26 = vld [vmem:[%s5462_s17 + $0x330] sm:$0xf0] }
  0xc4   : > { %2947 = vmatpush.bf16.msrb.mxu3 %v4662_v42  ;;  %2896 = vmatpush.bf16.msrb.mxu2 %v3914_v11  ;;  %v3767_v42 = vld [vmem:[%s5462_s17 + $0xd4] sm:$0xf0]  ;;  %v4367_v11 = vld [vmem:[%s5462_s17 + $0x57c] sm:$0xf0]  ;;  %v4822_v28 = vor.u32 %v5341_v20, %v4819_v21  ;;  %v4375_v20 = vld [vmem:[%s5462_s17 + $0x584] sm:$0xf0]  ;;  %v2510_v31 = vadd.f32 %v2509_v56, %v5962_v62 }
  0xc5   : > { %v3770_v0 = vor.u32 %v5080_v49, %v3767_v42  ;;  %v2549_v49 = vpop.f32.mrf.mxu0  ;;  %v3480_v21 = vmax.f32 %v2522_v1, 0.0  ;;  %v3775_v36 = vld [vmem:[%s5462_s17 + $0xdc] sm:$0xf0]  ;;  %v5378_v56 = vld [vmem:[%s5462_s17 + $0x994] sm:$0xf] }
  0xc6   : > { %2923 = vmatpush.bf16.msra.mxu0 %v4066_v24  ;;  %v3773_v24 = vld [vmem:[%s5462_s17 + $0x48] sm:$0xf] }
  0xc7   : > { %2974 = vmatpush.bf16.msra.mxu1 %v4814_v25  ;;  %5047 = vmatmul.msk.bf16.vlgmr.msra.gmra.mxu3 %vm2323_vm2, %v5508_v54  ;;  %v5099_v25 = vld [vmem:[%s5462_s17 + $0xd8] sm:$0xf0]  ;;  %v4827_v1 = vld [vmem:[%s5462_s17 + $0x904] sm:$0xf0] }
  0xc8   : > { %2948 = vmatpush.bf16.msrb.mxu3 %v4514_v4  ;;  %2897 = vmatpush.bf16.msrb.mxu2 %v3766_v29  ;;  %v2494_v4 = vadd.f32 %v5885_v34, %v2480_v59  ;;  %v2454_v34 = vadd.f32 %v2453_v63, %v5962_v62  ;;  %v4370_v29 = vor.u32 %v5229_v9, %v4367_v11  ;;  %v4071_v59 = vld [vmem:[%s5462_s17 + $0x32c] sm:$0xf0]  ;;  %v5211_v9 = vld [vmem:[%s5462_s17 + $0x458] sm:$0xf0]  ;;  %v1604_v11 = vunpack.c.h.b16 %v5954_v51 }
  0xc9   : > { %v3774_v40 = vor.u32 %v5099_v25, %v3773_v24  ;;  %v4077_v25 = vld [vmem:[%s5462_s17 + $0x2a0] sm:$0xf] }
  0xca   : > { %2924 = vmatpush.bf16.msra.mxu0 %v3918_v45  ;;  %v3479_v17 = vmax.f32 %v2494_v4, 0.0  ;;  %v4671_v45 = vld [vmem:[%s5462_s17 + $0x7d4] sm:$0xf0] }
  0xcb   : > { %2898 = vmatmul.bf16.vlgmr.msrb.gmra.mxu2 %v5563_v57  ;;  %2975 = vmatpush.bf16.msra.mxu1 %v4666_v43  ;;  %v5248_v43 = vld [vmem:[%s5462_s17 + $0x580] sm:$0xf0]  ;;  %v4674_v58 = vor.u32 %v5304_v44, %v4671_v45  ;;  %v4078_v45 = vor.u32 %v5174_v26, %v4077_v25  ;;  %v5305_v25 = vld [vmem:[%s5462_s17 + $0x74c] sm:$0xf]  ;;  %v4679_v26 = vld [vmem:[%s5462_s17 + $0x7dc] sm:$0xf0] }
  0xcc   : > { %2949 = vmatpush.bf16.msrb.mxu3 %v4366_v22  ;;  %2966 = vmatpush.bf16.msra.mxu2 %v2386_v33  ;;  %v4670_v22 = vor.u32 %v5322_v8, %v4669_v7  ;;  %v3552_v27 = vpack.c.bf16 %v3479_v17, %v3478_v14  ;;  %v2481_v33 = vpop.f32.mrf.mxu2  ;;  %v4074_v7 = vor.u32 %v5155_v52, %v4071_v59  ;;  %v4225_v8 = vld [vmem:[%s5462_s17 + $0x3c8] sm:$0xf] }
  0xcd   : > { %v2482_v39 = vadd.f32 %v2481_v33, %v5962_v62  ;;  %v3923_v14 = vld [vmem:[%s5462_s17 + $0x204] sm:$0xf0]  ;;  %v4226_v51 = vor.u32 %v5211_v9, %v4225_v8  ;;  %v6033_v33 = vpop.f32.mrf.mxu1  ;;  %v2524_v52 = vadd.f32 %v5976_v18, %v2510_v31  ;;  %v5156_v18 = vld [vmem:[%s5462_s17 + $0x2a4] sm:$0xf] }
  0xce   : > { %2925 = vmatpush.bf16.msra.mxu0 %v3770_v0  ;;  %3590 = vst [vmem:[%s5985_s6] sm:$0xff] %v3552_v27  ;;  %5048 = vmatmul.msk.bf16.vlgmr.msrb.gmra.mxu1 %vm2323_vm2, %v5508_v54  ;;  %v5267_v0 = vld [vmem:[%s5462_s17 + $0x61c] sm:$0xf]  ;;  %v4677_v17 = vld [vmem:[%s5462_s17 + $0x748] sm:$0xf]  ;;  %v3926_v24 = vor.u32 %v5118_v10, %v3923_v14  ;;  %v2551_v27 = vpop.f32.mrf.mxu0  ;;  %v4233_v14 = vld [vmem:[%s5462_s17 + $0x3d0] sm:$0xf] }
  0xcf   : > { %2976 = vmatpush.bf16.msra.mxu1 %v4518_v5  ;;  %v2496_v42 = vadd.f32 %v5912_v2, %v2482_v39  ;;  %v4526_v13 = vor.u32 %v5267_v0, %v4523_v48  ;;  %v4529_v39 = vld [vmem:[%s5462_s17 + $0x620] sm:$0xf]  ;;  %v4079_v0 = vld [vmem:[%s5462_s17 + $0x334] sm:$0xf0]  ;;  %v5342_v48 = vld [vmem:[%s5462_s17 + $0x874] sm:$0xf] }
  0xd0   : > { %2950 = vmatpush.bf16.msrb.mxu3 %v4218_v38  ;;  %2967 = vmatpush.bf16.msra.mxu2 %v4958_v53  ;;  %v2468_v38 = vadd.f32 %v5929_v23, %v2454_v34  ;;  %v4373_v23 = vld [vmem:[%s5462_s17 + $0x4f0] sm:$0xf]  ;;  %v5323_v34 = vld [vmem:[%s5462_s17 + $0x7d8] sm:$0xf0]  ;;  %v4085_v31 = vld [vmem:[%s5462_s17 + $0x2a8] sm:$0xf] }
  0xd1   : > { %2926 = vmatmul.bf16.vlgmr.msra.gmra.mxu0 %v5563_v57  ;;  %v4965_v53 = vld [vmem:[%s5462_s17 + $0x990] sm:$0xf]  ;;  %v3516_v63 = vmax.f32 %v2496_v42, 0.0  ;;  %v4374_v3 = vor.u32 %v5248_v43, %v4373_v23  ;;  %v5137_v42 = vld [vmem:[%s5462_s17 + $0x208] sm:$0xf0] }
  0xd2   : > { %2994 = vmatpush.bf16.msrb.mxu0 %v2389_v6  ;;  %v3515_v2 = vmax.f32 %v2468_v38, 0.0  ;;  %v4966_v4 = vor.u32 %v5396_v55, %v4965_v53  ;;  %v2535_v6 = vpop.f32.mrf.mxu3  ;;  %v6037_v38 = vld [vmem:[%s5462_s17 + $0xac0] sm:$0x33] }
  0xd3   : > { %2977 = vmatpush.bf16.msra.mxu1 %v4370_v29  ;;  %v2536_v37 = vadd.f32 %v2535_v6, %v5925_v16  ;;  %v5081_v29 = vld [vmem:[%s5462_s17 + $0x4c] sm:$0xf]  ;;  %v3517_v6 = vmax.f32 %v2524_v52, 0.0 }
  0xd4   : > { %2951 = vmatpush.bf16.msrb.mxu3 %v4070_v60  ;;  %3002 = vmatpush.bf16.msrb.mxu2 %v4818_v61  ;;  %v4825_v60 = vld [vmem:[%s5462_s17 + $0x870] sm:$0xf]  ;;  %v5360_v61 = vld [vmem:[%s5462_s17 + $0x900] sm:$0xf0]  ;;  %v3571_v5 = vpack.c.bf16 %v3516_v63, %v3515_v2  ;;  %v3778_v23 = vor.u32 %v5081_v29, %v3775_v36  ;;  %v4833_v36 = vld [vmem:[%s5462_s17 + $0x878] sm:$0xf] }
  0xd5   : > { %v4826_v12 = vor.u32 %v5360_v61, %v4825_v60  ;;  %v4381_v60 = vld [vmem:[%s5462_s17 + $0x4f8] sm:$0xf]  ;;  %v5249_v61 = vld [vmem:[%s5462_s17 + $0x588] sm:$0xf0]  ;;  %v6062_v8 = vpop.f32.mrf.mxu1 }
  0xd6   : > { %2995 = vmatpush.bf16.msrb.mxu0 %v4962_v30  ;;  %3610 = vst [vmem:[%s5985_s6 + $0x94] sm:$0xff] %v3571_v5  ;;  %v1974_v30 = vpack.c.b16 %v1604_v11, %v1604_v11  ;;  %v4382_v10 = vor.u32 %v5249_v61, %v4381_v60  ;;  %v2563_v11 = vpop.f32.mrf.mxu2 }
  0xd7   : > { %2978 = vmatpush.bf16.msra.mxu1 %v4222_v50  ;;  %v1605_v50 = vunpack.c.l.b16 %v6037_v38 }
  0xd8   : > { %2952 = vmatpush.bf16.msrb.mxu3 %v3922_v19  ;;  %3003 = vmatpush.bf16.msrb.mxu2 %v4670_v22  ;;  %v5230_v19 = vld [vmem:[%s5462_s17 + $0x4f4] sm:$0xf]  ;;  %v2550_v22 = vadd.f32 %v2549_v49, %v2536_v37  ;;  %v2395_v43 = vand.u32 %v5474_v15, %v1974_v30  ;;  %v3929_v49 = vld [vmem:[%s5462_s17 + $0x178] sm:$0xf]  ;;  %v4082_v37 = vor.u32 %v5156_v18, %v4079_v0  ;;  %v5397_v30 = vld [vmem:[%s5462_s17 + $0xa28] sm:$0xf0] }
  0xd9   : > { %v4378_v35 = vor.u32 %v5230_v19, %v4375_v20  ;;  %v3930_v63 = vor.u32 %v5137_v42, %v3929_v49  ;;  %v1975_v5 = vpack.c.b16 %v1605_v50, %v1605_v50  ;;  %v5119_v20 = vld [vmem:[%s5462_s17 + $0x17c] sm:$0xf]  ;;  %v4383_v0 = vld [vmem:[%s5462_s17 + $0x58c] sm:$0xf0] }
  0xda   : > { %3030 = vmatpush.bf16.msra.mxu0 %v4822_v28  ;;  %v3481_v32 = vmax.f32 %v2550_v22, 0.0  ;;  %v4678_v28 = vor.u32 %v5323_v34, %v4677_v17  ;;  %v5212_v17 = vld [vmem:[%s5462_s17 + $0x460] sm:$0xf0]  ;;  %v1606_v22 = vunpack.c.h.b16 %v6037_v38  ;;  %v5361_v38 = vld [vmem:[%s5462_s17 + $0x908] sm:$0xf0] }
  0xdb   : > { %5049 = vmatmul.msk.bf16.vlgmr.msra.gmra.mxu2 %vm2323_vm2, %v5508_v54  ;;  %2979 = vmatpush.bf16.msra.mxu1 %v4074_v7  ;;  %v4234_v29 = vor.u32 %v5212_v17, %v4233_v14  ;;  %v4834_v50 = vor.u32 %v5361_v38, %v4833_v36 }
  0xdc   : > { %2953 = vmatpush.bf16.msrb.mxu3 %v3774_v40  ;;  %3004 = vmatpush.bf16.msrb.mxu2 %v4522_v47  ;;  %v5286_v40 = vld [vmem:[%s5462_s17 + $0x6b0] sm:$0xf0]  ;;  %v3553_v44 = vpack.c.bf16 %v3481_v32, %v3480_v21  ;;  %v4227_v47 = vld [vmem:[%s5462_s17 + $0x45c] sm:$0xf0]  ;;  %v3931_v21 = vld [vmem:[%s5462_s17 + $0x20c] sm:$0xf0] }
  0xdd   : > { %v4530_v55 = vor.u32 %v5286_v40, %v4529_v39  ;;  %v4230_v59 = vor.u32 %v5193_v46, %v4227_v47  ;;  %v4682_v39 = vor.u32 %v5305_v25, %v4679_v26  ;;  %v5082_v40 = vld [vmem:[%s5462_s17 + $0x54] sm:$0xf]  ;;  %v6087_v46 = vld [vmem:[%s5462_s17 + $0xac8] sm:$0x33]  ;;  %v2605_v49 = vpop.f32.mrf.mxu1 }
  0xde   : > { %3031 = vmatpush.bf16.msra.mxu0 %v4674_v58  ;;  %3591 = vst [vmem:[%s5985_s6 + $0x8] sm:$0xff] %v3553_v44  ;;  %v4967_v58 = vld [vmem:[%s5462_s17 + $0xa24] sm:$0xf0]  ;;  %v1607_v60 = vunpack.c.l.b16 %v6087_v46 }
  0xdf   : > { %2954 = vmatmul.bf16.vlgmr.msrb.gmra.mxu3 %v5563_v57  ;;  %2980 = vmatpush.bf16.msra.mxu1 %v3926_v24  ;;  %v4970_v9 = vor.u32 %v5378_v56, %v4967_v58  ;;  %v2398_v24 = vand.u32 %v5474_v15, %v1975_v5  ;;  %v3783_v44 = vld [vmem:[%s5462_s17 + $0xe4] sm:$0xf0]  ;;  %v3937_v56 = vld [vmem:[%s5462_s17 + $0x180] sm:$0xf]  ;;  %v5138_v58 = vld [vmem:[%s5462_s17 + $0x210] sm:$0xf0] }
  0xe0   : > { %3022 = vmatpush.bf16.msra.mxu3 %v2392_v41  ;;  %3005 = vmatpush.bf16.msrb.mxu2 %v4374_v3  ;;  %v2537_v41 = vpop.f32.mrf.mxu3  ;;  %v3781_v3 = vld [vmem:[%s5462_s17 + $0x50] sm:$0xf]  ;;  %v1977_v14 = vpack.c.b16 %v1607_v60, %v1607_v60  ;;  %v5213_v60 = vld [vmem:[%s5462_s17 + $0x468] sm:$0xf0] }
  0xe1   : > { %v2538_v53 = vadd.f32 %v2537_v41, %v5962_v62  ;;  %5050 = vmatmul.msk.bf16.vlgmr.msrb.gmra.mxu0 %vm2323_vm2, %v5508_v54  ;;  %v4975_v5 = vld [vmem:[%s5462_s17 + $0xa2c] sm:$0xf0] }
  0xe2   : > { %3032 = vmatpush.bf16.msra.mxu0 %v4526_v13  ;;  %v2591_v13 = vpop.f32.mrf.mxu0 }
  0xe3   : > { %v2552_v2 = vadd.f32 %v2551_v27, %v2538_v53  ;;  %2981 = vmatpush.bf16.msra.mxu1 %v3778_v23  ;;  %v4973_v27 = vld [vmem:[%s5462_s17 + $0x998] sm:$0xf]  ;;  %v2592_v32 = vadd.f32 %v2591_v13, %v5925_v16  ;;  %v5268_v23 = vld [vmem:[%s5462_s17 + $0x624] sm:$0xf]  ;;  %v2565_v53 = vpop.f32.mrf.mxu2  ;;  %v5101_v13 = vld [vmem:[%s5462_s17 + $0xe8] sm:$0xf0] }
  0xe4   : > { %3023 = vmatpush.bf16.msra.mxu3 %v4966_v4  ;;  %3006 = vmatpush.bf16.msrb.mxu2 %v4226_v51  ;;  %v5100_v4 = vld [vmem:[%s5462_s17 + $0xe0] sm:$0xf0]  ;;  %v2564_v51 = vadd.f32 %v2563_v11, %v5925_v16  ;;  %v4974_v41 = vor.u32 %v5397_v30, %v4973_v27  ;;  %v4687_v30 = vld [vmem:[%s5462_s17 + $0x7e4] sm:$0xf0] }
  0xe5   : > { %v3518_v7 = vmax.f32 %v2552_v2, 0.0  ;;  %v3782_v19 = vor.u32 %v5100_v4, %v3781_v3  ;;  %v2606_v52 = vadd.f32 %v2605_v49, %v2592_v32  ;;  %v5324_v2 = vld [vmem:[%s5462_s17 + $0x7e0] sm:$0xf0]  ;;  %v2566_v3 = vadd.f32 %v2565_v53, %v5962_v62  ;;  %v5379_v4 = vld [vmem:[%s5462_s17 + $0x99c] sm:$0xf]  ;;  %v2607_v25 = vpop.f32.mrf.mxu1 }
  0xe6   : > { %3033 = vmatpush.bf16.msra.mxu0 %v4378_v35  ;;  %2982 = vmatmul.bf16.vlgmr.msra.gmra.mxu1 %v5563_v57  ;;  %v5175_v35 = vld [vmem:[%s5462_s17 + $0x338] sm:$0xf0]  ;;  %v2578_v47 = vadd.f32 %v6033_v33, %v2564_v51  ;;  %v5194_v51 = vld [vmem:[%s5462_s17 + $0x3d4] sm:$0xf]  ;;  %v4841_v49 = vld [vmem:[%s5462_s17 + $0x880] sm:$0xf] }
  0xe7   : > { %3050 = vmatpush.bf16.msrb.mxu1 %v2395_v43  ;;  %v3572_v34 = vpack.c.bf16 %v3518_v7, %v3517_v6  ;;  %v4531_v43 = vld [vmem:[%s5462_s17 + $0x6b4] sm:$0xf0]  ;;  %v4086_v42 = vor.u32 %v5175_v35, %v4085_v31  ;;  %v3938_v6 = vor.u32 %v5138_v58, %v3937_v56  ;;  %v5343_v7 = vld [vmem:[%s5462_s17 + $0x87c] sm:$0xf]  ;;  %v5250_v35 = vld [vmem:[%s5462_s17 + $0x590] sm:$0xf0] }
  0xe8   : > { %3058 = vmatpush.bf16.msrb.mxu3 %v4826_v12  ;;  %3007 = vmatpush.bf16.msrb.mxu2 %v4078_v45  ;;  %v4830_v12 = vor.u32 %v5342_v48, %v4827_v1  ;;  %v1976_v45 = vpack.c.b16 %v1606_v22, %v1606_v22  ;;  %v4534_v61 = vor.u32 %v5268_v23, %v4531_v43  ;;  %v3482_v48 = vmax.f32 %v2578_v47, 0.0  ;;  %v4087_v43 = vld [vmem:[%s5462_s17 + $0x33c] sm:$0xf0]  ;;  %v4241_v58 = vld [vmem:[%s5462_s17 + $0x3d8] sm:$0xf] }
  0xe9   : > { %3611 = vst [vmem:[%s5985_s6 + $0x9c] sm:$0xff] %v3572_v34  ;;  %v3483_v1 = vmax.f32 %v2606_v52, 0.0  ;;  %v4978_v34 = vor.u32 %v5379_v4, %v4975_v5  ;;  %v5269_v52 = vld [vmem:[%s5462_s17 + $0x62c] sm:$0xf]  ;;  %v4539_v53 = vld [vmem:[%s5462_s17 + $0x6bc] sm:$0xf0] }
  0xea   : > { %3034 = vmatpush.bf16.msra.mxu0 %v4230_v59  ;;  %v2593_v33 = vpop.f32.mrf.mxu0  ;;  %v4685_v59 = vld [vmem:[%s5462_s17 + $0x750] sm:$0xf]  ;;  %v2401_v18 = vand.u32 %v5474_v15, %v1976_v45  ;;  %v2619_v26 = vpop.f32.mrf.mxu3  ;;  %v5232_v4 = vld [vmem:[%s5462_s17 + $0x504] sm:$0xf]  ;;  %v4391_v5 = vld [vmem:[%s5462_s17 + $0x594] sm:$0xf0] }
  0xeb   : > { %3051 = vmatpush.bf16.msrb.mxu1 %v4970_v9  ;;  %v4835_v9 = vld [vmem:[%s5462_s17 + $0x90c] sm:$0xf0]  ;;  %v2594_v11 = vadd.f32 %v2593_v33, %v5962_v62  ;;  %v2633_v36 = vpop.f32.mrf.mxu2  ;;  %v2620_v33 = vadd.f32 %v2619_v26, %v5925_v16 }
  0xec   : > { %3059 = vmatpush.bf16.msrb.mxu3 %v4678_v28  ;;  %3008 = vmatpush.bf16.msrb.mxu2 %v3930_v63  ;;  %v3934_v28 = vor.u32 %v5119_v20, %v3931_v21  ;;  %v5231_v63 = vld [vmem:[%s5462_s17 + $0x4fc] sm:$0xf]  ;;  %v2580_v21 = vadd.f32 %v6062_v8, %v2566_v3  ;;  %v4838_v22 = vor.u32 %v5343_v7, %v4835_v9 }
  0xed   : > { %v4386_v17 = vor.u32 %v5231_v63, %v4383_v0  ;;  %v5287_v20 = vld [vmem:[%s5462_s17 + $0x6b8] sm:$0xf0]  ;;  %v2608_v31 = vadd.f32 %v2607_v25, %v2594_v11  ;;  %v2404_v8 = vand.u32 %v5474_v15, %v1977_v14  ;;  %v4542_v63 = vor.u32 %v5269_v52, %v4539_v53  ;;  %v4693_v0 = vld [vmem:[%s5462_s17 + $0x758] sm:$0xf]  ;;  %v2647_v3 = vpop.f32.mrf.mxu1 }
  0xee   : > { %3035 = vmatpush.bf16.msra.mxu0 %v4082_v37  ;;  %v4686_v37 = vor.u32 %v5324_v2, %v4685_v59  ;;  %v3519_v45 = vmax.f32 %v2580_v21, 0.0  ;;  %v2648_v7 = vadd.f32 %v2647_v3, %v5925_v16  ;;  %v4242_v9 = vor.u32 %v5213_v60, %v4241_v58  ;;  %v5195_v25 = vld [vmem:[%s5462_s17 + $0x3dc] sm:$0xf] }
  0xef   : > { %3086 = vmatpush.bf16.msra.mxu1 %v4830_v12  ;;  %5051 = vmatmul.msk.bf16.vlgmr.msra.gmra.mxu3 %vm2323_vm2, %v5508_v54  ;;  %v3789_v12 = vld [vmem:[%s5462_s17 + $0x58] sm:$0xf]  ;;  %v3520_v47 = vmax.f32 %v2608_v31, 0.0  ;;  %v4394_v14 = vor.u32 %v5232_v4, %v4391_v5  ;;  %v4243_v31 = vld [vmem:[%s5462_s17 + $0x46c] sm:$0xf0] }
  0xf0   : > { %3060 = vmatpush.bf16.msrb.mxu3 %v4530_v55  ;;  %3009 = vmatpush.bf16.msrb.mxu2 %v3782_v19  ;;  %v3786_v55 = vor.u32 %v5082_v40, %v3783_v44  ;;  %v4537_v19 = vld [vmem:[%s5462_s17 + $0x628] sm:$0xf]  ;;  %v3790_v27 = vor.u32 %v5101_v13, %v3789_v12  ;;  %v4981_v40 = vld [vmem:[%s5462_s17 + $0x9a0] sm:$0xf]  ;;  %v5398_v44 = vld [vmem:[%s5462_s17 + $0xa30] sm:$0xf0] }
  0xf1   : > { %v4538_v32 = vor.u32 %v5287_v20, %v4537_v19  ;;  %v4982_v56 = vor.u32 %v5398_v44, %v4981_v40  ;;  %v5176_v12 = vld [vmem:[%s5462_s17 + $0x340] sm:$0xf0]  ;;  %v6151_v20 = vld [vmem:[%s5462_s17 + $0xad0] sm:$0x33]  ;;  %v5121_v4 = vld [vmem:[%s5462_s17 + $0x18c] sm:$0xf] }
  0xf2   : > { %3036 = vmatpush.bf16.msra.mxu0 %v3934_v28  ;;  %v4389_v28 = vld [vmem:[%s5462_s17 + $0x500] sm:$0xf]  ;;  %v2661_v23 = vpop.f32.mrf.mxu0 }
  0xf3   : > { %3010 = vmatmul.bf16.vlgmr.msrb.gmra.mxu2 %v5563_v57  ;;  %3087 = vmatpush.bf16.msra.mxu1 %v4682_v39  ;;  %v5157_v39 = vld [vmem:[%s5462_s17 + $0x2ac] sm:$0xf]  ;;  %v2662_v13 = vadd.f32 %v2661_v23, %v2648_v7  ;;  %v2635_v21 = vpop.f32.mrf.mxu2  ;;  %v3947_v5 = vld [vmem:[%s5462_s17 + $0x21c] sm:$0xf0] }
  0xf4   : > { %3061 = vmatpush.bf16.msrb.mxu3 %v4382_v10  ;;  %3078 = vmatpush.bf16.msra.mxu2 %v2398_v24  ;;  %v3554_v10 = vpack.c.bf16 %v3483_v1, %v3482_v48  ;;  %v4235_v24 = vld [vmem:[%s5462_s17 + $0x464] sm:$0xf0]  ;;  %v4090_v59 = vor.u32 %v5157_v39, %v4087_v43  ;;  %v5325_v48 = vld [vmem:[%s5462_s17 + $0x7e8] sm:$0xf0]  ;;  %v1608_v1 = vunpack.c.h.b16 %v6087_v46  ;;  %v4246_v43 = vor.u32 %v5195_v25, %v4243_v31 }
  0xf5   : > { %v4238_v38 = vor.u32 %v5194_v51, %v4235_v24  ;;  %v4694_v11 = vor.u32 %v5325_v48, %v4693_v0  ;;  %v4545_v51 = vld [vmem:[%s5462_s17 + $0x630] sm:$0xf]  ;;  %v5288_v24 = vld [vmem:[%s5462_s17 + $0x6c0] sm:$0xf0]  ;;  %v2649_v23 = vpop.f32.mrf.mxu1 }
  0xf6   : > { %3037 = vmatpush.bf16.msra.mxu0 %v3786_v55  ;;  %3592 = vst [vmem:[%s5985_s6 + $0x10] sm:$0xff] %v3554_v10  ;;  %5052 = vmatmul.msk.bf16.vlgmr.msrb.gmra.mxu1 %vm2323_vm2, %v5508_v54  ;;  %v3573_v55 = vpack.c.bf16 %v3520_v47, %v3519_v45  ;;  %v2621_v10 = vpop.f32.mrf.mxu3  ;;  %v1978_v19 = vpack.c.b16 %v1608_v1, %v1608_v1  ;;  %v4397_v45 = vld [vmem:[%s5462_s17 + $0x508] sm:$0xf]  ;;  %v5251_v47 = vld [vmem:[%s5462_s17 + $0x598] sm:$0xf0] }
  0xf7   : > { %3088 = vmatpush.bf16.msra.mxu1 %v4534_v61  ;;  %v5120_v61 = vld [vmem:[%s5462_s17 + $0x184] sm:$0xf]  ;;  %v4546_v44 = vor.u32 %v5288_v24, %v4545_v51  ;;  %v2650_v53 = vadd.f32 %v2649_v23, %v5962_v62  ;;  %v5177_v51 = vld [vmem:[%s5462_s17 + $0x348] sm:$0xf0]  ;;  %v3950_v24 = vor.u32 %v5121_v4, %v3947_v5  ;;  %v3953_v23 = vld [vmem:[%s5462_s17 + $0x190] sm:$0xf] }
  0xf8   : > { %3062 = vmatpush.bf16.msrb.mxu3 %v4234_v29  ;;  %3079 = vmatpush.bf16.msra.mxu2 %v4974_v41  ;;  %v5306_v29 = vld [vmem:[%s5462_s17 + $0x754] sm:$0xf]  ;;  %3612 = vst [vmem:[%s5985_s6 + $0xa4] sm:$0xff] %v3573_v55  ;;  %v2407_v40 = vand.u32 %v5474_v15, %v1978_v19  ;;  %v3805_v4 = vld [vmem:[%s5462_s17 + $0x68] sm:$0xf] }
  0xf9   : > { %3038 = vmatmul.bf16.vlgmr.msra.gmra.mxu0 %v5563_v57  ;;  %v4690_v41 = vor.u32 %v5306_v29, %v4687_v30  ;;  %v3485_v29 = vmax.f32 %v2662_v13, 0.0  ;;  %v5103_v5 = vld [vmem:[%s5462_s17 + $0xf8] sm:$0xf0] }
  0xfa   : > { %3106 = vmatpush.bf16.msrb.mxu0 %v2401_v18  ;;  %v3939_v18 = vld [vmem:[%s5462_s17 + $0x214] sm:$0xf0] }
  0xfb   : > { %3089 = vmatpush.bf16.msra.mxu1 %v4386_v17  ;;  %v3942_v46 = vor.u32 %v5120_v61, %v3939_v18  ;;  %v5083_v17 = vld [vmem:[%s5462_s17 + $0x5c] sm:$0xf]  ;;  %v4398_v18 = vor.u32 %v5251_v47, %v4397_v45 }
  0xfc   : > { %3063 = vmatpush.bf16.msrb.mxu3 %v4086_v42  ;;  %3114 = vmatpush.bf16.msrb.mxu2 %v4834_v50  ;;  %v4390_v42 = vor.u32 %v5250_v35, %v4389_v28  ;;  %v5362_v50 = vld [vmem:[%s5462_s17 + $0x910] sm:$0xf0]  ;;  %v5139_v28 = vld [vmem:[%s5462_s17 + $0x218] sm:$0xf0]  ;;  %v5380_v35 = vld [vmem:[%s5462_s17 + $0x9a4] sm:$0xf] }
  0xfd   : > { %v4842_v2 = vor.u32 %v5362_v50, %v4841_v49  ;;  %v4095_v49 = vld [vmem:[%s5462_s17 + $0x344] sm:$0xf0]  ;;  %v4843_v50 = vld [vmem:[%s5462_s17 + $0x914] sm:$0xf0] }
  0xfe   : > { %3107 = vmatpush.bf16.msrb.mxu0 %v4978_v34  ;;  %v3791_v34 = vld [vmem:[%s5462_s17 + $0xec] sm:$0xf0]  ;;  %v2689_v58 = vpop.f32.mrf.mxu3  ;;  %v2675_v0 = vpop.f32.mrf.mxu2 }
  0xff   : > { %3090 = vmatpush.bf16.msra.mxu1 %v4238_v38  ;;  %v1609_v38 = vunpack.c.l.b16 %v6151_v20 }
 0x100   : > { %3064 = vmatpush.bf16.msrb.mxu3 %v3938_v6  ;;  %3115 = vmatpush.bf16.msrb.mxu2 %v4686_v37  ;;  %v2634_v6 = vadd.f32 %v2633_v36, %v2620_v33  ;;  %v4093_v37 = vld [vmem:[%s5462_s17 + $0x2b0] sm:$0xf]  ;;  %v4983_v36 = vld [vmem:[%s5462_s17 + $0xa34] sm:$0xf0]  ;;  %v3797_v33 = vld [vmem:[%s5462_s17 + $0x60] sm:$0xf] }
 0x101   : > { %v4094_v30 = vor.u32 %v5176_v12, %v4093_v37  ;;  %v4986_v61 = vor.u32 %v5380_v35, %v4983_v36 }
 0x102   : > { %3142 = vmatpush.bf16.msra.mxu0 %v4838_v22  ;;  %v2663_v22 = vpop.f32.mrf.mxu0  ;;  %v3484_v26 = vmax.f32 %v2634_v6, 0.0 }
 0x103   : > { %5053 = vmatmul.msk.bf16.vlgmr.msra.gmra.mxu2 %vm2323_vm2, %v5508_v54  ;;  %3091 = vmatpush.bf16.msra.mxu1 %v4090_v59  ;;  %v1979_v59 = vpack.c.b16 %v1609_v38, %v1609_v38  ;;  %v2664_v60 = vadd.f32 %v2663_v22, %v2650_v53  ;;  %v4101_v22 = vld [vmem:[%s5462_s17 + $0x2b8] sm:$0xf]  ;;  %v5270_v38 = vld [vmem:[%s5462_s17 + $0x634] sm:$0xf] }
 0x104   : > { %3065 = vmatpush.bf16.msrb.mxu3 %v3790_v27  ;;  %3116 = vmatpush.bf16.msrb.mxu2 %v4538_v32  ;;  %v2622_v27 = vadd.f32 %v2621_v10, %v5962_v62  ;;  %v3945_v32 = vld [vmem:[%s5462_s17 + $0x188] sm:$0xf]  ;;  %v3555_v39 = vpack.c.bf16 %v3485_v29, %v3484_v26  ;;  %v5307_v10 = vld [vmem:[%s5462_s17 + $0x75c] sm:$0xf]  ;;  %v5084_v29 = vld [vmem:[%s5462_s17 + $0x64] sm:$0xf] }
 0x105   : > { %v3946_v55 = vor.u32 %v5139_v28, %v3945_v32  ;;  %v3522_v7 = vmax.f32 %v2664_v60, 0.0  ;;  %v2410_v12 = vand.u32 %v5474_v15, %v1979_v59  ;;  %v4849_v26 = vld [vmem:[%s5462_s17 + $0x888] sm:$0xf]  ;;  %v3799_v32 = vld [vmem:[%s5462_s17 + $0xf4] sm:$0xf0] }
 0x106   : > { %3143 = vmatpush.bf16.msra.mxu0 %v4690_v41  ;;  %v5158_v41 = vld [vmem:[%s5462_s17 + $0x2b4] sm:$0xf]  ;;  %3593 = vst [vmem:[%s5985_s6 + $0x18] sm:$0xff] %v3555_v39  ;;  %v2636_v52 = vadd.f32 %v2635_v21, %v2622_v27  ;;  %v5399_v21 = vld [vmem:[%s5462_s17 + $0xa38] sm:$0xf0]  ;;  %v2691_v35 = vpop.f32.mrf.mxu3  ;;  %v2677_v47 = vpop.f32.mrf.mxu2 }
 0x107   : > { %3066 = vmatmul.bf16.vlgmr.msrb.gmra.mxu3 %v5563_v57  ;;  %3092 = vmatpush.bf16.msra.mxu1 %v3942_v46  ;;  %v4098_v48 = vor.u32 %v5158_v41, %v4095_v49  ;;  %v4695_v46 = vld [vmem:[%s5462_s17 + $0x7ec] sm:$0xf0]  ;;  %v5363_v27 = vld [vmem:[%s5462_s17 + $0x918] sm:$0xf0]  ;;  %v4547_v39 = vld [vmem:[%s5462_s17 + $0x6c4] sm:$0xf0]  ;;  %v3802_v41 = vor.u32 %v5084_v29, %v3799_v32 }
 0x108   : > { %3134 = vmatpush.bf16.msra.mxu3 %v2404_v8  ;;  %3117 = vmatpush.bf16.msrb.mxu2 %v4390_v42  ;;  %v3794_v8 = vor.u32 %v5083_v17, %v3791_v34  ;;  %v5344_v42 = vld [vmem:[%s5462_s17 + $0x884] sm:$0xf]  ;;  %v3521_v6 = vmax.f32 %v2636_v52, 0.0  ;;  %v4698_v25 = vor.u32 %v5307_v10, %v4695_v46  ;;  %v6199_v28 = vld [vmem:[%s5462_s17 + $0xad8] sm:$0x33]  ;;  %v4850_v45 = vor.u32 %v5363_v27, %v4849_v26 }
 0x109   : > { %5054 = vmatmul.msk.bf16.vlgmr.msrb.gmra.mxu0 %vm2323_vm2, %v5508_v54  ;;  %v4846_v1 = vor.u32 %v5344_v42, %v4843_v50  ;;  %v1611_v49 = vunpack.c.l.b16 %v6199_v28  ;;  %v2678_v50 = vadd.f32 %v2677_v47, %v5962_v62  ;;  %v4550_v52 = vor.u32 %v5270_v38, %v4547_v39  ;;  %v4399_v59 = vld [vmem:[%s5462_s17 + $0x59c] sm:$0xf0]  ;;  %v5381_v60 = vld [vmem:[%s5462_s17 + $0x9ac] sm:$0xf]  ;;  %v4553_v46 = vld [vmem:[%s5462_s17 + $0x638] sm:$0xf] }
 0x10a   : > { %3144 = vmatpush.bf16.msra.mxu0 %v4542_v63  ;;  %v5214_v63 = vld [vmem:[%s5462_s17 + $0x470] sm:$0xf0]  ;;  %v2703_v37 = vpop.f32.mrf.mxu0  ;;  %v3574_v17 = vpack.c.bf16 %v3522_v7, %v3521_v6  ;;  %v5252_v26 = vld [vmem:[%s5462_s17 + $0x5a0] sm:$0xf0]  ;;  %v4857_v38 = vld [vmem:[%s5462_s17 + $0x890] sm:$0xf] }
 0x10b   : > { %3093 = vmatpush.bf16.msra.mxu1 %v3794_v8  ;;  %v2704_v19 = vadd.f32 %v2703_v37, %v5925_v16  ;;  %v1981_v6 = vpack.c.b16 %v1611_v49, %v1611_v49  ;;  %v5400_v32 = vld [vmem:[%s5462_s17 + $0xa40] sm:$0xf0]  ;;  %v5215_v49 = vld [vmem:[%s5462_s17 + $0x478] sm:$0xf0] }
 0x10c   : > { %3135 = vmatpush.bf16.msra.mxu3 %v4982_v56  ;;  %3118 = vmatpush.bf16.msrb.mxu2 %v4242_v9  ;;  %v5102_v56 = vld [vmem:[%s5462_s17 + $0xf0] sm:$0xf0]  ;;  %v2676_v9 = vadd.f32 %v2675_v0, %v5925_v16  ;;  %3613 = vst [vmem:[%s5985_s6 + $0xac] sm:$0xff] %v3574_v17  ;;  %v5345_v0 = vld [vmem:[%s5462_s17 + $0x88c] sm:$0xf] }
 0x10d   : > { %v3798_v3 = vor.u32 %v5102_v56, %v3797_v33  ;;  %v5326_v33 = vld [vmem:[%s5462_s17 + $0x7f0] sm:$0xf0]  ;;  %v5233_v56 = vld [vmem:[%s5462_s17 + $0x50c] sm:$0xf]  ;;  %v5364_v39 = vld [vmem:[%s5462_s17 + $0x920] sm:$0xf0] }
 0x10e   : > { %3145 = vmatpush.bf16.msra.mxu0 %v4394_v14  ;;  %3094 = vmatmul.bf16.vlgmr.msra.gmra.mxu1 %v5563_v57  ;;  %v4989_v14 = vld [vmem:[%s5462_s17 + $0x9a8] sm:$0xf]  ;;  %v2690_v34 = vadd.f32 %v2689_v58, %v2676_v9  ;;  %v4402_v9 = vor.u32 %v5233_v56, %v4399_v59  ;;  %v1612_v56 = vunpack.c.h.b16 %v6199_v28  ;;  %v4109_v28 = vld [vmem:[%s5462_s17 + $0x2c0] sm:$0xf] }
 0x10f   : > { %3162 = vmatpush.bf16.msrb.mxu1 %v2407_v40  ;;  %v4990_v36 = vor.u32 %v5399_v21, %v4989_v14  ;;  %v4251_v14 = vld [vmem:[%s5462_s17 + $0x474] sm:$0xf0]  ;;  %v5308_v21 = vld [vmem:[%s5462_s17 + $0x764] sm:$0xf] }
 0x110   : > { %3170 = vmatpush.bf16.msrb.mxu3 %v4842_v2  ;;  %3119 = vmatpush.bf16.msrb.mxu2 %v4094_v30  ;;  %v4249_v2 = vld [vmem:[%s5462_s17 + $0x3e0] sm:$0xf]  ;;  %v3486_v30 = vmax.f32 %v2690_v34, 0.0 }
 0x111   : > { %v4250_v13 = vor.u32 %v5214_v63, %v4249_v2 }
 0x112   : > { %3146 = vmatpush.bf16.msra.mxu0 %v4246_v43  ;;  %v5140_v43 = vld [vmem:[%s5462_s17 + $0x220] sm:$0xf0]  ;;  %v2705_v58 = vpop.f32.mrf.mxu0  ;;  %v2731_v37 = vpop.f32.mrf.mxu3 }
 0x113   : > { %3163 = vmatpush.bf16.msrb.mxu1 %v4986_v61  ;;  %v4991_v61 = vld [vmem:[%s5462_s17 + $0xa3c] sm:$0xf0]  ;;  %v2706_v2 = vadd.f32 %v2705_v58, %v5962_v62  ;;  %v3954_v63 = vor.u32 %v5140_v43, %v3953_v23  ;;  %v4257_v43 = vld [vmem:[%s5462_s17 + $0x3e8] sm:$0xf] }
 0x114   : > { %3171 = vmatpush.bf16.msrb.mxu3 %v4694_v11  ;;  %3120 = vmatpush.bf16.msrb.mxu2 %v3946_v55  ;;  %v1610_v11 = vunpack.c.h.b16 %v6151_v20  ;;  %v2717_v20 = vpop.f32.mrf.mxu1  ;;  %v4701_v55 = vld [vmem:[%s5462_s17 + $0x760] sm:$0xf]  ;;  %v4994_v10 = vor.u32 %v5381_v60, %v4991_v61  ;;  %v5327_v60 = vld [vmem:[%s5462_s17 + $0x7f8] sm:$0xf0]  ;;  %v5234_v61 = vld [vmem:[%s5462_s17 + $0x514] sm:$0xf] }
 0x115   : > { %v2718_v31 = vadd.f32 %v2717_v20, %v2704_v19  ;;  %v3806_v19 = vor.u32 %v5103_v5, %v3805_v4 }
 0x116   : > { %3147 = vmatpush.bf16.msra.mxu0 %v4098_v48  ;;  %v1980_v8 = vpack.c.b16 %v1610_v11, %v1610_v11  ;;  %v4851_v48 = vld [vmem:[%s5462_s17 + $0x91c] sm:$0xf0]  ;;  %v5289_v11 = vld [vmem:[%s5462_s17 + $0x6c8] sm:$0xf0] }
 0x117   : > { %3198 = vmatpush.bf16.msra.mxu1 %v4846_v1  ;;  %5055 = vmatmul.msk.bf16.vlgmr.msra.gmra.mxu3 %vm2323_vm2, %v5508_v54  ;;  %v3487_v40 = vmax.f32 %v2718_v31, 0.0  ;;  %v4554_v20 = vor.u32 %v5289_v11, %v4553_v46  ;;  %v4997_v31 = vld [vmem:[%s5462_s17 + $0x9b0] sm:$0xf]  ;;  %v6261_v46 = vld [vmem:[%s5462_s17 + $0xae0] sm:$0x33] }
 0x118   : > { %3172 = vmatpush.bf16.msrb.mxu3 %v4546_v44  ;;  %3121 = vmatpush.bf16.msrb.mxu2 %v3798_v3  ;;  %v4102_v44 = vor.u32 %v5177_v51, %v4101_v22  ;;  %v2413_v53 = vand.u32 %v5474_v15, %v1980_v8  ;;  %v4702_v3 = vor.u32 %v5326_v33, %v4701_v55  ;;  %v4703_v22 = vld [vmem:[%s5462_s17 + $0x7f4] sm:$0xf0]  ;;  %v2745_v51 = vpop.f32.mrf.mxu2  ;;  %v3955_v55 = vld [vmem:[%s5462_s17 + $0x224] sm:$0xf0] }
 0x119   : > { %v3556_v42 = vpack.c.bf16 %v3487_v40, %v3486_v30  ;;  %v5159_v30 = vld [vmem:[%s5462_s17 + $0x2bc] sm:$0xf]  ;;  %v2732_v40 = vadd.f32 %v2731_v37, %v5925_v16  ;;  %v4709_v33 = vld [vmem:[%s5462_s17 + $0x768] sm:$0xf] }
 0x11a   : > { %3148 = vmatpush.bf16.msra.mxu0 %v3950_v24  ;;  %v2416_v24 = vand.u32 %v5474_v15, %v1981_v6  ;;  %v2773_v8 = vpop.f32.mrf.mxu0  ;;  %v4710_v4 = vor.u32 %v5327_v60, %v4709_v33  ;;  %v4265_v60 = vld [vmem:[%s5462_s17 + $0x3f0] sm:$0xf] }
 0x11b   : > { %3122 = vmatmul.bf16.vlgmr.msrb.gmra.mxu2 %v5563_v57  ;;  %3199 = vmatpush.bf16.msra.mxu1 %v4698_v25  ;;  %3594 = vst [vmem:[%s5985_s6 + $0x20] sm:$0xff] %v3556_v42  ;;  %v4405_v25 = vld [vmem:[%s5462_s17 + $0x510] sm:$0xf]  ;;  %v2746_v58 = vadd.f32 %v2745_v51, %v2732_v40  ;;  %v3961_v51 = vld [vmem:[%s5462_s17 + $0x198] sm:$0xf] }
 0x11c   : > { %3173 = vmatpush.bf16.msrb.mxu3 %v4398_v18  ;;  %3190 = vmatpush.bf16.msra.mxu2 %v2410_v12  ;;  %v2692_v18 = vadd.f32 %v2691_v35, %v2678_v50  ;;  %v2719_v1 = vpop.f32.mrf.mxu1  ;;  %v4854_v12 = vor.u32 %v5345_v0, %v4851_v48  ;;  %v4706_v35 = vor.u32 %v5308_v21, %v4703_v22 }
 0x11d   : > { %v2720_v7 = vadd.f32 %v2719_v1, %v2706_v2  ;;  %v4406_v47 = vor.u32 %v5252_v26, %v4405_v25  ;;  %v4858_v50 = vor.u32 %v5364_v39, %v4857_v38  ;;  %v2733_v2 = vpop.f32.mrf.mxu3  ;;  %v5178_v1 = vld [vmem:[%s5462_s17 + $0x350] sm:$0xf0]  ;;  %v3488_v11 = vmax.f32 %v2746_v58, 0.0  ;;  %v5160_v38 = vld [vmem:[%s5462_s17 + $0x2c4] sm:$0xf] }
 0x11e   : > { %3149 = vmatpush.bf16.msra.mxu0 %v3802_v41  ;;  %v3523_v17 = vmax.f32 %v2692_v18, 0.0  ;;  %5056 = vmatmul.msk.bf16.vlgmr.msrb.gmra.mxu1 %vm2323_vm2, %v5508_v54  ;;  %v4998_v41 = vor.u32 %v5400_v32, %v4997_v31  ;;  %v4407_v18 = vld [vmem:[%s5462_s17 + $0x5a4] sm:$0xf0]  ;;  %v1613_v25 = vunpack.c.l.b16 %v6261_v46  ;;  %v4413_v31 = vld [vmem:[%s5462_s17 + $0x518] sm:$0xf] }
 0x11f   : > { %3200 = vmatpush.bf16.msra.mxu1 %v4550_v52  ;;  %v3524_v34 = vmax.f32 %v2720_v7, 0.0  ;;  %v4410_v6 = vor.u32 %v5234_v61, %v4407_v18  ;;  %v5085_v7 = vld [vmem:[%s5462_s17 + $0x6c] sm:$0xf]  ;;  %v4111_v39 = vld [vmem:[%s5462_s17 + $0x354] sm:$0xf0] }
 0x120   : > { %3174 = vmatpush.bf16.msrb.mxu3 %v4250_v13  ;;  %3191 = vmatpush.bf16.msra.mxu2 %v4990_v36  ;;  %v5196_v13 = vld [vmem:[%s5462_s17 + $0x3e4] sm:$0xf]  ;;  %v4103_v36 = vld [vmem:[%s5462_s17 + $0x34c] sm:$0xf0]  ;;  %v5253_v32 = vld [vmem:[%s5462_s17 + $0x5a8] sm:$0xf0] }
 0x121   : > { %3150 = vmatmul.bf16.vlgmr.msra.gmra.mxu0 %v5563_v57  ;;  %v3575_v27 = vpack.c.bf16 %v3524_v34, %v3523_v17  ;;  %v4254_v29 = vor.u32 %v5196_v13, %v4251_v14  ;;  %v4106_v23 = vor.u32 %v5159_v30, %v4103_v36  ;;  %v4561_v13 = vld [vmem:[%s5462_s17 + $0x640] sm:$0xf]  ;;  %v5290_v14 = vld [vmem:[%s5462_s17 + $0x6d0] sm:$0xf0]  ;;  %v4110_v17 = vor.u32 %v5178_v1, %v4109_v28  ;;  %v5197_v34 = vld [vmem:[%s5462_s17 + $0x3ec] sm:$0xf] }
 0x122   : > { %3218 = vmatpush.bf16.msrb.mxu0 %v2413_v53  ;;  %v5122_v53 = vld [vmem:[%s5462_s17 + $0x194] sm:$0xf]  ;;  %v2775_v5 = vpop.f32.mrf.mxu0  ;;  %v4999_v30 = vld [vmem:[%s5462_s17 + $0xa44] sm:$0xf0]  ;;  %v5216_v61 = vld [vmem:[%s5462_s17 + $0x480] sm:$0xf0] }
 0x123   : > { %3201 = vmatpush.bf16.msra.mxu1 %v4402_v9  ;;  %3614 = vst [vmem:[%s5985_s6 + $0xb4] sm:$0xff] %v3575_v27  ;;  %v3958_v48 = vor.u32 %v5122_v53, %v3955_v55  ;;  %v3807_v9 = vld [vmem:[%s5462_s17 + $0xfc] sm:$0xf0]  ;;  %v4114_v53 = vor.u32 %v5160_v38, %v4111_v39  ;;  %v5142_v39 = vld [vmem:[%s5462_s17 + $0x230] sm:$0xf0] }
 0x124   : > { %3175 = vmatpush.bf16.msrb.mxu3 %v4102_v44  ;;  %3226 = vmatpush.bf16.msrb.mxu2 %v4850_v45  ;;  %v5271_v44 = vld [vmem:[%s5462_s17 + $0x63c] sm:$0xf]  ;;  %v4555_v45 = vld [vmem:[%s5462_s17 + $0x6cc] sm:$0xf0]  ;;  %v2759_v42 = vpop.f32.mrf.mxu1  ;;  %v3810_v22 = vor.u32 %v5085_v7, %v3807_v9  ;;  %v4266_v9 = vor.u32 %v5216_v61, %v4265_v60  ;;  %v3969_v38 = vld [vmem:[%s5462_s17 + $0x1a0] sm:$0xf] }
 0x125   : > { %v4558_v52 = vor.u32 %v5271_v44, %v4555_v45  ;;  %v2760_v59 = vadd.f32 %v2759_v42, %v5925_v16  ;;  %v2801_v40 = vpop.f32.mrf.mxu3  ;;  %v5346_v45 = vld [vmem:[%s5462_s17 + $0x894] sm:$0xf]  ;;  %v3821_v61 = vld [vmem:[%s5462_s17 + $0x78] sm:$0xf] }
 0x126   : > { %3219 = vmatpush.bf16.msrb.mxu0 %v4994_v10  ;;  %v1982_v10 = vpack.c.b16 %v1612_v56, %v1612_v56 }
 0x127   : > { %3202 = vmatpush.bf16.msra.mxu1 %v4254_v29  ;;  %v2774_v0 = vadd.f32 %v2773_v8, %v2760_v59  ;;  %v4562_v29 = vor.u32 %v5290_v14, %v4561_v13  ;;  %v4865_v14 = vld [vmem:[%s5462_s17 + $0x898] sm:$0xf] }
 0x128   : > { %3176 = vmatpush.bf16.msrb.mxu3 %v3954_v63  ;;  %3227 = vmatpush.bf16.msrb.mxu2 %v4702_v3  ;;  %v4258_v63 = vor.u32 %v5215_v49, %v4257_v43  ;;  %v2747_v3 = vpop.f32.mrf.mxu2  ;;  %v2419_v27 = vand.u32 %v5474_v15, %v1982_v10  ;;  %v5104_v43 = vld [vmem:[%s5462_s17 + $0x100] sm:$0xf0]  ;;  %v1983_v49 = vpack.c.b16 %v1613_v25, %v1613_v25  ;;  %v5401_v10 = vld [vmem:[%s5462_s17 + $0xa48] sm:$0xf0] }
 0x129   : > { %v3489_v37 = vmax.f32 %v2774_v0, 0.0  ;;  %v3963_v0 = vld [vmem:[%s5462_s17 + $0x22c] sm:$0xf0] }
 0x12a   : > { %3254 = vmatpush.bf16.msra.mxu0 %v4854_v12  ;;  %v2734_v12 = vadd.f32 %v2733_v2, %v5962_v62  ;;  %v2815_v58 = vpop.f32.mrf.mxu0 }
 0x12b   : > { %5057 = vmatmul.msk.bf16.vlgmr.msra.gmra.mxu2 %vm2323_vm2, %v5508_v54  ;;  %3203 = vmatpush.bf16.msra.mxu1 %v4106_v23  ;;  %v3557_v21 = vpack.c.bf16 %v3489_v37, %v3488_v11  ;;  %v3813_v23 = vld [vmem:[%s5462_s17 + $0x70] sm:$0xf]  ;;  %v2816_v18 = vadd.f32 %v2815_v58, %v5925_v16  ;;  %v4117_v11 = vld [vmem:[%s5462_s17 + $0x2c8] sm:$0xf]  ;;  %v5179_v37 = vld [vmem:[%s5462_s17 + $0x358] sm:$0xf0] }
 0x12c   : > { %3177 = vmatpush.bf16.msrb.mxu3 %v3806_v19  ;;  %3228 = vmatpush.bf16.msrb.mxu2 %v4554_v20  ;;  %v4259_v19 = vld [vmem:[%s5462_s17 + $0x47c] sm:$0xf0]  ;;  %v5141_v20 = vld [vmem:[%s5462_s17 + $0x228] sm:$0xf0]  ;;  %v2761_v26 = vpop.f32.mrf.mxu1  ;;  %v2748_v8 = vadd.f32 %v2747_v3, %v2734_v12  ;;  %v3814_v2 = vor.u32 %v5104_v43, %v3813_v23  ;;  %v2422_v3 = vand.u32 %v5474_v15, %v1983_v49  ;;  %v5328_v23 = vld [vmem:[%s5462_s17 + $0x800] sm:$0xf0] }
 0x12d   : > { %3595 = vst [vmem:[%s5985_s6 + $0x28] sm:$0xff] %v3557_v21  ;;  %v4262_v36 = vor.u32 %v5197_v34, %v4259_v19  ;;  %v3962_v44 = vor.u32 %v5141_v20, %v3961_v51  ;;  %v2803_v19 = vpop.f32.mrf.mxu3  ;;  %v5086_v21 = vld [vmem:[%s5462_s17 + $0x74] sm:$0xf]  ;;  %v6309_v20 = vld [vmem:[%s5462_s17 + $0xae8] sm:$0x33] }
 0x12e   : > { %3255 = vmatpush.bf16.msra.mxu0 %v4706_v35  ;;  %v2762_v35 = vadd.f32 %v2761_v26, %v5962_v62  ;;  %v3525_v55 = vmax.f32 %v2748_v8, 0.0  ;;  %v5272_v26 = vld [vmem:[%s5462_s17 + $0x644] sm:$0xf]  ;;  %v5235_v43 = vld [vmem:[%s5462_s17 + $0x51c] sm:$0xf] }
 0x12f   : > { %3178 = vmatmul.bf16.vlgmr.msrb.gmra.mxu3 %v5563_v57  ;;  %3204 = vmatpush.bf16.msra.mxu1 %v3958_v48  ;;  %v1614_v48 = vunpack.c.h.b16 %v6261_v46  ;;  %v4415_v49 = vld [vmem:[%s5462_s17 + $0x5ac] sm:$0xf0] }
 0x130   : > { %3246 = vmatpush.bf16.msra.mxu3 %v2416_v24  ;;  %3229 = vmatpush.bf16.msrb.mxu2 %v4406_v47  ;;  %v5382_v24 = vld [vmem:[%s5462_s17 + $0x9b4] sm:$0xf]  ;;  %v4859_v47 = vld [vmem:[%s5462_s17 + $0x924] sm:$0xf0]  ;;  %v2787_v42 = vpop.f32.mrf.mxu2 }
 0x131   : > { %5058 = vmatmul.msk.bf16.vlgmr.msrb.gmra.mxu0 %vm2323_vm2, %v5508_v54  ;;  %v2788_v56 = vadd.f32 %v2787_v42, %v5925_v16  ;;  %v4862_v59 = vor.u32 %v5346_v45, %v4859_v47  ;;  %v1984_v51 = vpack.c.b16 %v1614_v48, %v1614_v48 }
 0x132   : > { %3256 = vmatpush.bf16.msra.mxu0 %v4558_v52  ;;  %v4414_v52 = vor.u32 %v5253_v32, %v4413_v31 }
 0x133   : > { %3205 = vmatpush.bf16.msra.mxu1 %v3810_v22  ;;  %v2802_v1 = vadd.f32 %v2801_v40, %v2788_v56  ;;  %v3815_v22 = vld [vmem:[%s5462_s17 + $0x104] sm:$0xf0]  ;;  %v4717_v40 = vld [vmem:[%s5462_s17 + $0x770] sm:$0xf] }
 0x134   : > { %3247 = vmatpush.bf16.msra.mxu3 %v4998_v41  ;;  %3230 = vmatpush.bf16.msrb.mxu2 %v4258_v63  ;;  %v2776_v41 = vadd.f32 %v2775_v5, %v2762_v35  ;;  %v5123_v63 = vld [vmem:[%s5462_s17 + $0x19c] sm:$0xf]  ;;  %v4711_v5 = vld [vmem:[%s5462_s17 + $0x7fc] sm:$0xf0]  ;;  %v2829_v7 = vpop.f32.mrf.mxu1  ;;  %v2817_v35 = vpop.f32.mrf.mxu0  ;;  %v4867_v56 = vld [vmem:[%s5462_s17 + $0x92c] sm:$0xf0]  ;;  %v4718_v60 = vor.u32 %v5328_v23, %v4717_v40 }
 0x135   : > { %v3490_v46 = vmax.f32 %v2802_v1, 0.0  ;;  %v2830_v12 = vadd.f32 %v2829_v7, %v2816_v18  ;;  %v3966_v13 = vor.u32 %v5123_v63, %v3963_v0  ;;  %v2818_v45 = vadd.f32 %v2817_v35, %v5962_v62  ;;  %v5105_v18 = vld [vmem:[%s5462_s17 + $0x108] sm:$0xf0]  ;;  %v5291_v1 = vld [vmem:[%s5462_s17 + $0x6d8] sm:$0xf0] }
 0x136   : > { %3257 = vmatpush.bf16.msra.mxu0 %v4410_v6  ;;  %v3526_v33 = vmax.f32 %v2776_v41, 0.0  ;;  %3206 = vmatmul.bf16.vlgmr.msra.gmra.mxu1 %v5563_v57  ;;  %v5005_v6 = vld [vmem:[%s5462_s17 + $0x9b8] sm:$0xf]  ;;  %v2425_v41 = vand.u32 %v5474_v15, %v1984_v51  ;;  %v4418_v63 = vor.u32 %v5235_v43, %v4415_v49  ;;  %v3822_v7 = vor.u32 %v5105_v18, %v3821_v61  ;;  %v5402_v51 = vld [vmem:[%s5462_s17 + $0xa50] sm:$0xf0] }
 0x137   : > { %3274 = vmatpush.bf16.msrb.mxu1 %v2419_v27  ;;  %v5006_v25 = vor.u32 %v5401_v10, %v5005_v6  ;;  %v4563_v27 = vld [vmem:[%s5462_s17 + $0x6d4] sm:$0xf0]  ;;  %v4267_v6 = vld [vmem:[%s5462_s17 + $0x484] sm:$0xf0]  ;;  %v5124_v40 = vld [vmem:[%s5462_s17 + $0x1a4] sm:$0xf] }
 0x138   : > { %3282 = vmatpush.bf16.msrb.mxu3 %v4858_v50  ;;  %3231 = vmatpush.bf16.msrb.mxu2 %v4110_v17  ;;  %v5002_v50 = vor.u32 %v5382_v24, %v4999_v30  ;;  %v3576_v28 = vpack.c.bf16 %v3526_v33, %v3525_v55  ;;  %v5365_v17 = vld [vmem:[%s5462_s17 + $0x928] sm:$0xf0]  ;;  %v3491_v24 = vmax.f32 %v2830_v12, 0.0  ;;  %v4118_v30 = vor.u32 %v5179_v37, %v4117_v11  ;;  %v5347_v33 = vld [vmem:[%s5462_s17 + $0x89c] sm:$0xf] }
 0x139   : > { %v4866_v31 = vor.u32 %v5365_v17, %v4865_v14  ;;  %v4566_v47 = vor.u32 %v5272_v26, %v4563_v27  ;;  %v3970_v55 = vor.u32 %v5142_v39, %v3969_v38  ;;  %v4719_v10 = vld [vmem:[%s5462_s17 + $0x804] sm:$0xf0]  ;;  %v4421_v14 = vld [vmem:[%s5462_s17 + $0x520] sm:$0xf]  ;;  %v5254_v17 = vld [vmem:[%s5462_s17 + $0x5b0] sm:$0xf0] }
 0x13a   : > { %3258 = vmatpush.bf16.msra.mxu0 %v4262_v36  ;;  %3615 = vst [vmem:[%s5985_s6 + $0xbc] sm:$0xff] %v3576_v28  ;;  %v3558_v32 = vpack.c.bf16 %v3491_v24, %v3490_v46  ;;  %v3818_v36 = vor.u32 %v5086_v21, %v3815_v22  ;;  %v2843_v0 = vpop.f32.mrf.mxu3  ;;  %v4569_v28 = vld [vmem:[%s5462_s17 + $0x648] sm:$0xf]  ;;  %v4119_v21 = vld [vmem:[%s5462_s17 + $0x35c] sm:$0xf0] }
 0x13b   : > { %3275 = vmatpush.bf16.msrb.mxu1 %v5002_v50  ;;  %v5383_v50 = vld [vmem:[%s5462_s17 + $0x9bc] sm:$0xf]  ;;  %v4570_v46 = vor.u32 %v5291_v1, %v4569_v28  ;;  %v5013_v22 = vld [vmem:[%s5462_s17 + $0x9c0] sm:$0xf]  ;;  %v2844_v24 = vadd.f32 %v2843_v0, %v5925_v16  ;;  %v5366_v27 = vld [vmem:[%s5462_s17 + $0x930] sm:$0xf0] }
 0x13c   : > { %3283 = vmatpush.bf16.msrb.mxu3 %v4710_v4  ;;  %3232 = vmatpush.bf16.msrb.mxu2 %v3962_v44  ;;  %v5309_v4 = vld [vmem:[%s5462_s17 + $0x76c] sm:$0xf]  ;;  %v1615_v44 = vunpack.c.l.b16 %v6309_v20  ;;  %3596 = vst [vmem:[%s5985_s6 + $0x30] sm:$0xff] %v3558_v32  ;;  %v4873_v26 = vld [vmem:[%s5462_s17 + $0x8a0] sm:$0xf]  ;;  %v5014_v32 = vor.u32 %v5402_v51, %v5013_v22 }
 0x13d   : > { %v4714_v34 = vor.u32 %v5309_v4, %v4711_v5  ;;  %v4870_v4 = vor.u32 %v5347_v33, %v4867_v56  ;;  %v5198_v5 = vld [vmem:[%s5462_s17 + $0x3f4] sm:$0xf]  ;;  %v4273_v38 = vld [vmem:[%s5462_s17 + $0x3f8] sm:$0xf]  ;;  %v5217_v39 = vld [vmem:[%s5462_s17 + $0x488] sm:$0xf0] }
 0x13e   : > { %3259 = vmatpush.bf16.msra.mxu0 %v4114_v53  ;;  %v2831_v53 = vpop.f32.mrf.mxu1  ;;  %v3971_v23 = vld [vmem:[%s5462_s17 + $0x234] sm:$0xf0]  ;;  %v5329_v49 = vld [vmem:[%s5462_s17 + $0x808] sm:$0xf0]  ;;  %v3823_v28 = vld [vmem:[%s5462_s17 + $0x10c] sm:$0xf0] }
 0x13f   : > { %3310 = vmatpush.bf16.msra.mxu1 %v4862_v59  ;;  %5059 = vmatmul.msk.bf16.vlgmr.msra.gmra.mxu3 %vm2323_vm2, %v5508_v54  ;;  %v2832_v59 = vadd.f32 %v2831_v53, %v2818_v45  ;;  %v4725_v43 = vld [vmem:[%s5462_s17 + $0x778] sm:$0xf]  ;;  %v6372_v1 = vld [vmem:[%s5462_s17 + $0xaf0] sm:$0x33] }
 0x140   : > { %3284 = vmatpush.bf16.msrb.mxu3 %v4562_v29  ;;  %3233 = vmatpush.bf16.msrb.mxu2 %v3814_v2  ;;  %v2789_v29 = vpop.f32.mrf.mxu2  ;;  %v1985_v2 = vpack.c.b16 %v1615_v44, %v1615_v44  ;;  %v1616_v44 = vunpack.c.h.b16 %v6309_v20  ;;  %v4274_v20 = vor.u32 %v5217_v39, %v4273_v38  ;;  %v4726_v33 = vor.u32 %v5329_v49, %v4725_v43  ;;  %v4281_v49 = vld [vmem:[%s5462_s17 + $0x400] sm:$0xf] }
 0x141   : > { %v2790_v8 = vadd.f32 %v2789_v29, %v5962_v62  ;;  %v5273_v29 = vld [vmem:[%s5462_s17 + $0x64c] sm:$0xf] }
 0x142   : > { %3260 = vmatpush.bf16.msra.mxu0 %v3966_v13  ;;  %v2428_v12 = vand.u32 %v5474_v15, %v1985_v2  ;;  %v2885_v13 = vpop.f32.mrf.mxu0  ;;  %v1986_v61 = vpack.c.b16 %v1616_v44, %v1616_v44 }
 0x143   : > { %3234 = vmatmul.bf16.vlgmr.msrb.gmra.mxu2 %v5563_v57  ;;  %3311 = vmatpush.bf16.msra.mxu1 %v4714_v34  ;;  %v2804_v42 = vadd.f32 %v2803_v19, %v2790_v8  ;;  %v5161_v34 = vld [vmem:[%s5462_s17 + $0x2cc] sm:$0xf]  ;;  %v4270_v19 = vor.u32 %v5198_v5, %v4267_v6 }
 0x144   : > { %3285 = vmatpush.bf16.msrb.mxu3 %v4414_v52  ;;  %3302 = vmatpush.bf16.msra.mxu2 %v2422_v3  ;;  %v5007_v52 = vld [vmem:[%s5462_s17 + $0xa4c] sm:$0xf0]  ;;  %v3528_v3 = vmax.f32 %v2832_v59, 0.0  ;;  %v4122_v35 = vor.u32 %v5161_v34, %v4119_v21  ;;  %v5180_v59 = vld [vmem:[%s5462_s17 + $0x360] sm:$0xf0] }
 0x145   : > { %v3527_v58 = vmax.f32 %v2804_v42, 0.0  ;;  %v5010_v48 = vor.u32 %v5383_v50, %v5007_v52  ;;  %v2845_v42 = vpop.f32.mrf.mxu3  ;;  %v5236_v50 = vld [vmem:[%s5462_s17 + $0x524] sm:$0xf]  ;;  %v4423_v52 = vld [vmem:[%s5462_s17 + $0x5b4] sm:$0xf0] }
 0x146   : > { %3261 = vmatpush.bf16.msra.mxu0 %v3818_v36  ;;  %5060 = vmatmul.msk.bf16.vlgmr.msrb.gmra.mxu1 %vm2323_vm2, %v5508_v54  ;;  %v2871_v8 = vpop.f32.mrf.mxu1  ;;  %v4874_v36 = vor.u32 %v5366_v27, %v4873_v26  ;;  %v5015_v21 = vld [vmem:[%s5462_s17 + $0xa54] sm:$0xf0]  ;;  %v5162_v26 = vld [vmem:[%s5462_s17 + $0x2d4] sm:$0xf] }
 0x147   : > { %3312 = vmatpush.bf16.msra.mxu1 %v4566_v47  ;;  %v3577_v11 = vpack.c.bf16 %v3528_v3, %v3527_v58  ;;  %v2872_v47 = vadd.f32 %v2871_v8, %v5925_v16  ;;  %v4125_v58 = vld [vmem:[%s5462_s17 + $0x2d0] sm:$0xf]  ;;  %v3829_v8 = vld [vmem:[%s5462_s17 + $0x80] sm:$0xf] }
 0x148   : > { %3286 = vmatpush.bf16.msrb.mxu3 %v4266_v9  ;;  %3303 = vmatpush.bf16.msra.mxu2 %v5006_v25  ;;  %v5310_v9 = vld [vmem:[%s5462_s17 + $0x774] sm:$0xf]  ;;  %v2857_v37 = vpop.f32.mrf.mxu2  ;;  %v4577_v3 = vld [vmem:[%s5462_s17 + $0x650] sm:$0xf]  ;;  %v4126_v6 = vor.u32 %v5180_v59, %v4125_v58 }
 0x149   : > { %3262 = vmatmul.bf16.vlgmr.msra.gmra.mxu0 %v5563_v57  ;;  %3616 = vst [vmem:[%s5985_s6 + $0xc4] sm:$0xff] %v3577_v11  ;;  %v4722_v25 = vor.u32 %v5310_v9, %v4719_v10  ;;  %v2858_v45 = vadd.f32 %v2857_v37, %v2844_v24  ;;  %v2886_v53 = vadd.f32 %v2885_v13, %v2872_v47  ;;  %v4275_v9 = vld [vmem:[%s5462_s17 + $0x48c] sm:$0xf0]  ;;  %v1617_v13 = vunpack.c.l.b16 %v6372_v1  ;;  %v4429_v24 = vld [vmem:[%s5462_s17 + $0x528] sm:$0xf] }
 0x14a   : > { %3330 = vmatpush.bf16.msrb.mxu0 %v2425_v41  ;;  %v2887_v56 = vpop.f32.mrf.mxu0  ;;  %v2431_v37 = vand.u32 %v5474_v15, %v1986_v61  ;;  %v5021_v61 = vld [vmem:[%s5462_s17 + $0x9c8] sm:$0xf] }
 0x14b   : > { %3313 = vmatpush.bf16.msra.mxu1 %v4418_v63  ;;  %v3492_v18 = vmax.f32 %v2858_v45, 0.0  ;;  %v3493_v2 = vmax.f32 %v2886_v53, 0.0  ;;  %v2846_v63 = vadd.f32 %v2845_v42, %v5962_v62  ;;  %v5218_v42 = vld [vmem:[%s5462_s17 + $0x490] sm:$0xf0] }
 0x14c   : > { %3287 = vmatpush.bf16.msrb.mxu3 %v4118_v30  ;;  %3338 = vmatpush.bf16.msrb.mxu2 %v4866_v31  ;;  %v4571_v30 = vld [vmem:[%s5462_s17 + $0x6dc] sm:$0xf0]  ;;  %v4422_v31 = vor.u32 %v5254_v17, %v4421_v14 }
 0x14d   : > { %v4574_v41 = vor.u32 %v5273_v29, %v4571_v30  ;;  %v3559_v5 = vpack.c.bf16 %v3493_v2, %v3492_v18  ;;  %v2913_v51 = vpop.f32.mrf.mxu3  ;;  %v4127_v30 = vld [vmem:[%s5462_s17 + $0x364] sm:$0xf0]  ;;  %v5403_v18 = vld [vmem:[%s5462_s17 + $0xa58] sm:$0xf0] }
 0x14e   : > { %3331 = vmatpush.bf16.msrb.mxu0 %v5010_v48  ;;  %v4426_v48 = vor.u32 %v5236_v50, %v4423_v52  ;;  %v2873_v10 = vpop.f32.mrf.mxu1 }
 0x14f   : > { %3314 = vmatpush.bf16.msra.mxu1 %v4270_v19  ;;  %3597 = vst [vmem:[%s5985_s6 + $0x38] sm:$0xff] %v3559_v5  ;;  %v2874_v17 = vadd.f32 %v2873_v10, %v5962_v62  ;;  %v5384_v19 = vld [vmem:[%s5462_s17 + $0x9c4] sm:$0xf]  ;;  %v4881_v5 = vld [vmem:[%s5462_s17 + $0x8a8] sm:$0xf] }
 0x150   : > { %3288 = vmatpush.bf16.msrb.mxu3 %v3970_v55  ;;  %3339 = vmatpush.bf16.msrb.mxu2 %v4718_v60  ;;  %v3974_v55 = vor.u32 %v5124_v40, %v3971_v23  ;;  %v5087_v60 = vld [vmem:[%s5462_s17 + $0x7c] sm:$0xf]  ;;  %v2859_v0 = vpop.f32.mrf.mxu2  ;;  %v5018_v44 = vor.u32 %v5384_v19, %v5015_v21  ;;  %v4130_v23 = vor.u32 %v5162_v26, %v4127_v30  ;;  %v3831_v10 = vld [vmem:[%s5462_s17 + $0x114] sm:$0xf0]  ;;  %v5144_v26 = vld [vmem:[%s5462_s17 + $0x240] sm:$0xf0] }
 0x151   : > { %v3826_v11 = vor.u32 %v5087_v60, %v3823_v28  ;;  %v2860_v14 = vadd.f32 %v2859_v0, %v2846_v63  ;;  %v2888_v27 = vadd.f32 %v2887_v56, %v2874_v17  ;;  %v1618_v56 = vunpack.c.h.b16 %v6372_v1  ;;  %v4727_v60 = vld [vmem:[%s5462_s17 + $0x80c] sm:$0xf0]  ;;  %v4133_v0 = vld [vmem:[%s5462_s17 + $0x2d8] sm:$0xf] }
 0x152   : > { %3366 = vmatpush.bf16.msra.mxu0 %v4870_v4  ;;  %v5292_v4 = vld [vmem:[%s5462_s17 + $0x6e0] sm:$0xf0]  ;;  %v4282_v63 = vor.u32 %v5218_v42, %v4281_v49  ;;  %v5107_v49 = vld [vmem:[%s5462_s17 + $0x118] sm:$0xf0] }
 0x153   : > { %5061 = vmatmul.msk.bf16.vlgmr.msra.gmra.mxu2 %vm2323_vm2, %v5508_v54  ;;  %3315 = vmatpush.bf16.msra.mxu1 %v4122_v35  ;;  %v4578_v34 = vor.u32 %v5292_v4, %v4577_v3  ;;  %v5106_v35 = vld [vmem:[%s5462_s17 + $0x110] sm:$0xf0]  ;;  %v3529_v38 = vmax.f32 %v2860_v14, 0.0  ;;  %v3530_v39 = vmax.f32 %v2888_v27, 0.0  ;;  %v4579_v14 = vld [vmem:[%s5462_s17 + $0x6e4] sm:$0xf0] }
 0x154   : > { %3289 = vmatpush.bf16.msrb.mxu3 %v3822_v7  ;;  %3340 = vmatpush.bf16.msrb.mxu2 %v4570_v46  ;;  %v5199_v7 = vld [vmem:[%s5462_s17 + $0x3fc] sm:$0xf]  ;;  %v3977_v46 = vld [vmem:[%s5462_s17 + $0x1a8] sm:$0xf]  ;;  %v3830_v53 = vor.u32 %v5106_v35, %v3829_v8  ;;  %v4733_v27 = vld [vmem:[%s5462_s17 + $0x780] sm:$0xf] }
 0x155   : > { %v4278_v22 = vor.u32 %v5199_v7, %v4275_v9  ;;  %v3578_v50 = vpack.c.bf16 %v3530_v39, %v3529_v38  ;;  %v2915_v4 = vpop.f32.mrf.mxu3  ;;  %v5088_v9 = vld [vmem:[%s5462_s17 + $0x84] sm:$0xf]  ;;  %v5237_v8 = vld [vmem:[%s5462_s17 + $0x52c] sm:$0xf]  ;;  %v4431_v35 = vld [vmem:[%s5462_s17 + $0x5bc] sm:$0xf0] }
 0x156   : > { %3367 = vmatpush.bf16.msra.mxu0 %v4722_v25  ;;  %v5255_v25 = vld [vmem:[%s5462_s17 + $0x5b8] sm:$0xf0]  ;;  %v2941_v2 = vpop.f32.mrf.mxu1  ;;  %v5385_v39 = vld [vmem:[%s5462_s17 + $0x9cc] sm:$0xf] }
 0x157   : > { %3290 = vmatmul.bf16.vlgmr.msrb.gmra.mxu3 %v5563_v57  ;;  %3316 = vmatpush.bf16.msra.mxu1 %v3974_v55  ;;  %v4430_v45 = vor.u32 %v5255_v25, %v4429_v24  ;;  %v3979_v55 = vld [vmem:[%s5462_s17 + $0x23c] sm:$0xf0]  ;;  %3617 = vst [vmem:[%s5985_s6 + $0xcc] sm:$0xff] %v3578_v50  ;;  %v3834_v24 = vor.u32 %v5088_v9, %v3831_v10  ;;  %v3985_v25 = vld [vmem:[%s5462_s17 + $0x1b0] sm:$0xf] }
 0x158   : > { %3358 = vmatpush.bf16.msra.mxu3 %v2428_v12  ;;  %3341 = vmatpush.bf16.msrb.mxu2 %v4422_v31  ;;  %v5143_v12 = vld [vmem:[%s5462_s17 + $0x238] sm:$0xf0]  ;;  %v5348_v31 = vld [vmem:[%s5462_s17 + $0x8a4] sm:$0xf]  ;;  %v2899_v40 = vpop.f32.mrf.mxu2  ;;  %v4434_v50 = vor.u32 %v5237_v8, %v4431_v35 }
 0x159   : > { %5062 = vmatmul.msk.bf16.vlgmr.msrb.gmra.mxu0 %vm2323_vm2, %v5508_v54  ;;  %v3978_v29 = vor.u32 %v5143_v12, %v3977_v46  ;;  %v2900_v47 = vadd.f32 %v2899_v40, %v5925_v16  ;;  %v5022_v12 = vor.u32 %v5403_v18, %v5021_v61  ;;  %v5023_v40 = vld [vmem:[%s5462_s17 + $0xa5c] sm:$0xf0] }
 0x15a   : > { %3368 = vmatpush.bf16.msra.mxu0 %v4574_v41  ;;  %v2927_v41 = vpop.f32.mrf.mxu0 }
 0x15b   : > { %3317 = vmatpush.bf16.msra.mxu1 %v3826_v11  ;;  %v2928_v52 = vadd.f32 %v2927_v41, %v5925_v16  ;;  %v2914_v58 = vadd.f32 %v2913_v51, %v2900_v47  ;;  %v534_v11 = vld [vmem:[%s5462_s17 + $0xaf8] sm:$0x3] }
 0x15c   : > { %3359 = vmatpush.bf16.msra.mxu3 %v5014_v32  ;;  %3342 = vmatpush.bf16.msrb.mxu2 %v4274_v20  ;;  %v4875_v32 = vld [vmem:[%s5462_s17 + $0x934] sm:$0xf0]  ;;  %v5125_v20 = vld [vmem:[%s5462_s17 + $0x1ac] sm:$0xf] }
 0x15d   : > { %v4878_v43 = vor.u32 %v5348_v31, %v4875_v32  ;;  %v3494_v28 = vmax.f32 %v2914_v58, 0.0  ;;  %v2942_v1 = vadd.f32 %v2941_v2, %v2928_v52  ;;  %v3982_v3 = vor.u32 %v5125_v20, %v3979_v55  ;;  %v5330_v32 = vld [vmem:[%s5462_s17 + $0x810] sm:$0xf0]  ;;  %v5293_v20 = vld [vmem:[%s5462_s17 + $0x6e8] sm:$0xf0] }
 0x15e   : > { %3369 = vmatpush.bf16.msra.mxu0 %v4426_v48  ;;  %3318 = vmatmul.bf16.vlgmr.msra.gmra.mxu1 %v5563_v57  ;;  %v5181_v48 = vld [vmem:[%s5462_s17 + $0x368] sm:$0xf0]  ;;  %v5026_v55 = vor.u32 %v5385_v39, %v5023_v40  ;;  %v4283_v58 = vld [vmem:[%s5462_s17 + $0x494] sm:$0xf0] }
 0x15f   : > { %3386 = vmatpush.bf16.msrb.mxu1 %v2431_v37  ;;  %v1988_v37 = vpack.c.b16 %v1618_v56, %v1618_v56  ;;  %v3495_v46 = vmax.f32 %v2942_v1, 0.0  ;;  %v5200_v56 = vld [vmem:[%s5462_s17 + $0x404] sm:$0xf]  ;;  %v5029_v1 = vld [vmem:[%s5462_s17 + $0x9d0] sm:$0xf] }
 0x160   : > { %3394 = vmatpush.bf16.msrb.mxu3 %v4874_v36  ;;  %3343 = vmatpush.bf16.msrb.mxu2 %v4126_v6  ;;  %v1987_v36 = vpack.c.b16 %v1617_v13, %v1617_v13  ;;  %v5367_v6 = vld [vmem:[%s5462_s17 + $0x938] sm:$0xf0]  ;;  %v5274_v13 = vld [vmem:[%s5462_s17 + $0x654] sm:$0xf]  ;;  %v2901_v17 = vpop.f32.mrf.mxu2  ;;  %v5145_v39 = vld [vmem:[%s5462_s17 + $0x248] sm:$0xf0] }
 0x161   : > { %v4882_v19 = vor.u32 %v5367_v6, %v4881_v5  ;;  %v3560_v21 = vpack.c.bf16 %v3495_v46, %v3494_v28  ;;  %v4582_v31 = vor.u32 %v5274_v13, %v4579_v14  ;;  %v5256_v28 = vld [vmem:[%s5462_s17 + $0x5c0] sm:$0xf0]  ;;  %v5163_v5 = vld [vmem:[%s5462_s17 + $0x2dc] sm:$0xf]  ;;  %v4135_v6 = vld [vmem:[%s5462_s17 + $0x36c] sm:$0xf0] }
 0x162   : > { %3370 = vmatpush.bf16.msra.mxu0 %v4278_v22  ;;  %v2434_v59 = vand.u32 %v5474_v15, %v1987_v36  ;;  %v2902_v22 = vadd.f32 %v2901_v17, %v5962_v62  ;;  %v2929_v51 = vpop.f32.mrf.mxu0  ;;  %v2437_v36 = vand.u32 %v5474_v15, %v1988_v37  ;;  %v2955_v52 = vpop.f32.mrf.mxu3  ;;  %v4138_v10 = vor.u32 %v5163_v5, %v4135_v6  ;;  %v5219_v37 = vld [vmem:[%s5462_s17 + $0x498] sm:$0xf0]  ;;  %v5126_v13 = vld [vmem:[%s5462_s17 + $0x1b4] sm:$0xf]  ;;  %v3987_v14 = vld [vmem:[%s5462_s17 + $0x244] sm:$0xf0] }
 0x163   : > { %3387 = vmatpush.bf16.msrb.mxu1 %v5018_v44  ;;  %v2930_v30 = vadd.f32 %v2929_v51, %v5962_v62  ;;  %3598 = vst [vmem:[%s5985_s6 + $0x40] sm:$0xff] %v3560_v21  ;;  %v2943_v44 = vpop.f32.mrf.mxu1  ;;  %v3990_v21 = vor.u32 %v5126_v13, %v3987_v14  ;;  %v4141_v51 = vld [vmem:[%s5462_s17 + $0x2e0] sm:$0xf] }
 0x164   : > { %3395 = vmatpush.bf16.msrb.mxu3 %v4726_v33  ;;  %3344 = vmatpush.bf16.msrb.mxu2 %v3978_v29  ;;  %v5311_v33 = vld [vmem:[%s5462_s17 + $0x77c] sm:$0xf]  ;;  %v1619_v29 = vunpack.c.l.b16 %v534_v11  ;;  %v2916_v38 = vadd.f32 %v2915_v4, %v2902_v22  ;;  %v2956_v4 = vadd.f32 %v2955_v52, %v5925_v16  ;;  %v4289_v11 = vld [vmem:[%s5462_s17 + $0x408] sm:$0xf] }
 0x165   : > { %v4730_v7 = vor.u32 %v5311_v33, %v4727_v60  ;;  %v2944_v41 = vadd.f32 %v2943_v44, %v2930_v30  ;;  %v5089_v30 = vld [vmem:[%s5462_s17 + $0x8c] sm:$0xf] }
 0x166   : > { %3371 = vmatpush.bf16.msra.mxu0 %v4130_v23  ;;  %v3531_v47 = vmax.f32 %v2916_v38, 0.0  ;;  %v4734_v23 = vor.u32 %v5330_v32, %v4733_v27  ;;  %v1989_v42 = vpack.c.b16 %v1619_v29, %v1619_v29  ;;  %v3993_v38 = vld [vmem:[%s5462_s17 + $0x1b8] sm:$0xf] }
 0x167   : > { %5063 = vmatmul.msk.bf16.vlgmr.msra.gmra.mxu3 %vm2323_vm2, %v5508_v54  ;;  %3422 = vmatpush.bf16.msra.mxu1 %v4878_v43  ;;  %v3837_v43 = vld [vmem:[%s5462_s17 + $0x88] sm:$0xf]  ;;  %v3532_v33 = vmax.f32 %v2944_v41, 0.0  ;;  %v3994_v41 = vor.u32 %v5145_v39, %v3993_v38 }
 0x168   : > { %3396 = vmatpush.bf16.msrb.mxu3 %v4578_v34  ;;  %3345 = vmatpush.bf16.msrb.mxu2 %v3830_v53  ;;  %v4134_v34 = vor.u32 %v5181_v48, %v4133_v0  ;;  %v4585_v53 = vld [vmem:[%s5462_s17 + $0x658] sm:$0xf]  ;;  %v2969_v61 = vpop.f32.mrf.mxu2  ;;  %v2440_v0 = vand.u32 %v5474_v15, %v1989_v42  ;;  %v4286_v48 = vor.u32 %v5200_v56, %v4283_v58 }
 0x169   : > { %v3579_v60 = vpack.c.bf16 %v3532_v33, %v3531_v47  ;;  %v4586_v18 = vor.u32 %v5293_v20, %v4585_v53  ;;  %v2970_v46 = vadd.f32 %v2969_v61, %v2956_v4 }
 0x16a   : > { %3372 = vmatpush.bf16.msra.mxu0 %v3982_v3  ;;  %v2997_v2 = vpop.f32.mrf.mxu0  ;;  %v5404_v3 = vld [vmem:[%s5462_s17 + $0xa60] sm:$0xf0]  ;;  %v2957_v17 = vpop.f32.mrf.mxu3 }
 0x16b   : > { %3346 = vmatmul.bf16.vlgmr.msrb.gmra.mxu2 %v5563_v57  ;;  %3423 = vmatpush.bf16.msra.mxu1 %v4730_v7  ;;  %3618 = vst [vmem:[%s5985_s6 + $0xd4] sm:$0xff] %v3579_v60  ;;  %v5030_v7 = vor.u32 %v5404_v3, %v5029_v1  ;;  %v2983_v9 = vpop.f32.mrf.mxu1  ;;  %v2958_v27 = vadd.f32 %v2957_v17, %v5962_v62 }
 0x16c   : > { %3397 = vmatpush.bf16.msrb.mxu3 %v4430_v45  ;;  %3414 = vmatpush.bf16.msra.mxu2 %v2434_v59  ;;  %v3986_v45 = vor.u32 %v5144_v26, %v3985_v25  ;;  %v3838_v59 = vor.u32 %v5107_v49, %v3837_v43  ;;  %v3496_v25 = vmax.f32 %v2970_v46, 0.0  ;;  %v5108_v43 = vld [vmem:[%s5462_s17 + $0x120] sm:$0xf0] }
 0x16e   : > { %3373 = vmatpush.bf16.msra.mxu0 %v3834_v24  ;;  %5064 = vmatmul.msk.bf16.vlgmr.msrb.gmra.mxu1 %vm2323_vm2, %v5508_v54  ;;  %v5182_v24 = vld [vmem:[%s5462_s17 + $0x370] sm:$0xf0] }
 0x16f   : > { %3424 = vmatpush.bf16.msra.mxu1 %v4582_v31  ;;  %v3839_v31 = vld [vmem:[%s5462_s17 + $0x11c] sm:$0xf0]  ;;  %v4142_v8 = vor.u32 %v5182_v24, %v4141_v51 }
 0x170   : > { %3398 = vmatpush.bf16.msrb.mxu3 %v4282_v63  ;;  %3415 = vmatpush.bf16.msra.mxu2 %v5022_v12  ;;  %v4437_v63 = vld [vmem:[%s5462_s17 + $0x530] sm:$0xf]  ;;  %v2984_v12 = vadd.f32 %v2983_v9, %v5925_v16  ;;  %v2971_v29 = vpop.f32.mrf.mxu2 }
 0x171   : > { %3374 = vmatmul.bf16.vlgmr.msra.gmra.mxu0 %v5563_v57  ;;  %v4438_v15 = vor.u32 %v5256_v28, %v4437_v63  ;;  %v2972_v40 = vadd.f32 %v2971_v29, %v2958_v27 }
 0x172   : > { %3442 = vmatpush.bf16.msrb.mxu0 %v2437_v36  ;;  %v2999_v22 = vpop.f32.mrf.mxu0  ;;  %v3842_v36 = vor.u32 %v5089_v30, %v3839_v31 }
 0x173   : > { %3425 = vmatpush.bf16.msra.mxu1 %v4434_v50  ;;  %v2985_v35 = vpop.f32.mrf.mxu1  ;;  %v3533_v49 = vmax.f32 %v2972_v40, 0.0 }
 0x174   : > { %3399 = vmatpush.bf16.msrb.mxu3 %v4134_v34  ;;  %3450 = vmatpush.bf16.msrb.mxu2 %v4882_v19  ;;  %v2998_v34 = vadd.f32 %v2997_v2, %v2984_v12  ;;  %v4290_v19 = vor.u32 %v5219_v37, %v4289_v11  ;;  %v2986_v44 = vadd.f32 %v2985_v35, %v5962_v62 }
 0x176   : > { %3443 = vmatpush.bf16.msrb.mxu0 %v5026_v55  ;;  %v3497_v26 = vmax.f32 %v2998_v34, 0.0  ;;  %v3000_v47 = vadd.f32 %v2999_v22, %v2986_v44 }
 0x177   : > { %3426 = vmatpush.bf16.msra.mxu1 %v4286_v48 }
 0x178   : > { %3400 = vmatpush.bf16.msrb.mxu3 %v3986_v45  ;;  %3451 = vmatpush.bf16.msrb.mxu2 %v4734_v23  ;;  %v3561_v32 = vpack.c.bf16 %v3497_v26, %v3496_v25  ;;  %v3025_v45 = vpop.f32.mrf.mxu3  ;;  %v3845_v23 = vld [vmem:[%s5462_s17 + $0x90] sm:$0xf]  ;;  %v3534_v42 = vmax.f32 %v3000_v47, 0.0  ;;  %v3011_v50 = vpop.f32.mrf.mxu2 }
 0x179   : > { %v3012_v52 = vadd.f32 %v3011_v50, %v5925_v16  ;;  %v3846_v33 = vor.u32 %v5108_v43, %v3845_v23 }
 0x17a   : > { %3599 = vst [vmem:[%s5985_s6 + $0x48] sm:$0xff] %v3561_v32  ;;  %v3039_v53 = vpop.f32.mrf.mxu0  ;;  %v3580_v20 = vpack.c.bf16 %v3534_v42, %v3533_v49 }
 0x17b   : > { %5065 = vmatmul.msk.bf16.vlgmr.msra.gmra.mxu2 %vm2323_vm2, %v5508_v54  ;;  %3427 = vmatpush.bf16.msra.mxu1 %v4138_v10  ;;  %v3040_v55 = vadd.f32 %v3039_v53, %v5925_v16  ;;  %v3026_v56 = vadd.f32 %v3025_v45, %v3012_v52  ;;  %v3053_v58 = vpop.f32.mrf.mxu1 }
 0x17c   : > { %3401 = vmatpush.bf16.msrb.mxu3 %v3838_v59  ;;  %3452 = vmatpush.bf16.msrb.mxu2 %v4586_v18  ;;  %3619 = vst [vmem:[%s5985_s6 + $0xdc] sm:$0xff] %v3580_v20 }
 0x17d   : > { %v3498_v59 = vmax.f32 %v3026_v56, 0.0  ;;  %v3054_v60 = vadd.f32 %v3053_v58, %v3040_v55 }
 0x17f   : > { %3402 = vmatmul.bf16.vlgmr.msrb.gmra.mxu3 %v5563_v57  ;;  %3428 = vmatpush.bf16.msra.mxu1 %v3990_v21  ;;  %v3499_v18 = vmax.f32 %v3054_v60, 0.0 }
 0x180   : > { %3470 = vmatpush.bf16.msra.mxu3 %v2440_v0  ;;  %3453 = vmatpush.bf16.msrb.mxu2 %v4438_v15  ;;  %v3027_v61 = vpop.f32.mrf.mxu3  ;;  %v3013_v2 = vpop.f32.mrf.mxu2 }
 0x181   : > { %5066 = vmatmul.msk.bf16.vlgmr.msrb.gmra.mxu0 %vm2323_vm2, %v5508_v54  ;;  %v3562_v63 = vpack.c.bf16 %v3499_v18, %v3498_v59  ;;  %v3014_v0 = vadd.f32 %v3013_v2, %v5962_v62 }
 0x182   : > { %v3041_v48 = vpop.f32.mrf.mxu0 }
 0x183   : > { %3429 = vmatpush.bf16.msra.mxu1 %v3842_v36  ;;  %v3042_v28 = vadd.f32 %v3041_v48, %v5962_v62  ;;  %3600 = vst [vmem:[%s5985_s6 + $0x50] sm:$0xff] %v3562_v63  ;;  %v3028_v1 = vadd.f32 %v3027_v61, %v3014_v0  ;;  %v3055_v3 = vpop.f32.mrf.mxu1 }
 0x184   : > { %3471 = vmatpush.bf16.msra.mxu3 %v5030_v7  ;;  %3454 = vmatpush.bf16.msrb.mxu2 %v4290_v19 }
 0x185   : > { %v3056_v4 = vadd.f32 %v3055_v3, %v3042_v28 }
 0x186   : > { %3430 = vmatmul.bf16.vlgmr.msra.gmra.mxu1 %v5563_v57 }
 0x187   : > { %v3536_v6 = vmax.f32 %v3056_v4, 0.0 }
 0x188   : > { %3455 = vmatpush.bf16.msrb.mxu2 %v4142_v8  ;;  %v3081_v7 = vpop.f32.mrf.mxu2 }
 0x18a   : > { %v3067_v5 = vpop.f32.mrf.mxu3  ;;  %v3109_v9 = vpop.f32.mrf.mxu0 }
 0x18b   : > { %v3068_v10 = vadd.f32 %v3067_v5, %v5925_v16 }
 0x18c   : > { %3456 = vmatpush.bf16.msrb.mxu2 %v3994_v41 }
 0x18d   : > { %v3082_v11 = vadd.f32 %v3081_v7, %v3068_v10 }
 0x18f   : > { %5067 = vmatmul.msk.bf16.vlgmr.msra.gmra.mxu3 %vm2323_vm2, %v5508_v54  ;;  %v3535_v54 = vmax.f32 %v3028_v1, 0.0  ;;  %v3500_v14 = vmax.f32 %v3082_v11, 0.0 }
 0x190   : > { %3457 = vmatpush.bf16.msrb.mxu2 %v3846_v33  ;;  %v3083_v19 = vpop.f32.mrf.mxu2 }
 0x191   : > { %v3581_v15 = vpack.c.bf16 %v3536_v6, %v3535_v54 }
 0x192   : > { %v3069_v46 = vpop.f32.mrf.mxu3  ;;  %v3111_v13 = vpop.f32.mrf.mxu0 }
 0x193   : > { %3458 = vmatmul.bf16.vlgmr.msrb.gmra.mxu2 %v5563_v57  ;;  %3620 = vst [vmem:[%s5985_s6 + $0xe4] sm:$0xff] %v3581_v15  ;;  %v3095_v57 = vpop.f32.mrf.mxu1  ;;  %v3070_v34 = vadd.f32 %v3069_v46, %v5962_v62 }
 0x194   : > { %v3096_v37 = vadd.f32 %v3095_v57, %v5925_v16 }
 0x195   : > { %v3084_v51 = vadd.f32 %v3083_v19, %v3070_v34 }
 0x196   : > { %v3110_v12 = vadd.f32 %v3109_v9, %v3096_v37 }
 0x197   : > { %v3537_v27 = vmax.f32 %v3084_v51, 0.0 }
 0x198   : > { %v3501_v17 = vmax.f32 %v3110_v12, 0.0 }
 0x19a   : > { %v3563_v21 = vpack.c.bf16 %v3501_v17, %v3500_v14  ;;  %v3137_v25 = vpop.f32.mrf.mxu3 }
 0x19b   : > { %v3097_v22 = vpop.f32.mrf.mxu1 }
 0x19c   : > { %3601 = vst [vmem:[%s5985_s6 + $0x58] sm:$0xff] %v3563_v21  ;;  %v3098_v24 = vadd.f32 %v3097_v22, %v5962_v62 }
 0x19e   : > { %v3112_v26 = vadd.f32 %v3111_v13, %v3098_v24  ;;  %v3123_v30 = vpop.f32.mrf.mxu2  ;;  %v3151_v32 = vpop.f32.mrf.mxu0 }
 0x19f   : > { %v3124_v31 = vadd.f32 %v3123_v30, %v5925_v16  ;;  %v3152_v35 = vadd.f32 %v3151_v32, %v5925_v16 }
 0x1a0   : > { %v3538_v29 = vmax.f32 %v3112_v26, 0.0 }
 0x1a1   : > { %v3138_v36 = vadd.f32 %v3137_v25, %v3124_v31 }
 0x1a2   : > { %v3582_v8 = vpack.c.bf16 %v3538_v29, %v3537_v27  ;;  %v3139_v44 = vpop.f32.mrf.mxu3 }
 0x1a3   : > { %v3165_v38 = vpop.f32.mrf.mxu1  ;;  %v3502_v39 = vmax.f32 %v3138_v36, 0.0 }
 0x1a4   : > { %3621 = vst [vmem:[%s5985_s6 + $0xec] sm:$0xff] %v3582_v8  ;;  %v3166_v40 = vadd.f32 %v3165_v38, %v3152_v35 }
 0x1a6   : > { %v3503_v45 = vmax.f32 %v3166_v40, 0.0  ;;  %v3125_v47 = vpop.f32.mrf.mxu2  ;;  %v3153_v43 = vpop.f32.mrf.mxu0 }
 0x1a7   : > { %v3126_v23 = vadd.f32 %v3125_v47, %v5962_v62  ;;  %v3154_v49 = vadd.f32 %v3153_v43, %v5962_v62 }
 0x1a8   : > { %v3564_v41 = vpack.c.bf16 %v3503_v45, %v3502_v39 }
 0x1a9   : > { %v3140_v42 = vadd.f32 %v3139_v44, %v3126_v23 }
 0x1aa   : > { %3602 = vst [vmem:[%s5985_s6 + $0x60] sm:$0xff] %v3564_v41 }
 0x1ab   : > { %v3167_v50 = vpop.f32.mrf.mxu1  ;;  %v3539_v52 = vmax.f32 %v3140_v42, 0.0 }
 0x1ac   : > { %v3168_v53 = vadd.f32 %v3167_v50, %v3154_v49 }
 0x1ae   : > { %v3540_v55 = vmax.f32 %v3168_v53, 0.0  ;;  %v3193_v56 = vpop.f32.mrf.mxu2  ;;  %v3221_v58 = vpop.f32.mrf.mxu0 }
 0x1b0   : > { %v3583_v33 = vpack.c.bf16 %v3540_v55, %v3539_v52 }
 0x1b2   : > { %v3179_v20 = vpop.f32.mrf.mxu3  ;;  %3622 = vst [vmem:[%s5985_s6 + $0xf4] sm:$0xff] %v3583_v33 }
 0x1b3   : > { %v3180_v59 = vadd.f32 %v3179_v20, %v5925_v16  ;;  %v3207_v60 = vpop.f32.mrf.mxu1 }
 0x1b4   : > { %v3208_v18 = vadd.f32 %v3207_v60, %v5925_v16 }
 0x1b5   : > { %v3194_v61 = vadd.f32 %v3193_v56, %v3180_v59 }
 0x1b6   : > { %v3222_v63 = vadd.f32 %v3221_v58, %v3208_v18  ;;  %v3223_v0 = vpop.f32.mrf.mxu0  ;;  %v3195_v3 = vpop.f32.mrf.mxu2 }
 0x1b7   : > { %v3504_v48 = vmax.f32 %v3194_v61, 0.0 }
 0x1b8   : > { %v3505_v28 = vmax.f32 %v3222_v63, 0.0 }
 0x1ba   : > { %v3181_v2 = vpop.f32.mrf.mxu3  ;;  %v3565_v54 = vpack.c.bf16 %v3505_v28, %v3504_v48 }
 0x1bb   : > { %v3182_v1 = vadd.f32 %v3181_v2, %v5962_v62  ;;  %v3209_v4 = vpop.f32.mrf.mxu1 }
 0x1bc   : > { %3603 = vst [vmem:[%s5985_s6 + $0x68] sm:$0xff] %v3565_v54  ;;  %v3210_v6 = vadd.f32 %v3209_v4, %v5962_v62 }
 0x1bd   : > { %v3196_v5 = vadd.f32 %v3195_v3, %v3182_v1 }
 0x1be   : > { %v3224_v7 = vadd.f32 %v3223_v0, %v3210_v6 }
 0x1bf   : > { %v3541_v9 = vmax.f32 %v3196_v5, 0.0 }
 0x1c0   : > { %v3542_v10 = vmax.f32 %v3224_v7, 0.0 }
 0x1c2   : > { %v3249_v15 = vpop.f32.mrf.mxu3  ;;  %v3584_v46 = vpack.c.bf16 %v3542_v10, %v3541_v9 }
 0x1c3   : > { %v3277_v14 = vpop.f32.mrf.mxu1 }
 0x1c4   : > { %3623 = vst [vmem:[%s5985_s6 + $0xfc] sm:$0xff] %v3584_v46 }
 0x1c6   : > { %v3235_v57 = vpop.f32.mrf.mxu2  ;;  %v3263_v37 = vpop.f32.mrf.mxu0 }
 0x1c7   : > { %v3236_v11 = vadd.f32 %v3235_v57, %v5925_v16  ;;  %v3264_v12 = vadd.f32 %v3263_v37, %v5925_v16 }
 0x1c9   : > { %v3250_v13 = vadd.f32 %v3249_v15, %v3236_v11  ;;  %v3278_v34 = vadd.f32 %v3277_v14, %v3264_v12 }
 0x1ca   : > { %v3251_v19 = vpop.f32.mrf.mxu3 }
 0x1cb   : > { %v3506_v17 = vmax.f32 %v3250_v13, 0.0  ;;  %v3507_v21 = vmax.f32 %v3278_v34, 0.0  ;;  %v3279_v29 = vpop.f32.mrf.mxu1 }
 0x1cd   : > { %v3566_v51 = vpack.c.bf16 %v3507_v21, %v3506_v17 }
 0x1ce   : > { %v3237_v22 = vpop.f32.mrf.mxu2  ;;  %v3265_v25 = vpop.f32.mrf.mxu0 }
 0x1cf   : > { %v3238_v24 = vadd.f32 %v3237_v22, %v5962_v62  ;;  %v3266_v26 = vadd.f32 %v3265_v25, %v5962_v62  ;;  %3604 = vst [vmem:[%s5985_s6 + $0x70] sm:$0xff] %v3566_v51 }
 0x1d1   : > { %v3252_v27 = vadd.f32 %v3251_v19, %v3238_v24  ;;  %v3280_v31 = vadd.f32 %v3279_v29, %v3266_v26 }
 0x1d3   : > { %v3543_v30 = vmax.f32 %v3252_v27, 0.0  ;;  %v3544_v8 = vmax.f32 %v3280_v31, 0.0 }
 0x1d5   : > { %v3585_v35 = vpack.c.bf16 %v3544_v8, %v3543_v30 }
 0x1d6   : > { %v3305_v36 = vpop.f32.mrf.mxu2  ;;  %v3333_v38 = vpop.f32.mrf.mxu0 }
 0x1d7   : > { %3624 = vst [vmem:[%s5985_s6 + $0x104] sm:$0xff] %v3585_v35 }
 0x1da   : > { %v3291_v32 = vpop.f32.mrf.mxu3 }
 0x1db   : > { %v3292_v39 = vadd.f32 %v3291_v32, %v5925_v16  ;;  %v3319_v40 = vpop.f32.mrf.mxu1 }
 0x1dc   : > { %v3320_v47 = vadd.f32 %v3319_v40, %v5925_v16 }
 0x1dd   : > { %v3306_v45 = vadd.f32 %v3305_v36, %v3292_v39 }
 0x1de   : > { %v3334_v41 = vadd.f32 %v3333_v38, %v3320_v47  ;;  %v3335_v23 = vpop.f32.mrf.mxu0  ;;  %v3307_v50 = vpop.f32.mrf.mxu2 }
 0x1df   : > { %v3508_v43 = vmax.f32 %v3306_v45, 0.0 }
 0x1e0   : > { %v3509_v49 = vmax.f32 %v3334_v41, 0.0 }
 0x1e2   : > { %v3293_v44 = vpop.f32.mrf.mxu3  ;;  %v3567_v52 = vpack.c.bf16 %v3509_v49, %v3508_v43 }
 0x1e3   : > { %v3294_v42 = vadd.f32 %v3293_v44, %v5962_v62  ;;  %v3321_v53 = vpop.f32.mrf.mxu1 }
 0x1e4   : > { %3605 = vst [vmem:[%s5985_s6 + $0x78] sm:$0xff] %v3567_v52  ;;  %v3322_v55 = vadd.f32 %v3321_v53, %v5962_v62 }
 0x1e5   : > { %v3308_v20 = vadd.f32 %v3307_v50, %v3294_v42 }
 0x1e6   : > { %v3336_v56 = vadd.f32 %v3335_v23, %v3322_v55 }
 0x1e7   : > { %v3545_v58 = vmax.f32 %v3308_v20, 0.0 }
 0x1e8   : > { %v3546_v59 = vmax.f32 %v3336_v56, 0.0 }
 0x1ea   : > { %v3361_v33 = vpop.f32.mrf.mxu3  ;;  %v3586_v2 = vpack.c.bf16 %v3546_v59, %v3545_v58 }
 0x1eb   : > { %v3389_v48 = vpop.f32.mrf.mxu1 }
 0x1ec   : > { %3625 = vst [vmem:[%s5985_s6 + $0x10c] sm:$0xff] %v3586_v2 }
 0x1ee   : > { %v3347_v60 = vpop.f32.mrf.mxu2  ;;  %v3375_v18 = vpop.f32.mrf.mxu0 }
 0x1ef   : > { %v3348_v61 = vadd.f32 %v3347_v60, %v5925_v16  ;;  %v3376_v63 = vadd.f32 %v3375_v18, %v5925_v16 }
 0x1f1   : > { %v3362_v0 = vadd.f32 %v3361_v33, %v3348_v61  ;;  %v3390_v1 = vadd.f32 %v3389_v48, %v3376_v63 }
 0x1f2   : > { %v3363_v3 = vpop.f32.mrf.mxu3 }
 0x1f3   : > { %v3510_v28 = vmax.f32 %v3362_v0, 0.0  ;;  %v3511_v54 = vmax.f32 %v3390_v1, 0.0  ;;  %v3391_v10 = vpop.f32.mrf.mxu1 }
 0x1f5   : > { %v3568_v5 = vpack.c.bf16 %v3511_v54, %v3510_v28 }
 0x1f6   : > { %v3349_v4 = vpop.f32.mrf.mxu2  ;;  %v3377_v15 = vpop.f32.mrf.mxu0 }
 0x1f7   : > { %v3350_v6 = vadd.f32 %v3349_v4, %v5962_v62  ;;  %v3378_v7 = vadd.f32 %v3377_v15, %v5962_v62  ;;  %3606 = vst [vmem:[%s5985_s6 + $0x80] sm:$0xff] %v3568_v5 }
 0x1f9   : > { %v3364_v9 = vadd.f32 %v3363_v3, %v3350_v6  ;;  %v3392_v11 = vadd.f32 %v3391_v10, %v3378_v7 }
 0x1fb   : > { %v3547_v57 = vmax.f32 %v3364_v9, 0.0  ;;  %v3548_v46 = vmax.f32 %v3392_v11, 0.0 }
 0x1fd   : > { %v3587_v12 = vpack.c.bf16 %v3548_v46, %v3547_v57 }
 0x1fe   : > { %v3417_v13 = vpop.f32.mrf.mxu2  ;;  %v3445_v17 = vpop.f32.mrf.mxu0 }
 0x1ff   : > { %3626 = vst [vmem:[%s5985_s6 + $0x114] sm:$0xff] %v3587_v12 }
 0x202   : > { %v3403_v37 = vpop.f32.mrf.mxu3 }
 0x203   : > { %v3404_v14 = vadd.f32 %v3403_v37, %v5925_v16  ;;  %v3431_v34 = vpop.f32.mrf.mxu1 }
 0x204   : > { %v3432_v21 = vadd.f32 %v3431_v34, %v5925_v16 }
 0x205   : > { %v3418_v19 = vadd.f32 %v3417_v13, %v3404_v14 }
 0x206   : > { %v3446_v51 = vadd.f32 %v3445_v17, %v3432_v21  ;;  %v3419_v27 = vpop.f32.mrf.mxu2  ;;  %v3447_v31 = vpop.f32.mrf.mxu0 }
 0x207   : > { %v3512_v24 = vmax.f32 %v3418_v19, 0.0 }
 0x208   : > { %v3513_v26 = vmax.f32 %v3446_v51, 0.0 }
 0x20a   : > { %v3405_v22 = vpop.f32.mrf.mxu3  ;;  %v3569_v29 = vpack.c.bf16 %v3513_v26, %v3512_v24 }
 0x20b   : > { %v3406_v25 = vadd.f32 %v3405_v22, %v5962_v62  ;;  %v3433_v30 = vpop.f32.mrf.mxu1 }
 0x20c   : > { %3607 = vst [vmem:[%s5985_s6 + $0x88] sm:$0xff] %v3569_v29  ;;  %v3434_v8 = vadd.f32 %v3433_v30, %v5962_v62 }
 0x20d   : > { %v3420_v32 = vadd.f32 %v3419_v27, %v3406_v25 }
 0x20e   : > { %v3448_v35 = vadd.f32 %v3447_v31, %v3434_v8 }
 0x20f   : > { %v3549_v36 = vmax.f32 %v3420_v32, 0.0 }
 0x210   : > { %v3550_v39 = vmax.f32 %v3448_v35, 0.0 }
 0x212   : > { %v3473_v38 = vpop.f32.mrf.mxu3  ;;  %v3588_v45 = vpack.c.bf16 %v3550_v39, %v3549_v36 }
 0x214   : > { %3627 = vst [vmem:[%s5985_s6 + $0x11c] sm:$0xff] %v3588_v45 }
 0x216   : > { %v3459_v40 = vpop.f32.mrf.mxu2 }
 0x217   : > { %v3460_v44 = vadd.f32 %v3459_v40, %v5925_v16 }
 0x219   : > { %v3474_v47 = vadd.f32 %v3473_v38, %v3460_v44 }
 0x21a   : > { %v3475_v42 = vpop.f32.mrf.mxu3 }
 0x21b   : > { %v3514_v41 = vmax.f32 %v3474_v47, 0.0 }
 0x21d   : > { %v3570_v23 = vpack.c.bf16 %v3514_v41, %v3514_v41 }
 0x21e   : > { %v3461_v43 = vpop.f32.mrf.mxu2 }
 0x21f   : > { %3609 = vst.msk [vmem:[%s5985_s6 + $0x90] sm:$0xf] %vm3608_vm3, %v3570_v23  ;;  %v3462_v49 = vadd.f32 %v3461_v43, %v5962_v62 }
 0x221   : > { %v3476_v50 = vadd.f32 %v3475_v42, %v3462_v49 }
 0x223   : > { %v3551_v52 = vmax.f32 %v3476_v50, 0.0 }
 0x225   : > { %v3589_v53 = vpack.c.bf16 %v3551_v52, %v3551_v52 }
 0x227   : > { %3628 = vst.msk [vmem:[%s5985_s6 + $0x124] sm:$0xf] %vm3608_vm3, %v3589_v53 }
 0x228 PF: > { %s13_s12 = sadd.s32 1, %s5424_s12  }
 0x229   : > { %p10_p4 = scmp.ge.s32.totalorder %s13_s12, 4  }
 0x22b   :  { %12 = sbr.rel (!%p10_p4) target bundleno = 1 (0x1), region = 62 }

// kernel: layers2_forward.7
= control target key start
LH: loop header
LB: loop body
LE: loop exit
PB: predicated region body
PF: predicated region fallthrough
CT: control target
= control target key end

     0   :  { %vm521_vm0 = vcmask 1043456   ;;  %vm522_vm1 = vcmask 31748   ;;  %s883_s0 = inlined_call_operand.vmem [shape: bf16[32,1156], index: 0, kind: input, shape index: {}]   ;;  %s884_s1 = inlined_call_operand.vmem [shape: bf16[32,1156], index: 1, kind: input, shape index: {}]   ;;  %s885_s2 = inlined_call_operand.vmem [shape: bf16[32,1156], index: 2, kind: input, shape index: {}]   ;;  %s886_s3 = inlined_call_operand.vmem [shape: bf16[32,1156], index: 3, kind: input, shape index: {}]   ;;  %s887_s4 = inlined_call_operand.vmem [shape: bf16[32,1156], index: 4, kind: output, shape index: {}]  }
   0x1   :  { %v17_v0 = vld [vmem:[%s883_s0] sm:$0xff]  ;;  %v18_v8 = vld [vmem:[%s883_s0 + $0x8] sm:$0xff]  ;;  %v19_v24 = vld [vmem:[%s883_s0 + $0x10] sm:$0xff] }
   0x2   :  { %v37_v1 = vld [vmem:[%s884_s1] sm:$0xff]  ;;  %v57_v3 = vunpack.c.l.bf16 %v17_v0  ;;  %v58_v4 = vunpack.c.h.bf16 %v17_v0  ;;  %v38_v9 = vld [vmem:[%s884_s1 + $0x8] sm:$0xff]  ;;  %v59_v18 = vunpack.c.l.bf16 %v18_v8  ;;  %v60_v19 = vunpack.c.h.bf16 %v18_v8  ;;  %v39_v29 = vld [vmem:[%s884_s1 + $0x10] sm:$0xff] }
   0x3   :  { %v197_v2 = vld [vmem:[%s885_s2] sm:$0xff]  ;;  %v97_v5 = vunpack.c.l.bf16 %v37_v1  ;;  %v98_v6 = vunpack.c.h.bf16 %v37_v1  ;;  %v198_v14 = vld [vmem:[%s885_s2 + $0x8] sm:$0xff]  ;;  %v99_v22 = vunpack.c.l.bf16 %v38_v9  ;;  %v100_v23 = vunpack.c.h.bf16 %v38_v9  ;;  %v199_v30 = vld [vmem:[%s885_s2 + $0x10] sm:$0xff] }
   0x4   :  { %v217_v7 = vld [vmem:[%s886_s3] sm:$0xff]  ;;  %v237_v10 = vunpack.c.l.bf16 %v197_v2  ;;  %v238_v11 = vunpack.c.h.bf16 %v197_v2  ;;  %v218_v15 = vld [vmem:[%s886_s3 + $0x8] sm:$0xff]  ;;  %v239_v25 = vunpack.c.l.bf16 %v198_v14  ;;  %v240_v26 = vunpack.c.h.bf16 %v198_v14  ;;  %v219_v35 = vld [vmem:[%s886_s3 + $0x10] sm:$0xff] }
   0x5   :  { %v277_v12 = vunpack.c.l.bf16 %v217_v7  ;;  %v278_v13 = vunpack.c.h.bf16 %v217_v7  ;;  %v137_v16 = vmax.f32 %v57_v3, %v97_v5  ;;  %v138_v17 = vmax.f32 %v58_v4, %v98_v6  ;;  %v20_v40 = vld [vmem:[%s883_s0 + $0x18] sm:$0xff]  ;;  %v21_v60 = vld [vmem:[%s883_s0 + $0x20] sm:$0xff]  ;;  %vm670_vm2 = vmor %vm522_vm1, %vm521_vm0 }
   0x6   :  { %v279_v27 = vunpack.c.l.bf16 %v218_v15  ;;  %v280_v28 = vunpack.c.h.bf16 %v218_v15  ;;  %v139_v33 = vmax.f32 %v59_v18, %v99_v22  ;;  %v140_v34 = vmax.f32 %v60_v19, %v100_v23  ;;  %v40_v45 = vld [vmem:[%s884_s1 + $0x18] sm:$0xff]  ;;  %v41_v1 = vld [vmem:[%s884_s1 + $0x20] sm:$0xff]  ;;  %v202_v22 = vld [vmem:[%s885_s2 + $0x28] sm:$0xff] }
   0x7   :  { %v317_v20 = vmax.f32 %v237_v10, %v277_v12  ;;  %v318_v21 = vmax.f32 %v238_v11, %v278_v13  ;;  %v61_v38 = vunpack.c.l.bf16 %v19_v24  ;;  %v62_v39 = vunpack.c.h.bf16 %v19_v24  ;;  %v200_v50 = vld [vmem:[%s885_s2 + $0x18] sm:$0xff]  ;;  %v201_v6 = vld [vmem:[%s885_s2 + $0x20] sm:$0xff] }
   0x8   :  { %v319_v36 = vmax.f32 %v239_v25, %v279_v27  ;;  %v320_v37 = vmax.f32 %v240_v26, %v280_v28  ;;  %v101_v42 = vunpack.c.l.bf16 %v39_v29  ;;  %v102_v43 = vunpack.c.h.bf16 %v39_v29  ;;  %v220_v55 = vld [vmem:[%s886_s3 + $0x18] sm:$0xff]  ;;  %v221_v7 = vld [vmem:[%s886_s3 + $0x20] sm:$0xff]  ;;  %v222_v27 = vld [vmem:[%s886_s3 + $0x28] sm:$0xff] }
   0x9   :  { %v457_v31 = vmax.f32 %v137_v16, %v317_v20  ;;  %v458_v32 = vmax.f32 %v138_v17, %v318_v21  ;;  %v241_v44 = vunpack.c.l.bf16 %v199_v30  ;;  %v242_v48 = vunpack.c.h.bf16 %v199_v30  ;;  %v22_v16 = vld [vmem:[%s883_s0 + $0x28] sm:$0xff] }
   0xa   :  { %v459_v46 = vmax.f32 %v139_v33, %v319_v36  ;;  %v460_v47 = vmax.f32 %v140_v34, %v320_v37  ;;  %v281_v49 = vunpack.c.l.bf16 %v219_v35  ;;  %v141_v51 = vmax.f32 %v61_v38, %v101_v42  ;;  %v42_v21 = vld [vmem:[%s884_s1 + $0x28] sm:$0xff]  ;;  %v43_v37 = vld [vmem:[%s884_s1 + $0x30] sm:$0xff] }
   0xb   :  { %v497_v41 = vpack.c.bf16 %v458_v32, %v457_v31  ;;  %v142_v52 = vmax.f32 %v62_v39, %v102_v43  ;;  %v282_v53 = vunpack.c.h.bf16 %v219_v35  ;;  %v63_v54 = vunpack.c.l.bf16 %v20_v40  ;;  %v23_v32 = vld [vmem:[%s883_s0 + $0x30] sm:$0xff] }
   0xc   :  { %v498_v56 = vpack.c.bf16 %v460_v47, %v459_v46  ;;  %v321_v57 = vmax.f32 %v241_v44, %v281_v49  ;;  %v64_v58 = vunpack.c.h.bf16 %v20_v40  ;;  %v103_v59 = vunpack.c.l.bf16 %v40_v45  ;;  %v203_v42 = vld [vmem:[%s885_s2 + $0x30] sm:$0xff] }
   0xd   :  { %517 = vst [vmem:[%s887_s4] sm:$0xff] %v497_v41  ;;  %v322_v61 = vmax.f32 %v242_v48, %v282_v53  ;;  %v104_v62 = vunpack.c.h.bf16 %v40_v45  ;;  %v243_v63 = vunpack.c.l.bf16 %v200_v50  ;;  %v244_v0 = vunpack.c.h.bf16 %v200_v50  ;;  %v223_v47 = vld [vmem:[%s886_s3 + $0x30] sm:$0xff] }
   0xe   :  { %518 = vst [vmem:[%s887_s4 + $0x8] sm:$0xff] %v498_v56  ;;  %v461_v2 = vmax.f32 %v141_v51, %v321_v57  ;;  %v143_v3 = vmax.f32 %v63_v54, %v103_v59  ;;  %v283_v4 = vunpack.c.l.bf16 %v220_v55  ;;  %v284_v5 = vunpack.c.h.bf16 %v220_v55 }
   0xf   :  { %v462_v8 = vmax.f32 %v142_v52, %v322_v61  ;;  %v144_v9 = vmax.f32 %v64_v58, %v104_v62  ;;  %v65_v10 = vunpack.c.l.bf16 %v21_v60  ;;  %v66_v11 = vunpack.c.h.bf16 %v21_v60  ;;  %v24_v52 = vld [vmem:[%s883_s0 + $0x38] sm:$0xff] }
  0x10   :  { %v323_v12 = vmax.f32 %v243_v63, %v283_v4  ;;  %v324_v13 = vmax.f32 %v244_v0, %v284_v5  ;;  %v105_v14 = vunpack.c.l.bf16 %v41_v1  ;;  %v106_v15 = vunpack.c.h.bf16 %v41_v1  ;;  %v44_v58 = vld [vmem:[%s884_s1 + $0x38] sm:$0xff] }
  0x11   :  { %v499_v17 = vpack.c.bf16 %v462_v8, %v461_v2  ;;  %v245_v18 = vunpack.c.l.bf16 %v201_v6  ;;  %v246_v19 = vunpack.c.h.bf16 %v201_v6  ;;  %v285_v20 = vunpack.c.l.bf16 %v221_v7  ;;  %v204_v63 = vld [vmem:[%s885_s2 + $0x38] sm:$0xff] }
  0x12   :  { %v463_v23 = vmax.f32 %v143_v3, %v323_v12  ;;  %v464_v24 = vmax.f32 %v144_v9, %v324_v13  ;;  %v145_v25 = vmax.f32 %v65_v10, %v105_v14  ;;  %v146_v26 = vmax.f32 %v66_v11, %v106_v15  ;;  %v224_v4 = vld [vmem:[%s886_s3 + $0x38] sm:$0xff]  ;;  %v25_v9 = vld [vmem:[%s883_s0 + $0x40] sm:$0xff] }
  0x13   :  { %519 = vst [vmem:[%s887_s4 + $0x10] sm:$0xff] %v499_v17  ;;  %v286_v28 = vunpack.c.h.bf16 %v221_v7  ;;  %v325_v29 = vmax.f32 %v245_v18, %v285_v20  ;;  %v67_v30 = vunpack.c.l.bf16 %v22_v16  ;;  %v68_v31 = vunpack.c.h.bf16 %v22_v16  ;;  %v45_v14 = vld [vmem:[%s884_s1 + $0x40] sm:$0xff] }
  0x14   :  { %v500_v33 = vpack.c.bf16 %v464_v24, %v463_v23  ;;  %v107_v34 = vunpack.c.l.bf16 %v42_v21  ;;  %v108_v35 = vunpack.c.h.bf16 %v42_v21  ;;  %v247_v36 = vunpack.c.l.bf16 %v202_v22  ;;  %v205_v15 = vld [vmem:[%s885_s2 + $0x40] sm:$0xff] }
  0x15   :  { %v326_v38 = vmax.f32 %v246_v19, %v286_v28  ;;  %v465_v39 = vmax.f32 %v145_v25, %v325_v29  ;;  %v248_v40 = vunpack.c.h.bf16 %v202_v22  ;;  %v287_v41 = vunpack.c.l.bf16 %v222_v27  ;;  %v225_v20 = vld [vmem:[%s886_s3 + $0x40] sm:$0xff]  ;;  %v26_v29 = vld [vmem:[%s883_s0 + $0x48] sm:$0xff] }
  0x16   :  { %520 = vst [vmem:[%s887_s4 + $0x18] sm:$0xff] %v500_v33  ;;  %v147_v43 = vmax.f32 %v67_v30, %v107_v34  ;;  %v148_v44 = vmax.f32 %v68_v31, %v108_v35  ;;  %v288_v45 = vunpack.c.h.bf16 %v222_v27  ;;  %v69_v46 = vunpack.c.l.bf16 %v23_v32  ;;  %v46_v34 = vld [vmem:[%s884_s1 + $0x48] sm:$0xff] }
  0x17   :  { %v466_v48 = vmax.f32 %v146_v26, %v326_v38  ;;  %v327_v49 = vmax.f32 %v247_v36, %v287_v41  ;;  %v70_v50 = vunpack.c.h.bf16 %v23_v32  ;;  %v109_v51 = vunpack.c.l.bf16 %v43_v37  ;;  %v206_v35 = vld [vmem:[%s885_s2 + $0x48] sm:$0xff] }
  0x18   :  { %v328_v54 = vmax.f32 %v248_v40, %v288_v45  ;;  %v110_v55 = vunpack.c.h.bf16 %v43_v37  ;;  %v249_v56 = vunpack.c.l.bf16 %v203_v42  ;;  %v250_v57 = vunpack.c.h.bf16 %v203_v42  ;;  %v226_v40 = vld [vmem:[%s886_s3 + $0x48] sm:$0xff] }
  0x19   :  { %v501_v59 = vpack.c.bf16 %v466_v48, %v465_v39  ;;  %v467_v60 = vmax.f32 %v147_v43, %v327_v49  ;;  %v149_v61 = vmax.f32 %v69_v46, %v109_v51  ;;  %v289_v62 = vunpack.c.l.bf16 %v223_v47  ;;  %v27_v49 = vld [vmem:[%s883_s0 + $0x50] sm:$0xff] }
  0x1a   :  { %v468_v0 = vmax.f32 %v148_v44, %v328_v54  ;;  %v150_v1 = vmax.f32 %v70_v50, %v110_v55  ;;  %v290_v2 = vunpack.c.h.bf16 %v223_v47  ;;  %v71_v3 = vunpack.c.l.bf16 %v24_v52  ;;  %v47_v50 = vld [vmem:[%s884_s1 + $0x50] sm:$0xff] }
  0x1b   :  { %524 = vst.msk [vmem:[%s887_s4 + $0x20] sm:$0xff] %vm670_vm2, %v501_v59  ;;  %v329_v5 = vmax.f32 %v249_v56, %v289_v62  ;;  %v72_v6 = vunpack.c.h.bf16 %v24_v52  ;;  %v111_v7 = vunpack.c.l.bf16 %v44_v58  ;;  %v112_v8 = vunpack.c.h.bf16 %v44_v58  ;;  %v207_v56 = vld [vmem:[%s885_s2 + $0x50] sm:$0xff] }
  0x1c   :  { %v502_v10 = vpack.c.bf16 %v468_v0, %v467_v60  ;;  %v330_v11 = vmax.f32 %v250_v57, %v290_v2  ;;  %v251_v12 = vunpack.c.l.bf16 %v204_v63  ;;  %v252_v13 = vunpack.c.h.bf16 %v204_v63  ;;  %v28_v2 = vld [vmem:[%s883_s0 + $0x58] sm:$0xff] }
  0x1d   :  { %v469_v16 = vmax.f32 %v149_v61, %v329_v5  ;;  %v151_v17 = vmax.f32 %v71_v3, %v111_v7  ;;  %v152_v18 = vmax.f32 %v72_v6, %v112_v8  ;;  %v291_v19 = vunpack.c.l.bf16 %v224_v4  ;;  %v227_v61 = vld [vmem:[%s886_s3 + $0x50] sm:$0xff]  ;;  %v48_v7 = vld [vmem:[%s884_s1 + $0x58] sm:$0xff] }
  0x1e   :  { %525 = vst [vmem:[%s887_s4 + $0x28] sm:$0xff] %v502_v10  ;;  %v470_v21 = vmax.f32 %v150_v1, %v330_v11  ;;  %v292_v22 = vunpack.c.h.bf16 %v224_v4  ;;  %v73_v23 = vunpack.c.l.bf16 %v25_v9  ;;  %v74_v24 = vunpack.c.h.bf16 %v25_v9 }
  0x1f   :  { %v331_v25 = vmax.f32 %v251_v12, %v291_v19  ;;  %v113_v26 = vunpack.c.l.bf16 %v45_v14  ;;  %v114_v27 = vunpack.c.h.bf16 %v45_v14  ;;  %v253_v28 = vunpack.c.l.bf16 %v205_v15  ;;  %v208_v12 = vld [vmem:[%s885_s2 + $0x58] sm:$0xff] }
  0x20   :  { %v503_v30 = vpack.c.bf16 %v470_v21, %v469_v16  ;;  %v332_v31 = vmax.f32 %v252_v13, %v292_v22  ;;  %v254_v32 = vunpack.c.h.bf16 %v205_v15  ;;  %v293_v33 = vunpack.c.l.bf16 %v225_v20  ;;  %v29_v22 = vld [vmem:[%s883_s0 + $0x60] sm:$0xff] }
  0x21   :  { %v471_v36 = vmax.f32 %v151_v17, %v331_v25  ;;  %v153_v37 = vmax.f32 %v73_v23, %v113_v26  ;;  %v154_v38 = vmax.f32 %v74_v24, %v114_v27  ;;  %v294_v39 = vunpack.c.h.bf16 %v225_v20  ;;  %v228_v17 = vld [vmem:[%s886_s3 + $0x58] sm:$0xff]  ;;  %v49_v27 = vld [vmem:[%s884_s1 + $0x60] sm:$0xff] }
  0x22   :  { %526 = vst [vmem:[%s887_s4 + $0x30] sm:$0xff] %v503_v30  ;;  %v472_v41 = vmax.f32 %v152_v18, %v332_v31  ;;  %v333_v42 = vmax.f32 %v253_v28, %v293_v33  ;;  %v75_v43 = vunpack.c.l.bf16 %v26_v29  ;;  %v76_v44 = vunpack.c.h.bf16 %v26_v29  ;;  %v209_v28 = vld [vmem:[%s885_s2 + $0x60] sm:$0xff] }
  0x23   :  { %v334_v45 = vmax.f32 %v254_v32, %v294_v39  ;;  %v115_v46 = vunpack.c.l.bf16 %v46_v34  ;;  %v116_v47 = vunpack.c.h.bf16 %v46_v34  ;;  %v255_v48 = vunpack.c.l.bf16 %v206_v35  ;;  %v229_v33 = vld [vmem:[%s886_s3 + $0x60] sm:$0xff] }
  0x24   :  { %v504_v51 = vpack.c.bf16 %v472_v41, %v471_v36  ;;  %v473_v52 = vmax.f32 %v153_v37, %v333_v42  ;;  %v256_v54 = vunpack.c.h.bf16 %v206_v35  ;;  %v295_v55 = vunpack.c.l.bf16 %v226_v40  ;;  %v30_v42 = vld [vmem:[%s883_s0 + $0x68] sm:$0xff] }
  0x25   :  { %v474_v57 = vmax.f32 %v154_v38, %v334_v45  ;;  %v155_v58 = vmax.f32 %v75_v43, %v115_v46  ;;  %v156_v59 = vmax.f32 %v76_v44, %v116_v47  ;;  %v296_v60 = vunpack.c.h.bf16 %v226_v40  ;;  %v50_v47 = vld [vmem:[%s884_s1 + $0x68] sm:$0xff] }
  0x26   :  { %527 = vst [vmem:[%s887_s4 + $0x38] sm:$0xff] %v504_v51  ;;  %v335_v62 = vmax.f32 %v255_v48, %v295_v55  ;;  %v77_v63 = vunpack.c.l.bf16 %v27_v49  ;;  %v78_v0 = vunpack.c.h.bf16 %v27_v49  ;;  %v117_v1 = vunpack.c.l.bf16 %v47_v50  ;;  %v210_v48 = vld [vmem:[%s885_s2 + $0x68] sm:$0xff] }
  0x27   :  { %v505_v3 = vpack.c.bf16 %v474_v57, %v473_v52  ;;  %v336_v4 = vmax.f32 %v256_v54, %v296_v60  ;;  %v118_v5 = vunpack.c.h.bf16 %v47_v50  ;;  %v257_v6 = vunpack.c.l.bf16 %v207_v56  ;;  %v230_v54 = vld [vmem:[%s886_s3 + $0x68] sm:$0xff] }
  0x28   :  { %v475_v8 = vmax.f32 %v155_v58, %v335_v62  ;;  %v157_v9 = vmax.f32 %v77_v63, %v117_v1  ;;  %v258_v10 = vunpack.c.h.bf16 %v207_v56  ;;  %v297_v11 = vunpack.c.l.bf16 %v227_v61  ;;  %v31_v63 = vld [vmem:[%s883_s0 + $0x70] sm:$0xff] }
  0x29   :  { %528 = vst [vmem:[%s887_s4 + $0x40] sm:$0xff] %v505_v3  ;;  %v476_v13 = vmax.f32 %v156_v59, %v336_v4  ;;  %v158_v14 = vmax.f32 %v78_v0, %v118_v5  ;;  %v298_v15 = vunpack.c.h.bf16 %v227_v61  ;;  %v79_v16 = vunpack.c.l.bf16 %v28_v2  ;;  %v51_v0 = vld [vmem:[%s884_s1 + $0x70] sm:$0xff] }
  0x2a   :  { %v337_v18 = vmax.f32 %v257_v6, %v297_v11  ;;  %v80_v19 = vunpack.c.h.bf16 %v28_v2  ;;  %v119_v20 = vunpack.c.l.bf16 %v48_v7  ;;  %v120_v21 = vunpack.c.h.bf16 %v48_v7  ;;  %v211_v5 = vld [vmem:[%s885_s2 + $0x70] sm:$0xff] }
  0x2b   :  { %v506_v23 = vpack.c.bf16 %v476_v13, %v475_v8  ;;  %v338_v24 = vmax.f32 %v258_v10, %v298_v15  ;;  %v259_v25 = vunpack.c.l.bf16 %v208_v12  ;;  %v260_v26 = vunpack.c.h.bf16 %v208_v12  ;;  %v231_v10 = vld [vmem:[%s886_s3 + $0x70] sm:$0xff]  ;;  %v32_v15 = vld [vmem:[%s883_s0 + $0x78] sm:$0xff] }
  0x2c   :  { %v477_v29 = vmax.f32 %v157_v9, %v337_v18  ;;  %v159_v30 = vmax.f32 %v79_v16, %v119_v20  ;;  %v160_v31 = vmax.f32 %v80_v19, %v120_v21  ;;  %v299_v32 = vunpack.c.l.bf16 %v228_v17  ;;  %v52_v20 = vld [vmem:[%s884_s1 + $0x78] sm:$0xff] }
  0x2d   :  { %529 = vst.msk [vmem:[%s887_s4 + $0x48] sm:$0xff] %vm670_vm2, %v506_v23  ;;  %v478_v34 = vmax.f32 %v158_v14, %v338_v24  ;;  %v300_v35 = vunpack.c.h.bf16 %v228_v17  ;;  %v81_v36 = vunpack.c.l.bf16 %v29_v22  ;;  %v82_v37 = vunpack.c.h.bf16 %v29_v22 }
  0x2e   :  { %v339_v38 = vmax.f32 %v259_v25, %v299_v32  ;;  %v121_v39 = vunpack.c.l.bf16 %v49_v27  ;;  %v122_v40 = vunpack.c.h.bf16 %v49_v27  ;;  %v261_v41 = vunpack.c.l.bf16 %v209_v28  ;;  %v212_v25 = vld [vmem:[%s885_s2 + $0x78] sm:$0xff] }
  0x2f   :  { %v507_v43 = vpack.c.bf16 %v478_v34, %v477_v29  ;;  %v340_v44 = vmax.f32 %v260_v26, %v300_v35  ;;  %v262_v45 = vunpack.c.h.bf16 %v209_v28  ;;  %v301_v46 = vunpack.c.l.bf16 %v229_v33  ;;  %v33_v35 = vld [vmem:[%s883_s0 + $0x80] sm:$0xff] }
  0x30   :  { %v479_v49 = vmax.f32 %v159_v30, %v339_v38  ;;  %v161_v50 = vmax.f32 %v81_v36, %v121_v39  ;;  %v162_v51 = vmax.f32 %v82_v37, %v122_v40  ;;  %v302_v52 = vunpack.c.h.bf16 %v229_v33  ;;  %v232_v30 = vld [vmem:[%s886_s3 + $0x78] sm:$0xff]  ;;  %v53_v40 = vld [vmem:[%s884_s1 + $0x80] sm:$0xff] }
  0x31   :  { %530 = vst [vmem:[%s887_s4 + $0x50] sm:$0xff] %v507_v43  ;;  %v480_v55 = vmax.f32 %v160_v31, %v340_v44  ;;  %v341_v56 = vmax.f32 %v261_v41, %v301_v46  ;;  %v83_v57 = vunpack.c.l.bf16 %v30_v42  ;;  %v84_v58 = vunpack.c.h.bf16 %v30_v42  ;;  %v213_v41 = vld [vmem:[%s885_s2 + $0x80] sm:$0xff] }
  0x32   :  { %v342_v59 = vmax.f32 %v262_v45, %v302_v52  ;;  %v123_v60 = vunpack.c.l.bf16 %v50_v47  ;;  %v124_v61 = vunpack.c.h.bf16 %v50_v47  ;;  %v263_v62 = vunpack.c.l.bf16 %v210_v48  ;;  %v233_v46 = vld [vmem:[%s886_s3 + $0x80] sm:$0xff] }
  0x33   :  { %v508_v1 = vpack.c.bf16 %v480_v55, %v479_v49  ;;  %v481_v2 = vmax.f32 %v161_v50, %v341_v56  ;;  %v264_v3 = vunpack.c.h.bf16 %v210_v48  ;;  %v303_v4 = vunpack.c.l.bf16 %v230_v54  ;;  %v34_v56 = vld [vmem:[%s883_s0 + $0x88] sm:$0xff] }
  0x34   :  { %v482_v6 = vmax.f32 %v162_v51, %v342_v59  ;;  %v163_v7 = vmax.f32 %v83_v57, %v123_v60  ;;  %v164_v8 = vmax.f32 %v84_v58, %v124_v61  ;;  %v304_v9 = vunpack.c.h.bf16 %v230_v54  ;;  %v54_v61 = vld [vmem:[%s884_s1 + $0x88] sm:$0xff] }
  0x35   :  { %531 = vst [vmem:[%s887_s4 + $0x58] sm:$0xff] %v508_v1  ;;  %v343_v11 = vmax.f32 %v263_v62, %v303_v4  ;;  %v85_v12 = vunpack.c.l.bf16 %v31_v63  ;;  %v86_v13 = vunpack.c.h.bf16 %v31_v63  ;;  %v125_v14 = vunpack.c.l.bf16 %v51_v0  ;;  %v214_v62 = vld [vmem:[%s885_s2 + $0x88] sm:$0xff] }
  0x36   :  { %v509_v16 = vpack.c.bf16 %v482_v6, %v481_v2  ;;  %v344_v17 = vmax.f32 %v264_v3, %v304_v9  ;;  %v126_v18 = vunpack.c.h.bf16 %v51_v0  ;;  %v265_v19 = vunpack.c.l.bf16 %v211_v5  ;;  %v234_v3 = vld [vmem:[%s886_s3 + $0x88] sm:$0xff] }
  0x37   :  { %v483_v21 = vmax.f32 %v163_v7, %v343_v11  ;;  %v165_v22 = vmax.f32 %v85_v12, %v125_v14  ;;  %v266_v23 = vunpack.c.h.bf16 %v211_v5  ;;  %v305_v24 = vunpack.c.l.bf16 %v231_v10  ;;  %v35_v12 = vld [vmem:[%s883_s0 + $0x90] sm:$0xff] }
  0x38   :  { %532 = vst [vmem:[%s887_s4 + $0x60] sm:$0xff] %v509_v16  ;;  %v484_v26 = vmax.f32 %v164_v8, %v344_v17  ;;  %v166_v27 = vmax.f32 %v86_v13, %v126_v18  ;;  %v306_v28 = vunpack.c.h.bf16 %v231_v10  ;;  %v87_v29 = vunpack.c.l.bf16 %v32_v15  ;;  %v55_v13 = vld [vmem:[%s884_s1 + $0x90] sm:$0xff] }
  0x39   :  { %v345_v31 = vmax.f32 %v265_v19, %v305_v24  ;;  %v88_v32 = vunpack.c.h.bf16 %v32_v15  ;;  %v127_v33 = vunpack.c.l.bf16 %v52_v20  ;;  %v128_v34 = vunpack.c.h.bf16 %v52_v20  ;;  %v215_v18 = vld [vmem:[%s885_s2 + $0x90] sm:$0xff] }
  0x3a   :  { %v510_v36 = vpack.c.bf16 %v484_v26, %v483_v21  ;;  %v346_v37 = vmax.f32 %v266_v23, %v306_v28  ;;  %v267_v38 = vunpack.c.l.bf16 %v212_v25  ;;  %v268_v39 = vunpack.c.h.bf16 %v212_v25  ;;  %v235_v23 = vld [vmem:[%s886_s3 + $0x90] sm:$0xff]  ;;  %v36_v28 = vld [vmem:[%s883_s0 + $0x98] sm:$0xff] }
  0x3b   :  { %v485_v42 = vmax.f32 %v165_v22, %v345_v31  ;;  %v167_v43 = vmax.f32 %v87_v29, %v127_v33  ;;  %v168_v44 = vmax.f32 %v88_v32, %v128_v34  ;;  %v307_v45 = vunpack.c.l.bf16 %v232_v30  ;;  %v56_v33 = vld [vmem:[%s884_s1 + $0x98] sm:$0xff] }
  0x3c   :  { %533 = vst [vmem:[%s887_s4 + $0x68] sm:$0xff] %v510_v36  ;;  %v486_v47 = vmax.f32 %v166_v27, %v346_v37  ;;  %v308_v48 = vunpack.c.h.bf16 %v232_v30  ;;  %v89_v49 = vunpack.c.l.bf16 %v33_v35  ;;  %v90_v50 = vunpack.c.h.bf16 %v33_v35 }
  0x3d   :  { %v347_v51 = vmax.f32 %v267_v38, %v307_v45  ;;  %v129_v52 = vunpack.c.l.bf16 %v53_v40  ;;  %v130_v54 = vunpack.c.h.bf16 %v53_v40  ;;  %v269_v55 = vunpack.c.l.bf16 %v213_v41  ;;  %v216_v38 = vld [vmem:[%s885_s2 + $0x98] sm:$0xff] }
  0x3e   :  { %v511_v57 = vpack.c.bf16 %v486_v47, %v485_v42  ;;  %v348_v58 = vmax.f32 %v268_v39, %v308_v48  ;;  %v270_v59 = vunpack.c.h.bf16 %v213_v41  ;;  %v309_v60 = vunpack.c.l.bf16 %v233_v46 }
  0x3f   :  { %v487_v63 = vmax.f32 %v167_v43, %v347_v51  ;;  %v169_v0 = vmax.f32 %v89_v49, %v129_v52  ;;  %v170_v1 = vmax.f32 %v90_v50, %v130_v54  ;;  %v310_v2 = vunpack.c.h.bf16 %v233_v46  ;;  %v236_v43 = vld [vmem:[%s886_s3 + $0x98] sm:$0xff] }
  0x40   :  { %534 = vst.msk [vmem:[%s887_s4 + $0x70] sm:$0xff] %vm670_vm2, %v511_v57  ;;  %v488_v4 = vmax.f32 %v168_v44, %v348_v58  ;;  %v349_v5 = vmax.f32 %v269_v55, %v309_v60  ;;  %v91_v6 = vunpack.c.l.bf16 %v34_v56  ;;  %v92_v7 = vunpack.c.h.bf16 %v34_v56 }
  0x41   :  { %v350_v8 = vmax.f32 %v270_v59, %v310_v2  ;;  %v131_v9 = vunpack.c.l.bf16 %v54_v61  ;;  %v132_v10 = vunpack.c.h.bf16 %v54_v61  ;;  %v271_v11 = vunpack.c.l.bf16 %v214_v62 }
  0x42   :  { %v512_v14 = vpack.c.bf16 %v488_v4, %v487_v63  ;;  %v489_v15 = vmax.f32 %v169_v0, %v349_v5  ;;  %v272_v16 = vunpack.c.h.bf16 %v214_v62  ;;  %v311_v17 = vunpack.c.l.bf16 %v234_v3 }
  0x43   :  { %v490_v19 = vmax.f32 %v170_v1, %v350_v8  ;;  %v171_v20 = vmax.f32 %v91_v6, %v131_v9  ;;  %v172_v21 = vmax.f32 %v92_v7, %v132_v10  ;;  %v312_v22 = vunpack.c.h.bf16 %v234_v3 }
  0x44   :  { %535 = vst [vmem:[%s887_s4 + $0x78] sm:$0xff] %v512_v14  ;;  %v351_v24 = vmax.f32 %v271_v11, %v311_v17  ;;  %v93_v25 = vunpack.c.l.bf16 %v35_v12  ;;  %v94_v26 = vunpack.c.h.bf16 %v35_v12  ;;  %v133_v27 = vunpack.c.l.bf16 %v55_v13 }
  0x45   :  { %v513_v29 = vpack.c.bf16 %v490_v19, %v489_v15  ;;  %v352_v30 = vmax.f32 %v272_v16, %v312_v22  ;;  %v134_v31 = vunpack.c.h.bf16 %v55_v13  ;;  %v273_v32 = vunpack.c.l.bf16 %v215_v18 }
  0x46   :  { %v491_v34 = vmax.f32 %v171_v20, %v351_v24  ;;  %v173_v35 = vmax.f32 %v93_v25, %v133_v27  ;;  %v274_v36 = vunpack.c.h.bf16 %v215_v18  ;;  %v313_v37 = vunpack.c.l.bf16 %v235_v23 }
  0x47   :  { %536 = vst [vmem:[%s887_s4 + $0x80] sm:$0xff] %v513_v29  ;;  %v492_v39 = vmax.f32 %v172_v21, %v352_v30  ;;  %v174_v40 = vmax.f32 %v94_v26, %v134_v31  ;;  %v314_v41 = vunpack.c.h.bf16 %v235_v23  ;;  %v95_v42 = vunpack.c.l.bf16 %v36_v28 }
  0x48   :  { %v353_v44 = vmax.f32 %v273_v32, %v313_v37  ;;  %v96_v45 = vunpack.c.h.bf16 %v36_v28  ;;  %v135_v46 = vunpack.c.l.bf16 %v56_v33  ;;  %v136_v47 = vunpack.c.h.bf16 %v56_v33 }
  0x49   :  { %v514_v48 = vpack.c.bf16 %v492_v39, %v491_v34  ;;  %v354_v49 = vmax.f32 %v274_v36, %v314_v41  ;;  %v275_v50 = vunpack.c.l.bf16 %v216_v38  ;;  %v276_v51 = vunpack.c.h.bf16 %v216_v38 }
  0x4a   :  { %v493_v52 = vmax.f32 %v173_v35, %v353_v44  ;;  %v175_v54 = vmax.f32 %v95_v42, %v135_v46  ;;  %v176_v55 = vmax.f32 %v96_v45, %v136_v47  ;;  %v315_v56 = vunpack.c.l.bf16 %v236_v43 }
  0x4b   :  { %537 = vst [vmem:[%s887_s4 + $0x88] sm:$0xff] %v514_v48  ;;  %v494_v57 = vmax.f32 %v174_v40, %v354_v49  ;;  %v316_v58 = vunpack.c.h.bf16 %v236_v43 }
  0x4c   :  { %v355_v59 = vmax.f32 %v275_v50, %v315_v56 }
  0x4d   :  { %v515_v60 = vpack.c.bf16 %v494_v57, %v493_v52  ;;  %v356_v61 = vmax.f32 %v276_v51, %v316_v58 }
  0x4e   :  { %v495_v62 = vmax.f32 %v175_v54, %v355_v59 }
  0x4f   :  { %538 = vst [vmem:[%s887_s4 + $0x90] sm:$0xff] %v515_v60  ;;  %v496_v63 = vmax.f32 %v176_v55, %v356_v61 }
  0x51   :  { %v516_v0 = vpack.c.bf16 %v496_v63, %v495_v62 }
  0x53   :  { %539 = vst.msk [vmem:[%s887_s4 + $0x98] sm:$0xff] %vm670_vm2, %v516_v0 }

// kernel: layers2_forward.8
= control target key start
LH: loop header
LB: loop body
LE: loop exit
PB: predicated region body
PF: predicated region fallthrough
CT: control target
= control target key end

     0   :  { %s1537_s12 = smov 0   ;;  %s1854_s0 = inlined_call_operand.vmem [shape: bf16[2,144,1024], index: 0, kind: input, shape index: {}]   ;;  %s1855_s1 = inlined_call_operand.vmem [shape: bf16[32,144], index: 1, kind: input, shape index: {}]   ;;  %s1856_s2 = inlined_call_operand.vmem [shape: f32[32,1], index: 2, kind: input, shape index: {}]   ;;  %s1857_s3 = inlined_call_operand.vmem [shape: bf16[2,32,1024], index: 3, kind: output, shape index: {}]  }
   0x1 LB: > { %s1080_s13 = sadd.s32 4294967295, %s1514_s12   ;;  %p1084_p0 = scmp.ge.s32.totalorder %s1514_s12, 1  ;;  %s1514_s12 = sphi %s1537_s12, %s13_s12  }
   0x2   : > { %p137_p1 = scmp.lt.s32.totalorder %s1514_s12, 3 }
   0x4   : > { %p138_p2 = pnand %p1084_p0, %p137_p1 }
   0x5   : > { %p161_p3 = scmp.lt.s32.totalorder (!%p138_p2), %s1080_s13, 1 }
   0x6   : > { %141 = sbr.rel (%p138_p2) target bundleno = 299 (0x12b), region = 32 }
   0xb   : > { %s1859_s13 = smov (!%p161_p3, %s1080_s13), 1  ;;  %v1411_v0 = vld [vmem:[%s1855_s1 + $0x4] sm:$0xf]  ;;  %v1092_v1 = vld [vmem:[%s1855_s1 + $0x8] sm:$0xf0]  ;;  %vm650_vm0 = vcmask 130048  }
   0xc   : > { %s1496_s14 = smul.u32 576, %s1859_s13  ;;  %v1568_v15 = vor.u32 %v1411_v0, %v1092_v1  ;;  %v1413_v52 = vld [vmem:[%s1855_s1 + $0x14] sm:$0xf]  ;;  %v1100_v54 = vld [vmem:[%s1855_s1 + $0x18] sm:$0xf0] }
   0xd   : > { %v1611_v62 = vor.u32 %v1413_v52, %v1100_v54 }
   0xe   : > { %s1551_s17 = scalar_lea.vmem %s1854_s0, %s1496_s14 }
   0xf   : > { %v1330_v2 = vld [vmem:[%s1551_s17 + $0x1c0] sm:$0xf]  ;;  %v1471_v7 = vld [vmem:[%s1551_s17 + $0x1c4] sm:$0xf]  ;;  %v1370_v13 = vld [vmem:[%s1551_s17 + $0x208] sm:$0xf] }
  0x10   : > { %v1475_v3 = vld [vmem:[%s1551_s17 + $0x1dc] sm:$0xf0]  ;;  %v1332_v8 = vld [vmem:[%s1551_s17 + $0x1e0] sm:$0xf0]  ;;  %v1484_v16 = vld [vmem:[%s1551_s17 + $0x224] sm:$0xf0] }
  0x11   : > { %v1362_v4 = vld [vmem:[%s1551_s17 + $0x200] sm:$0xf]  ;;  %v1331_v5 = vor.u32 %v1475_v3, %v1330_v2  ;;  %v1335_v10 = vor.u32 %v1471_v7, %v1332_v8  ;;  %v1479_v11 = vld [vmem:[%s1551_s17 + $0x204] sm:$0xf]  ;;  %v1371_v19 = vor.u32 %v1484_v16, %v1370_v13  ;;  %v1338_v23 = vld [vmem:[%s1551_s17 + $0x1c8] sm:$0xf] }
  0x12   : > { %v1483_v6 = vld [vmem:[%s1551_s17 + $0x21c] sm:$0xf0]  ;;  %v1364_v12 = vld [vmem:[%s1551_s17 + $0x220] sm:$0xf0]  ;;  %v1476_v25 = vld [vmem:[%s1551_s17 + $0x1e4] sm:$0xf0] }
  0x13   : > { %v1363_v9 = vor.u32 %v1483_v6, %v1362_v4  ;;  %657 = vmatpush.bf16.msra.mxu0 %v1331_v5  ;;  %v1367_v14 = vor.u32 %v1479_v11, %v1364_v12  ;;  %v1298_v17 = vld [vmem:[%s1551_s17 + $0x180] sm:$0xf]  ;;  %695 = vmatpush.bf16.msra.mxu2 %v1335_v10  ;;  %v1463_v21 = vld [vmem:[%s1551_s17 + $0x184] sm:$0xf]  ;;  %v1339_v28 = vor.u32 %v1476_v25, %v1338_v23  ;;  %v1306_v31 = vld [vmem:[%s1551_s17 + $0x188] sm:$0xf] }
  0x14   : > { %v1467_v18 = vld [vmem:[%s1551_s17 + $0x19c] sm:$0xf0]  ;;  %v1300_v22 = vld [vmem:[%s1551_s17 + $0x1a0] sm:$0xf0]  ;;  %v1468_v33 = vld [vmem:[%s1551_s17 + $0x1a4] sm:$0xf0] }
  0x15   : > { %683 = vmatpush.bf16.msra.mxu1 %v1363_v9  ;;  %v1299_v20 = vor.u32 %v1467_v18, %v1298_v17  ;;  %721 = vmatpush.bf16.msra.mxu3 %v1367_v14  ;;  %v1303_v24 = vor.u32 %v1463_v21, %v1300_v22  ;;  %v1266_v26 = vld [vmem:[%s1551_s17 + $0x140] sm:$0xf]  ;;  %v1455_v29 = vld [vmem:[%s1551_s17 + $0x144] sm:$0xf]  ;;  %v1307_v37 = vor.u32 %v1468_v33, %v1306_v31  ;;  %v1274_v40 = vld [vmem:[%s1551_s17 + $0x148] sm:$0xf] }
  0x16   : > { %v1459_v27 = vld [vmem:[%s1551_s17 + $0x15c] sm:$0xf0]  ;;  %v1268_v30 = vld [vmem:[%s1551_s17 + $0x160] sm:$0xf0]  ;;  %v1460_v41 = vld [vmem:[%s1551_s17 + $0x164] sm:$0xf0] }
  0x17   : > { %658 = vmatpush.bf16.msra.mxu0 %v1299_v20  ;;  %v1267_v32 = vor.u32 %v1459_v27, %v1266_v26  ;;  %696 = vmatpush.bf16.msra.mxu2 %v1303_v24  ;;  %v1271_v34 = vor.u32 %v1455_v29, %v1268_v30  ;;  %v1234_v35 = vld [vmem:[%s1551_s17 + $0x100] sm:$0xf]  ;;  %v1447_v38 = vld [vmem:[%s1551_s17 + $0x104] sm:$0xf]  ;;  %v1275_v46 = vor.u32 %v1460_v41, %v1274_v40  ;;  %v1242_v49 = vld [vmem:[%s1551_s17 + $0x108] sm:$0xf] }
  0x18   : > { %1392 = vmatmul.msk.bf16.vlgmr.msra.gmra.mxu1 %vm650_vm0, %v1568_v15  ;;  %1394 = vmatmul.msk.bf16.vlgmr.msra.gmra.mxu3 %vm650_vm0, %v1568_v15  ;;  %v1451_v36 = vld [vmem:[%s1551_s17 + $0x11c] sm:$0xf0]  ;;  %v1236_v39 = vld [vmem:[%s1551_s17 + $0x120] sm:$0xf0]  ;;  %v1452_v50 = vld [vmem:[%s1551_s17 + $0x124] sm:$0xf0] }
  0x19   : > { %759 = vmatpush.bf16.msrb.mxu3 %v1371_v19  ;;  %733 = vmatpush.bf16.msrb.mxu1 %v1339_v28  ;;  %v1235_v42 = vor.u32 %v1451_v36, %v1234_v35  ;;  %v1239_v43 = vor.u32 %v1447_v38, %v1236_v39  ;;  %v1202_v44 = vld [vmem:[%s1551_s17 + $0xc0] sm:$0xf]  ;;  %v1439_v47 = vld [vmem:[%s1551_s17 + $0xc4] sm:$0xf]  ;;  %v1243_v57 = vor.u32 %v1452_v50, %v1242_v49  ;;  %v1210_v60 = vld [vmem:[%s1551_s17 + $0xc8] sm:$0xf] }
  0x1a   : > { %v1443_v45 = vld [vmem:[%s1551_s17 + $0xdc] sm:$0xf0]  ;;  %v1204_v48 = vld [vmem:[%s1551_s17 + $0xe0] sm:$0xf0]  ;;  %v1444_v61 = vld [vmem:[%s1551_s17 + $0xe4] sm:$0xf0] }
  0x1b   : > { %659 = vmatpush.bf16.msra.mxu0 %v1267_v32  ;;  %697 = vmatpush.bf16.msra.mxu2 %v1271_v34  ;;  %v1203_v51 = vor.u32 %v1443_v45, %v1202_v44  ;;  %v1207_v53 = vor.u32 %v1439_v47, %v1204_v48  ;;  %v1170_v55 = vld [vmem:[%s1551_s17 + $0x80] sm:$0xf]  ;;  %v1431_v58 = vld [vmem:[%s1551_s17 + $0x84] sm:$0xf]  ;;  %v1480_v0 = vld [vmem:[%s1551_s17 + $0x20c] sm:$0xf]  ;;  %v1211_v6 = vor.u32 %v1444_v61, %v1210_v60 }
  0x1c   : > { %v1435_v56 = vld [vmem:[%s1551_s17 + $0x9c] sm:$0xf0]  ;;  %v1172_v59 = vld [vmem:[%s1551_s17 + $0xa0] sm:$0xf0]  ;;  %v1372_v1 = vld [vmem:[%s1551_s17 + $0x228] sm:$0xf0] }
  0x1d   : > { %734 = vmatpush.bf16.msrb.mxu1 %v1307_v37  ;;  %v1171_v63 = vor.u32 %v1435_v56, %v1170_v55  ;;  %v1175_v2 = vor.u32 %v1431_v58, %v1172_v59  ;;  %v1138_v3 = vld [vmem:[%s1551_s17 + $0x40] sm:$0xf]  ;;  %v1375_v5 = vor.u32 %v1480_v0, %v1372_v1  ;;  %v1423_v7 = vld [vmem:[%s1551_s17 + $0x44] sm:$0xf]  ;;  %v1178_v9 = vld [vmem:[%s1551_s17 + $0x88] sm:$0xf] }
  0x1e   : > { %v1427_v4 = vld [vmem:[%s1551_s17 + $0x5c] sm:$0xf0]  ;;  %v1140_v8 = vld [vmem:[%s1551_s17 + $0x60] sm:$0xf0]  ;;  %v1436_v10 = vld [vmem:[%s1551_s17 + $0xa4] sm:$0xf0] }
  0x1f   : > { %660 = vmatpush.bf16.msra.mxu0 %v1235_v42  ;;  %698 = vmatpush.bf16.msra.mxu2 %v1239_v43  ;;  %v1139_v11 = vor.u32 %v1427_v4, %v1138_v3  ;;  %v248_v12 = vld [vmem:[%s1856_s2] sm:$0xff]  ;;  %v1143_v13 = vor.u32 %v1423_v7, %v1140_v8  ;;  %v1179_v18 = vor.u32 %v1436_v10, %v1178_v9  ;;  %v1472_v20 = vld [vmem:[%s1551_s17 + $0x1cc] sm:$0xf]  ;;  %v1516_v22 = vmov 0   ;;  %v1146_v23 = vld [vmem:[%s1551_s17 + $0x48] sm:$0xf] }
  0x20   : > { %1487 = vmatpush.bf16.msra.mxu3 %v1375_v5  ;;  %v1106_v14 = vld [vmem:[%s1551_s17] sm:$0xf]  ;;  %v1415_v17 = vld [vmem:[%s1551_s17 + $0x4] sm:$0xf]  ;;  %v1340_v21 = vld [vmem:[%s1551_s17 + $0x1e8] sm:$0xf0]  ;;  %1506 = vset.pattern.permute.xlu0 %v1516_v22 }
  0x21   : > { %735 = vmatpush.bf16.msrb.mxu1 %v1275_v46  ;;  %v1419_v16 = vld [vmem:[%s1551_s17 + $0x1c] sm:$0xf0]  ;;  %v1108_v19 = vld [vmem:[%s1551_s17 + $0x20] sm:$0xf0]  ;;  %v1428_v24 = vld [vmem:[%s1551_s17 + $0x64] sm:$0xf0]  ;;  %254 = vperm.xlu0 %1506, %v248_v12   ;;  %v1343_v29 = vor.u32 %v1472_v20, %v1340_v21 }
  0x22   : > { %1507 = vset.pattern.permute.xlu1 %v1516_v22  ;;  %v1107_v25 = vor.u32 %v1419_v16, %v1106_v14  ;;  %v1090_v26 = vld [vmem:[%s1855_s1] sm:$0xf]  ;;  %v1412_v27 = vld [vmem:[%s1855_s1 + $0x4] sm:$0xf0]  ;;  %v1111_v28 = vor.u32 %v1415_v17, %v1108_v19  ;;  %v1147_v30 = vor.u32 %v1428_v24, %v1146_v23  ;;  %v1464_v31 = vld [vmem:[%s1551_s17 + $0x18c] sm:$0xf] }
  0x23   : > { %661 = vmatpush.bf16.msra.mxu0 %v1203_v51  ;;  %699 = vmatpush.bf16.msra.mxu2 %v1207_v53  ;;  %v1308_v32 = vld [vmem:[%s1551_s17 + $0x1a8] sm:$0xf0]  ;;  %v250_v33 = vld [vmem:[%s1856_s2 + $0x10] sm:$0xff]  ;;  %v1647_v34 = vor.u32 %v1412_v27, %v1090_v26  ;;  %v1114_v35 = vld [vmem:[%s1551_s17 + $0x8] sm:$0xf] }
  0x24   : > { %v1420_v36 = vld [vmem:[%s1551_s17 + $0x24] sm:$0xf0]  ;;  %264 = vperm.xlu1 %1507, %v250_v33   ;;  %v1346_v37 = vld [vmem:[%s1551_s17 + $0x1d0] sm:$0xf]  ;;  %v1311_v40 = vor.u32 %v1464_v31, %v1308_v32  ;;  %v1456_v43 = vld [vmem:[%s1551_s17 + $0x14c] sm:$0xf] }
  0x25   : > { %736 = vmatpush.bf16.msrb.mxu1 %v1243_v57  ;;  %v1477_v38 = vld [vmem:[%s1551_s17 + $0x1ec] sm:$0xf0]  ;;  %v249_v39 = vld [vmem:[%s1856_s2 + $0x8] sm:$0xff]  ;;  %v1115_v41 = vor.u32 %v1420_v36, %v1114_v35  ;;  %v251_v47 = vld [vmem:[%s1856_s2 + $0x18] sm:$0xff] }
  0x26   : > { %v1347_v42 = vor.u32 %v1477_v38, %v1346_v37  ;;  %v1276_v44 = vld [vmem:[%s1551_s17 + $0x168] sm:$0xf0]  ;;  %v1314_v45 = vld [vmem:[%s1551_s17 + $0x190] sm:$0xf]  ;;  %v1481_v56 = vld [vmem:[%s1551_s17 + $0x214] sm:$0xf] }
  0x27   : > { %662 = vmatpush.bf16.msra.mxu0 %v1171_v63  ;;  %700 = vmatpush.bf16.msra.mxu2 %v1175_v2  ;;  %v1469_v46 = vld [vmem:[%s1551_s17 + $0x1ac] sm:$0xf0]  ;;  %v1279_v48 = vor.u32 %v1456_v43, %v1276_v44  ;;  %v1448_v50 = vld [vmem:[%s1551_s17 + $0x10c] sm:$0xf]  ;;  %v1380_v59 = vld [vmem:[%s1551_s17 + $0x230] sm:$0xf0] }
  0x28   : > { %1393 = vmatmul.msk.bf16.gmra.mxu1 %vm650_vm0, %v1611_v62  ;;  %1395 = vmatmul.msk.bf16.gmra.mxu3 %vm650_vm0, %v1611_v62  ;;  %v1315_v49 = vor.u32 %v1469_v46, %v1314_v45  ;;  %v1244_v51 = vld [vmem:[%s1551_s17 + $0x128] sm:$0xf0]  ;;  %v1282_v52 = vld [vmem:[%s1551_s17 + $0x150] sm:$0xf]  ;;  %v1383_v1 = vor.u32 %v1481_v56, %v1380_v59  ;;  %v1414_v2 = vld [vmem:[%s1855_s1 + $0x14] sm:$0xf0] }
  0x29   : > { %737 = vmatpush.bf16.msrb.mxu1 %v1211_v6  ;;  %259 = vperm.xlu0 %1506, %v249_v39   ;;  %v1461_v53 = vld [vmem:[%s1551_s17 + $0x16c] sm:$0xf0]  ;;  %v1247_v57 = vor.u32 %v1448_v50, %v1244_v51  ;;  %v1440_v63 = vld [vmem:[%s1551_s17 + $0xcc] sm:$0xf]  ;;  %v1348_v26 = vld [vmem:[%s1551_s17 + $0x1f0] sm:$0xf0] }
  0x2a   : > { %v1378_v54 = vld [vmem:[%s1551_s17 + $0x210] sm:$0xf]  ;;  %v1283_v60 = vor.u32 %v1461_v53, %v1282_v52  ;;  %v1212_v0 = vld [vmem:[%s1551_s17 + $0xe8] sm:$0xf0]  ;;  %v1465_v32 = vld [vmem:[%s1551_s17 + $0x194] sm:$0xf] }
  0x2b   : > { %663 = vmatpush.bf16.msra.mxu0 %v1139_v11  ;;  %701 = vmatpush.bf16.msra.mxu2 %v1143_v13  ;;  %v1485_v55 = vld [vmem:[%s1551_s17 + $0x22c] sm:$0xf0]  ;;  %v1432_v8 = vld [vmem:[%s1551_s17 + $0x8c] sm:$0xf]  ;;  %v1316_v33 = vld [vmem:[%s1551_s17 + $0x1b0] sm:$0xf0] }
  0x2c   : > { %269 = vperm.xlu1 %1507, %v251_v47   ;;  %v1379_v58 = vor.u32 %v1485_v55, %v1378_v54  ;;  %v1098_v61 = vld [vmem:[%s1855_s1 + $0x10] sm:$0xf]  ;;  %v1180_v9 = vld [vmem:[%s1551_s17 + $0xa8] sm:$0xf0]  ;;  %v1354_v35 = vld [vmem:[%s1551_s17 + $0x1d8] sm:$0xf] }
  0x2d   : > { %738 = vmatpush.bf16.msrb.mxu1 %v1179_v18  ;;  %v1250_v3 = vld [vmem:[%s1551_s17 + $0x110] sm:$0xf]  ;;  %v1686_v6 = vor.u32 %v1414_v2, %v1098_v61  ;;  %v1183_v12 = vor.u32 %v1432_v8, %v1180_v9  ;;  %v1424_v14 = vld [vmem:[%s1551_s17 + $0x4c] sm:$0xf]  ;;  %v1478_v36 = vld [vmem:[%s1551_s17 + $0x1f4] sm:$0xf0] }
  0x2e   : > { %v1453_v4 = vld [vmem:[%s1551_s17 + $0x12c] sm:$0xf0]  ;;  %v1148_v16 = vld [vmem:[%s1551_s17 + $0x68] sm:$0xf0]  ;;  %v1482_v37 = vld [vmem:[%s1551_s17 + $0x21c] sm:$0xf] }
  0x2f   : > { %664 = vmatpush.bf16.msra.mxu0 %v1107_v25  ;;  %702 = vmatpush.bf16.msra.mxu2 %v1111_v28  ;;  %v1251_v7 = vor.u32 %v1453_v4, %v1250_v3  ;;  %v1218_v10 = vld [vmem:[%s1551_s17 + $0xd0] sm:$0xf]  ;;  %v1151_v19 = vor.u32 %v1424_v14, %v1148_v16  ;;  %v1416_v21 = vld [vmem:[%s1551_s17 + $0xc] sm:$0xf]  ;;  %v1473_v25 = vld [vmem:[%s1551_s17 + $0x1d4] sm:$0xf] }
  0x30   : > { %v1445_v11 = vld [vmem:[%s1551_s17 + $0xec] sm:$0xf0]  ;;  %v1116_v22 = vld [vmem:[%s1551_s17 + $0x28] sm:$0xf0]  ;;  %v1388_v38 = vld [vmem:[%s1551_s17 + $0x238] sm:$0xf0] }
  0x31   : > { %739 = vmatpush.bf16.msrb.mxu1 %v1147_v30  ;;  %v1219_v13 = vor.u32 %v1445_v11, %v1218_v10  ;;  %v1186_v17 = vld [vmem:[%s1551_s17 + $0x90] sm:$0xf]  ;;  %v1119_v27 = vor.u32 %v1416_v21, %v1116_v22  ;;  %v1284_v43 = vld [vmem:[%s1551_s17 + $0x170] sm:$0xf0]  ;;  %v1391_v44 = vor.u32 %v1482_v37, %v1388_v38  ;;  %v1322_v45 = vld [vmem:[%s1551_s17 + $0x198] sm:$0xf] }
  0x32   : > { %665 = vmatmul.bf16.vlgmr.msra.gmra.mxu0 %v1647_v34  ;;  %703 = vmatmul.bf16.vlgmr.msra.gmra.mxu2 %v1647_v34  ;;  %v1437_v18 = vld [vmem:[%s1551_s17 + $0xac] sm:$0xf0]  ;;  %v1470_v46 = vld [vmem:[%s1551_s17 + $0x1b4] sm:$0xf0]  ;;  %v1449_v50 = vld [vmem:[%s1551_s17 + $0x114] sm:$0xf] }
  0x33   : > { %771 = vmatpush.bf16.msrb.mxu0 %v1343_v29  ;;  %797 = vmatpush.bf16.msrb.mxu2 %v1375_v5  ;;  %v1215_v5 = vor.u32 %v1440_v63, %v1212_v0  ;;  %v1187_v20 = vor.u32 %v1437_v18, %v1186_v17  ;;  %v1154_v23 = vld [vmem:[%s1551_s17 + $0x50] sm:$0xf]  ;;  %v1351_v29 = vor.u32 %v1473_v25, %v1348_v26  ;;  %v1386_v47 = vld [vmem:[%s1551_s17 + $0x218] sm:$0xf]  ;;  %v1252_v51 = vld [vmem:[%s1551_s17 + $0x130] sm:$0xf0] }
  0x34   : > { %v1429_v24 = vld [vmem:[%s1551_s17 + $0x6c] sm:$0xf0]  ;;  %v1323_v52 = vor.u32 %v1470_v46, %v1322_v45  ;;  %v1290_v54 = vld [vmem:[%s1551_s17 + $0x158] sm:$0xf]  ;;  %v1255_v56 = vor.u32 %v1449_v50, %v1252_v51  ;;  %v1433_v0 = vld [vmem:[%s1551_s17 + $0x94] sm:$0xf] }
  0x35   : > { %740 = vmatpush.bf16.msrb.mxu1 %v1115_v41  ;;  %v1155_v28 = vor.u32 %v1429_v24, %v1154_v23  ;;  %v1122_v30 = vld [vmem:[%s1551_s17 + $0x10] sm:$0xf]  ;;  %v1355_v41 = vor.u32 %v1478_v36, %v1354_v35  ;;  %v1462_v55 = vld [vmem:[%s1551_s17 + $0x174] sm:$0xf0]  ;;  %v1156_v8 = vld [vmem:[%s1551_s17 + $0x70] sm:$0xf0] }
  0x36   : > { %v1421_v31 = vld [vmem:[%s1551_s17 + $0x2c] sm:$0xf0]  ;;  %v1291_v59 = vor.u32 %v1462_v55, %v1290_v54  ;;  %v1454_v61 = vld [vmem:[%s1551_s17 + $0x134] sm:$0xf0]  ;;  %v1124_v14 = vld [vmem:[%s1551_s17 + $0x30] sm:$0xf0] }
  0x37   : > { %772 = vmatpush.bf16.msrb.mxu0 %v1311_v40  ;;  %873 = vmatpush.bf16.msra.mxu2 %v1383_v1  ;;  %v1123_v39 = vor.u32 %v1421_v31, %v1122_v30  ;;  %v1319_v40 = vor.u32 %v1465_v32, %v1316_v33  ;;  %v1188_v1 = vld [vmem:[%s1551_s17 + $0xb0] sm:$0xf0]  ;;  %v1226_v3 = vld [vmem:[%s1551_s17 + $0xd8] sm:$0xf]  ;;  %v1474_v17 = vld [vmem:[%s1551_s17 + $0x1dc] sm:$0xf] }
  0x38   : > { %741 = vmatmul.bf16.vlgmr.msrb.gmra.mxu1 %v1647_v34  ;;  %1396 = vmatmul.msk.bf16.vlgmr.msrb.gmra.mxu3 %vm650_vm0, %v1568_v15  ;;  %v1446_v4 = vld [vmem:[%s1551_s17 + $0xf4] sm:$0xf0]  ;;  %v1356_v18 = vld [vmem:[%s1551_s17 + $0x1f8] sm:$0xf0] }
  0x39   : > { %809 = vmatpush.bf16.msra.mxu1 %v1347_v42  ;;  %835 = vmatpush.bf16.msrb.mxu3 %v1379_v58  ;;  %v1457_v42 = vld [vmem:[%s1551_s17 + $0x154] sm:$0xf]  ;;  %v1227_v9 = vor.u32 %v1446_v4, %v1226_v3  ;;  %v1194_v10 = vld [vmem:[%s1551_s17 + $0x98] sm:$0xf]  ;;  %v1359_v22 = vor.u32 %v1474_v17, %v1356_v18  ;;  %v1466_v24 = vld [vmem:[%s1551_s17 + $0x19c] sm:$0xf] }
  0x3a   : > { %v1220_v58 = vld [vmem:[%s1551_s17 + $0xf0] sm:$0xf0]  ;;  %v1438_v11 = vld [vmem:[%s1551_s17 + $0xb4] sm:$0xf0]  ;;  %v1324_v25 = vld [vmem:[%s1551_s17 + $0x1b8] sm:$0xf0] }
  0x3b   : > { %773 = vmatpush.bf16.msrb.mxu0 %v1279_v48  ;;  %v1486_v48 = vld [vmem:[%s1551_s17 + $0x234] sm:$0xf0]  ;;  %v1195_v16 = vor.u32 %v1438_v11, %v1194_v10  ;;  %v1458_v30 = vld [vmem:[%s1551_s17 + $0x15c] sm:$0xf] }
  0x3c   : > { %v1387_v53 = vor.u32 %v1486_v48, %v1386_v47  ;;  %v1130_v26 = vld [vmem:[%s1551_s17 + $0x18] sm:$0xf]  ;;  %v1292_v31 = vld [vmem:[%s1551_s17 + $0x178] sm:$0xf0] }
  0x3d   : > { %810 = vmatpush.bf16.msra.mxu1 %v1315_v49  ;;  %v1287_v49 = vor.u32 %v1457_v42, %v1284_v43  ;;  %v1295_v32 = vor.u32 %v1458_v30, %v1292_v31  ;;  %v1450_v33 = vld [vmem:[%s1551_s17 + $0x11c] sm:$0xf] }
  0x3e   : > { %v1260_v35 = vld [vmem:[%s1551_s17 + $0x138] sm:$0xf0] }
  0x3f   : > { %774 = vmatpush.bf16.msrb.mxu0 %v1247_v57  ;;  %v1441_v57 = vld [vmem:[%s1551_s17 + $0xd4] sm:$0xf]  ;;  %v1263_v36 = vor.u32 %v1450_v33, %v1260_v35  ;;  %v1442_v37 = vld [vmem:[%s1551_s17 + $0xdc] sm:$0xf] }
  0x40   : > { %v1223_v63 = vor.u32 %v1441_v57, %v1220_v58  ;;  %v1228_v38 = vld [vmem:[%s1551_s17 + $0xf8] sm:$0xf0] }
  0x41   : > { %811 = vmatpush.bf16.msra.mxu1 %v1283_v60  ;;  %v1258_v60 = vld [vmem:[%s1551_s17 + $0x118] sm:$0xf]  ;;  %v1426_v43 = vld [vmem:[%s1551_s17 + $0x5c] sm:$0xf] }
  0x42   : > { %670 = vmatmul.bf16.gmra.mxu0 %v1686_v6  ;;  %708 = vmatmul.bf16.gmra.mxu2 %v1686_v6  ;;  %v1259_v2 = vor.u32 %v1454_v61, %v1258_v60  ;;  %v1418_v46 = vld [vmem:[%s1551_s17 + $0x1c] sm:$0xf] }
  0x43   : > { %775 = vmatpush.bf16.msrb.mxu0 %v1215_v5  ;;  %v1191_v5 = vor.u32 %v1433_v0, %v1188_v1  ;;  %v1132_v47 = vld [vmem:[%s1551_s17 + $0x38] sm:$0xf0] }
  0x44   : > { %v1135_v48 = vor.u32 %v1418_v46, %v1132_v47 }
  0x45   : > { %812 = vmatpush.bf16.msra.mxu1 %v1251_v7  ;;  %v1425_v7 = vld [vmem:[%s1551_s17 + $0x54] sm:$0xf] }
  0x47   : > { %776 = vmatpush.bf16.msrb.mxu0 %v1183_v12  ;;  %v1159_v12 = vor.u32 %v1425_v7, %v1156_v8 }
  0x48   : > { %746 = vmatmul.bf16.gmra.mxu1 %v1686_v6  ;;  %1397 = vmatmul.msk.bf16.gmra.mxu3 %vm650_vm0, %v1611_v62 }
  0x49   : > { %813 = vmatpush.bf16.msra.mxu1 %v1219_v13  ;;  %v1417_v13 = vld [vmem:[%s1551_s17 + $0x14] sm:$0xf] }
  0x4a   : > { %v1127_v21 = vor.u32 %v1417_v13, %v1124_v14 }
  0x4b   : > { %777 = vmatpush.bf16.msrb.mxu0 %v1151_v19  ;;  %v1162_v19 = vld [vmem:[%s1551_s17 + $0x58] sm:$0xf] }
  0x4d   : > { %814 = vmatpush.bf16.msra.mxu1 %v1187_v20  ;;  %v1430_v20 = vld [vmem:[%s1551_s17 + $0x74] sm:$0xf0] }
  0x4e   : > { %v1163_v23 = vor.u32 %v1430_v20, %v1162_v19 }
  0x4f   : > { %778 = vmatpush.bf16.msrb.mxu0 %v1119_v27  ;;  %v1422_v27 = vld [vmem:[%s1551_s17 + $0x34] sm:$0xf0] }
  0x51   : > { %815 = vmatpush.bf16.msra.mxu1 %v1155_v28  ;;  %v1327_v28 = vor.u32 %v1466_v24, %v1324_v25 }
  0x52   : > { %779 = vmatmul.bf16.vlgmr.msrb.gmra.mxu0 %v1647_v34  ;;  %1398 = vmatmul.msk.bf16.vlgmr.msrb.gmra.mxu2 %vm650_vm0, %v1568_v15 }
  0x53   : > { %847 = vmatpush.bf16.msra.mxu0 %v1351_v29  ;;  %949 = vmatpush.bf16.msrb.mxu2 %v1391_v44  ;;  %v1131_v29 = vor.u32 %v1422_v27, %v1130_v26  ;;  %v1164_v44 = vld [vmem:[%s1551_s17 + $0x78] sm:$0xf0] }
  0x54   : > { %v1167_v45 = vor.u32 %v1426_v43, %v1164_v44 }
  0x55   : > { %816 = vmatpush.bf16.msra.mxu1 %v1123_v39  ;;  %v1231_v39 = vor.u32 %v1442_v37, %v1228_v38 }
  0x57   : > { %848 = vmatpush.bf16.msra.mxu0 %v1319_v40  ;;  %v1434_v40 = vld [vmem:[%s1551_s17 + $0x9c] sm:$0xf] }
  0x58   : > { %1399 = vmatmul.msk.bf16.vlgmr.msra.gmra.mxu3 %vm650_vm0, %v1611_v62  ;;  %817 = vmatmul.bf16.vlgmr.msra.gmra.mxu1 %v1647_v34 }
  0x59   : > { %885 = vmatpush.bf16.msrb.mxu1 %v1355_v41  ;;  %911 = vmatpush.bf16.msra.mxu3 %v1387_v53  ;;  %v1196_v41 = vld [vmem:[%s1551_s17 + $0xb8] sm:$0xf0]  ;;  %s1410_s17 = sshll.u32 %s1859_s13, 7 }
  0x5a   : > { %v1199_v42 = vor.u32 %v1434_v40, %v1196_v41  ;;  %s1800_s20 = scalar_lea.vmem %s1857_s3, %s1410_s17 }
  0x5b   : > { %849 = vmatpush.bf16.msra.mxu0 %v1287_v49 }
  0x5d   : > { %886 = vmatpush.bf16.msrb.mxu1 %v1323_v52 }
  0x5f   : > { %850 = vmatpush.bf16.msra.mxu0 %v1255_v56 }
  0x61   : > { %887 = vmatpush.bf16.msrb.mxu1 %v1291_v59 }
  0x62   : > { %784 = vmatmul.bf16.gmra.mxu0 %v1686_v6  ;;  %1402 = vmatmul.msk.bf16.vlgmr.msra.gmra.mxu2 %vm650_vm0, %v1568_v15 }
  0x63   : > { %851 = vmatpush.bf16.msra.mxu0 %v1223_v63 }
  0x65   : > { %888 = vmatpush.bf16.msrb.mxu1 %v1259_v2 }
  0x67   : > { %852 = vmatpush.bf16.msra.mxu0 %v1191_v5 }
  0x68   : > { %822 = vmatmul.bf16.gmra.mxu1 %v1686_v6  ;;  %1400 = vmatmul.msk.bf16.vlgmr.msrb.gmra.mxu3 %vm650_vm0, %v1568_v15 }
  0x69   : > { %889 = vmatpush.bf16.msrb.mxu1 %v1227_v9 }
  0x6b   : > { %853 = vmatpush.bf16.msra.mxu0 %v1159_v12 }
  0x6d   : > { %890 = vmatpush.bf16.msrb.mxu1 %v1195_v16 }
  0x6f   : > { %854 = vmatpush.bf16.msra.mxu0 %v1127_v21 }
  0x71   : > { %891 = vmatpush.bf16.msrb.mxu1 %v1163_v23 }
  0x72   : > { %855 = vmatmul.bf16.vlgmr.msra.gmra.mxu0 %v1647_v34  ;;  %1403 = vmatmul.msk.bf16.gmra.mxu2 %vm650_vm0, %v1611_v62 }
  0x73   : > { %923 = vmatpush.bf16.msrb.mxu0 %v1359_v22 }
  0x75   : > { %892 = vmatpush.bf16.msrb.mxu1 %v1131_v29 }
  0x77   : > { %924 = vmatpush.bf16.msrb.mxu0 %v1327_v28 }
  0x78   : > { %1401 = vmatmul.msk.bf16.gmra.mxu3 %vm650_vm0, %v1611_v62  ;;  %893 = vmatmul.bf16.vlgmr.msrb.gmra.mxu1 %v1647_v34 }
  0x79   : > { %1488 = vmatpush.bf16.msra.mxu1 %v1359_v22 }
  0x7b   : > { %925 = vmatpush.bf16.msrb.mxu0 %v1295_v32 }
  0x7d   : > { %1489 = vmatpush.bf16.msra.mxu1 %v1327_v28 }
  0x7f   : > { %926 = vmatpush.bf16.msrb.mxu0 %v1263_v36 }
  0x81   : > { %1490 = vmatpush.bf16.msra.mxu1 %v1295_v32 }
  0x82   : > { %860 = vmatmul.bf16.gmra.mxu0 %v1686_v6  ;;  %1406 = vmatmul.msk.bf16.vlgmr.msrb.gmra.mxu2 %vm650_vm0, %v1568_v15 }
  0x83   : > { %927 = vmatpush.bf16.msrb.mxu0 %v1231_v39 }
  0x85   : > { %1491 = vmatpush.bf16.msra.mxu1 %v1263_v36 }
  0x87   : > { %928 = vmatpush.bf16.msrb.mxu0 %v1199_v42 }
  0x88   : > { %898 = vmatmul.bf16.gmra.mxu1 %v1686_v6  ;;  %1404 = vmatmul.msk.bf16.vlgmr.msra.gmra.mxu3 %vm650_vm0, %v1568_v15 }
  0x89   : > { %1492 = vmatpush.bf16.msra.mxu1 %v1231_v39 }
  0x8b   : > { %929 = vmatpush.bf16.msrb.mxu0 %v1167_v45 }
  0x8d   : > { %1493 = vmatpush.bf16.msra.mxu1 %v1199_v42 }
  0x8f   : > { %930 = vmatpush.bf16.msrb.mxu0 %v1135_v48 }
  0x91   : > { %1494 = vmatpush.bf16.msra.mxu1 %v1167_v45 }
  0x92   : > { %931 = vmatmul.bf16.vlgmr.msrb.gmra.mxu0 %v1647_v34  ;;  %1407 = vmatmul.msk.bf16.gmra.mxu2 %vm650_vm0, %v1611_v62 }
  0x93   : > { %v1789_v55 = vpop.permute.xlu0 %254 }
  0x95   : > { %1495 = vmatpush.bf16.msra.mxu1 %v1135_v48  ;;  %v685_v49 = vpop.f32.mrf.mxu1 }
  0x96   : > { %v1802_v8 = vpop.permute.xlu1 %264 }
  0x98   : > { %1405 = vmatmul.msk.bf16.gmra.mxu3 %vm650_vm0, %v1611_v62  ;;  %936 = vmatmul.bf16.vlgmr.msra.gmra.mxu1 %v1686_v6 }
  0x9b   : > { %v723_v50 = vpop.f32.mrf.mxu3  ;;  %v1793_v6 = vpop.permute.xlu0 %259 }
  0x9d   : > { %v687_v51 = vpop.f32.mrf.mxu1 }
  0x9e   : > { %v1809_v24 = vpop.permute.xlu1 %269 }
  0xa3   : > { %v725_v52 = vpop.f32.mrf.mxu3 }
  0xa5   : > { %v690_v53 = vpop.f32.mrf.mxu1 }
  0xab   : > { %v728_v15 = vpop.f32.mrf.mxu3 }
  0xad   : > { %v692_v54 = vpop.f32.mrf.mxu1 }
  0xaf   : > { %v666_v56 = vpop.f32.mrf.mxu0 }
  0xb0   : > { %v667_v34 = vadd.f32 %v666_v56, %v1789_v55 }
  0xb2   : > { %v686_v60 = vadd.f32 %v685_v49, %v667_v34 }
  0xb3   : > { %v730_v57 = vpop.f32.mrf.mxu3 }
  0xb4   : > { %v961_v0 = vmax.f32 %v686_v60, 0.0 }
  0xb5   : > { %v742_v58 = vpop.f32.mrf.mxu1  ;;  %v704_v59 = vpop.f32.mrf.mxu2 }
  0xb6   : > { %v705_v62 = vadd.f32 %v704_v59, %v1789_v55  ;;  %v743_v37 = vadd.f32 %v742_v58, %v1789_v55 }
  0xb7   : > { %v668_v61 = vpop.f32.mrf.mxu0 }
  0xb8   : > { %v724_v63 = vadd.f32 %v723_v50, %v705_v62  ;;  %v669_v2 = vadd.f32 %v668_v61, %v1793_v6 }
  0xba   : > { %v962_v1 = vmax.f32 %v724_v63, 0.0  ;;  %v688_v9 = vadd.f32 %v687_v51, %v669_v2 }
  0xbb   : > { %v761_v3 = vpop.f32.mrf.mxu3 }
  0xbc   : > { %v993_v4 = vpack.c.bf16 %v962_v1, %v961_v0  ;;  %v969_v13 = vmax.f32 %v688_v9, 0.0  ;;  %v762_v43 = vadd.f32 %v761_v3, %v743_v37 }
  0xbd   : > { %v744_v5 = vpop.f32.mrf.mxu1  ;;  %v706_v7 = vpop.f32.mrf.mxu2 }
  0xbe   : > { %1009 = vst [vmem:[%s1800_s20] sm:$0xff] %v993_v4  ;;  %v707_v10 = vadd.f32 %v706_v7, %v1793_v6  ;;  %v963_v49 = vmax.f32 %v762_v43, 0.0  ;;  %v745_v51 = vadd.f32 %v744_v5, %v1793_v6 }
  0xbf   : > { %v671_v11 = vpop.f32.mrf.mxu0 }
  0xc0   : > { %v726_v12 = vadd.f32 %v725_v52, %v707_v10  ;;  %v672_v16 = vadd.f32 %v671_v11, %v1802_v8 }
  0xc2   : > { %v970_v14 = vmax.f32 %v726_v12, 0.0  ;;  %v691_v21 = vadd.f32 %v690_v53, %v672_v16 }
  0xc3   : > { %v763_v17 = vpop.f32.mrf.mxu3 }
  0xc4   : > { %v997_v18 = vpack.c.bf16 %v970_v14, %v969_v13  ;;  %v977_v26 = vmax.f32 %v691_v21, 0.0 }
  0xc5   : > { %v747_v19 = vpop.f32.mrf.mxu1  ;;  %v709_v20 = vpop.f32.mrf.mxu2 }
  0xc6   : > { %1013 = vst [vmem:[%s1800_s20 + $0x20] sm:$0xff] %v997_v18  ;;  %v710_v22 = vadd.f32 %v709_v20, %v1802_v8 }
  0xc7   : > { %v673_v23 = vpop.f32.mrf.mxu0 }
  0xc8   : > { %v729_v25 = vadd.f32 %v728_v15, %v710_v22  ;;  %v674_v28 = vadd.f32 %v673_v23, %v1809_v24  ;;  %v748_v15 = vadd.f32 %v747_v19, %v1802_v8 }
  0xca   : > { %v978_v27 = vmax.f32 %v729_v25, 0.0  ;;  %v693_v33 = vadd.f32 %v692_v54, %v674_v28  ;;  %v764_v54 = vadd.f32 %v763_v17, %v745_v51 }
  0xcb   : > { %v766_v29 = vpop.f32.mrf.mxu3 }
  0xcc   : > { %v1001_v30 = vpack.c.bf16 %v978_v27, %v977_v26  ;;  %v985_v39 = vmax.f32 %v693_v33, 0.0  ;;  %v767_v60 = vadd.f32 %v766_v29, %v748_v15  ;;  %v971_v61 = vmax.f32 %v764_v54, 0.0 }
  0xcd   : > { %v749_v31 = vpop.f32.mrf.mxu1  ;;  %v711_v32 = vpop.f32.mrf.mxu2 }
  0xce   : > { %1017 = vst [vmem:[%s1800_s20 + $0x40] sm:$0xff] %v1001_v30  ;;  %v712_v35 = vadd.f32 %v711_v32, %v1809_v24  ;;  %v979_v3 = vmax.f32 %v767_v60, 0.0  ;;  %v750_v7 = vadd.f32 %v749_v31, %v1809_v24 }
  0xcf   : > { %v780_v36 = vpop.f32.mrf.mxu0 }
  0xd0   : > { %v731_v38 = vadd.f32 %v730_v57, %v712_v35  ;;  %v781_v41 = vadd.f32 %v780_v36, %v1789_v55 }
  0xd2   : > { %v986_v40 = vmax.f32 %v731_v38, 0.0 }
  0xd3   : > { %v768_v42 = vpop.f32.mrf.mxu3 }
  0xd4   : > { %v1005_v44 = vpack.c.bf16 %v986_v40, %v985_v39  ;;  %v769_v12 = vadd.f32 %v768_v42, %v750_v7 }
  0xd5   : > { %v818_v45 = vpop.f32.mrf.mxu1  ;;  %v799_v46 = vpop.f32.mrf.mxu2 }
  0xd6   : > { %1021 = vst [vmem:[%s1800_s20 + $0x60] sm:$0xff] %v1005_v44  ;;  %v800_v47 = vadd.f32 %v799_v46, %v781_v41  ;;  %v987_v17 = vmax.f32 %v769_v12, 0.0  ;;  %v819_v20 = vadd.f32 %v818_v45, %v1789_v55 }
  0xd7   : > { %v782_v48 = vpop.f32.mrf.mxu0 }
  0xd8   : > { %v964_v50 = vmax.f32 %v800_v47, 0.0  ;;  %v783_v56 = vadd.f32 %v782_v48, %v1793_v6 }
  0xda   : > { %v994_v52 = vpack.c.bf16 %v964_v50, %v963_v49 }
  0xdb   : > { %v804_v53 = vpop.f32.mrf.mxu3 }
  0xdc   : > { %1010 = vst [vmem:[%s1800_s20 + $0x8] sm:$0xff] %v994_v52 }
  0xdd   : > { %v820_v34 = vpop.f32.mrf.mxu1  ;;  %v801_v57 = vpop.f32.mrf.mxu2 }
  0xde   : > { %v802_v58 = vadd.f32 %v801_v57, %v783_v56  ;;  %v821_v32 = vadd.f32 %v820_v34, %v1793_v6 }
  0xdf   : > { %v785_v59 = vpop.f32.mrf.mxu0 }
  0xe0   : > { %v786_v62 = vadd.f32 %v785_v59, %v1802_v8  ;;  %v972_v63 = vmax.f32 %v802_v58, 0.0 }
  0xe2   : > { %v805_v0 = vadd.f32 %v804_v53, %v786_v62  ;;  %v998_v1 = vpack.c.bf16 %v972_v63, %v971_v61 }
  0xe3   : > { %v806_v2 = vpop.f32.mrf.mxu3 }
  0xe4   : > { %v980_v4 = vmax.f32 %v805_v0, 0.0  ;;  %1014 = vst [vmem:[%s1800_s20 + $0x28] sm:$0xff] %v998_v1 }
  0xe5   : > { %v823_v5 = vpop.f32.mrf.mxu1  ;;  %v875_v10 = vpop.f32.mrf.mxu2 }
  0xe6   : > { %v1002_v9 = vpack.c.bf16 %v980_v4, %v979_v3  ;;  %v824_v44 = vadd.f32 %v823_v5, %v1802_v8 }
  0xe7   : > { %v787_v11 = vpop.f32.mrf.mxu0 }
  0xe8   : > { %1018 = vst [vmem:[%s1800_s20 + $0x48] sm:$0xff] %v1002_v9  ;;  %v788_v13 = vadd.f32 %v787_v11, %v1809_v24 }
  0xea   : > { %v807_v14 = vadd.f32 %v806_v2, %v788_v13 }
  0xeb   : > { %v837_v16 = vpop.f32.mrf.mxu3 }
  0xec   : > { %v988_v18 = vmax.f32 %v807_v14, 0.0  ;;  %v838_v25 = vadd.f32 %v837_v16, %v819_v20 }
  0xed   : > { %v825_v19 = vpop.f32.mrf.mxu1  ;;  %v877_v22 = vpop.f32.mrf.mxu2 }
  0xee   : > { %v1006_v21 = vpack.c.bf16 %v988_v18, %v987_v17  ;;  %v965_v29 = vmax.f32 %v838_v25, 0.0  ;;  %v826_v54 = vadd.f32 %v825_v19, %v1809_v24 }
  0xef   : > { %v856_v23 = vpop.f32.mrf.mxu0 }
  0xf0   : > { %1022 = vst [vmem:[%s1800_s20 + $0x68] sm:$0xff] %v1006_v21  ;;  %v857_v26 = vadd.f32 %v856_v23, %v1789_v55 }
  0xf2   : > { %v876_v27 = vadd.f32 %v875_v10, %v857_v26 }
  0xf3   : > { %v839_v28 = vpop.f32.mrf.mxu3 }
  0xf4   : > { %v966_v30 = vmax.f32 %v876_v27, 0.0  ;;  %v840_v37 = vadd.f32 %v839_v28, %v821_v32 }
  0xf5   : > { %v894_v31 = vpop.f32.mrf.mxu1  ;;  %v880_v35 = vpop.f32.mrf.mxu2 }
  0xf6   : > { %v995_v33 = vpack.c.bf16 %v966_v30, %v965_v29  ;;  %v973_v41 = vmax.f32 %v840_v37, 0.0  ;;  %v895_v1 = vadd.f32 %v894_v31, %v1789_v55 }
  0xf7   : > { %v858_v36 = vpop.f32.mrf.mxu0 }
  0xf8   : > { %1011 = vst [vmem:[%s1800_s20 + $0x10] sm:$0xff] %v995_v33  ;;  %v859_v38 = vadd.f32 %v858_v36, %v1793_v6 }
  0xfa   : > { %v878_v39 = vadd.f32 %v877_v22, %v859_v38 }
  0xfb   : > { %v842_v40 = vpop.f32.mrf.mxu3 }
  0xfc   : > { %v974_v42 = vmax.f32 %v878_v39, 0.0  ;;  %v843_v48 = vadd.f32 %v842_v40, %v824_v44 }
  0xfd   : > { %v896_v43 = vpop.f32.mrf.mxu1  ;;  %v882_v46 = vpop.f32.mrf.mxu2 }
  0xfe   : > { %v999_v45 = vpack.c.bf16 %v974_v42, %v973_v41  ;;  %v981_v52 = vmax.f32 %v843_v48, 0.0  ;;  %v897_v14 = vadd.f32 %v896_v43, %v1793_v6 }
  0xff   : > { %v861_v47 = vpop.f32.mrf.mxu0 }
 0x100   : > { %1015 = vst [vmem:[%s1800_s20 + $0x30] sm:$0xff] %v999_v45  ;;  %v862_v49 = vadd.f32 %v861_v47, %v1802_v8 }
 0x102   : > { %v881_v50 = vadd.f32 %v880_v35, %v862_v49 }
 0x103   : > { %v844_v51 = vpop.f32.mrf.mxu3 }
 0x104   : > { %v982_v53 = vmax.f32 %v881_v50, 0.0  ;;  %v845_v58 = vadd.f32 %v844_v51, %v826_v54 }
 0x105   : > { %v899_v15 = vpop.f32.mrf.mxu1  ;;  %v951_v34 = vpop.f32.mrf.mxu2 }
 0x106   : > { %v1003_v56 = vpack.c.bf16 %v982_v53, %v981_v52  ;;  %v989_v61 = vmax.f32 %v845_v58, 0.0 }
 0x107   : > { %v863_v57 = vpop.f32.mrf.mxu0 }
 0x108   : > { %1019 = vst [vmem:[%s1800_s20 + $0x50] sm:$0xff] %v1003_v56  ;;  %v864_v59 = vadd.f32 %v863_v57, %v1809_v24 }
 0x10a   : > { %v883_v60 = vadd.f32 %v882_v46, %v864_v59 }
 0x10b   : > { %v913_v62 = vpop.f32.mrf.mxu3 }
 0x10c   : > { %v990_v63 = vmax.f32 %v883_v60, 0.0  ;;  %v914_v5 = vadd.f32 %v913_v62, %v895_v1 }
 0x10d   : > { %v901_v0 = vpop.f32.mrf.mxu1  ;;  %v953_v3 = vpop.f32.mrf.mxu2 }
 0x10e   : > { %v1007_v2 = vpack.c.bf16 %v990_v63, %v989_v61  ;;  %v967_v11 = vmax.f32 %v914_v5, 0.0 }
 0x10f   : > { %v932_v4 = vpop.f32.mrf.mxu0 }
 0x110   : > { %1023 = vst [vmem:[%s1800_s20 + $0x70] sm:$0xff] %v1007_v2  ;;  %v933_v7 = vadd.f32 %v932_v4, %v1789_v55  ;;  %v900_v55 = vadd.f32 %v899_v15, %v1802_v8 }
 0x112   : > { %v952_v9 = vadd.f32 %v951_v34, %v933_v7 }
 0x113   : > { %v915_v10 = vpop.f32.mrf.mxu3 }
 0x114   : > { %v968_v12 = vmax.f32 %v952_v9, 0.0  ;;  %v916_v20 = vadd.f32 %v915_v10, %v897_v14 }
 0x115   : > { %v937_v13 = vpop.f32.mrf.mxu1  ;;  %v956_v18 = vpop.f32.mrf.mxu2 }
 0x116   : > { %v996_v16 = vpack.c.bf16 %v968_v12, %v967_v11  ;;  %v938_v17 = vadd.f32 %v937_v13, %v1802_v8  ;;  %v975_v26 = vmax.f32 %v916_v20, 0.0 }
 0x117   : > { %v934_v19 = vpop.f32.mrf.mxu0 }
 0x118   : > { %1012 = vst [vmem:[%s1800_s20 + $0x18] sm:$0xff] %v996_v16  ;;  %v957_v21 = vadd.f32 %v956_v18, %v938_v17  ;;  %v935_v22 = vadd.f32 %v934_v19, %v1793_v6  ;;  %v902_v6 = vadd.f32 %v901_v0, %v1809_v24 }
 0x11a   : > { %v954_v23 = vadd.f32 %v953_v3, %v935_v22  ;;  %v984_v27 = vmax.f32 %v957_v21, 0.0 }
 0x11b   : > { %v918_v25 = vpop.f32.mrf.mxu3 }
 0x11c   : > { %v976_v28 = vmax.f32 %v954_v23, 0.0  ;;  %v919_v29 = vadd.f32 %v918_v25, %v900_v55 }
 0x11d   : > { %v939_v30 = vpop.f32.mrf.mxu1  ;;  %v958_v35 = vpop.f32.mrf.mxu2 }
 0x11e   : > { %v1000_v31 = vpack.c.bf16 %v976_v28, %v975_v26  ;;  %v983_v32 = vmax.f32 %v919_v29, 0.0  ;;  %v940_v33 = vadd.f32 %v939_v30, %v1809_v24 }
 0x120   : > { %1016 = vst [vmem:[%s1800_s20 + $0x38] sm:$0xff] %v1000_v31  ;;  %v1004_v36 = vpack.c.bf16 %v984_v27, %v983_v32  ;;  %v959_v37 = vadd.f32 %v958_v35, %v940_v33 }
 0x122   : > { %1020 = vst [vmem:[%s1800_s20 + $0x58] sm:$0xff] %v1004_v36  ;;  %v992_v39 = vmax.f32 %v959_v37, 0.0 }
 0x123   : > { %v920_v8 = vpop.f32.mrf.mxu3 }
 0x124   : > { %v921_v38 = vadd.f32 %v920_v8, %v902_v6 }
 0x126   : > { %v991_v40 = vmax.f32 %v921_v38, 0.0 }
 0x128   : > { %v1008_v41 = vpack.c.bf16 %v992_v39, %v991_v40 }
 0x12a   : > { %1024 = vst [vmem:[%s1800_s20 + $0x78] sm:$0xff] %v1008_v41 }
 0x12b PF: > { %s13_s12 = sadd.s32 1, %s1514_s12  }
 0x12c   : > { %p10_p4 = scmp.ge.s32.totalorder %s13_s12, 4  }
 0x12e   :  { %12 = sbr.rel (!%p10_p4) target bundleno = 1 (0x1), region = 62 }

// kernel: layers2_forward.9
= control target key start
LH: loop header
LB: loop body
LE: loop exit
PB: predicated region body
PF: predicated region fallthrough
CT: control target
= control target key end

     0   :  { %s374_s0 = inlined_call_operand.vmem [shape: bf16[64,256], index: 0, kind: input, shape index: {}]   ;;  %s375_s1 = inlined_call_operand.vmem [shape: bf16[64,256], index: 1, kind: input, shape index: {}]   ;;  %s376_s2 = inlined_call_operand.vmem [shape: bf16[64,256], index: 2, kind: input, shape index: {}]   ;;  %s377_s3 = inlined_call_operand.vmem [shape: bf16[64,256], index: 3, kind: input, shape index: {}]   ;;  %s378_s4 = inlined_call_operand.vmem [shape: bf16[64,256], index: 4, kind: output, shape index: {}]  }
   0x1   :  { %v17_v0 = vld [vmem:[%s374_s0] sm:$0xff]  ;;  %v18_v8 = vld [vmem:[%s374_s0 + $0x8] sm:$0xff]  ;;  %v19_v24 = vld [vmem:[%s374_s0 + $0x10] sm:$0xff] }
   0x2   :  { %v25_v1 = vld [vmem:[%s375_s1] sm:$0xff]  ;;  %v33_v3 = vunpack.c.l.bf16 %v17_v0  ;;  %v34_v4 = vunpack.c.h.bf16 %v17_v0  ;;  %v26_v9 = vld [vmem:[%s375_s1 + $0x8] sm:$0xff]  ;;  %v35_v18 = vunpack.c.l.bf16 %v18_v8  ;;  %v36_v19 = vunpack.c.h.bf16 %v18_v8  ;;  %v27_v29 = vld [vmem:[%s375_s1 + $0x10] sm:$0xff] }
   0x3   :  { %v89_v2 = vld [vmem:[%s376_s2] sm:$0xff]  ;;  %v49_v5 = vunpack.c.l.bf16 %v25_v1  ;;  %v50_v6 = vunpack.c.h.bf16 %v25_v1  ;;  %v90_v14 = vld [vmem:[%s376_s2 + $0x8] sm:$0xff]  ;;  %v51_v22 = vunpack.c.l.bf16 %v26_v9  ;;  %v52_v23 = vunpack.c.h.bf16 %v26_v9  ;;  %v91_v30 = vld [vmem:[%s376_s2 + $0x10] sm:$0xff] }
   0x4   :  { %v97_v7 = vld [vmem:[%s377_s3] sm:$0xff]  ;;  %v105_v10 = vunpack.c.l.bf16 %v89_v2  ;;  %v106_v11 = vunpack.c.h.bf16 %v89_v2  ;;  %v98_v15 = vld [vmem:[%s377_s3 + $0x8] sm:$0xff]  ;;  %v107_v25 = vunpack.c.l.bf16 %v90_v14  ;;  %v108_v26 = vunpack.c.h.bf16 %v90_v14  ;;  %v99_v35 = vld [vmem:[%s377_s3 + $0x10] sm:$0xff] }
   0x5   :  { %v121_v12 = vunpack.c.l.bf16 %v97_v7  ;;  %v122_v13 = vunpack.c.h.bf16 %v97_v7  ;;  %v65_v16 = vmax.f32 %v33_v3, %v49_v5  ;;  %v66_v17 = vmax.f32 %v34_v4, %v50_v6  ;;  %v20_v40 = vld [vmem:[%s374_s0 + $0x18] sm:$0xff]  ;;  %v21_v60 = vld [vmem:[%s374_s0 + $0x20] sm:$0xff] }
   0x6   :  { %v123_v27 = vunpack.c.l.bf16 %v98_v15  ;;  %v124_v28 = vunpack.c.h.bf16 %v98_v15  ;;  %v67_v33 = vmax.f32 %v35_v18, %v51_v22  ;;  %v68_v34 = vmax.f32 %v36_v19, %v52_v23  ;;  %v28_v45 = vld [vmem:[%s375_s1 + $0x18] sm:$0xff]  ;;  %v29_v1 = vld [vmem:[%s375_s1 + $0x20] sm:$0xff]  ;;  %v94_v22 = vld [vmem:[%s376_s2 + $0x28] sm:$0xff] }
   0x7   :  { %v137_v20 = vmax.f32 %v105_v10, %v121_v12  ;;  %v138_v21 = vmax.f32 %v106_v11, %v122_v13  ;;  %v37_v38 = vunpack.c.l.bf16 %v19_v24  ;;  %v38_v39 = vunpack.c.h.bf16 %v19_v24  ;;  %v92_v50 = vld [vmem:[%s376_s2 + $0x18] sm:$0xff]  ;;  %v93_v6 = vld [vmem:[%s376_s2 + $0x20] sm:$0xff] }
   0x8   :  { %v139_v36 = vmax.f32 %v107_v25, %v123_v27  ;;  %v140_v37 = vmax.f32 %v108_v26, %v124_v28  ;;  %v53_v42 = vunpack.c.l.bf16 %v27_v29  ;;  %v54_v43 = vunpack.c.h.bf16 %v27_v29  ;;  %v100_v55 = vld [vmem:[%s377_s3 + $0x18] sm:$0xff]  ;;  %v101_v7 = vld [vmem:[%s377_s3 + $0x20] sm:$0xff]  ;;  %v102_v27 = vld [vmem:[%s377_s3 + $0x28] sm:$0xff] }
   0x9   :  { %v193_v31 = vmax.f32 %v65_v16, %v137_v20  ;;  %v194_v32 = vmax.f32 %v66_v17, %v138_v21  ;;  %v109_v44 = vunpack.c.l.bf16 %v91_v30  ;;  %v110_v48 = vunpack.c.h.bf16 %v91_v30  ;;  %v22_v16 = vld [vmem:[%s374_s0 + $0x28] sm:$0xff] }
   0xa   :  { %v195_v46 = vmax.f32 %v67_v33, %v139_v36  ;;  %v196_v47 = vmax.f32 %v68_v34, %v140_v37  ;;  %v125_v49 = vunpack.c.l.bf16 %v99_v35  ;;  %v69_v51 = vmax.f32 %v37_v38, %v53_v42  ;;  %v30_v21 = vld [vmem:[%s375_s1 + $0x28] sm:$0xff]  ;;  %v31_v37 = vld [vmem:[%s375_s1 + $0x30] sm:$0xff] }
   0xb   :  { %v209_v41 = vpack.c.bf16 %v194_v32, %v193_v31  ;;  %v70_v52 = vmax.f32 %v38_v39, %v54_v43  ;;  %v126_v53 = vunpack.c.h.bf16 %v99_v35  ;;  %v39_v54 = vunpack.c.l.bf16 %v20_v40  ;;  %v23_v32 = vld [vmem:[%s374_s0 + $0x30] sm:$0xff] }
   0xc   :  { %v210_v56 = vpack.c.bf16 %v196_v47, %v195_v46  ;;  %v141_v57 = vmax.f32 %v109_v44, %v125_v49  ;;  %v40_v58 = vunpack.c.h.bf16 %v20_v40  ;;  %v55_v59 = vunpack.c.l.bf16 %v28_v45  ;;  %v95_v42 = vld [vmem:[%s376_s2 + $0x30] sm:$0xff] }
   0xd   :  { %217 = vst [vmem:[%s378_s4] sm:$0xff] %v209_v41  ;;  %v142_v61 = vmax.f32 %v110_v48, %v126_v53  ;;  %v56_v62 = vunpack.c.h.bf16 %v28_v45  ;;  %v111_v63 = vunpack.c.l.bf16 %v92_v50  ;;  %v112_v0 = vunpack.c.h.bf16 %v92_v50  ;;  %v103_v47 = vld [vmem:[%s377_s3 + $0x30] sm:$0xff] }
   0xe   :  { %218 = vst [vmem:[%s378_s4 + $0x8] sm:$0xff] %v210_v56  ;;  %v197_v2 = vmax.f32 %v69_v51, %v141_v57  ;;  %v71_v3 = vmax.f32 %v39_v54, %v55_v59  ;;  %v127_v4 = vunpack.c.l.bf16 %v100_v55  ;;  %v128_v5 = vunpack.c.h.bf16 %v100_v55  ;;  %v32_v57 = vld [vmem:[%s375_s1 + $0x38] sm:$0xff] }
   0xf   :  { %v198_v8 = vmax.f32 %v70_v52, %v142_v61  ;;  %v72_v9 = vmax.f32 %v40_v58, %v56_v62  ;;  %v41_v10 = vunpack.c.l.bf16 %v21_v60  ;;  %v42_v11 = vunpack.c.h.bf16 %v21_v60  ;;  %v24_v52 = vld [vmem:[%s374_s0 + $0x38] sm:$0xff] }
  0x10   :  { %v143_v12 = vmax.f32 %v111_v63, %v127_v4  ;;  %v144_v13 = vmax.f32 %v112_v0, %v128_v5  ;;  %v57_v14 = vunpack.c.l.bf16 %v29_v1  ;;  %v58_v15 = vunpack.c.h.bf16 %v29_v1  ;;  %v96_v62 = vld [vmem:[%s376_s2 + $0x38] sm:$0xff] }
  0x11   :  { %v211_v17 = vpack.c.bf16 %v198_v8, %v197_v2  ;;  %v113_v18 = vunpack.c.l.bf16 %v93_v6  ;;  %v114_v19 = vunpack.c.h.bf16 %v93_v6  ;;  %v129_v20 = vunpack.c.l.bf16 %v101_v7 }
  0x12   :  { %v199_v23 = vmax.f32 %v71_v3, %v143_v12  ;;  %v200_v24 = vmax.f32 %v72_v9, %v144_v13  ;;  %v73_v25 = vmax.f32 %v41_v10, %v57_v14  ;;  %v74_v26 = vmax.f32 %v42_v11, %v58_v15  ;;  %v104_v3 = vld [vmem:[%s377_s3 + $0x38] sm:$0xff] }
  0x13   :  { %219 = vst [vmem:[%s378_s4 + $0x10] sm:$0xff] %v211_v17  ;;  %v130_v28 = vunpack.c.h.bf16 %v101_v7  ;;  %v145_v29 = vmax.f32 %v113_v18, %v129_v20  ;;  %v43_v30 = vunpack.c.l.bf16 %v22_v16  ;;  %v44_v31 = vunpack.c.h.bf16 %v22_v16 }
  0x14   :  { %v212_v33 = vpack.c.bf16 %v200_v24, %v199_v23  ;;  %v59_v34 = vunpack.c.l.bf16 %v30_v21  ;;  %v60_v35 = vunpack.c.h.bf16 %v30_v21  ;;  %v115_v36 = vunpack.c.l.bf16 %v94_v22 }
  0x15   :  { %v146_v38 = vmax.f32 %v114_v19, %v130_v28  ;;  %v201_v39 = vmax.f32 %v73_v25, %v145_v29  ;;  %v116_v40 = vunpack.c.h.bf16 %v94_v22  ;;  %v131_v41 = vunpack.c.l.bf16 %v102_v27 }
  0x16   :  { %220 = vst [vmem:[%s378_s4 + $0x18] sm:$0xff] %v212_v33  ;;  %v75_v43 = vmax.f32 %v43_v30, %v59_v34  ;;  %v76_v44 = vmax.f32 %v44_v31, %v60_v35  ;;  %v132_v45 = vunpack.c.h.bf16 %v102_v27  ;;  %v45_v46 = vunpack.c.l.bf16 %v23_v32 }
  0x17   :  { %v202_v48 = vmax.f32 %v74_v26, %v146_v38  ;;  %v147_v49 = vmax.f32 %v115_v36, %v131_v41  ;;  %v46_v50 = vunpack.c.h.bf16 %v23_v32  ;;  %v61_v51 = vunpack.c.l.bf16 %v31_v37 }
  0x18   :  { %v148_v53 = vmax.f32 %v116_v40, %v132_v45  ;;  %v62_v54 = vunpack.c.h.bf16 %v31_v37  ;;  %v117_v55 = vunpack.c.l.bf16 %v95_v42  ;;  %v118_v56 = vunpack.c.h.bf16 %v95_v42 }
  0x19   :  { %v213_v58 = vpack.c.bf16 %v202_v48, %v201_v39  ;;  %v203_v59 = vmax.f32 %v75_v43, %v147_v49  ;;  %v77_v60 = vmax.f32 %v45_v46, %v61_v51  ;;  %v133_v61 = vunpack.c.l.bf16 %v103_v47 }
  0x1a   :  { %v204_v63 = vmax.f32 %v76_v44, %v148_v53  ;;  %v78_v0 = vmax.f32 %v46_v50, %v62_v54  ;;  %v134_v1 = vunpack.c.h.bf16 %v103_v47  ;;  %v47_v2 = vunpack.c.l.bf16 %v24_v52 }
  0x1b   :  { %221 = vst [vmem:[%s378_s4 + $0x20] sm:$0xff] %v213_v58  ;;  %v149_v4 = vmax.f32 %v117_v55, %v133_v61  ;;  %v48_v5 = vunpack.c.h.bf16 %v24_v52  ;;  %v63_v6 = vunpack.c.l.bf16 %v32_v57  ;;  %v64_v7 = vunpack.c.h.bf16 %v32_v57 }
  0x1c   :  { %v214_v8 = vpack.c.bf16 %v204_v63, %v203_v59  ;;  %v150_v9 = vmax.f32 %v118_v56, %v134_v1  ;;  %v119_v10 = vunpack.c.l.bf16 %v96_v62  ;;  %v120_v11 = vunpack.c.h.bf16 %v96_v62 }
  0x1d   :  { %v205_v12 = vmax.f32 %v77_v60, %v149_v4  ;;  %v79_v13 = vmax.f32 %v47_v2, %v63_v6  ;;  %v135_v14 = vunpack.c.l.bf16 %v104_v3  ;;  %v80_v16 = vmax.f32 %v48_v5, %v64_v7 }
  0x1e   :  { %222 = vst [vmem:[%s378_s4 + $0x28] sm:$0xff] %v214_v8  ;;  %v206_v15 = vmax.f32 %v78_v0, %v150_v9  ;;  %v136_v17 = vunpack.c.h.bf16 %v104_v3 }
  0x1f   :  { %v151_v18 = vmax.f32 %v119_v10, %v135_v14 }
  0x20   :  { %v215_v19 = vpack.c.bf16 %v206_v15, %v205_v12  ;;  %v152_v20 = vmax.f32 %v120_v11, %v136_v17 }
  0x21   :  { %v207_v21 = vmax.f32 %v79_v13, %v151_v18 }
  0x22   :  { %223 = vst [vmem:[%s378_s4 + $0x30] sm:$0xff] %v215_v19  ;;  %v208_v22 = vmax.f32 %v80_v16, %v152_v20 }
  0x24   :  { %v216_v23 = vpack.c.bf16 %v208_v22, %v207_v21 }
  0x26   :  { %224 = vst [vmem:[%s378_s4 + $0x38] sm:$0xff] %v216_v23 }

// kernel: layers2_forward.11
= control target key start
LH: loop header
LB: loop body
LE: loop exit
PB: predicated region body
PF: predicated region fallthrough
CT: control target
= control target key end

     0   :  { %s832_s0 = inlined_call_operand.vmem [shape: bf16[2,640], index: 0, kind: input, shape index: {}]   ;;  %s833_s1 = inlined_call_operand.vmem [shape: bf16[640,9], index: 1, kind: input, shape index: {}]   ;;  %s834_s2 = inlined_call_operand.vmem [shape: f32[1,9], index: 2, kind: input, shape index: {}]   ;;  %s835_s3 = inlined_call_operand.hbm [shape: f32[2,9], index: 3, kind: output, shape index: {}]  }
   0x1   :  { %v616_v0 = vld [vmem:[%s833_s1 + $0x38] sm:$0xff]  ;;  %v615_v3 = vld [vmem:[%s833_s1 + $0x30] sm:$0xff]  ;;  %v614_v8 = vld [vmem:[%s833_s1 + $0x28] sm:$0xff] }
   0x2   :  { %v632_v1 = vld [vmem:[%s833_s1 + $0xb8] sm:$0xff]  ;;  %355 = vmatpush.bf16.msra.mxu0 %v616_v0  ;;  %v631_v5 = vld [vmem:[%s833_s1 + $0xb0] sm:$0xff]  ;;  %v630_v9 = vld [vmem:[%s833_s1 + $0xa8] sm:$0xff] }
   0x3   :  { %v640_v2 = vld [vmem:[%s833_s1 + $0xf8] sm:$0xff]  ;;  %381 = vmatpush.bf16.msra.mxu2 %v632_v1  ;;  %v639_v6 = vld [vmem:[%s833_s1 + $0xf0] sm:$0xff]  ;;  %v638_v10 = vld [vmem:[%s833_s1 + $0xe8] sm:$0xff] }
   0x4   :  { %v624_v4 = vld [vmem:[%s833_s1 + $0x78] sm:$0xff]  ;;  %394 = vmatpush.bf16.msra.mxu3 %v640_v2  ;;  %v623_v7 = vld [vmem:[%s833_s1 + $0x70] sm:$0xff]  ;;  %v622_v11 = vld [vmem:[%s833_s1 + $0x68] sm:$0xff] }
   0x5   :  { %368 = vmatpush.bf16.msra.mxu1 %v624_v4  ;;  %v613_v12 = vld [vmem:[%s833_s1 + $0x20] sm:$0xff] }
   0x6   :  { %356 = vmatpush.bf16.msra.mxu0 %v615_v3  ;;  %v22_v13 = vld [vmem:[%s832_s0] sm:$0x1f] }
   0x7   :  { %382 = vmatpush.bf16.msra.mxu2 %v631_v5  ;;  %v629_v14 = vld [vmem:[%s833_s1 + $0xa0] sm:$0xff]  ;;  %104 = vst [vmem:[#allocation1] ss:$9 sm:$0xff] %v22_v13 }
   0x8   :  { %395 = vmatpush.bf16.msra.mxu3 %v639_v6  ;;  %v637_v15 = vld [vmem:[%s833_s1 + $0xe0] sm:$0xff] }
   0x9   :  { %369 = vmatpush.bf16.msra.mxu1 %v623_v7  ;;  %v621_v16 = vld [vmem:[%s833_s1 + $0x60] sm:$0xff] }
   0xa   :  { %357 = vmatpush.bf16.msra.mxu0 %v614_v8 }
   0xb   :  { %383 = vmatpush.bf16.msra.mxu2 %v630_v9 }
   0xc   :  { %396 = vmatpush.bf16.msra.mxu3 %v638_v10 }
   0xd   :  { %370 = vmatpush.bf16.msra.mxu1 %v622_v11 }
   0xe   :  { %8 = vsyncpa [#allocation3], 0  ;;  %358 = vmatpush.bf16.msra.mxu0 %v613_v12  ;;  %v612_v17 = vld [vmem:[%s833_s1 + $0x18] sm:$0xff]  ;;  %v611_v21 = vld [vmem:[%s833_s1 + $0x10] sm:$0xff]  ;;  %vm19_vm0 = vcmask 66560   ;;  %v678_v46 = vmov 0.0  }
   0xf   :  { %384 = vmatpush.bf16.msra.mxu2 %v629_v14  ;;  %v628_v18 = vld [vmem:[%s833_s1 + $0x98] sm:$0xff]  ;;  %v627_v22 = vld [vmem:[%s833_s1 + $0x90] sm:$0xff]  ;;  %v610_v25 = vld [vmem:[%s833_s1 + $0x8] sm:$0xff]  ;;  %20 = vst.msk [vmem:[#allocation2] sm:$0x3] %vm19_vm0, %v678_v46  ;;  %s679_s12 = smov [#allocation2]  }
  0x10   :  { %397 = vmatpush.bf16.msra.mxu3 %v637_v15  ;;  %v636_v19 = vld [vmem:[%s833_s1 + $0xd8] sm:$0xff]  ;;  %v635_v23 = vld [vmem:[%s833_s1 + $0xd0] sm:$0xff]  ;;  %v626_v26 = vld [vmem:[%s833_s1 + $0x88] sm:$0xff]  ;;  %s438_s13 = sshll.u32 %s679_s12, 4  ;;  %s440_s16 = sshll.u32 %s835_s3, 4  ;;  %s439_s13 = int_to_ptr.vmem [resolvable:$true] %s438_s13  ;;  %s441_s16 = int_to_ptr.hbm [resolvable:$true] %s440_s16 }
  0x11   :  { %371 = vmatpush.bf16.msra.mxu1 %v621_v16  ;;  %v620_v20 = vld [vmem:[%s833_s1 + $0x58] sm:$0xff]  ;;  %v619_v24 = vld [vmem:[%s833_s1 + $0x50] sm:$0xff]  ;;  %v634_v27 = vld [vmem:[%s833_s1 + $0xc8] sm:$0xff] }
  0x12   :  { %359 = vmatpush.bf16.msra.mxu0 %v612_v17  ;;  %v618_v28 = vld [vmem:[%s833_s1 + $0x48] sm:$0xff]  ;;  %v609_v29 = vld [vmem:[%s833_s1] sm:$0xff]  ;;  %v648_v30 = vld [vmem:[%s833_s1 + $0x138] sm:$0xff] }
  0x13   :  { %385 = vmatpush.bf16.msra.mxu2 %v628_v18  ;;  %v625_v31 = vld [vmem:[%s833_s1 + $0x80] sm:$0xff]  ;;  %v647_v35 = vld [vmem:[%s833_s1 + $0x130] sm:$0xff]  ;;  %v646_v39 = vld [vmem:[%s833_s1 + $0x128] sm:$0xff] }
  0x14   :  { %398 = vmatpush.bf16.msra.mxu3 %v636_v19  ;;  %v633_v32 = vld [vmem:[%s833_s1 + $0xc0] sm:$0xff]  ;;  %v107_v36 = vld [vmem:[#allocation1 + $0x12] sm:$0xff]  ;;  %v106_v38 = vld [vmem:[#allocation1 + $0x9] sm:$0xff] }
  0x15   :  { %372 = vmatpush.bf16.msra.mxu1 %v620_v20  ;;  %v617_v33 = vld [vmem:[%s833_s1 + $0x40] sm:$0xff]  ;;  %v644_v41 = vld [vmem:[%s833_s1 + $0x118] sm:$0xff]  ;;  %v643_v42 = vld [vmem:[%s833_s1 + $0x110] sm:$0xff] }
  0x16   :  { %360 = vmatpush.bf16.msra.mxu0 %v611_v21  ;;  %v105_v34 = vld [vmem:[#allocation1] sm:$0xff]  ;;  %v642_v43 = vld [vmem:[%s833_s1 + $0x108] sm:$0xff] }
  0x17   :  { %386 = vmatpush.bf16.msra.mxu2 %v627_v22  ;;  %v108_v37 = vld [vmem:[#allocation1 + $0x1b] sm:$0xff]  ;;  %v109_v45 = vld [vmem:[#allocation1 + $0x24] sm:$0xff] }
  0x18   :  { %399 = vmatpush.bf16.msra.mxu3 %v635_v23  ;;  %v645_v40 = vld [vmem:[%s833_s1 + $0x120] sm:$0xff]  ;;  %v21_v58 = vld [vmem:[#allocation2] sm:$0x3] }
  0x19   :  { %373 = vmatpush.bf16.msra.mxu1 %v619_v24  ;;  %v641_v44 = vld [vmem:[%s833_s1 + $0x100] sm:$0xff] }
  0x1a   :  { %361 = vmatpush.bf16.msra.mxu0 %v610_v25  ;;  %v651_v63 = vld [vmem:[%s834_s2] ss:$0 sm:$0xff] }
  0x1b   :  { %387 = vmatpush.bf16.msra.mxu2 %v626_v26 }
  0x1c   :  { %400 = vmatpush.bf16.msra.mxu3 %v634_v27 }
  0x1d   :  { %374 = vmatpush.bf16.msra.mxu1 %v618_v28 }
  0x1e   :  { %362 = vmatpush.bf16.msra.mxu0 %v609_v29 }
  0x1f   :  { %388 = vmatpush.bf16.msra.mxu2 %v625_v31 }
  0x20   :  { %401 = vmatpush.bf16.msra.mxu3 %v633_v32 }
  0x21   :  { %375 = vmatpush.bf16.msra.mxu1 %v617_v33  ;;  %363 = vmatmul.bf16.vlgmr.msra.gmra.mxu0 %v105_v34 }
  0x22   :  { %407 = vmatpush.bf16.msrb.mxu0 %v648_v30  ;;  %389 = vmatmul.bf16.vlgmr.msra.gmra.mxu2 %v107_v36 }
  0x23   :  { %402 = vmatmul.bf16.vlgmr.msra.gmra.mxu3 %v108_v37 }
  0x24   :  { %376 = vmatmul.bf16.vlgmr.msra.gmra.mxu1 %v106_v38 }
  0x26   :  { %408 = vmatpush.bf16.msrb.mxu0 %v647_v35 }
  0x2a   :  { %409 = vmatpush.bf16.msrb.mxu0 %v646_v39 }
  0x2e   :  { %410 = vmatpush.bf16.msrb.mxu0 %v645_v40 }
  0x32   :  { %411 = vmatpush.bf16.msrb.mxu0 %v644_v41 }
  0x36   :  { %412 = vmatpush.bf16.msrb.mxu0 %v643_v42 }
  0x3a   :  { %413 = vmatpush.bf16.msrb.mxu0 %v642_v43 }
  0x3e   :  { %414 = vmatpush.bf16.msrb.mxu0 %v641_v44 }
  0x41   :  { %415 = vmatmul.bf16.vlgmr.msrb.gmra.mxu0 %v109_v45 }
  0x9e   :  { %v364_v47 = vpop.f32.mrf.mxu0 }
  0xa1   :  { %v377_v48 = vpop.f32.mrf.mxu1 }
  0xa2   :  { %v378_v55 = vadd.f32 %v377_v48, %v364_v47 }
  0xa5   :  { %v390_v49 = vpop.f32.mrf.mxu2 }
  0xa6   :  { %v366_v50 = vpop.f32.mrf.mxu0  ;;  %v403_v51 = vpop.f32.mrf.mxu3  ;;  %v391_v56 = vadd.f32 %v390_v49, %v378_v55 }
  0xa8   :  { %v404_v57 = vadd.f32 %v403_v51, %v391_v56 }
  0xa9   :  { %v379_v52 = vpop.f32.mrf.mxu1 }
  0xad   :  { %v392_v53 = vpop.f32.mrf.mxu2 }
  0xae   :  { %v405_v54 = vpop.f32.mrf.mxu3 }
  0xbe   :  { %v416_v59 = vpop.f32.mrf.mxu0 }
  0xbf   :  { %v417_v60 = vadd.f32 %v416_v59, %v404_v57 }
  0xc1   :  { %v420_v61 = vadd.f32 %v417_v60, %v21_v58 }
  0xc3   :  { %422 = vst.msk [vmem:[#allocation2] sm:$0x3] %vm19_vm0, %v420_v61 }
  0xc6   :  { %v418_v62 = vpop.f32.mrf.mxu0 }
  0xca   :  { %v426_v0 = vld [vmem:[#allocation2] sm:$0x3] }
  0xcb   :  { %v431_v1 = vadd.f32 %v651_v63, %v426_v0 }
  0xcd   :  { %432 = vst.msk [vmem:[#allocation2] sm:$0x3] %vm19_vm0, %v431_v1 }
  0xce   :  { %443 = dma.vmem_to_hbm [thread:$0]  %s439_s13, 32, %s441_s16, [#allocation3]  }
  0xcf   :  { %676 = dma.done.wait [#allocation3], 32  }
  0xd0   :  { %677 = vsyncadd [#allocation3], 4294967264 }
  0xd1   :  { %448 = vsyncpa [#allocation3], 1 }

// kernel: layers2_forward.10
= control target key start
LH: loop header
LB: loop body
LE: loop exit
PB: predicated region body
PF: predicated region fallthrough
CT: control target
= control target key end

     0   :  { %s8876_s12 = smov 0   ;;  %s8878_s13 = smov 0   ;;  %s10359_s0 = inlined_call_operand.vmem [shape: bf16[2,8192], index: 0, kind: input, shape index: {}]   ;;  %s10360_s1 = inlined_call_operand.vmem [shape: bf16[8192,640], index: 1, kind: input, shape index: {}]   ;;  %s10361_s2 = inlined_call_operand.vmem [shape: f32[1,640], index: 2, kind: input, shape index: {}]   ;;  %s10362_s3 = inlined_call_operand.vmem [shape: f32[2,640], index: 3, kind: output, shape index: {}]  }
   0x1   :  { %s8880_s14 = smov 0  }
   0x2 LB: > { %s22_s15 = sadd.s32 1, %s8849_s13  ;;  %p5563_p0 = scmp.ge.s32.totalorder %s8853_s14, 1  ;;  %s8853_s14 = sphi %s8880_s14, %s13_s14   ;;  %s8849_s13 = sphi %s8878_s13, %s10364_s13   ;;  %s8845_s12 = sphi %s8876_s12, %s10363_s12  }
   0x3   : > { %p23_p1 = scmp.ge.s32.totalorder %s22_s15, 4  ;;  %p178_p2 = scmp.lt.s32.totalorder %s8853_s14, 5 }
   0x5   : > { %s10366_s15 = smov (%p23_p1, %s22_s15), 0  ;;  %p179_p3 = pnand %p5563_p0, %p178_p2 }
   0x6   : > { %s5564_s16 = sshll.u32 (!%p179_p3), %s8845_s12, 4  ;;  %s5565_s17 = sshll.u32 (!%p179_p3), %s8845_s12, 8 }
   0x7   : > { %182 = sbr.rel (%p179_p3) target bundleno = 819 (0x333), region = 32  ;;  %p216_p4 = scmp.lt.s32.totalorder (!%p179_p3), %s5564_s16, 63 }
   0x8   : > { %p222_p5 = scmp.lt.s32.totalorder (!%p179_p3), %s5565_s17, 1023  ;;  %p5567_p6 = scmp.ne.s32.totalorder (!%p179_p3), %s8845_s12, 0 }
   0xc   : > { %s10368_s16 = smov (!%p216_p4, %s5564_s16), 63  ;;  %s10370_s17 = smov (!%p222_p5, %s5565_s17), 1023 }
   0xd   : > { %s8901_s20 = scalar_lea.vmem %s10359_s0, %s10368_s16  ;;  %s8773_s21 = smul.u32 20, %s10370_s17 }
   0xe   : > { %246 = sbr.rel (%p5567_p6) target bundleno = 22 (0x16), region = 36 }
   0xf   : > { %s8906_s24 = scalar_lea.vmem %s10360_s1, %s8773_s21 }
  0x13   : > { %v8855_v0 = vmov 0.0  }
  0x14   : > { %247 = vst [vmem:[%s10362_s3] sm:$0xff] %v8855_v0 }
  0x15   : > { %248 = vst [vmem:[%s10362_s3 + $0x8] sm:$0x3] %v8855_v0 }
  0x16 PF: > { %v5710_v1 = vld [vmem:[%s8906_s24 + $0x118] sm:$0xf]  ;;  %v8170_v2 = vld [vmem:[%s8906_s24 + $0x128] sm:$0xf0]  ;;  %v5690_v12 = vld [vmem:[%s8906_s24 + $0xf0] sm:$0xf] }
  0x17   : > { %v5870_v3 = vld [vmem:[%s8906_s24 + $0x258] sm:$0xf]  ;;  %v5711_v4 = vor.u32 %v8170_v2, %v5710_v1  ;;  %v8210_v5 = vld [vmem:[%s8906_s24 + $0x268] sm:$0xf0]  ;;  %v8165_v14 = vld [vmem:[%s8906_s24 + $0x100] sm:$0xf0] }
  0x18   : > { %v6030_v6 = vld [vmem:[%s8906_s24 + $0x398] sm:$0xf]  ;;  %v8250_v7 = vld [vmem:[%s8906_s24 + $0x3a8] sm:$0xf0]  ;;  %v5871_v8 = vor.u32 %v8210_v5, %v5870_v3  ;;  %v5850_v15 = vld [vmem:[%s8906_s24 + $0x230] sm:$0xf]  ;;  %v5691_v17 = vor.u32 %v8165_v14, %v5690_v12 }
  0x19   : > { %v6031_v9 = vor.u32 %v8250_v7, %v6030_v6  ;;  %v6190_v10 = vld [vmem:[%s8906_s24 + $0x4d8] sm:$0xf]  ;;  %v8290_v11 = vld [vmem:[%s8906_s24 + $0x4e8] sm:$0xf0]  ;;  %4385 = vmatpush.bf16.msra.mxu0 %v5711_v4  ;;  %v8205_v16 = vld [vmem:[%s8906_s24 + $0x240] sm:$0xf0] }
  0x1a   : > { %v6191_v13 = vor.u32 %v8290_v11, %v6190_v10  ;;  %4398 = vmatpush.bf16.msra.mxu1 %v5871_v8  ;;  %v5851_v18 = vor.u32 %v8205_v16, %v5850_v15  ;;  %v6010_v19 = vld [vmem:[%s8906_s24 + $0x370] sm:$0xf]  ;;  %v8245_v20 = vld [vmem:[%s8906_s24 + $0x380] sm:$0xf0]  ;;  %v5670_v24 = vld [vmem:[%s8906_s24 + $0xc8] sm:$0xf] }
  0x1b   : > { %4411 = vmatpush.bf16.msra.mxu2 %v6031_v9  ;;  %v6170_v21 = vld [vmem:[%s8906_s24 + $0x4b0] sm:$0xf]  ;;  %v6011_v22 = vor.u32 %v8245_v20, %v6010_v19  ;;  %v8285_v23 = vld [vmem:[%s8906_s24 + $0x4c0] sm:$0xf0]  ;;  %v8160_v25 = vld [vmem:[%s8906_s24 + $0xd8] sm:$0xf0] }
  0x1c   : > { %4424 = vmatpush.bf16.msra.mxu3 %v6191_v13  ;;  %v6171_v26 = vor.u32 %v8285_v23, %v6170_v21  ;;  %v5830_v27 = vld [vmem:[%s8906_s24 + $0x208] sm:$0xf]  ;;  %v8200_v28 = vld [vmem:[%s8906_s24 + $0x218] sm:$0xf0]  ;;  %v5671_v30 = vor.u32 %v8160_v25, %v5670_v24  ;;  %v5650_v36 = vld [vmem:[%s8906_s24 + $0xa0] sm:$0xf] }
  0x1d   : > { %v5990_v29 = vld [vmem:[%s8906_s24 + $0x348] sm:$0xf]  ;;  %4386 = vmatpush.bf16.msra.mxu0 %v5691_v17  ;;  %v8240_v31 = vld [vmem:[%s8906_s24 + $0x358] sm:$0xf0]  ;;  %v5831_v34 = vor.u32 %v8200_v28, %v5830_v27  ;;  %v8155_v37 = vld [vmem:[%s8906_s24 + $0xb0] sm:$0xf0] }
  0x1e   : > { %v6150_v32 = vld [vmem:[%s8906_s24 + $0x488] sm:$0xf]  ;;  %v8280_v33 = vld [vmem:[%s8906_s24 + $0x498] sm:$0xf0]  ;;  %4399 = vmatpush.bf16.msra.mxu1 %v5851_v18  ;;  %v5991_v35 = vor.u32 %v8240_v31, %v5990_v29  ;;  %v5810_v38 = vld [vmem:[%s8906_s24 + $0x1e0] sm:$0xf]  ;;  %v5651_v45 = vor.u32 %v8155_v37, %v5650_v36 }
  0x1f   : > { %4412 = vmatpush.bf16.msra.mxu2 %v6011_v22  ;;  %v6151_v39 = vor.u32 %v8280_v33, %v6150_v32  ;;  %v8195_v40 = vld [vmem:[%s8906_s24 + $0x1f0] sm:$0xf0]  ;;  %v5970_v41 = vld [vmem:[%s8906_s24 + $0x320] sm:$0xf]  ;;  %v5630_v48 = vld [vmem:[%s8906_s24 + $0x78] sm:$0xf] }
  0x20   : > { %4425 = vmatpush.bf16.msra.mxu3 %v6171_v26  ;;  %v8235_v42 = vld [vmem:[%s8906_s24 + $0x330] sm:$0xf0]  ;;  %v6130_v43 = vld [vmem:[%s8906_s24 + $0x460] sm:$0xf]  ;;  %v5811_v46 = vor.u32 %v8195_v40, %v5810_v38  ;;  %v8150_v49 = vld [vmem:[%s8906_s24 + $0x88] sm:$0xf0] }
  0x21   : > { %v8275_v44 = vld [vmem:[%s8906_s24 + $0x470] sm:$0xf0]  ;;  %4387 = vmatpush.bf16.msra.mxu0 %v5671_v30  ;;  %v5971_v47 = vor.u32 %v8235_v42, %v5970_v41  ;;  %v5790_v50 = vld [vmem:[%s8906_s24 + $0x1b8] sm:$0xf]  ;;  %v8190_v52 = vld [vmem:[%s8906_s24 + $0x1c8] sm:$0xf0]  ;;  %v5631_v57 = vor.u32 %v8150_v49, %v5630_v48 }
  0x22   : > { %4400 = vmatpush.bf16.msra.mxu1 %v5831_v34  ;;  %v6131_v51 = vor.u32 %v8275_v44, %v6130_v43  ;;  %v5950_v53 = vld [vmem:[%s8906_s24 + $0x2f8] sm:$0xf]  ;;  %v8230_v54 = vld [vmem:[%s8906_s24 + $0x308] sm:$0xf0]  ;;  %v5791_v58 = vor.u32 %v8190_v52, %v5790_v50  ;;  %v5610_v60 = vld [vmem:[%s8906_s24 + $0x50] sm:$0xf] }
  0x23   : > { %4413 = vmatpush.bf16.msra.mxu2 %v5991_v35  ;;  %v6110_v55 = vld [vmem:[%s8906_s24 + $0x438] sm:$0xf]  ;;  %v8270_v56 = vld [vmem:[%s8906_s24 + $0x448] sm:$0xf0]  ;;  %v5951_v59 = vor.u32 %v8230_v54, %v5950_v53  ;;  %v8145_v61 = vld [vmem:[%s8906_s24 + $0x60] sm:$0xf0] }
  0x24   : > { %4426 = vmatpush.bf16.msra.mxu3 %v6151_v39  ;;  %v5770_v62 = vld [vmem:[%s8906_s24 + $0x190] sm:$0xf]  ;;  %v6111_v63 = vor.u32 %v8270_v56, %v6110_v55  ;;  %v8185_v0 = vld [vmem:[%s8906_s24 + $0x1a0] sm:$0xf0]  ;;  %v5611_v5 = vor.u32 %v8145_v61, %v5610_v60  ;;  %v5590_v8 = vld [vmem:[%s8906_s24 + $0x28] sm:$0xf] }
  0x25   : > { %4388 = vmatpush.bf16.msra.mxu0 %v5651_v45  ;;  %v5930_v1 = vld [vmem:[%s8906_s24 + $0x2d0] sm:$0xf]  ;;  %v8225_v2 = vld [vmem:[%s8906_s24 + $0x2e0] sm:$0xf0]  ;;  %v5771_v6 = vor.u32 %v8185_v0, %v5770_v62  ;;  %v8140_v9 = vld [vmem:[%s8906_s24 + $0x38] sm:$0xf0] }
  0x26   : > { %4401 = vmatpush.bf16.msra.mxu1 %v5811_v46  ;;  %v6090_v3 = vld [vmem:[%s8906_s24 + $0x410] sm:$0xf]  ;;  %v8265_v4 = vld [vmem:[%s8906_s24 + $0x420] sm:$0xf0]  ;;  %v5931_v7 = vor.u32 %v8225_v2, %v5930_v1  ;;  %v5750_v10 = vld [vmem:[%s8906_s24 + $0x168] sm:$0xf]  ;;  %v5591_v17 = vor.u32 %v8140_v9, %v5590_v8 }
  0x27   : > { %4414 = vmatpush.bf16.msra.mxu2 %v5971_v47  ;;  %v6091_v11 = vor.u32 %v8265_v4, %v6090_v3  ;;  %v8180_v12 = vld [vmem:[%s8906_s24 + $0x178] sm:$0xf0]  ;;  %v5910_v13 = vld [vmem:[%s8906_s24 + $0x2a8] sm:$0xf]  ;;  %v5570_v18 = vld [vmem:[%s8906_s24] sm:$0xf] }
  0x28   : > { %4427 = vmatpush.bf16.msra.mxu3 %v6131_v51  ;;  %v8220_v14 = vld [vmem:[%s8906_s24 + $0x2b8] sm:$0xf0]  ;;  %v6070_v15 = vld [vmem:[%s8906_s24 + $0x3e8] sm:$0xf]  ;;  %v8135_v19 = vld [vmem:[%s8906_s24 + $0x10] sm:$0xf0]  ;;  %v5751_v20 = vor.u32 %v8180_v12, %v5750_v10 }
  0x29   : > { %4389 = vmatpush.bf16.msra.mxu0 %v5631_v57  ;;  %v8260_v16 = vld [vmem:[%s8906_s24 + $0x3f8] sm:$0xf0]  ;;  %v5911_v21 = vor.u32 %v8220_v14, %v5910_v13  ;;  %v5730_v22 = vld [vmem:[%s8906_s24 + $0x140] sm:$0xf]  ;;  %v8175_v23 = vld [vmem:[%s8906_s24 + $0x150] sm:$0xf0]  ;;  %v5571_v32 = vor.u32 %v8135_v19, %v5570_v18 }
  0x2a   : > { %4402 = vmatpush.bf16.msra.mxu1 %v5791_v58  ;;  %v5890_v24 = vld [vmem:[%s8906_s24 + $0x280] sm:$0xf]  ;;  %v6071_v25 = vor.u32 %v8260_v16, %v6070_v15  ;;  %v8215_v26 = vld [vmem:[%s8906_s24 + $0x290] sm:$0xf0]  ;;  %v6350_v29 = vld [vmem:[%s8906_s24 + $0x618] sm:$0xf]  ;;  %v5731_v36 = vor.u32 %v8175_v23, %v5730_v22 }
  0x2b   : > { %4415 = vmatpush.bf16.msra.mxu2 %v5951_v59  ;;  %v6050_v27 = vld [vmem:[%s8906_s24 + $0x3c0] sm:$0xf]  ;;  %v8255_v28 = vld [vmem:[%s8906_s24 + $0x3d0] sm:$0xf0]  ;;  %v8330_v30 = vld [vmem:[%s8906_s24 + $0x628] sm:$0xf0]  ;;  %v5891_v37 = vor.u32 %v8215_v26, %v5890_v24 }
  0x2c   : > { %4428 = vmatpush.bf16.msra.mxu3 %v6111_v63  ;;  %v6510_v31 = vld [vmem:[%s8906_s24 + $0x758] sm:$0xf]  ;;  %v8370_v33 = vld [vmem:[%s8906_s24 + $0x768] sm:$0xf0]  ;;  %v6051_v40 = vor.u32 %v8255_v28, %v6050_v27  ;;  %v6351_v41 = vor.u32 %v8330_v30, %v6350_v29  ;;  %v6330_v44 = vld [vmem:[%s8906_s24 + $0x5f0] sm:$0xf] }
  0x2d   : > { %4390 = vmatpush.bf16.msra.mxu0 %v5611_v5  ;;  %v6670_v34 = vld [vmem:[%s8906_s24 + $0x898] sm:$0xf]  ;;  %v8410_v35 = vld [vmem:[%s8906_s24 + $0x8a8] sm:$0xf0]  ;;  %v6511_v42 = vor.u32 %v8370_v33, %v6510_v31  ;;  %v8325_v45 = vld [vmem:[%s8906_s24 + $0x600] sm:$0xf0] }
  0x2e   : > { %4403 = vmatpush.bf16.msra.mxu1 %v5771_v6  ;;  %v6830_v38 = vld [vmem:[%s8906_s24 + $0x9d8] sm:$0xf]  ;;  %v8450_v39 = vld [vmem:[%s8906_s24 + $0x9e8] sm:$0xf0]  ;;  %v6671_v43 = vor.u32 %v8410_v35, %v6670_v34  ;;  %v6490_v46 = vld [vmem:[%s8906_s24 + $0x730] sm:$0xf]  ;;  %v6331_v53 = vor.u32 %v8325_v45, %v6330_v44 }
  0x2f   : > { %4416 = vmatpush.bf16.msra.mxu2 %v5931_v7  ;;  %v6831_v47 = vor.u32 %v8450_v39, %v6830_v38  ;;  %v8365_v48 = vld [vmem:[%s8906_s24 + $0x740] sm:$0xf0]  ;;  %v6650_v49 = vld [vmem:[%s8906_s24 + $0x870] sm:$0xf]  ;;  %v6310_v54 = vld [vmem:[%s8906_s24 + $0x5c8] sm:$0xf] }
  0x30   : > { %4429 = vmatpush.bf16.msra.mxu3 %v6091_v11  ;;  %v8405_v50 = vld [vmem:[%s8906_s24 + $0x880] sm:$0xf0]  ;;  %v6810_v51 = vld [vmem:[%s8906_s24 + $0x9b0] sm:$0xf]  ;;  %v8320_v55 = vld [vmem:[%s8906_s24 + $0x5d8] sm:$0xf0]  ;;  %v6491_v56 = vor.u32 %v8365_v48, %v6490_v46 }
  0x31   : > { %4391 = vmatpush.bf16.msra.mxu0 %v5591_v17  ;;  %v8445_v52 = vld [vmem:[%s8906_s24 + $0x9c0] sm:$0xf0]  ;;  %v6651_v57 = vor.u32 %v8405_v50, %v6650_v49  ;;  %v6470_v58 = vld [vmem:[%s8906_s24 + $0x708] sm:$0xf]  ;;  %v8360_v59 = vld [vmem:[%s8906_s24 + $0x718] sm:$0xf0]  ;;  %v6311_v2 = vor.u32 %v8320_v55, %v6310_v54 }
  0x32   : > { %4404 = vmatpush.bf16.msra.mxu1 %v5751_v20  ;;  %v251_v60 = vld [vmem:[%s8901_s20] sm:$0xff]  ;;  %v6811_v61 = vor.u32 %v8445_v52, %v6810_v51  ;;  %v6630_v62 = vld [vmem:[%s8906_s24 + $0x848] sm:$0xf]  ;;  %v8400_v63 = vld [vmem:[%s8906_s24 + $0x858] sm:$0xf0]  ;;  %v6471_v3 = vor.u32 %v8360_v59, %v6470_v58  ;;  %vm5432_vm0 = vcmask 1041408  }
  0x33   : > { %4417 = vmatpush.bf16.msra.mxu2 %v5911_v21  ;;  %1022 = vst [vmem:[#allocation1] ss:$9 sm:$0xff] %v251_v60  ;;  %v6790_v0 = vld [vmem:[%s8906_s24 + $0x988] sm:$0xf]  ;;  %v8440_v1 = vld [vmem:[%s8906_s24 + $0x998] sm:$0xf0]  ;;  %v6631_v4 = vor.u32 %v8400_v63, %v6630_v62 }
  0x34   : > { %4430 = vmatpush.bf16.msra.mxu3 %v6071_v25  ;;  %v6290_v5 = vld [vmem:[%s8906_s24 + $0x5a0] sm:$0xf]  ;;  %v8315_v6 = vld [vmem:[%s8906_s24 + $0x5b0] sm:$0xf0]  ;;  %v6791_v8 = vor.u32 %v8440_v1, %v6790_v0  ;;  %v6270_v14 = vld [vmem:[%s8906_s24 + $0x578] sm:$0xf] }
  0x35   : > { %4392 = vmatpush.bf16.msra.mxu0 %v5571_v32  ;;  %v6450_v7 = vld [vmem:[%s8906_s24 + $0x6e0] sm:$0xf]  ;;  %v8355_v9 = vld [vmem:[%s8906_s24 + $0x6f0] sm:$0xf0]  ;;  %v6291_v15 = vor.u32 %v8315_v6, %v6290_v5  ;;  %v8310_v16 = vld [vmem:[%s8906_s24 + $0x588] sm:$0xf0] }
  0x36   : > { %4405 = vmatpush.bf16.msra.mxu1 %v5731_v36  ;;  %v6610_v10 = vld [vmem:[%s8906_s24 + $0x820] sm:$0xf]  ;;  %v8395_v11 = vld [vmem:[%s8906_s24 + $0x830] sm:$0xf0]  ;;  %v6430_v17 = vld [vmem:[%s8906_s24 + $0x6b8] sm:$0xf]  ;;  %v6451_v19 = vor.u32 %v8355_v9, %v6450_v7  ;;  %v6271_v30 = vor.u32 %v8310_v16, %v6270_v14 }
  0x37   : > { %4418 = vmatpush.bf16.msra.mxu2 %v5891_v37  ;;  %v6770_v12 = vld [vmem:[%s8906_s24 + $0x960] sm:$0xf]  ;;  %v8435_v13 = vld [vmem:[%s8906_s24 + $0x970] sm:$0xf0]  ;;  %v8350_v18 = vld [vmem:[%s8906_s24 + $0x6c8] sm:$0xf0]  ;;  %v6611_v20 = vor.u32 %v8395_v11, %v6610_v10 }
  0x38   : > { %4431 = vmatpush.bf16.msra.mxu3 %v6051_v40  ;;  %v6771_v24 = vor.u32 %v8435_v13, %v6770_v12  ;;  %v6590_v25 = vld [vmem:[%s8906_s24 + $0x7f8] sm:$0xf]  ;;  %v8390_v26 = vld [vmem:[%s8906_s24 + $0x808] sm:$0xf0]  ;;  %v6431_v31 = vor.u32 %v8350_v18, %v6430_v17  ;;  %v6250_v33 = vld [vmem:[%s8906_s24 + $0x550] sm:$0xf] }
  0x39   : > { %4437 = vmatpush.bf16.msrb.mxu0 %v6351_v41  ;;  %v6750_v28 = vld [vmem:[%s8906_s24 + $0x938] sm:$0xf]  ;;  %v8430_v29 = vld [vmem:[%s8906_s24 + $0x948] sm:$0xf0]  ;;  %v6591_v32 = vor.u32 %v8390_v26, %v6590_v25  ;;  %v8305_v34 = vld [vmem:[%s8906_s24 + $0x560] sm:$0xf0] }
  0x3a   : > { %4450 = vmatpush.bf16.msrb.mxu1 %v6511_v42  ;;  %v9016_v21 = vld [vmem:[#allocation1 + $0x12] sm:$0xff]  ;;  %v9018_v22 = vld [vmem:[#allocation1] sm:$0xff]  ;;  %v9025_v27 = vld [vmem:[#allocation1 + $0x9] sm:$0xff]  ;;  %v6751_v36 = vor.u32 %v8430_v29, %v6750_v28  ;;  %v6251_v42 = vor.u32 %v8305_v34, %v6250_v33  ;;  %vm5434_vm1 = vcmask 1045508   ;;  %vm5436_vm2 = vcmask 1043456   ;;  %p8128_p7 = scmp.ne.s32.totalorder %s8845_s12, 3 }
  0x3b   : > { %4463 = vmatpush.bf16.msrb.mxu2 %v6671_v43  ;;  %v9020_v23 = vld [vmem:[#allocation1 + $0x1b] sm:$0xff]  ;;  %4393 = vmatmul.bf16.vlgmr.msra.gmra.mxu0 %v9018_v22  ;;  %v6410_v35 = vld [vmem:[%s8906_s24 + $0x690] sm:$0xf]  ;;  %v8345_v37 = vld [vmem:[%s8906_s24 + $0x6a0] sm:$0xf0] }
  0x3c   : > { %4476 = vmatpush.bf16.msrb.mxu3 %v6831_v47  ;;  %4419 = vmatmul.bf16.vlgmr.msra.gmra.mxu2 %v9016_v21  ;;  %v6570_v38 = vld [vmem:[%s8906_s24 + $0x7d0] sm:$0xf]  ;;  %v8385_v39 = vld [vmem:[%s8906_s24 + $0x7e0] sm:$0xf0]  ;;  %v6230_v43 = vld [vmem:[%s8906_s24 + $0x528] sm:$0xf]  ;;  %v6411_v44 = vor.u32 %v8345_v37, %v6410_v35 }
  0x3d   : > { %4438 = vmatpush.bf16.msrb.mxu0 %v6331_v53  ;;  %4432 = vmatmul.bf16.vlgmr.msra.gmra.mxu3 %v9020_v23  ;;  %v6730_v40 = vld [vmem:[%s8906_s24 + $0x910] sm:$0xf]  ;;  %v8425_v41 = vld [vmem:[%s8906_s24 + $0x920] sm:$0xf0]  ;;  %v6571_v45 = vor.u32 %v8385_v39, %v6570_v38  ;;  %v8300_v46 = vld [vmem:[%s8906_s24 + $0x538] sm:$0xf0] }
  0x3e   : > { %4451 = vmatpush.bf16.msrb.mxu1 %v6491_v56  ;;  %v6390_v47 = vld [vmem:[%s8906_s24 + $0x668] sm:$0xf]  ;;  %v8340_v48 = vld [vmem:[%s8906_s24 + $0x678] sm:$0xf0]  ;;  %v6731_v49 = vor.u32 %v8425_v41, %v6730_v40  ;;  %v6210_v54 = vld [vmem:[%s8906_s24 + $0x500] sm:$0xf]  ;;  %v6231_v56 = vor.u32 %v8300_v46, %v6230_v43 }
  0x3f   : > { %4464 = vmatpush.bf16.msrb.mxu2 %v6651_v57  ;;  %4406 = vmatmul.bf16.vlgmr.msra.gmra.mxu1 %v9025_v27  ;;  %v6550_v50 = vld [vmem:[%s8906_s24 + $0x7a8] sm:$0xf]  ;;  %v8380_v51 = vld [vmem:[%s8906_s24 + $0x7b8] sm:$0xf0]  ;;  %v8295_v55 = vld [vmem:[%s8906_s24 + $0x510] sm:$0xf0]  ;;  %v6391_v63 = vor.u32 %v8340_v48, %v6390_v47 }
  0x40   : > { %4477 = vmatpush.bf16.msrb.mxu3 %v6811_v61  ;;  %v6710_v52 = vld [vmem:[%s8906_s24 + $0x8e8] sm:$0xf]  ;;  %v8420_v53 = vld [vmem:[%s8906_s24 + $0x8f8] sm:$0xf0]  ;;  %v6370_v57 = vld [vmem:[%s8906_s24 + $0x640] sm:$0xf]  ;;  %v6551_v0 = vor.u32 %v8380_v51, %v6550_v50  ;;  %v6211_v10 = vor.u32 %v8295_v55, %v6210_v54 }
  0x41   : > { %4439 = vmatpush.bf16.msrb.mxu0 %v6311_v2  ;;  %v8335_v58 = vld [vmem:[%s8906_s24 + $0x650] sm:$0xf0]  ;;  %v6530_v59 = vld [vmem:[%s8906_s24 + $0x780] sm:$0xf]  ;;  %v252_v62 = vld [vmem:[%s8901_s20 + $0x8] sm:$0xff] }
  0x42   : > { %4452 = vmatpush.bf16.msrb.mxu1 %v6471_v3  ;;  %v8375_v60 = vld [vmem:[%s8906_s24 + $0x790] sm:$0xf0]  ;;  %v9057_v1 = vld [vmem:[#allocation1 + $0x24] sm:$0xff]  ;;  %v6690_v5 = vld [vmem:[%s8906_s24 + $0x8c0] sm:$0xf]  ;;  %v6371_v14 = vor.u32 %v8335_v58, %v6370_v57 }
  0x43   : > { %4465 = vmatpush.bf16.msrb.mxu2 %v6631_v4  ;;  %v9054_v61 = vld [vmem:[#allocation1 + $0x36] sm:$0xff]  ;;  %v9059_v2 = vld [vmem:[#allocation1 + $0x3f] sm:$0xff]  ;;  %v9061_v3 = vld [vmem:[#allocation1 + $0x2d] sm:$0xff]  ;;  %v6711_v4 = vor.u32 %v8420_v53, %v6710_v52 }
  0x44   : > { %4478 = vmatpush.bf16.msrb.mxu3 %v6791_v8  ;;  %v8415_v6 = vld [vmem:[%s8906_s24 + $0x8d0] sm:$0xf0]  ;;  %1032 = vst [vmem:[#allocation1] ss:$9 sm:$0xff] %v252_v62  ;;  %v6990_v7 = vld [vmem:[%s8906_s24 + $0xb18] sm:$0xf] }
  0x45   : > { %4440 = vmatpush.bf16.msrb.mxu0 %v6291_v15  ;;  %v8490_v8 = vld [vmem:[%s8906_s24 + $0xb28] sm:$0xf0]  ;;  %v7150_v9 = vld [vmem:[%s8906_s24 + $0xc58] sm:$0xf]  ;;  %v6531_v15 = vor.u32 %v8375_v60, %v6530_v59  ;;  %v6691_v18 = vor.u32 %v8415_v6, %v6690_v5  ;;  %v6970_v25 = vld [vmem:[%s8906_s24 + $0xaf0] sm:$0xf] }
  0x46   : > { %4453 = vmatpush.bf16.msrb.mxu1 %v6451_v19  ;;  %v8530_v11 = vld [vmem:[%s8906_s24 + $0xc68] sm:$0xf0]  ;;  %v7310_v12 = vld [vmem:[%s8906_s24 + $0xd98] sm:$0xf]  ;;  %v6991_v19 = vor.u32 %v8490_v8, %v6990_v7  ;;  %v8485_v26 = vld [vmem:[%s8906_s24 + $0xb00] sm:$0xf0] }
  0x47   : > { %4466 = vmatpush.bf16.msrb.mxu2 %v6611_v20  ;;  %v8570_v13 = vld [vmem:[%s8906_s24 + $0xda8] sm:$0xf0]  ;;  %v7470_v16 = vld [vmem:[%s8906_s24 + $0xed8] sm:$0xf]  ;;  %v7151_v20 = vor.u32 %v8530_v11, %v7150_v9  ;;  %v7130_v28 = vld [vmem:[%s8906_s24 + $0xc30] sm:$0xf]  ;;  %v6971_v35 = vor.u32 %v8485_v26, %v6970_v25 }
  0x48   : > { %4479 = vmatpush.bf16.msrb.mxu3 %v6771_v24  ;;  %v8610_v17 = vld [vmem:[%s8906_s24 + $0xee8] sm:$0xf0]  ;;  %v7311_v24 = vor.u32 %v8570_v13, %v7310_v12  ;;  %v7450_v33 = vld [vmem:[%s8906_s24 + $0xeb0] sm:$0xf]  ;;  %v8605_v34 = vld [vmem:[%s8906_s24 + $0xec0] sm:$0xf0] }
  0x49   : > { %4441 = vmatpush.bf16.msrb.mxu0 %v6271_v30  ;;  %v7471_v29 = vor.u32 %v8610_v17, %v7470_v16  ;;  %v8525_v30 = vld [vmem:[%s8906_s24 + $0xc40] sm:$0xf0]  ;;  %v6950_v38 = vld [vmem:[%s8906_s24 + $0xac8] sm:$0xf]  ;;  %v8480_v39 = vld [vmem:[%s8906_s24 + $0xad8] sm:$0xf0]  ;;  %v7451_v41 = vor.u32 %v8605_v34, %v7450_v33 }
  0x4a   : > { %4454 = vmatpush.bf16.msrb.mxu1 %v6431_v31  ;;  %v7290_v31 = vld [vmem:[%s8906_s24 + $0xd70] sm:$0xf]  ;;  %v7110_v40 = vld [vmem:[%s8906_s24 + $0xc08] sm:$0xf]  ;;  %v8600_v46 = vld [vmem:[%s8906_s24 + $0xe98] sm:$0xf0]  ;;  %v6951_v47 = vor.u32 %v8480_v39, %v6950_v38 }
  0x4b   : > { %4467 = vmatpush.bf16.msrb.mxu2 %v6591_v32  ;;  %v8565_v32 = vld [vmem:[%s8906_s24 + $0xd80] sm:$0xf0]  ;;  %v7270_v43 = vld [vmem:[%s8906_s24 + $0xd48] sm:$0xf]  ;;  %v6930_v50 = vld [vmem:[%s8906_s24 + $0xaa0] sm:$0xf] }
  0x4c   : > { %4480 = vmatpush.bf16.msrb.mxu3 %v6751_v36  ;;  %v7131_v36 = vor.u32 %v8525_v30, %v7130_v28  ;;  %v7291_v37 = vor.u32 %v8565_v32, %v7290_v31  ;;  %v8475_v51 = vld [vmem:[%s8906_s24 + $0xab0] sm:$0xf0]  ;;  %v7090_v52 = vld [vmem:[%s8906_s24 + $0xbe0] sm:$0xf]  ;;  %v8510_v6 = vld [vmem:[%s8906_s24 + $0xbc8] sm:$0xf0] }
  0x4d   : > { %4442 = vmatpush.bf16.msrb.mxu0 %v6251_v42  ;;  %v8520_v42 = vld [vmem:[%s8906_s24 + $0xc18] sm:$0xf0]  ;;  %v8515_v54 = vld [vmem:[%s8906_s24 + $0xbf0] sm:$0xf0]  ;;  %v7250_v55 = vld [vmem:[%s8906_s24 + $0xd20] sm:$0xf]  ;;  %v6931_v59 = vor.u32 %v8475_v51, %v6930_v50 }
  0x4e   : > { %4455 = vmatpush.bf16.msrb.mxu1 %v6411_v44  ;;  %v8560_v44 = vld [vmem:[%s8906_s24 + $0xd58] sm:$0xf0]  ;;  %v7111_v48 = vor.u32 %v8520_v42, %v7110_v40  ;;  %v7410_v57 = vld [vmem:[%s8906_s24 + $0xe60] sm:$0xf]  ;;  %v8595_v58 = vld [vmem:[%s8906_s24 + $0xe70] sm:$0xf0]  ;;  %v7091_v60 = vor.u32 %v8515_v54, %v7090_v52 }
  0x4f   : > { %4468 = vmatpush.bf16.msrb.mxu2 %v6571_v45  ;;  %v7430_v45 = vld [vmem:[%s8906_s24 + $0xe88] sm:$0xf]  ;;  %v7411_v5 = vor.u32 %v8595_v58, %v7410_v57  ;;  %v7230_v7 = vld [vmem:[%s8906_s24 + $0xcf8] sm:$0xf]  ;;  %v8550_v8 = vld [vmem:[%s8906_s24 + $0xd08] sm:$0xf0] }
  0x50   : > { %4481 = vmatpush.bf16.msrb.mxu3 %v6731_v49  ;;  %v7271_v49 = vor.u32 %v8560_v44, %v7270_v43  ;;  %v7431_v53 = vor.u32 %v8600_v46, %v7430_v45  ;;  %v7390_v9 = vld [vmem:[%s8906_s24 + $0xe38] sm:$0xf]  ;;  %v7231_v13 = vor.u32 %v8550_v8, %v7230_v7  ;;  %v7050_v16 = vld [vmem:[%s8906_s24 + $0xb90] sm:$0xf]  ;;  %v8585_v25 = vld [vmem:[%s8906_s24 + $0xe20] sm:$0xf0] }
  0x51   : > { %4443 = vmatpush.bf16.msrb.mxu0 %v6231_v56  ;;  %v8555_v56 = vld [vmem:[%s8906_s24 + $0xd30] sm:$0xf0]  ;;  %v6870_v30 = vld [vmem:[%s8906_s24 + $0xa28] sm:$0xf]  ;;  %v8460_v31 = vld [vmem:[%s8906_s24 + $0xa38] sm:$0xf0] }
  0x52   : > { %4456 = vmatpush.bf16.msrb.mxu1 %v6391_v63  ;;  %v7251_v62 = vor.u32 %v8555_v56, %v7250_v55  ;;  %v6910_v63 = vld [vmem:[%s8906_s24 + $0xa78] sm:$0xf]  ;;  %v7030_v32 = vld [vmem:[%s8906_s24 + $0xb68] sm:$0xf]  ;;  %v8500_v34 = vld [vmem:[%s8906_s24 + $0xb78] sm:$0xf0]  ;;  %v6871_v39 = vor.u32 %v8460_v31, %v6870_v30 }
  0x53   : > { %4469 = vmatpush.bf16.msrb.mxu2 %v6551_v0  ;;  %v8470_v0 = vld [vmem:[%s8906_s24 + $0xa88] sm:$0xf0]  ;;  %v8580_v38 = vld [vmem:[%s8906_s24 + $0xdf8] sm:$0xf0]  ;;  %v6850_v40 = vld [vmem:[%s8906_s24 + $0xa00] sm:$0xf]  ;;  %v7031_v42 = vor.u32 %v8500_v34, %v7030_v32 }
  0x54   : > { %4482 = vmatpush.bf16.msrb.mxu3 %v6711_v4  ;;  %v7070_v4 = vld [vmem:[%s8906_s24 + $0xbb8] sm:$0xf]  ;;  %v6911_v11 = vor.u32 %v8470_v0, %v6910_v63  ;;  %v7010_v44 = vld [vmem:[%s8906_s24 + $0xb40] sm:$0xf]  ;;  %v8495_v45 = vld [vmem:[%s8906_s24 + $0xb50] sm:$0xf0] }
  0x55   : > { %4444 = vmatpush.bf16.msrb.mxu0 %v6211_v10  ;;  %v8590_v10 = vld [vmem:[%s8906_s24 + $0xe48] sm:$0xf0]  ;;  %v7071_v12 = vor.u32 %v8510_v6, %v7070_v4  ;;  %v7170_v46 = vld [vmem:[%s8906_s24 + $0xc80] sm:$0xf]  ;;  %v8575_v50 = vld [vmem:[%s8906_s24 + $0xdd0] sm:$0xf0]  ;;  %v7011_v58 = vor.u32 %v8495_v45, %v7010_v44 }
  0x56   : > { %4457 = vmatpush.bf16.msrb.mxu1 %v6371_v14  ;;  %v6890_v14 = vld [vmem:[%s8906_s24 + $0xa50] sm:$0xf]  ;;  %v7391_v17 = vor.u32 %v8590_v10, %v7390_v9  ;;  %v7630_v51 = vld [vmem:[%s8906_s24 + $0x1018] sm:$0xf]  ;;  %v8650_v52 = vld [vmem:[%s8906_s24 + $0x1028] sm:$0xf0] }
  0x57   : > { %4470 = vmatpush.bf16.msrb.mxu2 %v6531_v15  ;;  %v8465_v15 = vld [vmem:[%s8906_s24 + $0xa60] sm:$0xf0]  ;;  %v8690_v55 = vld [vmem:[%s8906_s24 + $0x1168] sm:$0xf0]  ;;  %v7950_v56 = vld [vmem:[%s8906_s24 + $0x1298] sm:$0xf]  ;;  %v7631_v0 = vor.u32 %v8650_v52, %v7630_v51 }
  0x58   : > { %4483 = vmatpush.bf16.msrb.mxu3 %v6691_v18  ;;  %4445 = vmatmul.bf16.vlgmr.msrb.gmra.mxu0 %v9057_v1  ;;  %v8505_v18 = vld [vmem:[%s8906_s24 + $0xba0] sm:$0xf0]  ;;  %v6891_v26 = vor.u32 %v8465_v15, %v6890_v14  ;;  %v8730_v57 = vld [vmem:[%s8906_s24 + $0x12a8] sm:$0xf0]  ;;  %v7610_v6 = vld [vmem:[%s8906_s24 + $0xff0] sm:$0xf] }
  0x59   : > { %4489 = vmatpush.bf16.msra.mxu0 %v6991_v19  ;;  %4458 = vmatmul.bf16.vlgmr.msrb.gmra.mxu1 %v9061_v3  ;;  %v7210_v19 = vld [vmem:[%s8906_s24 + $0xcd0] sm:$0xf]  ;;  %v7051_v28 = vor.u32 %v8505_v18, %v7050_v16  ;;  %v8645_v7 = vld [vmem:[%s8906_s24 + $0x1000] sm:$0xf0]  ;;  %v1036_v18 = vld [vmem:[#allocation1 + $0x1b] sm:$0xff] }
  0x5a   : > { %4502 = vmatpush.bf16.msra.mxu1 %v7151_v20  ;;  %4471 = vmatmul.bf16.vlgmr.msrb.gmra.mxu2 %v9054_v61  ;;  %v8545_v20 = vld [vmem:[%s8906_s24 + $0xce0] sm:$0xf0]  ;;  %v7770_v8 = vld [vmem:[%s8906_s24 + $0x1130] sm:$0xf]  ;;  %v8680_v30 = vld [vmem:[%s8906_s24 + $0x1118] sm:$0xf0] }
  0x5b   : > { %4515 = vmatpush.bf16.msra.mxu2 %v7311_v24  ;;  %4484 = vmatmul.bf16.vlgmr.msrb.gmra.mxu3 %v9059_v2  ;;  %v7370_v24 = vld [vmem:[%s8906_s24 + $0xe10] sm:$0xf]  ;;  %v8685_v10 = vld [vmem:[%s8906_s24 + $0x1140] sm:$0xf0]  ;;  %v7910_v31 = vld [vmem:[%s8906_s24 + $0x1248] sm:$0xf] }
  0x5c   : > { %4528 = vmatpush.bf16.msra.mxu3 %v7471_v29  ;;  %v7211_v29 = vor.u32 %v8545_v20, %v7210_v19  ;;  %v7371_v33 = vor.u32 %v8585_v25, %v7370_v24  ;;  %v8090_v14 = vld [vmem:[%s8906_s24 + $0x13b0] sm:$0xf]  ;;  %v8765_v15 = vld [vmem:[%s8906_s24 + $0x13c0] sm:$0xf0]  ;;  %v7611_v19 = vor.u32 %v8645_v7, %v7610_v6  ;;  %v7771_v20 = vor.u32 %v8685_v10, %v7770_v8  ;;  %v7590_v25 = vld [vmem:[%s8906_s24 + $0xfc8] sm:$0xf] }
  0x5d   : > { %4490 = vmatpush.bf16.msra.mxu0 %v6971_v35  ;;  %v7190_v35 = vld [vmem:[%s8906_s24 + $0xca8] sm:$0xf]  ;;  %v1035_v16 = vld [vmem:[#allocation1 + $0x12] sm:$0xff]  ;;  %v8720_v32 = vld [vmem:[%s8906_s24 + $0x1258] sm:$0xf0] }
  0x5e   : > { %4503 = vmatpush.bf16.msra.mxu1 %v7131_v36  ;;  %v8540_v36 = vld [vmem:[%s8906_s24 + $0xcb8] sm:$0xf0]  ;;  %v8715_v44 = vld [vmem:[%s8906_s24 + $0x1230] sm:$0xf0]  ;;  %v8050_v45 = vld [vmem:[%s8906_s24 + $0x1360] sm:$0xf] }
  0x5f   : > { %4516 = vmatpush.bf16.msra.mxu2 %v7291_v37  ;;  %v7350_v37 = vld [vmem:[%s8906_s24 + $0xde8] sm:$0xf]  ;;  %v7191_v43 = vor.u32 %v8540_v36, %v7190_v35  ;;  %v8760_v34 = vld [vmem:[%s8906_s24 + $0x1398] sm:$0xf0]  ;;  %v8630_v51 = vld [vmem:[%s8906_s24 + $0xf88] sm:$0xf0] }
  0x60   : > { %4529 = vmatpush.bf16.msra.mxu3 %v7451_v41  ;;  %v8455_v41 = vld [vmem:[%s8906_s24 + $0xa10] sm:$0xf0]  ;;  %v7710_v52 = vld [vmem:[%s8906_s24 + $0x10b8] sm:$0xf]  ;;  %v8665_v6 = vld [vmem:[%s8906_s24 + $0x10a0] sm:$0xf0] }
  0x61   : > { %4491 = vmatpush.bf16.msra.mxu0 %v6951_v47  ;;  %v7351_v47 = vor.u32 %v8580_v38, %v7350_v37  ;;  %v6851_v54 = vor.u32 %v8455_v41, %v6850_v40  ;;  %v7911_v37 = vor.u32 %v8720_v32, %v7910_v31  ;;  %v7570_v38 = vld [vmem:[%s8906_s24 + $0xfa0] sm:$0xf]  ;;  %v7850_v7 = vld [vmem:[%s8906_s24 + $0x11d0] sm:$0xf]  ;;  %v8705_v8 = vld [vmem:[%s8906_s24 + $0x11e0] sm:$0xf0] }
  0x62   : > { %4504 = vmatpush.bf16.msra.mxu1 %v7111_v48  ;;  %v8535_v48 = vld [vmem:[%s8906_s24 + $0xc90] sm:$0xf0]  ;;  %v7730_v40 = vld [vmem:[%s8906_s24 + $0x10e0] sm:$0xf]  ;;  %v8745_v10 = vld [vmem:[%s8906_s24 + $0x1320] sm:$0xf0] }
  0x63   : > { %4517 = vmatpush.bf16.msra.mxu2 %v7271_v49  ;;  %v7330_v49 = vld [vmem:[%s8906_s24 + $0xdc0] sm:$0xf] }
  0x64   : > { %4530 = vmatpush.bf16.msra.mxu3 %v7431_v53  ;;  %v7790_v53 = vld [vmem:[%s8906_s24 + $0x1158] sm:$0xf]  ;;  %v7331_v63 = vor.u32 %v8575_v50, %v7330_v49  ;;  %v7650_v32 = vld [vmem:[%s8906_s24 + $0x1040] sm:$0xf] }
  0x65   : > { %4492 = vmatpush.bf16.msra.mxu0 %v6931_v59  ;;  %v7171_v59 = vor.u32 %v8535_v48, %v7170_v46  ;;  %v7791_v4 = vor.u32 %v8690_v55, %v7790_v53  ;;  %v8755_v46 = vld [vmem:[%s8906_s24 + $0x1370] sm:$0xf0]  ;;  %v7550_v50 = vld [vmem:[%s8906_s24 + $0xf78] sm:$0xf] }
  0x66   : > { %4505 = vmatpush.bf16.msra.mxu1 %v7091_v60  ;;  %v8110_v60 = vld [vmem:[%s8906_s24 + $0x13d8] sm:$0xf]  ;;  %v8051_v53 = vor.u32 %v8755_v46, %v8050_v45  ;;  %v6032_v45 = vld [vmem:[%s8906_s24 + $0x3ac] sm:$0xf0] }
  0x67   : > { %4518 = vmatpush.bf16.msra.mxu2 %v7251_v62  ;;  %v8770_v62 = vld [vmem:[%s8906_s24 + $0x13e8] sm:$0xf0]  ;;  %v7870_v55 = vld [vmem:[%s8906_s24 + $0x11f8] sm:$0xf] }
  0x68   : > { %4531 = vmatpush.bf16.msra.mxu3 %v7411_v5  ;;  %v7951_v5 = vor.u32 %v8730_v57, %v7950_v56  ;;  %v8111_v9 = vor.u32 %v8770_v62, %v8110_v60  ;;  %v8710_v56 = vld [vmem:[%s8906_s24 + $0x1208] sm:$0xf0]  ;;  %v8030_v57 = vld [vmem:[%s8906_s24 + $0x1338] sm:$0xf] }
  0x69   : > { %4493 = vmatpush.bf16.msra.mxu0 %v6911_v11  ;;  %v7930_v11 = vld [vmem:[%s8906_s24 + $0x1270] sm:$0xf]  ;;  %v7871_v62 = vor.u32 %v8710_v56, %v7870_v55  ;;  %v5692_v55 = vld [vmem:[%s8906_s24 + $0x104] sm:$0xf0]  ;;  %v8203_v56 = vld [vmem:[%s8906_s24 + $0x234] sm:$0xf] }
  0x6a   : > { %4506 = vmatpush.bf16.msra.mxu1 %v7071_v12  ;;  %v8725_v12 = vld [vmem:[%s8906_s24 + $0x1280] sm:$0xf0] }
  0x6b   : > { %4519 = vmatpush.bf16.msra.mxu2 %v7231_v13  ;;  %v1033_v13 = vld [vmem:[#allocation1] sm:$0xff]  ;;  %v7931_v24 = vor.u32 %v8725_v12, %v7930_v11 }
  0x6c   : > { %4532 = vmatpush.bf16.msra.mxu3 %v7391_v17  ;;  %v1034_v17 = vld [vmem:[#allocation1 + $0x9] sm:$0xff] }
  0x6d   : > { %4494 = vmatpush.bf16.msra.mxu0 %v6891_v26  ;;  %v8640_v26 = vld [vmem:[%s8906_s24 + $0xfd8] sm:$0xf0] }
  0x6e   : > { %4507 = vmatpush.bf16.msra.mxu1 %v7051_v28  ;;  %v7750_v28 = vld [vmem:[%s8906_s24 + $0x1108] sm:$0xf]  ;;  %v7591_v35 = vor.u32 %v8640_v26, %v7590_v25  ;;  %v8740_v25 = vld [vmem:[%s8906_s24 + $0x12f8] sm:$0xf0] }
  0x6f   : > { %4520 = vmatpush.bf16.msra.mxu2 %v7211_v29  ;;  %v8091_v29 = vor.u32 %v8765_v15, %v8090_v14  ;;  %v7751_v36 = vor.u32 %v8680_v30, %v7750_v28  ;;  %v7510_v14 = vld [vmem:[%s8906_s24 + $0xf28] sm:$0xf]  ;;  %v8620_v15 = vld [vmem:[%s8906_s24 + $0xf38] sm:$0xf0]  ;;  %v7490_v28 = vld [vmem:[%s8906_s24 + $0xf00] sm:$0xf] }
  0x70   : > { %4533 = vmatpush.bf16.msra.mxu3 %v7371_v33  ;;  %v8070_v33 = vld [vmem:[%s8906_s24 + $0x1388] sm:$0xf]  ;;  %v7511_v26 = vor.u32 %v8620_v15, %v7510_v14  ;;  %v5832_v14 = vld [vmem:[%s8906_s24 + $0x21c] sm:$0xf0]  ;;  %v8238_v15 = vld [vmem:[%s8906_s24 + $0x34c] sm:$0xf] }
  0x71   : > { %4495 = vmatpush.bf16.msra.mxu0 %v6871_v39  ;;  %v8635_v39 = vld [vmem:[%s8906_s24 + $0xfb0] sm:$0xf0]  ;;  %v8071_v41 = vor.u32 %v8760_v34, %v8070_v33  ;;  %v7810_v34 = vld [vmem:[%s8906_s24 + $0x1180] sm:$0xf] }
  0x72   : > { %4508 = vmatpush.bf16.msra.mxu1 %v7031_v42  ;;  %v8675_v42 = vld [vmem:[%s8906_s24 + $0x10f0] sm:$0xf0] }
  0x73   : > { %4521 = vmatpush.bf16.msra.mxu2 %v7191_v43  ;;  %v7890_v43 = vld [vmem:[%s8906_s24 + $0x1220] sm:$0xf]  ;;  %v7731_v48 = vor.u32 %v8675_v42, %v7730_v40  ;;  %v8655_v33 = vld [vmem:[%s8906_s24 + $0x1050] sm:$0xf0]  ;;  %v5712_v40 = vld [vmem:[%s8906_s24 + $0x12c] sm:$0xf0] }
  0x74   : > { %4534 = vmatpush.bf16.msra.mxu3 %v7351_v47  ;;  %v7571_v47 = vor.u32 %v8635_v39, %v7570_v38  ;;  %v7891_v49 = vor.u32 %v8715_v44, %v7890_v43  ;;  %v8735_v38 = vld [vmem:[%s8906_s24 + $0x12d0] sm:$0xf0]  ;;  %v8168_v39 = vld [vmem:[%s8906_s24 + $0x11c] sm:$0xf]  ;;  %v5872_v43 = vld [vmem:[%s8906_s24 + $0x26c] sm:$0xf0]  ;;  %v7651_v46 = vor.u32 %v8655_v33, %v7650_v32 }
  0x75   : > { %4496 = vmatpush.bf16.msra.mxu0 %v6851_v54  ;;  %v8670_v54 = vld [vmem:[%s8906_s24 + $0x10c8] sm:$0xf0]  ;;  %v8248_v44 = vld [vmem:[%s8906_s24 + $0x39c] sm:$0xf]  ;;  %v5972_v32 = vld [vmem:[%s8906_s24 + $0x334] sm:$0xf0] }
  0x76   : > { %4509 = vmatpush.bf16.msra.mxu1 %v7011_v58  ;;  %v8750_v58 = vld [vmem:[%s8906_s24 + $0x1348] sm:$0xf0]  ;;  %v7711_v60 = vor.u32 %v8670_v54, %v7710_v52  ;;  %v8163_v54 = vld [vmem:[%s8906_s24 + $0xf4] sm:$0xf]  ;;  %v8273_v33 = vld [vmem:[%s8906_s24 + $0x464] sm:$0xf] }
  0x77   : > { %4522 = vmatpush.bf16.msra.mxu2 %v7171_v59  ;;  %v7551_v59 = vor.u32 %v8630_v51, %v7550_v50  ;;  %v5715_v51 = vor.u32 %v8168_v39, %v5712_v40  ;;  %v5632_v39 = vld [vmem:[%s8906_s24 + $0x8c] sm:$0xf0]  ;;  %v8188_v40 = vld [vmem:[%s8906_s24 + $0x1bc] sm:$0xf] }
  0x78   : > { %4535 = vmatpush.bf16.msra.mxu3 %v7331_v63  ;;  %4497 = vmatmul.bf16.vlgmr.msra.gmra.mxu0 %v1033_v13  ;;  %v7530_v63 = vld [vmem:[%s8906_s24 + $0xf50] sm:$0xf]  ;;  %v7851_v13 = vor.u32 %v8705_v8, %v7850_v7  ;;  %v5695_v7 = vor.u32 %v8163_v54, %v5692_v55  ;;  %v5772_v54 = vld [vmem:[%s8906_s24 + $0x1a4] sm:$0xf0]  ;;  %v8223_v55 = vld [vmem:[%s8906_s24 + $0x2d4] sm:$0xf] }
  0x79   : > { %4541 = vmatpush.bf16.msrb.mxu0 %v7631_v0  ;;  %4510 = vmatmul.bf16.vlgmr.msra.gmra.mxu1 %v1034_v17  ;;  %v8625_v0 = vld [vmem:[%s8906_s24 + $0xf60] sm:$0xf0] }
  0x7a   : > { %4554 = vmatpush.bf16.msrb.mxu1 %v7791_v4  ;;  %4523 = vmatmul.bf16.vlgmr.msra.gmra.mxu2 %v1035_v16  ;;  %v7690_v4 = vld [vmem:[%s8906_s24 + $0x1090] sm:$0xf]  ;;  %v7531_v11 = vor.u32 %v8625_v0, %v7530_v63  ;;  %v7670_v16 = vld [vmem:[%s8906_s24 + $0x1068] sm:$0xf]  ;;  %v8283_v63 = vld [vmem:[%s8906_s24 + $0x4b4] sm:$0xf] }
  0x7b   : > { %4567 = vmatpush.bf16.msrb.mxu2 %v7951_v5  ;;  %4536 = vmatmul.bf16.vlgmr.msra.gmra.mxu3 %v1036_v18  ;;  %v8031_v5 = vor.u32 %v8750_v58, %v8030_v57  ;;  %v7691_v12 = vor.u32 %v8665_v6, %v7690_v4  ;;  %v8660_v18 = vld [vmem:[%s8906_s24 + $0x1078] sm:$0xf0]  ;;  %v5852_v58 = vld [vmem:[%s8906_s24 + $0x244] sm:$0xf0] }
  0x7c   : > { %4580 = vmatpush.bf16.msrb.mxu3 %v8111_v9  ;;  %v8010_v9 = vld [vmem:[%s8906_s24 + $0x1310] sm:$0xf]  ;;  %v7671_v30 = vor.u32 %v8660_v18, %v7670_v16  ;;  %v6172_v0 = vld [vmem:[%s8906_s24 + $0x4c4] sm:$0xf0]  ;;  %v1039_v4 = vld [vmem:[#allocation1 + $0x36] sm:$0xff]  ;;  %v5855_v8 = vor.u32 %v8203_v56, %v5852_v58 }
  0x7d   : > { %4542 = vmatpush.bf16.msrb.mxu0 %v7611_v19  ;;  %v8011_v17 = vor.u32 %v8745_v10, %v8010_v9  ;;  %v7830_v19 = vld [vmem:[%s8906_s24 + $0x11a8] sm:$0xf]  ;;  %v1040_v6 = vld [vmem:[#allocation1 + $0x3f] sm:$0xff]  ;;  %v8158_v10 = vld [vmem:[%s8906_s24 + $0xcc] sm:$0xf] }
  0x7e   : > { %4555 = vmatpush.bf16.msrb.mxu1 %v7771_v20  ;;  %v8700_v20 = vld [vmem:[%s8906_s24 + $0x11b8] sm:$0xf0]  ;;  %v5992_v16 = vld [vmem:[%s8906_s24 + $0x35c] sm:$0xf0]  ;;  %v5932_v56 = vld [vmem:[%s8906_s24 + $0x2e4] sm:$0xf0] }
  0x7f   : > { %4568 = vmatpush.bf16.msrb.mxu2 %v7931_v24  ;;  %v7990_v24 = vld [vmem:[%s8906_s24 + $0x12e8] sm:$0xf]  ;;  %v7831_v31 = vor.u32 %v8700_v20, %v7830_v19  ;;  %v6152_v18 = vld [vmem:[%s8906_s24 + $0x49c] sm:$0xf0] }
  0x80   : > { %4581 = vmatpush.bf16.msrb.mxu3 %v8091_v29  ;;  %v8615_v29 = vld [vmem:[%s8906_s24 + $0xf10] sm:$0xf0]  ;;  %v6092_v58 = vld [vmem:[%s8906_s24 + $0x424] sm:$0xf0] }
  0x81   : > { %4543 = vmatpush.bf16.msrb.mxu0 %v7591_v35  ;;  %v7991_v35 = vor.u32 %v8740_v25, %v7990_v24  ;;  %v7491_v42 = vor.u32 %v8615_v29, %v7490_v28  ;;  %v5995_v24 = vor.u32 %v8238_v15, %v5992_v16  ;;  %v8153_v25 = vld [vmem:[%s8906_s24 + $0xa4] sm:$0xf] }
  0x82   : > { %4556 = vmatpush.bf16.msrb.mxu1 %v7751_v36  ;;  %v8695_v36 = vld [vmem:[%s8906_s24 + $0x1190] sm:$0xf0]  ;;  %v8193_v28 = vld [vmem:[%s8906_s24 + $0x1e4] sm:$0xf] }
  0x83   : > { %4569 = vmatpush.bf16.msrb.mxu2 %v7911_v37  ;;  %v7970_v37 = vld [vmem:[%s8906_s24 + $0x12c0] sm:$0xf]  ;;  %v8173_v16 = vld [vmem:[%s8906_s24 + $0x144] sm:$0xf] }
  0x84   : > { %4582 = vmatpush.bf16.msrb.mxu3 %v8071_v41  ;;  %v8208_v41 = vld [vmem:[%s8906_s24 + $0x25c] sm:$0xf]  ;;  %v7971_v50 = vor.u32 %v8735_v38, %v7970_v37 }
  0x85   : > { %4544 = vmatpush.bf16.msrb.mxu0 %v7571_v47  ;;  %v7811_v47 = vor.u32 %v8695_v36, %v7810_v34  ;;  %v5875_v52 = vor.u32 %v8208_v41, %v5872_v43  ;;  %v6132_v34 = vld [vmem:[%s8906_s24 + $0x474] sm:$0xf0]  ;;  %v8148_v38 = vld [vmem:[%s8906_s24 + $0x7c] sm:$0xf] }
  0x86   : > { %4557 = vmatpush.bf16.msrb.mxu1 %v7731_v48  ;;  %v8288_v48 = vld [vmem:[%s8906_s24 + $0x4dc] sm:$0xf]  ;;  %v6135_v41 = vor.u32 %v8273_v33, %v6132_v34  ;;  %v6672_v33 = vld [vmem:[%s8906_s24 + $0x8ac] sm:$0xf0] }
  0x87   : > { %4570 = vmatpush.bf16.msrb.mxu2 %v7891_v49  ;;  %v6192_v49 = vld [vmem:[%s8906_s24 + $0x4ec] sm:$0xf0]  ;;  %v8228_v43 = vld [vmem:[%s8906_s24 + $0x2fc] sm:$0xf] }
  0x88   : > { %4583 = vmatpush.bf16.msrb.mxu3 %v8051_v53  ;;  %v6035_v53 = vor.u32 %v8248_v44, %v6032_v45  ;;  %v6195_v57 = vor.u32 %v8288_v48, %v6192_v49  ;;  %v5952_v44 = vld [vmem:[%s8906_s24 + $0x30c] sm:$0xf0]  ;;  %v8268_v45 = vld [vmem:[%s8906_s24 + $0x43c] sm:$0xf] }
  0x89   : > { %4545 = vmatpush.bf16.msrb.mxu0 %v7551_v59  ;;  %v8243_v59 = vld [vmem:[%s8906_s24 + $0x374] sm:$0xf]  ;;  %v5955_v49 = vor.u32 %v8228_v43, %v5952_v44  ;;  %v6332_v43 = vld [vmem:[%s8906_s24 + $0x604] sm:$0xf0] }
  0x8a   : > { %4558 = vmatpush.bf16.msrb.mxu1 %v7711_v60  ;;  %v6012_v60 = vld [vmem:[%s8906_s24 + $0x384] sm:$0xf0]  ;;  %v8363_v44 = vld [vmem:[%s8906_s24 + $0x734] sm:$0xf] }
  0x8b   : > { %4571 = vmatpush.bf16.msrb.mxu2 %v7871_v62  ;;  %v1037_v62 = vld [vmem:[#allocation1 + $0x24] sm:$0xff]  ;;  %v6015_v9 = vor.u32 %v8243_v59, %v6012_v60 }
  0x8c   : > { %4584 = vmatpush.bf16.msrb.mxu3 %v8031_v5  ;;  %v1038_v5 = vld [vmem:[#allocation1 + $0x2d] sm:$0xff] }
  0x8d   : > { %4546 = vmatpush.bf16.msrb.mxu0 %v7531_v11  ;;  %v5672_v11 = vld [vmem:[%s8906_s24 + $0xdc] sm:$0xf0] }
  0x8e   : > { %4559 = vmatpush.bf16.msrb.mxu1 %v7691_v12  ;;  %v8198_v12 = vld [vmem:[%s8906_s24 + $0x20c] sm:$0xf]  ;;  %v5675_v19 = vor.u32 %v8158_v10, %v5672_v11  ;;  %v6072_v10 = vld [vmem:[%s8906_s24 + $0x3fc] sm:$0xf0] }
  0x8f   : > { %4572 = vmatpush.bf16.msrb.mxu2 %v7851_v13  ;;  %v6175_v13 = vor.u32 %v8283_v63, %v6172_v0  ;;  %v5835_v20 = vor.u32 %v8198_v12, %v5832_v14  ;;  %v8138_v63 = vld [vmem:[%s8906_s24 + $0x2c] sm:$0xf]  ;;  %v5592_v0 = vld [vmem:[%s8906_s24 + $0x3c] sm:$0xf0]  ;;  %v8133_v12 = vld [vmem:[%s8906_s24 + $0x4] sm:$0xf] }
  0x90   : > { %4585 = vmatpush.bf16.msrb.mxu3 %v8011_v17  ;;  %v8278_v17 = vld [vmem:[%s8906_s24 + $0x48c] sm:$0xf]  ;;  %v5595_v11 = vor.u32 %v8138_v63, %v5592_v0  ;;  %v6792_v63 = vld [vmem:[%s8906_s24 + $0x99c] sm:$0xf0] }
  0x91   : > { %4547 = vmatpush.bf16.msrb.mxu0 %v7511_v26  ;;  %v5652_v26 = vld [vmem:[%s8906_s24 + $0xb4] sm:$0xf0]  ;;  %v6155_v29 = vor.u32 %v8278_v17, %v6152_v18  ;;  %v8213_v18 = vld [vmem:[%s8906_s24 + $0x284] sm:$0xf] }
  0x92   : > { %4560 = vmatpush.bf16.msrb.mxu1 %v7671_v30  ;;  %v5812_v30 = vld [vmem:[%s8906_s24 + $0x1f4] sm:$0xf0] }
  0x93   : > { %4573 = vmatpush.bf16.msrb.mxu2 %v7831_v31  ;;  %v8233_v31 = vld [vmem:[%s8906_s24 + $0x324] sm:$0xf]  ;;  %v5815_v36 = vor.u32 %v8193_v28, %v5812_v30  ;;  %v5732_v17 = vld [vmem:[%s8906_s24 + $0x154] sm:$0xf0]  ;;  %v6352_v28 = vld [vmem:[%s8906_s24 + $0x62c] sm:$0xf0] }
  0x94   : > { %4586 = vmatpush.bf16.msrb.mxu3 %v7991_v35  ;;  %v5655_v35 = vor.u32 %v8153_v25, %v5652_v26  ;;  %v5975_v37 = vor.u32 %v8233_v31, %v5972_v32  ;;  %v6052_v25 = vld [vmem:[%s8906_s24 + $0x3d4] sm:$0xf0]  ;;  %v8328_v26 = vld [vmem:[%s8906_s24 + $0x61c] sm:$0xf]  ;;  %v6512_v31 = vld [vmem:[%s8906_s24 + $0x76c] sm:$0xf0]  ;;  %v5735_v34 = vor.u32 %v8173_v16, %v5732_v17 }
  0x95   : > { %4548 = vmatpush.bf16.msrb.mxu0 %v7491_v42  ;;  %v5792_v42 = vld [vmem:[%s8906_s24 + $0x1cc] sm:$0xf0]  ;;  %v8408_v32 = vld [vmem:[%s8906_s24 + $0x89c] sm:$0xf] }
  0x96   : > { %4561 = vmatpush.bf16.msrb.mxu1 %v7651_v46  ;;  %v6112_v46 = vld [vmem:[%s8906_s24 + $0x44c] sm:$0xf0]  ;;  %v5795_v48 = vor.u32 %v8188_v40, %v5792_v42  ;;  %v8323_v42 = vld [vmem:[%s8906_s24 + $0x5f4] sm:$0xf] }
  0x97   : > { %4574 = vmatpush.bf16.msrb.mxu2 %v7811_v47  ;;  %v5635_v47 = vor.u32 %v8148_v38, %v5632_v39  ;;  %v6355_v39 = vor.u32 %v8328_v26, %v6352_v28  ;;  %v8388_v26 = vld [vmem:[%s8906_s24 + $0x7fc] sm:$0xf]  ;;  %v6592_v28 = vld [vmem:[%s8906_s24 + $0x80c] sm:$0xf0] }
  0x98   : > { %4587 = vmatpush.bf16.msrb.mxu3 %v7971_v50  ;;  %4549 = vmatmul.bf16.vlgmr.msrb.gmra.mxu0 %v1037_v62  ;;  %v8143_v50 = vld [vmem:[%s8906_s24 + $0x54] sm:$0xf]  ;;  %v5935_v62 = vor.u32 %v8223_v55, %v5932_v56  ;;  %v6312_v55 = vld [vmem:[%s8906_s24 + $0x5dc] sm:$0xf0]  ;;  %v8358_v56 = vld [vmem:[%s8906_s24 + $0x70c] sm:$0xf] }
  0x99   : > { %4593 = vmatpush.bf16.msra.mxu0 %v5715_v51  ;;  %4562 = vmatmul.bf16.vlgmr.msrb.gmra.mxu1 %v1038_v5  ;;  %v5612_v51 = vld [vmem:[%s8906_s24 + $0x64] sm:$0xf0] }
  0x9a   : > { %4606 = vmatpush.bf16.msra.mxu1 %v5875_v52  ;;  %4575 = vmatmul.bf16.vlgmr.msrb.gmra.mxu2 %v1039_v4  ;;  %v8183_v52 = vld [vmem:[%s8906_s24 + $0x194] sm:$0xf]  ;;  %v5615_v59 = vor.u32 %v8143_v50, %v5612_v51  ;;  %v8178_v4 = vld [vmem:[%s8906_s24 + $0x16c] sm:$0xf]  ;;  %v6812_v50 = vld [vmem:[%s8906_s24 + $0x9c4] sm:$0xf0]  ;;  %v6335_v51 = vor.u32 %v8323_v42, %v6332_v43 }
  0x9b   : > { %4619 = vmatpush.bf16.msra.mxu2 %v6035_v53  ;;  %4588 = vmatmul.bf16.vlgmr.msrb.gmra.mxu3 %v1040_v6  ;;  %v6115_v53 = vor.u32 %v8268_v45, %v6112_v46  ;;  %v5775_v60 = vor.u32 %v8183_v52, %v5772_v54  ;;  %v5752_v6 = vld [vmem:[%s8906_s24 + $0x17c] sm:$0xf0]  ;;  %v6492_v46 = vld [vmem:[%s8906_s24 + $0x744] sm:$0xf0]  ;;  %v8318_v54 = vld [vmem:[%s8906_s24 + $0x5cc] sm:$0xf] }
  0x9c   : > { %4632 = vmatpush.bf16.msra.mxu3 %v6195_v57  ;;  %v8263_v57 = vld [vmem:[%s8906_s24 + $0x414] sm:$0xf]  ;;  %v5755_v14 = vor.u32 %v8178_v4, %v5752_v6  ;;  %v6495_v52 = vor.u32 %v8363_v44, %v6492_v46  ;;  %v6315_v0 = vor.u32 %v8318_v54, %v6312_v55  ;;  %v8313_v6 = vld [vmem:[%s8906_s24 + $0x5a4] sm:$0xf]  ;;  %v6732_v42 = vld [vmem:[%s8906_s24 + $0x924] sm:$0xf0] }
  0x9d   : > { %4594 = vmatpush.bf16.msra.mxu0 %v5695_v7  ;;  %v6095_v5 = vor.u32 %v8263_v57, %v6092_v58  ;;  %v8218_v7 = vld [vmem:[%s8906_s24 + $0x2ac] sm:$0xf]  ;;  %v6472_v58 = vld [vmem:[%s8906_s24 + $0x71c] sm:$0xf0] }
  0x9e   : > { %4607 = vmatpush.bf16.msra.mxu1 %v5855_v8  ;;  %v5912_v8 = vld [vmem:[%s8906_s24 + $0x2bc] sm:$0xf0]  ;;  %v6475_v4 = vor.u32 %v8358_v56, %v6472_v58  ;;  %v8418_v56 = vld [vmem:[%s8906_s24 + $0x8ec] sm:$0xf] }
  0x9f   : > { %4620 = vmatpush.bf16.msra.mxu2 %v6015_v9  ;;  %v8258_v9 = vld [vmem:[%s8906_s24 + $0x3ec] sm:$0xf]  ;;  %v5915_v15 = vor.u32 %v8218_v7, %v5912_v8  ;;  %v6292_v7 = vld [vmem:[%s8906_s24 + $0x5b4] sm:$0xf0]  ;;  %v8353_v8 = vld [vmem:[%s8906_s24 + $0x6e4] sm:$0xf] }
  0xa0   : > { %4633 = vmatpush.bf16.msra.mxu3 %v6175_v13  ;;  %v5572_v13 = vld [vmem:[%s8906_s24 + $0x14] sm:$0xf0]  ;;  %v6552_v54 = vld [vmem:[%s8906_s24 + $0x7bc] sm:$0xf0] }
  0xa1   : > { %4595 = vmatpush.bf16.msra.mxu0 %v5675_v19  ;;  %v6075_v19 = vor.u32 %v8258_v9, %v6072_v10  ;;  %v5575_v30 = vor.u32 %v8133_v12, %v5572_v13  ;;  %v6452_v10 = vld [vmem:[%s8906_s24 + $0x6f4] sm:$0xf0]  ;;  %v8433_v13 = vld [vmem:[%s8906_s24 + $0x964] sm:$0xf] }
  0xa2   : > { %4608 = vmatpush.bf16.msra.mxu1 %v5835_v20  ;;  %v5892_v20 = vld [vmem:[%s8906_s24 + $0x294] sm:$0xf0]  ;;  %v6455_v16 = vor.u32 %v8353_v8, %v6452_v10 }
  0xa3   : > { %4621 = vmatpush.bf16.msra.mxu2 %v5995_v24  ;;  %v8253_v24 = vld [vmem:[%s8906_s24 + $0x3c4] sm:$0xf]  ;;  %v6612_v12 = vld [vmem:[%s8906_s24 + $0x834] sm:$0xf0] }
  0xa4   : > { %4634 = vmatpush.bf16.msra.mxu3 %v6155_v29  ;;  %v8368_v29 = vld [vmem:[%s8906_s24 + $0x75c] sm:$0xf]  ;;  %v6055_v38 = vor.u32 %v8253_v24, %v6052_v25  ;;  %v6432_v25 = vld [vmem:[%s8906_s24 + $0x6cc] sm:$0xf0]  ;;  %v6532_v8 = vld [vmem:[%s8906_s24 + $0x794] sm:$0xf0] }
  0xa5   : > { %4596 = vmatpush.bf16.msra.mxu0 %v5655_v35  ;;  %v5895_v35 = vor.u32 %v8213_v18, %v5892_v20  ;;  %v6515_v40 = vor.u32 %v8368_v29, %v6512_v31  ;;  %v8308_v18 = vld [vmem:[%s8906_s24 + $0x57c] sm:$0xf]  ;;  %v6692_v10 = vld [vmem:[%s8906_s24 + $0x8d4] sm:$0xf0] }
  0xa6   : > { %4609 = vmatpush.bf16.msra.mxu1 %v5815_v36  ;;  %v8448_v36 = vld [vmem:[%s8906_s24 + $0x9dc] sm:$0xf] }
  0xa7   : > { %4622 = vmatpush.bf16.msra.mxu2 %v5975_v37  ;;  %v6832_v37 = vld [vmem:[%s8906_s24 + $0x9ec] sm:$0xf0]  ;;  %v8348_v20 = vld [vmem:[%s8906_s24 + $0x6bc] sm:$0xf] }
  0xa8   : > { %4635 = vmatpush.bf16.msra.mxu3 %v6135_v41  ;;  %v6675_v41 = vor.u32 %v8408_v32, %v6672_v33  ;;  %v6835_v45 = vor.u32 %v8448_v36, %v6832_v37  ;;  %v8428_v29 = vld [vmem:[%s8906_s24 + $0x93c] sm:$0xf]  ;;  %v6435_v32 = vor.u32 %v8348_v20, %v6432_v25  ;;  %v6595_v33 = vor.u32 %v8388_v26, %v6592_v28  ;;  %v8343_v36 = vld [vmem:[%s8906_s24 + $0x694] sm:$0xf] }
  0xa9   : > { %4597 = vmatpush.bf16.msra.mxu0 %v5635_v47  ;;  %v8403_v47 = vld [vmem:[%s8906_s24 + $0x874] sm:$0xf]  ;;  %v8608_v28 = vld [vmem:[%s8906_s24 + $0xedc] sm:$0xf] }
  0xaa   : > { %4610 = vmatpush.bf16.msra.mxu1 %v5795_v48  ;;  %v6652_v48 = vld [vmem:[%s8906_s24 + $0x884] sm:$0xf0] }
  0xab   : > { %4623 = vmatpush.bf16.msra.mxu2 %v5955_v49  ;;  %v8443_v49 = vld [vmem:[%s8906_s24 + $0x9b4] sm:$0xf] }
  0xac   : > { %4636 = vmatpush.bf16.msra.mxu3 %v6115_v53  ;;  %v6655_v53 = vor.u32 %v8403_v47, %v6652_v48  ;;  %v6815_v57 = vor.u32 %v8443_v49, %v6812_v50  ;;  %v8298_v47 = vld [vmem:[%s8906_s24 + $0x52c] sm:$0xf]  ;;  %v6232_v48 = vld [vmem:[%s8906_s24 + $0x53c] sm:$0xf0] }
  0xad   : > { %4598 = vmatpush.bf16.msra.mxu0 %v5615_v59  ;;  %v8398_v59 = vld [vmem:[%s8906_s24 + $0x84c] sm:$0xf]  ;;  %v6235_v58 = vor.u32 %v8298_v47, %v6232_v48 }
  0xae   : > { %4611 = vmatpush.bf16.msra.mxu1 %v5775_v60  ;;  %v6632_v60 = vld [vmem:[%s8906_s24 + $0x85c] sm:$0xf0]  ;;  %v8338_v49 = vld [vmem:[%s8906_s24 + $0x66c] sm:$0xf] }
  0xaf   : > { %4624 = vmatpush.bf16.msra.mxu2 %v5935_v62  ;;  %v8438_v62 = vld [vmem:[%s8906_s24 + $0x98c] sm:$0xf] }
  0xb0   : > { %4637 = vmatpush.bf16.msra.mxu3 %v6095_v5  ;;  %v6635_v5 = vor.u32 %v8398_v59, %v6632_v60  ;;  %v6795_v9 = vor.u32 %v8438_v62, %v6792_v63  ;;  %v8293_v59 = vld [vmem:[%s8906_s24 + $0x504] sm:$0xf]  ;;  %v6212_v60 = vld [vmem:[%s8906_s24 + $0x514] sm:$0xf0] }
  0xb1   : > { %4599 = vmatpush.bf16.msra.mxu0 %v5595_v11  ;;  %v8393_v11 = vld [vmem:[%s8906_s24 + $0x824] sm:$0xf] }
  0xb2   : > { %4612 = vmatpush.bf16.msra.mxu1 %v5755_v14  ;;  %v6772_v14 = vld [vmem:[%s8906_s24 + $0x974] sm:$0xf0]  ;;  %v6615_v17 = vor.u32 %v8393_v11, %v6612_v12 }
  0xb3   : > { %4625 = vmatpush.bf16.msra.mxu2 %v5915_v15  ;;  %v6295_v15 = vor.u32 %v8313_v6, %v6292_v7  ;;  %v6775_v24 = vor.u32 %v8433_v13, %v6772_v14  ;;  %v8488_v13 = vld [vmem:[%s8906_s24 + $0xb1c] sm:$0xf]  ;;  %v6992_v14 = vld [vmem:[%s8906_s24 + $0xb2c] sm:$0xf0] }
  0xb4   : > { %4638 = vmatpush.bf16.msra.mxu3 %v6075_v19  ;;  %v6272_v19 = vld [vmem:[%s8906_s24 + $0x58c] sm:$0xf0] }
  0xb5   : > { %4600 = vmatpush.bf16.msra.mxu0 %v5575_v30  ;;  %v6752_v30 = vld [vmem:[%s8906_s24 + $0x94c] sm:$0xf0]  ;;  %v6275_v31 = vor.u32 %v8308_v18, %v6272_v19  ;;  %v8568_v18 = vld [vmem:[%s8906_s24 + $0xd9c] sm:$0xf] }
  0xb6   : > { %4613 = vmatpush.bf16.msra.mxu1 %v5735_v34  ;;  %v8303_v34 = vld [vmem:[%s8906_s24 + $0x554] sm:$0xf]  ;;  %v6755_v37 = vor.u32 %v8428_v29, %v6752_v30  ;;  %v7312_v19 = vld [vmem:[%s8906_s24 + $0xdac] sm:$0xf0] }
  0xb7   : > { %4626 = vmatpush.bf16.msra.mxu2 %v5895_v35  ;;  %v6252_v35 = vld [vmem:[%s8906_s24 + $0x564] sm:$0xf0]  ;;  %v7472_v29 = vld [vmem:[%s8906_s24 + $0xeec] sm:$0xf0] }
  0xb8   : > { %4639 = vmatpush.bf16.msra.mxu3 %v6055_v38  ;;  %4601 = vmatmul.bf16.vlgmr.msra.gmra.mxu0 %v9018_v22  ;;  %v6412_v38 = vld [vmem:[%s8906_s24 + $0x6a4] sm:$0xf0]  ;;  %v6255_v43 = vor.u32 %v8303_v34, %v6252_v35  ;;  %v4394_v44 = vpop.f32.mrf.mxu0  ;;  %v7315_v34 = vor.u32 %v8568_v18, %v7312_v19  ;;  %v8483_v35 = vld [vmem:[%s8906_s24 + $0xaf4] sm:$0xf] }
  0xb9   : > { %4645 = vmatpush.bf16.msrb.mxu0 %v6355_v39  ;;  %4614 = vmatmul.bf16.vlgmr.msra.gmra.mxu1 %v9025_v27  ;;  %v8383_v39 = vld [vmem:[%s8906_s24 + $0x7d4] sm:$0xf] }
  0xba   : > { %4658 = vmatpush.bf16.msrb.mxu1 %v6515_v40  ;;  %4627 = vmatmul.bf16.vlgmr.msra.gmra.mxu2 %v9016_v21  ;;  %v6572_v40 = vld [vmem:[%s8906_s24 + $0x7e4] sm:$0xf0] }
  0xbb   : > { %4671 = vmatpush.bf16.msrb.mxu2 %v6675_v41  ;;  %4640 = vmatmul.bf16.vlgmr.msra.gmra.mxu3 %v9020_v23  ;;  %v8423_v41 = vld [vmem:[%s8906_s24 + $0x914] sm:$0xf]  ;;  %v6575_v46 = vor.u32 %v8383_v39, %v6572_v40  ;;  %v7132_v39 = vld [vmem:[%s8906_s24 + $0xc44] sm:$0xf0] }
  0xbc   : > { %4684 = vmatpush.bf16.msrb.mxu3 %v6835_v45  ;;  %v6415_v45 = vor.u32 %v8343_v36, %v6412_v38  ;;  %v4407_v50 = vpop.f32.mrf.mxu1  ;;  %v6972_v36 = vld [vmem:[%s8906_s24 + $0xb04] sm:$0xf0]  ;;  %v7475_v38 = vor.u32 %v8608_v28, %v7472_v29  ;;  %v8563_v40 = vld [vmem:[%s8906_s24 + $0xd74] sm:$0xf]  ;;  %v8588_v28 = vld [vmem:[%s8906_s24 + $0xe3c] sm:$0xf] }
  0xbd   : > { %4646 = vmatpush.bf16.msrb.mxu0 %v6335_v51  ;;  %v6735_v51 = vor.u32 %v8423_v41, %v6732_v42  ;;  %v4408_v55 = vadd.f32 %v4407_v50, %v4394_v44  ;;  %v7292_v41 = vld [vmem:[%s8906_s24 + $0xd84] sm:$0xf0]  ;;  %v8603_v42 = vld [vmem:[%s8906_s24 + $0xeb4] sm:$0xf]  ;;  %v6952_v50 = vld [vmem:[%s8906_s24 + $0xadc] sm:$0xf0] }
  0xbe   : > { %4659 = vmatpush.bf16.msrb.mxu1 %v6495_v52  ;;  %v6392_v52 = vld [vmem:[%s8906_s24 + $0x67c] sm:$0xf0]  ;;  %v7295_v48 = vor.u32 %v8563_v40, %v7292_v41  ;;  %v7392_v29 = vld [vmem:[%s8906_s24 + $0xe4c] sm:$0xf0]  ;;  %v7212_v40 = vld [vmem:[%s8906_s24 + $0xce4] sm:$0xf0] }
  0xbf   : > { %4672 = vmatpush.bf16.msrb.mxu2 %v6655_v53  ;;  %v8378_v53 = vld [vmem:[%s8906_s24 + $0x7ac] sm:$0xf]  ;;  %v6395_v62 = vor.u32 %v8338_v49, %v6392_v52  ;;  %v4420_v6 = vpop.f32.mrf.mxu2 }
  0xc0   : > { %4685 = vmatpush.bf16.msrb.mxu3 %v6815_v57  ;;  %v6712_v57 = vld [vmem:[%s8906_s24 + $0x8fc] sm:$0xf0]  ;;  %v6555_v63 = vor.u32 %v8378_v53, %v6552_v54  ;;  %v4421_v11 = vadd.f32 %v4420_v6, %v4408_v55  ;;  %v4433_v12 = vpop.f32.mrf.mxu3  ;;  %v8478_v49 = vld [vmem:[%s8906_s24 + $0xacc] sm:$0xf]  ;;  %v8553_v6 = vld [vmem:[%s8906_s24 + $0xd24] sm:$0xf] }
  0xc1   : > { %4647 = vmatpush.bf16.msrb.mxu0 %v6315_v0  ;;  %v8333_v0 = vld [vmem:[%s8906_s24 + $0x644] sm:$0xf]  ;;  %v6715_v7 = vor.u32 %v8418_v56, %v6712_v57  ;;  %v7112_v53 = vld [vmem:[%s8906_s24 + $0xc1c] sm:$0xf0]  ;;  %v8558_v54 = vld [vmem:[%s8906_s24 + $0xd4c] sm:$0xf] }
  0xc2   : > { %4660 = vmatpush.bf16.msrb.mxu1 %v6475_v4  ;;  %v6372_v4 = vld [vmem:[%s8906_s24 + $0x654] sm:$0xf0]  ;;  %v9335_v20 = vadd.f32 %v4433_v12, %v4421_v11  ;;  %v7272_v55 = vld [vmem:[%s8906_s24 + $0xd5c] sm:$0xf0]  ;;  %v8598_v56 = vld [vmem:[%s8906_s24 + $0xe8c] sm:$0xf] }
  0xc3   : > { %4673 = vmatpush.bf16.msrb.mxu2 %v6635_v5  ;;  %v8373_v5 = vld [vmem:[%s8906_s24 + $0x784] sm:$0xf]  ;;  %v6375_v25 = vor.u32 %v8333_v0, %v6372_v4  ;;  %v7432_v57 = vld [vmem:[%s8906_s24 + $0xe9c] sm:$0xf0] }
  0xc4   : > { %4686 = vmatpush.bf16.msrb.mxu3 %v6795_v9  ;;  %v8413_v9 = vld [vmem:[%s8906_s24 + $0x8c4] sm:$0xf]  ;;  %v6535_v26 = vor.u32 %v8373_v5, %v6532_v8  ;;  %v4409_v30 = vpop.f32.mrf.mxu1  ;;  %v7435_v4 = vor.u32 %v8598_v56, %v7432_v57  ;;  %v7092_v5 = vld [vmem:[%s8906_s24 + $0xbf4] sm:$0xf0]  ;;  %v8538_v56 = vld [vmem:[%s8906_s24 + $0xcac] sm:$0xf] }
  0xc5   : > { %4648 = vmatpush.bf16.msrb.mxu0 %v6295_v15  ;;  %v8528_v15 = vld [vmem:[%s8906_s24 + $0xc5c] sm:$0xf]  ;;  %v8513_v0 = vld [vmem:[%s8906_s24 + $0xbe4] sm:$0xf]  ;;  %v7192_v57 = vld [vmem:[%s8906_s24 + $0xcbc] sm:$0xf0] }
  0xc6   : > { %4661 = vmatpush.bf16.msrb.mxu1 %v6455_v16  ;;  %v6215_v16 = vor.u32 %v8293_v59, %v6212_v60  ;;  %v7275_v60 = vor.u32 %v8558_v54, %v7272_v55  ;;  %v8593_v8 = vld [vmem:[%s8906_s24 + $0xe64] sm:$0xf]  ;;  %v7095_v12 = vor.u32 %v8513_v0, %v7092_v5  ;;  %v7032_v55 = vld [vmem:[%s8906_s24 + $0xb7c] sm:$0xf0] }
  0xc7   : > { %4674 = vmatpush.bf16.msrb.mxu2 %v6615_v17  ;;  %v7152_v17 = vld [vmem:[%s8906_s24 + $0xc6c] sm:$0xf0]  ;;  %v4422_v44 = vpop.f32.mrf.mxu2  ;;  %v8493_v5 = vld [vmem:[%s8906_s24 + $0xb44] sm:$0xf] }
  0xc8   : > { %4687 = vmatpush.bf16.msrb.mxu3 %v6775_v24  ;;  %v4396_v24 = vpop.f32.mrf.mxu0  ;;  %v7372_v44 = vld [vmem:[%s8906_s24 + $0xe24] sm:$0xf0] }
  0xc9   : > { %4649 = vmatpush.bf16.msrb.mxu0 %v6275_v31  ;;  %v6695_v31 = vor.u32 %v8413_v9, %v6692_v10  ;;  %v7412_v9 = vld [vmem:[%s8906_s24 + $0xe74] sm:$0xf0]  ;;  %v7072_v24 = vld [vmem:[%s8906_s24 + $0xbcc] sm:$0xf0] }
  0xca   : > { %4662 = vmatpush.bf16.msrb.mxu1 %v6435_v32  ;;  %v6995_v32 = vor.u32 %v8488_v13, %v6992_v14  ;;  %v8468_v14 = vld [vmem:[%s8906_s24 + $0xa7c] sm:$0xf]  ;;  %v7415_v19 = vor.u32 %v8593_v8, %v7412_v9 }
  0xcb   : > { %4675 = vmatpush.bf16.msrb.mxu2 %v6595_v33  ;;  %v7155_v33 = vor.u32 %v8528_v15, %v7152_v17  ;;  %v6912_v15 = vld [vmem:[%s8906_s24 + $0xa8c] sm:$0xf0] }
  0xcc   : > { %4688 = vmatpush.bf16.msrb.mxu3 %v6755_v37  ;;  %v8523_v37 = vld [vmem:[%s8906_s24 + $0xc34] sm:$0xf] }
  0xcd   : > { %4650 = vmatpush.bf16.msrb.mxu0 %v6255_v43  ;;  %v7452_v43 = vld [vmem:[%s8906_s24 + $0xec4] sm:$0xf0]  ;;  %v7135_v47 = vor.u32 %v8523_v37, %v7132_v39  ;;  %v7395_v37 = vor.u32 %v8588_v28, %v7392_v29  ;;  %v8543_v39 = vld [vmem:[%s8906_s24 + $0xcd4] sm:$0xf]  ;;  %v8768_v28 = vld [vmem:[%s8906_s24 + $0x13dc] sm:$0xf] }
  0xce   : > { %4663 = vmatpush.bf16.msrb.mxu1 %v6415_v45  ;;  %v6975_v45 = vor.u32 %v8483_v35, %v6972_v36  ;;  %v7455_v52 = vor.u32 %v8603_v42, %v7452_v43  ;;  %v8503_v35 = vld [vmem:[%s8906_s24 + $0xb94] sm:$0xf]  ;;  %v8112_v29 = vld [vmem:[%s8906_s24 + $0x13ec] sm:$0xf0] }
  0xcf   : > { %4676 = vmatpush.bf16.msrb.mxu2 %v6575_v46  ;;  %v4435_v46 = vpop.f32.mrf.mxu3  ;;  %v8583_v43 = vld [vmem:[%s8906_s24 + $0xe14] sm:$0xf] }
  0xd0   : > { %4689 = vmatpush.bf16.msrb.mxu3 %v6735_v51  ;;  %v8518_v51 = vld [vmem:[%s8906_s24 + $0xc0c] sm:$0xf]  ;;  %v7375_v54 = vor.u32 %v8583_v43, %v7372_v44 }
  0xd1   : > { %4651 = vmatpush.bf16.msrb.mxu0 %v6235_v58  ;;  %v6955_v58 = vor.u32 %v8478_v49, %v6952_v50  ;;  %v7115_v59 = vor.u32 %v8518_v51, %v7112_v53  ;;  %v7215_v49 = vor.u32 %v8543_v39, %v7212_v40  ;;  %v8458_v50 = vld [vmem:[%s8906_s24 + $0xa2c] sm:$0xf]  ;;  %v6872_v51 = vld [vmem:[%s8906_s24 + $0xa3c] sm:$0xf0]  ;;  %v7932_v39 = vld [vmem:[%s8906_s24 + $0x1284] sm:$0xf0] }
  0xd2   : > { %4664 = vmatpush.bf16.msrb.mxu1 %v6395_v62  ;;  %v8473_v62 = vld [vmem:[%s8906_s24 + $0xaa4] sm:$0xf]  ;;  %v8763_v40 = vld [vmem:[%s8906_s24 + $0x13b4] sm:$0xf] }
  0xd3   : > { %4677 = vmatpush.bf16.msrb.mxu2 %v6555_v63  ;;  %v6932_v63 = vld [vmem:[%s8906_s24 + $0xab4] sm:$0xf0] }
  0xd4   : > { %4690 = vmatpush.bf16.msrb.mxu3 %v6715_v7  ;;  %v7252_v7 = vld [vmem:[%s8906_s24 + $0xd34] sm:$0xf0]  ;;  %v6935_v10 = vor.u32 %v8473_v62, %v6932_v63  ;;  %v8453_v62 = vld [vmem:[%s8906_s24 + $0xa04] sm:$0xf] }
  0xd5   : > { %4652 = vmatpush.bf16.msrb.mxu0 %v6215_v16  ;;  %v4446_v11 = vpop.f32.mrf.mxu0  ;;  %v7255_v13 = vor.u32 %v8553_v6, %v7252_v7  ;;  %v8508_v16 = vld [vmem:[%s8906_s24 + $0xbbc] sm:$0xf]  ;;  %v6852_v63 = vld [vmem:[%s8906_s24 + $0xa14] sm:$0xf0]  ;;  %v8533_v7 = vld [vmem:[%s8906_s24 + $0xc84] sm:$0xf] }
  0xd6   : > { %4665 = vmatpush.bf16.msrb.mxu1 %v6375_v25  ;;  %v4447_v17 = vadd.f32 %v4446_v11, %v9335_v20  ;;  %v4459_v18 = vpop.f32.mrf.mxu1  ;;  %v8548_v25 = vld [vmem:[%s8906_s24 + $0xcfc] sm:$0xf]  ;;  %v7075_v20 = vor.u32 %v8508_v16, %v7072_v24  ;;  %v7012_v6 = vld [vmem:[%s8906_s24 + $0xb54] sm:$0xf0]  ;;  %v8573_v11 = vld [vmem:[%s8906_s24 + $0xdc4] sm:$0xf] }
  0xd7   : > { %4678 = vmatpush.bf16.msrb.mxu2 %v6535_v26  ;;  %v7232_v26 = vld [vmem:[%s8906_s24 + $0xd0c] sm:$0xf0]  ;;  %v8688_v16 = vld [vmem:[%s8906_s24 + $0x115c] sm:$0xf] }
  0xd8   : > { %4691 = vmatpush.bf16.msrb.mxu3 %v6695_v31  ;;  %4653 = vmatmul.bf16.vlgmr.msrb.gmra.mxu0 %v9057_v1  ;;  %v4460_v30 = vadd.f32 %v4459_v18, %v4447_v17  ;;  %v6915_v31 = vor.u32 %v8468_v14, %v6912_v15  ;;  %v8648_v14 = vld [vmem:[%s8906_s24 + $0x101c] sm:$0xf]  ;;  %v7632_v15 = vld [vmem:[%s8906_s24 + $0x102c] sm:$0xf0]  ;;  %v6855_v17 = vor.u32 %v8453_v62, %v6852_v63  ;;  %v8633_v63 = vld [vmem:[%s8906_s24 + $0xfa4] sm:$0xf] }
  0xd9   : > { %4697 = vmatpush.bf16.msra.mxu0 %v6995_v32  ;;  %4666 = vmatmul.bf16.vlgmr.msrb.gmra.mxu1 %v9061_v3  ;;  %v7235_v32 = vor.u32 %v8548_v25, %v7232_v26  ;;  %v7792_v18 = vld [vmem:[%s8906_s24 + $0x116c] sm:$0xf0]  ;;  %v7015_v25 = vor.u32 %v8493_v5, %v7012_v6  ;;  %v7732_v6 = vld [vmem:[%s8906_s24 + $0x10f4] sm:$0xf0] }
  0xda   : > { %4710 = vmatpush.bf16.msra.mxu1 %v7155_v33  ;;  %4679 = vmatmul.bf16.vlgmr.msrb.gmra.mxu2 %v9054_v61  ;;  %v8463_v33 = vld [vmem:[%s8906_s24 + $0xa54] sm:$0xf]  ;;  %v7952_v24 = vld [vmem:[%s8906_s24 + $0x12ac] sm:$0xf0] }
  0xdb   : > { %4723 = vmatpush.bf16.msra.mxu2 %v7315_v34  ;;  %4692 = vmatmul.bf16.vlgmr.msrb.gmra.mxu3 %v9059_v2  ;;  %v6892_v34 = vld [vmem:[%s8906_s24 + $0xa64] sm:$0xf0] }
  0xdc   : > { %4736 = vmatpush.bf16.msra.mxu3 %v7475_v38  ;;  %v7052_v38 = vld [vmem:[%s8906_s24 + $0xba4] sm:$0xf0] }
  0xdd   : > { %4698 = vmatpush.bf16.msra.mxu0 %v6975_v45  ;;  %v4472_v36 = vpop.f32.mrf.mxu2  ;;  %v6895_v45 = vor.u32 %v8463_v33, %v6892_v34  ;;  %v8643_v33 = vld [vmem:[%s8906_s24 + $0xff4] sm:$0xf]  ;;  %v7612_v34 = vld [vmem:[%s8906_s24 + $0x1004] sm:$0xf0] }
  0xde   : > { %4711 = vmatpush.bf16.msra.mxu1 %v7135_v47  ;;  %v4473_v41 = vadd.f32 %v4472_v36, %v4460_v30  ;;  %v4485_v42 = vpop.f32.mrf.mxu3  ;;  %v4448_v47 = vpop.f32.mrf.mxu0  ;;  %v8115_v36 = vor.u32 %v8768_v28, %v8112_v29  ;;  %v8708_v28 = vld [vmem:[%s8906_s24 + $0x11fc] sm:$0xf] }
  0xdf   : > { %4724 = vmatpush.bf16.msra.mxu2 %v7295_v48  ;;  %v7055_v48 = vor.u32 %v8503_v35, %v7052_v38  ;;  %v4461_v53 = vpop.f32.mrf.mxu1  ;;  %v8683_v35 = vld [vmem:[%s8906_s24 + $0x1134] sm:$0xf]  ;;  %v7592_v47 = vld [vmem:[%s8906_s24 + $0xfdc] sm:$0xf0]  ;;  %v8748_v29 = vld [vmem:[%s8906_s24 + $0x133c] sm:$0xf] }
  0xe0   : > { %4737 = vmatpush.bf16.msra.mxu3 %v7455_v52  ;;  %v9384_v46 = vadd.f32 %v4485_v42, %v4473_v41  ;;  %v8498_v52 = vld [vmem:[%s8906_s24 + $0xb6c] sm:$0xf]  ;;  %v8723_v38 = vld [vmem:[%s8906_s24 + $0x1274] sm:$0xf]  ;;  %v8092_v41 = vld [vmem:[%s8906_s24 + $0x13c4] sm:$0xf0]  ;;  %v7615_v42 = vor.u32 %v8643_v33, %v7612_v34 }
  0xe1   : > { %4699 = vmatpush.bf16.msra.mxu0 %v6955_v58  ;;  %v8578_v58 = vld [vmem:[%s8906_s24 + $0xdec] sm:$0xf]  ;;  %v7035_v0 = vor.u32 %v8498_v52, %v7032_v55  ;;  %v7935_v44 = vor.u32 %v8723_v38, %v7932_v39  ;;  %v7912_v53 = vld [vmem:[%s8906_s24 + $0x125c] sm:$0xf0]  ;;  %v8623_v33 = vld [vmem:[%s8906_s24 + $0xf54] sm:$0xf] }
  0xe2   : > { %4712 = vmatpush.bf16.msra.mxu1 %v7115_v59  ;;  %v7352_v59 = vld [vmem:[%s8906_s24 + $0xdfc] sm:$0xf0]  ;;  %v8718_v52 = vld [vmem:[%s8906_s24 + $0x124c] sm:$0xf]  ;;  %v7532_v34 = vld [vmem:[%s8906_s24 + $0xf64] sm:$0xf0] }
  0xe3   : > { %4725 = vmatpush.bf16.msra.mxu2 %v7275_v60  ;;  %v6875_v60 = vor.u32 %v8458_v50, %v6872_v51  ;;  %v7355_v9 = vor.u32 %v8578_v58, %v7352_v59  ;;  %v8095_v50 = vor.u32 %v8763_v40, %v8092_v41  ;;  %v7752_v51 = vld [vmem:[%s8906_s24 + $0x111c] sm:$0xf0]  ;;  %v8801_v55 = vld [vmem:[#allocation1 + $0x9] sm:$0xff]  ;;  %v7915_v62 = vor.u32 %v8718_v52, %v7912_v53  ;;  %v8703_v39 = vld [vmem:[%s8906_s24 + $0x11d4] sm:$0xf] }
  0xe4   : > { %4738 = vmatpush.bf16.msra.mxu3 %v7435_v4  ;;  %v7195_v4 = vor.u32 %v8538_v56, %v7192_v57  ;;  %v8758_v56 = vld [vmem:[%s8906_s24 + $0x138c] sm:$0xf]  ;;  %v8072_v57 = vld [vmem:[%s8906_s24 + $0x139c] sm:$0xf0]  ;;  %v7692_v38 = vld [vmem:[%s8906_s24 + $0x10a4] sm:$0xf0] }
  0xe5   : > { %4700 = vmatpush.bf16.msra.mxu0 %v6935_v10  ;;  %v4474_v8 = vpop.f32.mrf.mxu2  ;;  %v7172_v10 = vld [vmem:[%s8906_s24 + $0xc94] sm:$0xf0]  ;;  %v8075_v5 = vor.u32 %v8758_v56, %v8072_v57  ;;  %v7852_v40 = vld [vmem:[%s8906_s24 + $0x11e4] sm:$0xf0]  ;;  %v8618_v52 = vld [vmem:[%s8906_s24 + $0xf2c] sm:$0xf] }
  0xe6   : > { %4713 = vmatpush.bf16.msra.mxu1 %v7095_v12  ;;  %v7332_v12 = vld [vmem:[%s8906_s24 + $0xdd4] sm:$0xf0]  ;;  %v7175_v26 = vor.u32 %v8533_v7, %v7172_v10  ;;  %v8713_v7 = vld [vmem:[%s8906_s24 + $0x1224] sm:$0xf]  ;;  %v7512_v53 = vld [vmem:[%s8906_s24 + $0xf3c] sm:$0xf0] }
  0xe7   : > { %4726 = vmatpush.bf16.msra.mxu2 %v7255_v13  ;;  %v4487_v13 = vpop.f32.mrf.mxu3  ;;  %v7335_v30 = vor.u32 %v8573_v11, %v7332_v12  ;;  %v8802_v58 = vld [vmem:[#allocation1 + $0x1b] sm:$0xff]  ;;  %v8753_v10 = vld [vmem:[%s8906_s24 + $0x1364] sm:$0xf]  ;;  %v8698_v57 = vld [vmem:[%s8906_s24 + $0x11ac] sm:$0xf] }
  0xe8   : > { %4739 = vmatpush.bf16.msra.mxu3 %v7415_v19  ;;  %v8728_v19 = vld [vmem:[%s8906_s24 + $0x129c] sm:$0xf]  ;;  %v7892_v8 = vld [vmem:[%s8906_s24 + $0x1234] sm:$0xf0]  ;;  %v7672_v56 = vld [vmem:[%s8906_s24 + $0x107c] sm:$0xf0] }
  0xe9   : > { %4701 = vmatpush.bf16.msra.mxu0 %v6915_v31  ;;  %v7635_v31 = vor.u32 %v8648_v14, %v7632_v15  ;;  %v8052_v11 = vld [vmem:[%s8906_s24 + $0x1374] sm:$0xf0] }
  0xea   : > { %4714 = vmatpush.bf16.msra.mxu1 %v7075_v20  ;;  %v7795_v20 = vor.u32 %v8688_v16, %v7792_v18  ;;  %v7895_v16 = vor.u32 %v8713_v7, %v7892_v8  ;;  %v7552_v18 = vld [vmem:[%s8906_s24 + $0xf8c] sm:$0xf0]  ;;  %v7652_v7 = vld [vmem:[%s8906_s24 + $0x1054] sm:$0xf0]  ;;  %v8693_v8 = vld [vmem:[%s8906_s24 + $0x1184] sm:$0xf] }
  0xeb   : > { %4727 = vmatpush.bf16.msra.mxu2 %v7235_v32  ;;  %v7955_v32 = vor.u32 %v8728_v19, %v7952_v24  ;;  %v8668_v19 = vld [vmem:[%s8906_s24 + $0x10bc] sm:$0xf]  ;;  %v8055_v24 = vor.u32 %v8753_v10, %v8052_v11  ;;  %v7812_v10 = vld [vmem:[%s8906_s24 + $0x1194] sm:$0xf0]  ;;  %v8733_v11 = vld [vmem:[%s8906_s24 + $0x12c4] sm:$0xf] }
  0xec   : > { %4740 = vmatpush.bf16.msra.mxu3 %v7395_v37  ;;  %v7772_v37 = vld [vmem:[%s8906_s24 + $0x1144] sm:$0xf0] }
  0xed   : > { %4702 = vmatpush.bf16.msra.mxu0 %v6895_v45  ;;  %v7775_v43 = vor.u32 %v8683_v35, %v7772_v37  ;;  %v8638_v45 = vld [vmem:[%s8906_s24 + $0xfcc] sm:$0xf]  ;;  %v8663_v35 = vld [vmem:[%s8906_s24 + $0x1094] sm:$0xf] }
  0xee   : > { %4715 = vmatpush.bf16.msra.mxu1 %v7055_v48  ;;  %v8678_v48 = vld [vmem:[%s8906_s24 + $0x110c] sm:$0xf]  ;;  %v7595_v59 = vor.u32 %v8638_v45, %v7592_v47  ;;  %v7535_v47 = vor.u32 %v8623_v33, %v7532_v34  ;;  %v5698_v33 = vld [vmem:[%s8906_s24 + $0xf8] sm:$0xf] }
  0xef   : > { %4728 = vmatpush.bf16.msra.mxu2 %v7215_v49  ;;  %v8799_v49 = vld [vmem:[#allocation1] sm:$0xff]  ;;  %v8166_v34 = vld [vmem:[%s8906_s24 + $0x108] sm:$0xf0] }
  0xf0   : > { %4741 = vmatpush.bf16.msra.mxu3 %v7375_v54  ;;  %v8800_v54 = vld [vmem:[#allocation1 + $0x12] sm:$0xff] }
  0xf1   : > { %4703 = vmatpush.bf16.msra.mxu0 %v6875_v60  ;;  %v7755_v60 = vor.u32 %v8678_v48, %v7752_v51  ;;  %v7855_v51 = vor.u32 %v8703_v39, %v7852_v40  ;;  %v8246_v39 = vld [vmem:[%s8906_s24 + $0x388] sm:$0xf0]  ;;  %v6178_v40 = vld [vmem:[%s8906_s24 + $0x4b8] sm:$0xf] }
  0xf2   : > { %4716 = vmatpush.bf16.msra.mxu1 %v7035_v0  ;;  %v7572_v0 = vld [vmem:[%s8906_s24 + $0xfb4] sm:$0xf0] }
  0xf3   : > { %4729 = vmatpush.bf16.msra.mxu2 %v7195_v4  ;;  %v8673_v4 = vld [vmem:[%s8906_s24 + $0x10e4] sm:$0xf]  ;;  %v7575_v13 = vor.u32 %v8633_v63, %v7572_v0  ;;  %v7492_v0 = vld [vmem:[%s8906_s24 + $0xf14] sm:$0xf0] }
  0xf4   : > { %4742 = vmatpush.bf16.msra.mxu3 %v7355_v9  ;;  %v7735_v15 = vor.u32 %v8673_v4, %v7732_v6  ;;  %v8613_v63 = vld [vmem:[%s8906_s24 + $0xf04] sm:$0xf] }
  0xf5   : > { %4704 = vmatpush.bf16.msra.mxu0 %v6855_v17  ;;  %v4498_v9 = vpop.f32.mrf.mxu0  ;;  %v8628_v17 = vld [vmem:[%s8906_s24 + $0xf7c] sm:$0xf]  ;;  %v8653_v6 = vld [vmem:[%s8906_s24 + $0x1044] sm:$0xf] }
  0xf6   : > { %4717 = vmatpush.bf16.msra.mxu1 %v7015_v25  ;;  %v4499_v12 = vadd.f32 %v4498_v9, %v9384_v46  ;;  %v4511_v14 = vpop.f32.mrf.mxu1  ;;  %v7872_v46 = vld [vmem:[%s8906_s24 + $0x120c] sm:$0xf0] }
  0xf7   : > { %4730 = vmatpush.bf16.msra.mxu2 %v7175_v26  ;;  %v7712_v26 = vld [vmem:[%s8906_s24 + $0x10cc] sm:$0xf0] }
  0xf8   : > { %4743 = vmatpush.bf16.msra.mxu3 %v7335_v30  ;;  %4705 = vmatmul.bf16.vlgmr.msra.gmra.mxu0 %v8799_v49  ;;  %v4512_v25 = vadd.f32 %v4511_v14, %v4499_v12  ;;  %v8032_v30 = vld [vmem:[%s8906_s24 + $0x134c] sm:$0xf0]  ;;  %v7972_v12 = vld [vmem:[%s8906_s24 + $0x12d4] sm:$0xf0]  ;;  %v5718_v14 = vld [vmem:[%s8906_s24 + $0x120] sm:$0xf] }
  0xf9   : > { %4749 = vmatpush.bf16.msrb.mxu0 %v7635_v31  ;;  %4718 = vmatmul.bf16.vlgmr.msra.gmra.mxu1 %v8801_v55  ;;  %v7555_v31 = vor.u32 %v8628_v17, %v7552_v18  ;;  %v7495_v18 = vor.u32 %v8613_v63, %v7492_v0  ;;  %v5658_v0 = vld [vmem:[%s8906_s24 + $0xa8] sm:$0xf] }
  0xfa   : > { %4762 = vmatpush.bf16.msrb.mxu1 %v7795_v20  ;;  %4731 = vmatmul.bf16.vlgmr.msra.gmra.mxu2 %v8800_v54  ;;  %v7715_v20 = vor.u32 %v8668_v19, %v7712_v26  ;;  %v8658_v54 = vld [vmem:[%s8906_s24 + $0x106c] sm:$0xf]  ;;  %v8211_v19 = vld [vmem:[%s8906_s24 + $0x270] sm:$0xf0]  ;;  %v7655_v26 = vor.u32 %v8653_v6, %v7652_v7  ;;  %v8196_v7 = vld [vmem:[%s8906_s24 + $0x1f8] sm:$0xf0] }
  0xfb   : > { %4775 = vmatpush.bf16.msrb.mxu2 %v7955_v32  ;;  %4744 = vmatmul.bf16.vlgmr.msra.gmra.mxu3 %v8802_v58  ;;  %v7875_v32 = vor.u32 %v8708_v28, %v7872_v46  ;;  %v7832_v58 = vld [vmem:[%s8906_s24 + $0x11bc] sm:$0xf0]  ;;  %v7675_v4 = vor.u32 %v8658_v54, %v7672_v56  ;;  %v7815_v28 = vor.u32 %v8693_v8, %v7812_v10  ;;  %v8241_v54 = vld [vmem:[%s8906_s24 + $0x360] sm:$0xf0]  ;;  %v8805_v56 = vld [vmem:[#allocation1 + $0x2d] sm:$0xff] }
  0xfc   : > { %4788 = vmatpush.bf16.msrb.mxu3 %v8115_v36  ;;  %v8035_v36 = vor.u32 %v8748_v29, %v8032_v30  ;;  %v6198_v46 = vld [vmem:[%s8906_s24 + $0x4e0] sm:$0xf]  ;;  %v8291_v29 = vld [vmem:[%s8906_s24 + $0x4f0] sm:$0xf0]  ;;  %v7975_v30 = vor.u32 %v8733_v11, %v7972_v12  ;;  %v5978_v8 = vld [vmem:[%s8906_s24 + $0x328] sm:$0xf] }
  0xfd   : > { %4750 = vmatpush.bf16.msrb.mxu0 %v7615_v42  ;;  %v4524_v37 = vpop.f32.mrf.mxu2  ;;  %v4500_v45 = vpop.f32.mrf.mxu0  ;;  %v6138_v11 = vld [vmem:[%s8906_s24 + $0x468] sm:$0xf]  ;;  %v8276_v12 = vld [vmem:[%s8906_s24 + $0x478] sm:$0xf0] }
  0xfe   : > { %4763 = vmatpush.bf16.msrb.mxu1 %v7775_v43  ;;  %v4525_v41 = vadd.f32 %v4524_v37, %v4512_v25  ;;  %v4537_v42 = vpop.f32.mrf.mxu3  ;;  %v8743_v43 = vld [vmem:[%s8906_s24 + $0x1314] sm:$0xf]  ;;  %v4513_v48 = vpop.f32.mrf.mxu1  ;;  %v8206_v37 = vld [vmem:[%s8906_s24 + $0x248] sm:$0xf0]  ;;  %v5678_v45 = vld [vmem:[%s8906_s24 + $0xd0] sm:$0xf] }
  0xff   : > { %4776 = vmatpush.bf16.msrb.mxu2 %v7935_v44  ;;  %v8012_v44 = vld [vmem:[%s8906_s24 + $0x1324] sm:$0xf0]  ;;  %v8251_v25 = vld [vmem:[%s8906_s24 + $0x3b0] sm:$0xf0]  ;;  %v5838_v48 = vld [vmem:[%s8906_s24 + $0x210] sm:$0xf] }
 0x100   : > { %4789 = vmatpush.bf16.msrb.mxu3 %v8095_v50  ;;  %v9451_v49 = vadd.f32 %v4537_v42, %v4525_v41  ;;  %v7695_v50 = vor.u32 %v8663_v35, %v7692_v38  ;;  %v8015_v55 = vor.u32 %v8743_v43, %v8012_v44  ;;  %v5858_v35 = vld [vmem:[%s8906_s24 + $0x238] sm:$0xf]  ;;  %v8286_v41 = vld [vmem:[%s8906_s24 + $0x4c8] sm:$0xf0]  ;;  %v5699_v42 = vor.u32 %v8166_v34, %v5698_v33 }
 0x101   : > { %4751 = vmatpush.bf16.msrb.mxu0 %v7595_v59  ;;  %v8738_v59 = vld [vmem:[%s8906_s24 + $0x12ec] sm:$0xf]  ;;  %v6018_v38 = vld [vmem:[%s8906_s24 + $0x378] sm:$0xf]  ;;  %v5859_v43 = vor.u32 %v8206_v37, %v5858_v35 }
 0x102   : > { %4764 = vmatpush.bf16.msrb.mxu1 %v7755_v60  ;;  %v7992_v60 = vld [vmem:[%s8906_s24 + $0x12fc] sm:$0xf0]  ;;  %v6019_v44 = vor.u32 %v8246_v39, %v6018_v38  ;;  %v5618_v33 = vld [vmem:[%s8906_s24 + $0x58] sm:$0xf]  ;;  %v8146_v34 = vld [vmem:[%s8906_s24 + $0x68] sm:$0xf0] }
 0x103   : > { %4777 = vmatpush.bf16.msrb.mxu2 %v7915_v62  ;;  %v7515_v62 = vor.u32 %v8618_v52, %v7512_v53  ;;  %v7995_v9 = vor.u32 %v8738_v59, %v7992_v60  ;;  %v8201_v52 = vld [vmem:[%s8906_s24 + $0x220] sm:$0xf0]  ;;  %v5998_v53 = vld [vmem:[%s8906_s24 + $0x350] sm:$0xf]  ;;  %v5778_v35 = vld [vmem:[%s8906_s24 + $0x198] sm:$0xf] }
 0x104   : > { %4790 = vmatpush.bf16.msrb.mxu3 %v8075_v5  ;;  %v7835_v5 = vor.u32 %v8698_v57, %v7832_v58  ;;  %v6158_v57 = vld [vmem:[%s8906_s24 + $0x490] sm:$0xf]  ;;  %v8281_v58 = vld [vmem:[%s8906_s24 + $0x4a0] sm:$0xf0]  ;;  %v5999_v63 = vor.u32 %v8241_v54, %v5998_v53  ;;  %v8186_v38 = vld [vmem:[%s8906_s24 + $0x1a8] sm:$0xf0] }
 0x105   : > { %4752 = vmatpush.bf16.msrb.mxu0 %v7575_v13  ;;  %v4526_v13 = vpop.f32.mrf.mxu2  ;;  %v8806_v59 = vld [vmem:[#allocation1 + $0x3f] sm:$0xff]  ;;  %v6159_v6 = vor.u32 %v8281_v58, %v6158_v57  ;;  %v5938_v39 = vld [vmem:[%s8906_s24 + $0x2d8] sm:$0xf]  ;;  %v5598_v53 = vld [vmem:[%s8906_s24 + $0x30] sm:$0xf] }
 0x106   : > { %4765 = vmatpush.bf16.msrb.mxu1 %v7735_v15  ;;  %v8171_v15 = vld [vmem:[%s8906_s24 + $0x130] sm:$0xf0]  ;;  %v4539_v17 = vpop.f32.mrf.mxu3  ;;  %v8141_v54 = vld [vmem:[%s8906_s24 + $0x40] sm:$0xf0]  ;;  %v5918_v58 = vld [vmem:[%s8906_s24 + $0x2b0] sm:$0xf] }
 0x107   : > { %4778 = vmatpush.bf16.msrb.mxu2 %v7895_v16  ;;  %v5878_v16 = vld [vmem:[%s8906_s24 + $0x260] sm:$0xf]  ;;  %v8181_v57 = vld [vmem:[%s8906_s24 + $0x180] sm:$0xf0] }
 0x108   : > { %4791 = vmatpush.bf16.msrb.mxu3 %v8055_v24  ;;  %v6038_v24 = vld [vmem:[%s8906_s24 + $0x3a0] sm:$0xf] }
 0x109   : > { %4753 = vmatpush.bf16.msrb.mxu0 %v7555_v31  ;;  %v5719_v31 = vor.u32 %v8171_v15, %v5718_v14 }
 0x10a   : > { %4766 = vmatpush.bf16.msrb.mxu1 %v7715_v20  ;;  %v5879_v20 = vor.u32 %v8211_v19, %v5878_v16  ;;  %v8151_v19 = vld [vmem:[%s8906_s24 + $0x90] sm:$0xf0] }
 0x10b   : > { %4779 = vmatpush.bf16.msrb.mxu2 %v7875_v32  ;;  %v6039_v32 = vor.u32 %v8251_v25, %v6038_v24  ;;  %v5798_v24 = vld [vmem:[%s8906_s24 + $0x1c0] sm:$0xf]  ;;  %v6139_v25 = vor.u32 %v8276_v12, %v6138_v11  ;;  %v8216_v11 = vld [vmem:[%s8906_s24 + $0x298] sm:$0xf0]  ;;  %v6058_v12 = vld [vmem:[%s8906_s24 + $0x3c8] sm:$0xf] }
 0x10c   : > { %4792 = vmatpush.bf16.msrb.mxu3 %v8035_v36  ;;  %v6199_v36 = vor.u32 %v8291_v29, %v6198_v46  ;;  %v5958_v46 = vld [vmem:[%s8906_s24 + $0x300] sm:$0xf] }
 0x10d   : > { %4754 = vmatpush.bf16.msrb.mxu0 %v7535_v47  ;;  %v8161_v47 = vld [vmem:[%s8906_s24 + $0xe0] sm:$0xf0]  ;;  %v6118_v29 = vld [vmem:[%s8906_s24 + $0x440] sm:$0xf] }
 0x10e   : > { %4767 = vmatpush.bf16.msrb.mxu1 %v7695_v50  ;;  %v8803_v50 = vld [vmem:[#allocation1 + $0x24] sm:$0xff]  ;;  %v5679_v60 = vor.u32 %v8161_v47, %v5678_v45  ;;  %v5619_v47 = vor.u32 %v8146_v34, %v5618_v33  ;;  %v6338_v33 = vld [vmem:[%s8906_s24 + $0x5f8] sm:$0xf]  ;;  %v8326_v34 = vld [vmem:[%s8906_s24 + $0x608] sm:$0xf0] }
 0x10f   : > { %4780 = vmatpush.bf16.msrb.mxu2 %v7855_v51  ;;  %v6179_v51 = vor.u32 %v8286_v41, %v6178_v40  ;;  %v8226_v40 = vld [vmem:[%s8906_s24 + $0x2e8] sm:$0xf0] }
 0x110   : > { %4793 = vmatpush.bf16.msrb.mxu3 %v8015_v55  ;;  %v8804_v55 = vld [vmem:[#allocation1 + $0x36] sm:$0xff] }
 0x111   : > { %4755 = vmatpush.bf16.msrb.mxu0 %v7515_v62  ;;  %v5839_v62 = vor.u32 %v8201_v52, %v5838_v48  ;;  %v5939_v52 = vor.u32 %v8226_v40, %v5938_v39  ;;  %v8406_v39 = vld [vmem:[%s8906_s24 + $0x888] sm:$0xf0]  ;;  %v6818_v40 = vld [vmem:[%s8906_s24 + $0x9b8] sm:$0xf] }
 0x112   : > { %4768 = vmatpush.bf16.msrb.mxu1 %v7675_v4  ;;  %v8156_v4 = vld [vmem:[%s8906_s24 + $0xb8] sm:$0xf0] }
 0x113   : > { %4781 = vmatpush.bf16.msrb.mxu2 %v7835_v5  ;;  %v5818_v5 = vld [vmem:[%s8906_s24 + $0x1e8] sm:$0xf]  ;;  %v5659_v14 = vor.u32 %v8156_v4, %v5658_v0  ;;  %v8136_v4 = vld [vmem:[%s8906_s24 + $0x18] sm:$0xf0] }
 0x114   : > { %4794 = vmatpush.bf16.msrb.mxu3 %v7995_v9  ;;  %v8236_v9 = vld [vmem:[%s8906_s24 + $0x338] sm:$0xf0]  ;;  %v5819_v16 = vor.u32 %v8196_v7, %v5818_v5  ;;  %v5578_v0 = vld [vmem:[%s8906_s24 + $0x8] sm:$0xf] }
 0x115   : > { %4756 = vmatpush.bf16.msrb.mxu0 %v7495_v18  ;;  %v4550_v10 = vpop.f32.mrf.mxu0  ;;  %v5979_v17 = vor.u32 %v8236_v9, %v5978_v8  ;;  %v5638_v18 = vld [vmem:[%s8906_s24 + $0x80] sm:$0xf]  ;;  %v5738_v7 = vld [vmem:[%s8906_s24 + $0x148] sm:$0xf]  ;;  %v8176_v8 = vld [vmem:[%s8906_s24 + $0x158] sm:$0xf0] }
 0x116   : > { %4769 = vmatpush.bf16.msrb.mxu1 %v7655_v26  ;;  %v4551_v13 = vadd.f32 %v4550_v10, %v9451_v49  ;;  %v4563_v15 = vpop.f32.mrf.mxu1  ;;  %v8231_v49 = vld [vmem:[%s8906_s24 + $0x310] sm:$0xf0]  ;;  %v5898_v9 = vld [vmem:[%s8906_s24 + $0x288] sm:$0xf] }
 0x117   : > { %4782 = vmatpush.bf16.msrb.mxu2 %v7815_v28  ;;  %v8191_v28 = vld [vmem:[%s8906_s24 + $0x1d0] sm:$0xf0] }
 0x118   : > { %4795 = vmatpush.bf16.msrb.mxu3 %v7975_v30  ;;  %4757 = vmatmul.bf16.vlgmr.msrb.gmra.mxu0 %v8803_v50  ;;  %v4564_v26 = vadd.f32 %v4563_v15, %v4551_v13  ;;  %v8271_v30 = vld [vmem:[%s8906_s24 + $0x450] sm:$0xf0]  ;;  %v8256_v13 = vld [vmem:[%s8906_s24 + $0x3d8] sm:$0xf0]  ;;  %v6358_v15 = vld [vmem:[%s8906_s24 + $0x620] sm:$0xf] }
 0x119   : > { %4801 = vmatpush.bf16.msra.mxu0 %v5719_v31  ;;  %4770 = vmatmul.bf16.vlgmr.msrb.gmra.mxu1 %v8805_v56  ;;  %v5639_v31 = vor.u32 %v8151_v19, %v5638_v18  ;;  %v5579_v19 = vor.u32 %v8136_v4, %v5578_v0  ;;  %v8356_v4 = vld [vmem:[%s8906_s24 + $0x6f8] sm:$0xf0] }
 0x11a   : > { %4814 = vmatpush.bf16.msra.mxu1 %v5879_v20  ;;  %4783 = vmatmul.bf16.vlgmr.msrb.gmra.mxu2 %v8804_v55  ;;  %v5799_v20 = vor.u32 %v8191_v28, %v5798_v24  ;;  %v5758_v55 = vld [vmem:[%s8906_s24 + $0x170] sm:$0xf]  ;;  %v8371_v24 = vld [vmem:[%s8906_s24 + $0x770] sm:$0xf0]  ;;  %v5739_v28 = vor.u32 %v8176_v8, %v5738_v7  ;;  %v6778_v7 = vld [vmem:[%s8906_s24 + $0x968] sm:$0xf] }
 0x11b   : > { %4827 = vmatpush.bf16.msra.mxu2 %v6039_v32  ;;  %4796 = vmatmul.bf16.vlgmr.msrb.gmra.mxu3 %v8806_v59  ;;  %v5959_v32 = vor.u32 %v8231_v49, %v5958_v46  ;;  %v8221_v59 = vld [vmem:[%s8906_s24 + $0x2c0] sm:$0xf0]  ;;  %v5759_v5 = vor.u32 %v8181_v57, %v5758_v55  ;;  %v5899_v46 = vor.u32 %v8216_v11, %v5898_v9  ;;  %v6838_v49 = vld [vmem:[%s8906_s24 + $0x9e0] sm:$0xf]  ;;  %v6798_v55 = vld [vmem:[%s8906_s24 + $0x990] sm:$0xf] }
 0x11c   : > { %4840 = vmatpush.bf16.msra.mxu3 %v6199_v36  ;;  %v6119_v36 = vor.u32 %v8271_v30, %v6118_v29  ;;  %v8451_v29 = vld [vmem:[%s8906_s24 + $0x9f0] sm:$0xf0]  ;;  %v6059_v30 = vor.u32 %v8256_v13, %v6058_v12  ;;  %v8436_v8 = vld [vmem:[%s8906_s24 + $0x978] sm:$0xf0]  ;;  %v6278_v13 = vld [vmem:[%s8906_s24 + $0x580] sm:$0xf] }
 0x11d   : > { %4802 = vmatpush.bf16.msra.mxu0 %v5699_v42  ;;  %v4576_v37 = vpop.f32.mrf.mxu2  ;;  %v4552_v45 = vpop.f32.mrf.mxu0 }
 0x11e   : > { %4815 = vmatpush.bf16.msra.mxu1 %v5859_v43  ;;  %v4577_v41 = vadd.f32 %v4576_v37, %v4564_v26  ;;  %v4589_v42 = vpop.f32.mrf.mxu3  ;;  %v6098_v43 = vld [vmem:[%s8906_s24 + $0x418] sm:$0xf]  ;;  %v4565_v48 = vpop.f32.mrf.mxu1  ;;  %v8411_v26 = vld [vmem:[%s8906_s24 + $0x8b0] sm:$0xf0]  ;;  %v8366_v37 = vld [vmem:[%s8906_s24 + $0x748] sm:$0xf0] }
 0x11f   : > { %4828 = vmatpush.bf16.msra.mxu2 %v6019_v44  ;;  %v8266_v44 = vld [vmem:[%s8906_s24 + $0x428] sm:$0xf0]  ;;  %v6318_v45 = vld [vmem:[%s8906_s24 + $0x5d0] sm:$0xf] }
 0x120   : > { %4841 = vmatpush.bf16.msra.mxu3 %v6179_v51  ;;  %v9518_v50 = vadd.f32 %v4589_v42, %v4577_v41  ;;  %v5779_v51 = vor.u32 %v8186_v38, %v5778_v35  ;;  %v6099_v56 = vor.u32 %v8266_v44, %v6098_v43  ;;  %v6498_v35 = vld [vmem:[%s8906_s24 + $0x738] sm:$0xf]  ;;  %v8446_v41 = vld [vmem:[%s8906_s24 + $0x9c8] sm:$0xf0]  ;;  %v6339_v42 = vor.u32 %v8326_v34, %v6338_v33  ;;  %v6478_v48 = vld [vmem:[%s8906_s24 + $0x710] sm:$0xf] }
 0x121   : > { %4803 = vmatpush.bf16.msra.mxu0 %v5679_v60  ;;  %v6078_v60 = vld [vmem:[%s8906_s24 + $0x3f0] sm:$0xf]  ;;  %v6658_v38 = vld [vmem:[%s8906_s24 + $0x878] sm:$0xf]  ;;  %v6499_v43 = vor.u32 %v8366_v37, %v6498_v35  ;;  %v8346_v34 = vld [vmem:[%s8906_s24 + $0x6a8] sm:$0xf0] }
 0x122   : > { %4816 = vmatpush.bf16.msra.mxu1 %v5839_v62  ;;  %v8261_v62 = vld [vmem:[%s8906_s24 + $0x400] sm:$0xf0]  ;;  %v6659_v44 = vor.u32 %v8406_v39, %v6658_v38  ;;  %v6578_v35 = vld [vmem:[%s8906_s24 + $0x7d8] sm:$0xf] }
 0x123   : > { %4829 = vmatpush.bf16.msra.mxu2 %v5999_v63  ;;  %v5599_v63 = vor.u32 %v8141_v54, %v5598_v53  ;;  %v6079_v10 = vor.u32 %v8261_v62, %v6078_v60  ;;  %v6638_v53 = vld [vmem:[%s8906_s24 + $0x850] sm:$0xf]  ;;  %v8401_v54 = vld [vmem:[%s8906_s24 + $0x860] sm:$0xf0]  ;;  %v6298_v60 = vld [vmem:[%s8906_s24 + $0x5a8] sm:$0xf] }
 0x124   : > { %4842 = vmatpush.bf16.msra.mxu3 %v6159_v6  ;;  %v5919_v6 = vor.u32 %v8221_v59, %v5918_v58  ;;  %v6639_v59 = vor.u32 %v8401_v54, %v6638_v53  ;;  %v8316_v62 = vld [vmem:[%s8906_s24 + $0x5b8] sm:$0xf0]  ;;  %v6738_v39 = vld [vmem:[%s8906_s24 + $0x918] sm:$0xf]  ;;  %v8341_v54 = vld [vmem:[%s8906_s24 + $0x680] sm:$0xf0] }
 0x125   : > { %4804 = vmatpush.bf16.msra.mxu0 %v5659_v14  ;;  %v4578_v14 = vpop.f32.mrf.mxu2  ;;  %v6299_v9 = vor.u32 %v8316_v62, %v6298_v60  ;;  %v6218_v60 = vld [vmem:[%s8906_s24 + $0x508] sm:$0xf]  ;;  %v8296_v62 = vld [vmem:[%s8906_s24 + $0x518] sm:$0xf0] }
 0x126   : > { %4817 = vmatpush.bf16.msra.mxu1 %v5819_v16  ;;  %v8331_v16 = vld [vmem:[%s8906_s24 + $0x630] sm:$0xf0]  ;;  %v4591_v18 = vpop.f32.mrf.mxu3 }
 0x127   : > { %4830 = vmatpush.bf16.msra.mxu2 %v5979_v17  ;;  %v6518_v17 = vld [vmem:[%s8906_s24 + $0x760] sm:$0xf]  ;;  %v8311_v14 = vld [vmem:[%s8906_s24 + $0x590] sm:$0xf0] }
 0x128   : > { %4843 = vmatpush.bf16.msra.mxu3 %v6139_v25  ;;  %v6678_v25 = vld [vmem:[%s8906_s24 + $0x8a0] sm:$0xf]  ;;  %v8351_v18 = vld [vmem:[%s8906_s24 + $0x6d0] sm:$0xf0] }
 0x129   : > { %4805 = vmatpush.bf16.msra.mxu0 %v5639_v31  ;;  %v6359_v31 = vor.u32 %v8331_v16, %v6358_v15  ;;  %v6438_v15 = vld [vmem:[%s8906_s24 + $0x6c0] sm:$0xf] }
 0x12a   : > { %4818 = vmatpush.bf16.msra.mxu1 %v5799_v20  ;;  %v6519_v20 = vor.u32 %v8371_v24, %v6518_v17  ;;  %v6779_v17 = vor.u32 %v8436_v8, %v6778_v7  ;;  %v8391_v24 = vld [vmem:[%s8906_s24 + $0x810] sm:$0xf0] }
 0x12b   : > { %4831 = vmatpush.bf16.msra.mxu2 %v5959_v32  ;;  %v6679_v32 = vor.u32 %v8411_v26, %v6678_v25  ;;  %v6758_v26 = vld [vmem:[%s8906_s24 + $0x940] sm:$0xf] }
 0x12c   : > { %4844 = vmatpush.bf16.msra.mxu3 %v6119_v36  ;;  %v6839_v36 = vor.u32 %v8451_v29, %v6838_v49  ;;  %v6439_v49 = vor.u32 %v8351_v18, %v6438_v15  ;;  %v7158_v15 = vld [vmem:[%s8906_s24 + $0xc60] sm:$0xf] }
 0x12d   : > { %4806 = vmatpush.bf16.msra.mxu0 %v5619_v47  ;;  %v8321_v47 = vld [vmem:[%s8906_s24 + $0x5e0] sm:$0xf0]  ;;  %v7318_v18 = vld [vmem:[%s8906_s24 + $0xda0] sm:$0xf] }
 0x12e   : > { %4819 = vmatpush.bf16.msra.mxu1 %v5779_v51  ;;  %v6819_v51 = vor.u32 %v8446_v41, %v6818_v40  ;;  %v6319_v57 = vor.u32 %v8321_v47, %v6318_v45  ;;  %v8426_v40 = vld [vmem:[%s8906_s24 + $0x928] sm:$0xf0]  ;;  %v6238_v47 = vld [vmem:[%s8906_s24 + $0x530] sm:$0xf] }
 0x12f   : > { %4832 = vmatpush.bf16.msra.mxu2 %v5939_v52  ;;  %v8361_v52 = vld [vmem:[%s8906_s24 + $0x720] sm:$0xf0]  ;;  %v6739_v53 = vor.u32 %v8426_v40, %v6738_v39 }
 0x130   : > { %4845 = vmatpush.bf16.msra.mxu3 %v6099_v56  ;;  %v8441_v56 = vld [vmem:[%s8906_s24 + $0x9a0] sm:$0xf0]  ;;  %v6479_v58 = vor.u32 %v8361_v52, %v6478_v48 }
 0x131   : > { %4807 = vmatpush.bf16.msra.mxu0 %v5599_v63  ;;  %v6458_v63 = vld [vmem:[%s8906_s24 + $0x6e8] sm:$0xf]  ;;  %v6799_v0 = vor.u32 %v8441_v56, %v6798_v55  ;;  %v8301_v48 = vld [vmem:[%s8906_s24 + $0x540] sm:$0xf0]  ;;  %v6558_v55 = vld [vmem:[%s8906_s24 + $0x7b0] sm:$0xf] }
 0x132   : > { %4820 = vmatpush.bf16.msra.mxu1 %v5759_v5  ;;  %v6618_v5 = vld [vmem:[%s8906_s24 + $0x828] sm:$0xf]  ;;  %v6459_v11 = vor.u32 %v8356_v4, %v6458_v63  ;;  %v8381_v56 = vld [vmem:[%s8906_s24 + $0x7c0] sm:$0xf0] }
 0x133   : > { %4833 = vmatpush.bf16.msra.mxu2 %v5919_v6  ;;  %v8396_v6 = vld [vmem:[%s8906_s24 + $0x838] sm:$0xf0]  ;;  %v6378_v4 = vld [vmem:[%s8906_s24 + $0x648] sm:$0xf] }
 0x134   : > { %4846 = vmatpush.bf16.msra.mxu3 %v6079_v10  ;;  %v6619_v12 = vor.u32 %v8396_v6, %v6618_v5  ;;  %v8336_v5 = vld [vmem:[%s8906_s24 + $0x658] sm:$0xf0]  ;;  %v6538_v6 = vld [vmem:[%s8906_s24 + $0x788] sm:$0xf] }
 0x135   : > { %4808 = vmatpush.bf16.msra.mxu0 %v5579_v19  ;;  %v4602_v10 = vpop.f32.mrf.mxu0  ;;  %v6598_v19 = vld [vmem:[%s8906_s24 + $0x800] sm:$0xf] }
 0x136   : > { %4821 = vmatpush.bf16.msra.mxu1 %v5739_v28  ;;  %v4615_v16 = vpop.f32.mrf.mxu1  ;;  %v8431_v28 = vld [vmem:[%s8906_s24 + $0x950] sm:$0xf0]  ;;  %v6599_v29 = vor.u32 %v8391_v24, %v6598_v19  ;;  %v6379_v24 = vor.u32 %v8336_v5, %v6378_v4  ;;  %v8556_v4 = vld [vmem:[%s8906_s24 + $0xd38] sm:$0xf0]  ;;  %v7418_v5 = vld [vmem:[%s8906_s24 + $0xe68] sm:$0xf] }
 0x137   : > { %4834 = vmatpush.bf16.msra.mxu2 %v5899_v46  ;;  %v4616_v25 = vadd.f32 %v4615_v16, %v4602_v10  ;;  %v6279_v46 = vor.u32 %v8311_v14, %v6278_v13  ;;  %v6759_v33 = vor.u32 %v8431_v28, %v6758_v26  ;;  %v6698_v10 = vld [vmem:[%s8906_s24 + $0x8c8] sm:$0xf]  ;;  %v6998_v13 = vld [vmem:[%s8906_s24 + $0xb20] sm:$0xf]  ;;  %v8491_v14 = vld [vmem:[%s8906_s24 + $0xb30] sm:$0xf0]  ;;  %v6219_v16 = vor.u32 %v8296_v62, %v6218_v60 }
 0x138   : > { %4847 = vmatpush.bf16.msra.mxu3 %v6059_v30  ;;  %4809 = vmatmul.bf16.vlgmr.msra.gmra.mxu0 %v9018_v22  ;;  %v6258_v30 = vld [vmem:[%s8906_s24 + $0x558] sm:$0xf]  ;;  %v8571_v19 = vld [vmem:[%s8906_s24 + $0xdb0] sm:$0xf0]  ;;  %v7478_v26 = vld [vmem:[%s8906_s24 + $0xee0] sm:$0xf] }
 0x139   : > { %4853 = vmatpush.bf16.msrb.mxu0 %v6359_v31  ;;  %4822 = vmatmul.bf16.vlgmr.msra.gmra.mxu1 %v9025_v27  ;;  %v8306_v31 = vld [vmem:[%s8906_s24 + $0x568] sm:$0xf0]  ;;  %v8611_v28 = vld [vmem:[%s8906_s24 + $0xef0] sm:$0xf0]  ;;  %v7098_v60 = vld [vmem:[%s8906_s24 + $0xbe8] sm:$0xf] }
 0x13a   : > { %4866 = vmatpush.bf16.msrb.mxu1 %v6519_v20  ;;  %4835 = vmatmul.bf16.vlgmr.msra.gmra.mxu2 %v9016_v21  ;;  %v6418_v20 = vld [vmem:[%s8906_s24 + $0x698] sm:$0xf]  ;;  %v6259_v41 = vor.u32 %v8306_v31, %v6258_v30  ;;  %v7319_v30 = vor.u32 %v8571_v19, %v7318_v18  ;;  %v7238_v18 = vld [vmem:[%s8906_s24 + $0xd00] sm:$0xf]  ;;  %v8551_v19 = vld [vmem:[%s8906_s24 + $0xd10] sm:$0xf0] }
 0x13b   : > { %4879 = vmatpush.bf16.msrb.mxu2 %v6679_v32  ;;  %4848 = vmatmul.bf16.vlgmr.msra.gmra.mxu3 %v9020_v23  ;;  %v6978_v31 = vld [vmem:[%s8906_s24 + $0xaf8] sm:$0xf] }
 0x13c   : > { %4892 = vmatpush.bf16.msrb.mxu3 %v6839_v36  ;;  %v8386_v36 = vld [vmem:[%s8906_s24 + $0x7e8] sm:$0xf0] }
 0x13d   : > { %4854 = vmatpush.bf16.msrb.mxu0 %v6339_v42  ;;  %v4628_v32 = vpop.f32.mrf.mxu2  ;;  %v6579_v45 = vor.u32 %v8386_v36, %v6578_v35  ;;  %v7298_v35 = vld [vmem:[%s8906_s24 + $0xd78] sm:$0xf]  ;;  %v8566_v36 = vld [vmem:[%s8906_s24 + $0xd88] sm:$0xf0] }
 0x13e   : > { %4867 = vmatpush.bf16.msrb.mxu1 %v6499_v43  ;;  %v4629_v37 = vadd.f32 %v4628_v32, %v4616_v25  ;;  %v4641_v38 = vpop.f32.mrf.mxu3  ;;  %v4604_v43 = vpop.f32.mrf.mxu0  ;;  %v7138_v32 = vld [vmem:[%s8906_s24 + $0xc38] sm:$0xf] }
 0x13f   : > { %4880 = vmatpush.bf16.msrb.mxu2 %v6659_v44  ;;  %v6419_v44 = vor.u32 %v8346_v34, %v6418_v20  ;;  %v4617_v52 = vpop.f32.mrf.mxu1  ;;  %v8486_v20 = vld [vmem:[%s8906_s24 + $0xb08] sm:$0xf0]  ;;  %v6958_v43 = vld [vmem:[%s8906_s24 + $0xad0] sm:$0xf] }
 0x140   : > { %4893 = vmatpush.bf16.msrb.mxu3 %v6819_v51  ;;  %v9588_v42 = vadd.f32 %v4641_v38, %v4629_v37  ;;  %v6398_v51 = vld [vmem:[%s8906_s24 + $0x670] sm:$0xf]  ;;  %v8526_v34 = vld [vmem:[%s8906_s24 + $0xc48] sm:$0xf0]  ;;  %v7458_v37 = vld [vmem:[%s8906_s24 + $0xeb8] sm:$0xf]  ;;  %v6979_v39 = vor.u32 %v8486_v20, %v6978_v31 }
 0x141   : > { %4855 = vmatpush.bf16.msrb.mxu0 %v6319_v57  ;;  %v6718_v57 = vld [vmem:[%s8906_s24 + $0x8f0] sm:$0xf]  ;;  %v6399_v63 = vor.u32 %v8341_v54, %v6398_v51  ;;  %v8606_v38 = vld [vmem:[%s8906_s24 + $0xec8] sm:$0xf0]  ;;  %v7139_v40 = vor.u32 %v8526_v34, %v7138_v32  ;;  %v8561_v52 = vld [vmem:[%s8906_s24 + $0xd60] sm:$0xf0] }
 0x142   : > { %4868 = vmatpush.bf16.msrb.mxu1 %v6479_v58  ;;  %v8421_v58 = vld [vmem:[%s8906_s24 + $0x900] sm:$0xf0]  ;;  %v7278_v51 = vld [vmem:[%s8906_s24 + $0xd50] sm:$0xf]  ;;  %v8506_v32 = vld [vmem:[%s8906_s24 + $0xba8] sm:$0xf0] }
 0x143   : > { %4881 = vmatpush.bf16.msrb.mxu2 %v6639_v59  ;;  %v6239_v59 = vor.u32 %v8301_v48, %v6238_v47  ;;  %v6719_v8 = vor.u32 %v8421_v58, %v6718_v57  ;;  %v7459_v47 = vor.u32 %v8606_v38, %v7458_v37  ;;  %v8521_v48 = vld [vmem:[%s8906_s24 + $0xc20] sm:$0xf0]  ;;  %v7279_v57 = vor.u32 %v8561_v52, %v7278_v51  ;;  %v6938_v58 = vld [vmem:[%s8906_s24 + $0xaa8] sm:$0xf]  ;;  %v8546_v34 = vld [vmem:[%s8906_s24 + $0xce8] sm:$0xf0] }
 0x144   : > { %4894 = vmatpush.bf16.msrb.mxu3 %v6799_v0  ;;  %v6559_v0 = vor.u32 %v8381_v56, %v6558_v55  ;;  %v8601_v54 = vld [vmem:[%s8906_s24 + $0xea0] sm:$0xf0]  ;;  %v7378_v37 = vld [vmem:[%s8906_s24 + $0xe18] sm:$0xf]  ;;  %v8586_v38 = vld [vmem:[%s8906_s24 + $0xe28] sm:$0xf0] }
 0x145   : > { %4856 = vmatpush.bf16.msrb.mxu0 %v6299_v9  ;;  %v4630_v7 = vpop.f32.mrf.mxu2  ;;  %v8376_v9 = vld [vmem:[%s8906_s24 + $0x798] sm:$0xf0]  ;;  %v7379_v52 = vor.u32 %v8586_v38, %v7378_v37 }
 0x146   : > { %4869 = vmatpush.bf16.msrb.mxu1 %v6459_v11  ;;  %v8416_v11 = vld [vmem:[%s8906_s24 + $0x8d8] sm:$0xf0]  ;;  %v6539_v25 = vor.u32 %v8376_v9, %v6538_v6 }
 0x147   : > { %4882 = vmatpush.bf16.msrb.mxu2 %v6619_v12  ;;  %v4643_v12 = vpop.f32.mrf.mxu3  ;;  %v8596_v6 = vld [vmem:[%s8906_s24 + $0xe78] sm:$0xf0] }
 0x148   : > { %4895 = vmatpush.bf16.msrb.mxu3 %v6779_v17  ;;  %v8531_v17 = vld [vmem:[%s8906_s24 + $0xc70] sm:$0xf0] }
 0x149   : > { %4857 = vmatpush.bf16.msrb.mxu0 %v6279_v46  ;;  %v6699_v46 = vor.u32 %v8416_v11, %v6698_v10  ;;  %v6918_v11 = vld [vmem:[%s8906_s24 + $0xa80] sm:$0xf]  ;;  %v8471_v12 = vld [vmem:[%s8906_s24 + $0xa90] sm:$0xf0] }
 0x14a   : > { %4870 = vmatpush.bf16.msrb.mxu1 %v6439_v49  ;;  %v6999_v49 = vor.u32 %v8491_v14, %v6998_v13  ;;  %v7078_v13 = vld [vmem:[%s8906_s24 + $0xbc0] sm:$0xf] }
 0x14b   : > { %4883 = vmatpush.bf16.msrb.mxu2 %v6599_v29  ;;  %v7159_v29 = vor.u32 %v8531_v17, %v7158_v15  ;;  %v8511_v17 = vld [vmem:[%s8906_s24 + $0xbd0] sm:$0xf0] }
 0x14c   : > { %4896 = vmatpush.bf16.msrb.mxu3 %v6759_v33  ;;  %v7479_v33 = vor.u32 %v8611_v28, %v7478_v26  ;;  %v6919_v28 = vor.u32 %v8471_v12, %v6918_v11  ;;  %v7638_v12 = vld [vmem:[%s8906_s24 + $0x1020] sm:$0xf] }
 0x14d   : > { %4858 = vmatpush.bf16.msrb.mxu0 %v6259_v41  ;;  %v7299_v41 = vor.u32 %v8566_v36, %v7298_v35 }
 0x14e   : > { %4871 = vmatpush.bf16.msrb.mxu1 %v6419_v44  ;;  %v8481_v44 = vld [vmem:[%s8906_s24 + $0xae0] sm:$0xf0] }
 0x14f   : > { %4884 = vmatpush.bf16.msrb.mxu2 %v6579_v45  ;;  %v7118_v45 = vld [vmem:[%s8906_s24 + $0xc10] sm:$0xf]  ;;  %v6959_v55 = vor.u32 %v8481_v44, %v6958_v43 }
 0x150   : > { %4897 = vmatpush.bf16.msrb.mxu3 %v6739_v53  ;;  %v7438_v53 = vld [vmem:[%s8906_s24 + $0xe90] sm:$0xf]  ;;  %v7119_v56 = vor.u32 %v8521_v48, %v7118_v45 }
 0x151   : > { %4859 = vmatpush.bf16.msrb.mxu0 %v6239_v59  ;;  %v8476_v59 = vld [vmem:[%s8906_s24 + $0xab8] sm:$0xf0]  ;;  %v7439_v62 = vor.u32 %v8601_v54, %v7438_v53  ;;  %v6878_v45 = vld [vmem:[%s8906_s24 + $0xa30] sm:$0xf]  ;;  %v8501_v53 = vld [vmem:[%s8906_s24 + $0xb80] sm:$0xf0] }
 0x152   : > { %4872 = vmatpush.bf16.msrb.mxu1 %v6399_v63  ;;  %v8516_v63 = vld [vmem:[%s8906_s24 + $0xbf8] sm:$0xf0]  ;;  %v6939_v7 = vor.u32 %v8476_v59, %v6938_v58  ;;  %v7038_v48 = vld [vmem:[%s8906_s24 + $0xb70] sm:$0xf]  ;;  %v6858_v59 = vld [vmem:[%s8906_s24 + $0xa08] sm:$0xf] }
 0x153   : > { %4885 = vmatpush.bf16.msrb.mxu2 %v6559_v0  ;;  %v7258_v0 = vld [vmem:[%s8906_s24 + $0xd28] sm:$0xf]  ;;  %v7099_v9 = vor.u32 %v8516_v63, %v7098_v60  ;;  %v7198_v54 = vld [vmem:[%s8906_s24 + $0xcb0] sm:$0xf]  ;;  %v8456_v60 = vld [vmem:[%s8906_s24 + $0xa18] sm:$0xf0] }
 0x154   : > { %4898 = vmatpush.bf16.msrb.mxu3 %v6719_v8  ;;  %v7259_v10 = vor.u32 %v8556_v4, %v7258_v0  ;;  %v7018_v0 = vld [vmem:[%s8906_s24 + $0xb48] sm:$0xf]  ;;  %v8496_v4 = vld [vmem:[%s8906_s24 + $0xb58] sm:$0xf0] }
 0x155   : > { %4860 = vmatpush.bf16.msrb.mxu0 %v6219_v16  ;;  %v4654_v8 = vpop.f32.mrf.mxu0  ;;  %v7419_v16 = vor.u32 %v8596_v6, %v7418_v5  ;;  %v7178_v5 = vld [vmem:[%s8906_s24 + $0xc88] sm:$0xf] }
 0x156   : > { %4873 = vmatpush.bf16.msrb.mxu1 %v6379_v24  ;;  %v4655_v14 = vadd.f32 %v4654_v8, %v9588_v42  ;;  %v4667_v15 = vpop.f32.mrf.mxu1  ;;  %v7398_v24 = vld [vmem:[%s8906_s24 + $0xe40] sm:$0xf]  ;;  %v7079_v42 = vor.u32 %v8511_v17, %v7078_v13  ;;  %v8536_v8 = vld [vmem:[%s8906_s24 + $0xc98] sm:$0xf0]  ;;  %v8651_v13 = vld [vmem:[%s8906_s24 + $0x1030] sm:$0xf0] }
 0x157   : > { %4886 = vmatpush.bf16.msrb.mxu2 %v6539_v25  ;;  %v8591_v25 = vld [vmem:[%s8906_s24 + $0xe50] sm:$0xf0]  ;;  %v7958_v17 = vld [vmem:[%s8906_s24 + $0x12a0] sm:$0xf] }
 0x158   : > { %4899 = vmatpush.bf16.msrb.mxu3 %v6699_v46  ;;  %4861 = vmatmul.bf16.vlgmr.msrb.gmra.mxu0 %v9057_v1  ;;  %v4668_v26 = vadd.f32 %v4667_v15, %v4655_v14  ;;  %v7239_v46 = vor.u32 %v8551_v19, %v7238_v18  ;;  %v7399_v20 = vor.u32 %v8591_v25, %v7398_v24  ;;  %v7798_v14 = vld [vmem:[%s8906_s24 + $0x1160] sm:$0xf]  ;;  %v8731_v18 = vld [vmem:[%s8906_s24 + $0x12b0] sm:$0xf0] }
 0x159   : > { %4905 = vmatpush.bf16.msra.mxu0 %v6999_v49  ;;  %4874 = vmatmul.bf16.vlgmr.msrb.gmra.mxu1 %v9061_v3  ;;  %v6898_v49 = vld [vmem:[%s8906_s24 + $0xa58] sm:$0xf]  ;;  %v6859_v15 = vor.u32 %v8456_v60, %v6858_v59  ;;  %v7019_v19 = vor.u32 %v8496_v4, %v7018_v0  ;;  %v7179_v24 = vor.u32 %v8536_v8, %v7178_v5  ;;  %v8118_v25 = vld [vmem:[%s8906_s24 + $0x13e0] sm:$0xf]  ;;  %v7738_v0 = vld [vmem:[%s8906_s24 + $0x10e8] sm:$0xf] }
 0x15a   : > { %4918 = vmatpush.bf16.msra.mxu1 %v7159_v29  ;;  %4887 = vmatmul.bf16.vlgmr.msrb.gmra.mxu2 %v9054_v61  ;;  %v8466_v29 = vld [vmem:[%s8906_s24 + $0xa68] sm:$0xf0]  ;;  %v8676_v5 = vld [vmem:[%s8906_s24 + $0x10f8] sm:$0xf0] }
 0x15b   : > { %4931 = vmatpush.bf16.msra.mxu2 %v7319_v30  ;;  %4900 = vmatmul.bf16.vlgmr.msrb.gmra.mxu3 %v9059_v2  ;;  %v7058_v30 = vld [vmem:[%s8906_s24 + $0xb98] sm:$0xf] }
 0x15c   : > { %4944 = vmatpush.bf16.msra.mxu3 %v7479_v33  ;;  %v7218_v33 = vld [vmem:[%s8906_s24 + $0xcd8] sm:$0xf]  ;;  %v7059_v43 = vor.u32 %v8506_v32, %v7058_v30  ;;  %v8646_v30 = vld [vmem:[%s8906_s24 + $0x1008] sm:$0xf0] }
 0x15d   : > { %4906 = vmatpush.bf16.msra.mxu0 %v6979_v39  ;;  %v4680_v31 = vpop.f32.mrf.mxu2  ;;  %v6899_v39 = vor.u32 %v8466_v29, %v6898_v49  ;;  %v7219_v44 = vor.u32 %v8546_v34, %v7218_v33  ;;  %v7959_v49 = vor.u32 %v8731_v18, %v7958_v17  ;;  %v7618_v29 = vld [vmem:[%s8906_s24 + $0xff8] sm:$0xf]  ;;  %v8686_v32 = vld [vmem:[%s8906_s24 + $0x1148] sm:$0xf0]  ;;  %v8631_v17 = vld [vmem:[%s8906_s24 + $0xf90] sm:$0xf0] }
 0x15e   : > { %4919 = vmatpush.bf16.msra.mxu1 %v7139_v40  ;;  %v4681_v35 = vadd.f32 %v4680_v31, %v4668_v26  ;;  %v4693_v36 = vpop.f32.mrf.mxu3  ;;  %v4669_v51 = vpop.f32.mrf.mxu1  ;;  %v8771_v26 = vld [vmem:[%s8906_s24 + $0x13f0] sm:$0xf0]  ;;  %v7778_v31 = vld [vmem:[%s8906_s24 + $0x1138] sm:$0xf]  ;;  %v8726_v34 = vld [vmem:[%s8906_s24 + $0x1288] sm:$0xf0]  ;;  %v7619_v37 = vor.u32 %v8646_v30, %v7618_v29 }
 0x15f   : > { %4932 = vmatpush.bf16.msra.mxu2 %v7299_v41  ;;  %v4656_v41 = vpop.f32.mrf.mxu0  ;;  %v7938_v33 = vld [vmem:[%s8906_s24 + $0x1278] sm:$0xf]  ;;  %v7779_v38 = vor.u32 %v8686_v32, %v7778_v31  ;;  %v7918_v51 = vld [vmem:[%s8906_s24 + $0x1250] sm:$0xf]  ;;  %v7718_v18 = vld [vmem:[%s8906_s24 + $0x10c0] sm:$0xf] }
 0x160   : > { %4945 = vmatpush.bf16.msra.mxu3 %v7459_v47  ;;  %v9659_v40 = vadd.f32 %v4693_v36, %v4681_v35  ;;  %v8461_v47 = vld [vmem:[%s8906_s24 + $0xa40] sm:$0xf0]  ;;  %v8098_v35 = vld [vmem:[%s8906_s24 + $0x13b8] sm:$0xf]  ;;  %v8766_v36 = vld [vmem:[%s8906_s24 + $0x13c8] sm:$0xf0] }
 0x161   : > { %4907 = vmatpush.bf16.msra.mxu0 %v6959_v55  ;;  %v8541_v55 = vld [vmem:[%s8906_s24 + $0xcc0] sm:$0xf0]  ;;  %v6879_v58 = vor.u32 %v8461_v47, %v6878_v45  ;;  %v7598_v41 = vld [vmem:[%s8906_s24 + $0xfd0] sm:$0xf]  ;;  %v8099_v47 = vor.u32 %v8766_v36, %v8098_v35  ;;  %v7538_v30 = vld [vmem:[%s8906_s24 + $0xf58] sm:$0xf] }
 0x162   : > { %4920 = vmatpush.bf16.msra.mxu1 %v7119_v56  ;;  %v7358_v56 = vld [vmem:[%s8906_s24 + $0xdf0] sm:$0xf]  ;;  %v7199_v63 = vor.u32 %v8541_v55, %v7198_v54  ;;  %v8807_v45 = vld [vmem:[#allocation1] sm:$0xff]  ;;  %v8626_v31 = vld [vmem:[%s8906_s24 + $0xf68] sm:$0xf0] }
 0x163   : > { %4933 = vmatpush.bf16.msra.mxu2 %v7279_v57  ;;  %v8581_v57 = vld [vmem:[%s8906_s24 + $0xe00] sm:$0xf0]  ;;  %v8809_v54 = vld [vmem:[#allocation1 + $0x9] sm:$0xff]  ;;  %v7858_v35 = vld [vmem:[%s8906_s24 + $0x11d8] sm:$0xf] }
 0x164   : > { %4946 = vmatpush.bf16.msra.mxu3 %v7439_v62  ;;  %v7039_v62 = vor.u32 %v8501_v53, %v7038_v48  ;;  %v8681_v48 = vld [vmem:[%s8906_s24 + $0x1120] sm:$0xf0]  ;;  %v8808_v53 = vld [vmem:[#allocation1 + $0x12] sm:$0xff]  ;;  %v8706_v36 = vld [vmem:[%s8906_s24 + $0x11e8] sm:$0xf0] }
 0x165   : > { %4908 = vmatpush.bf16.msra.mxu0 %v6939_v7  ;;  %v4682_v6 = vpop.f32.mrf.mxu2  ;;  %v7359_v7 = vor.u32 %v8581_v57, %v7358_v56  ;;  %v8078_v55 = vld [vmem:[%s8906_s24 + $0x1390] sm:$0xf]  ;;  %v8761_v56 = vld [vmem:[%s8906_s24 + $0x13a0] sm:$0xf0]  ;;  %v8810_v57 = vld [vmem:[#allocation1 + $0x1b] sm:$0xff] }
 0x166   : > { %4921 = vmatpush.bf16.msra.mxu1 %v7099_v9  ;;  %v7338_v9 = vld [vmem:[%s8906_s24 + $0xdc8] sm:$0xf]  ;;  %v4695_v11 = vpop.f32.mrf.mxu3  ;;  %v8079_v4 = vor.u32 %v8761_v56, %v8078_v55  ;;  %v8661_v56 = vld [vmem:[%s8906_s24 + $0x1080] sm:$0xf0] }
 0x167   : > { %4934 = vmatpush.bf16.msra.mxu2 %v7259_v10  ;;  %v8576_v10 = vld [vmem:[%s8906_s24 + $0xdd8] sm:$0xf0]  ;;  %v7898_v6 = vld [vmem:[%s8906_s24 + $0x1228] sm:$0xf] }
 0x168   : > { %4947 = vmatpush.bf16.msra.mxu3 %v7419_v16  ;;  %v8691_v16 = vld [vmem:[%s8906_s24 + $0x1170] sm:$0xf0] }
 0x169   : > { %4909 = vmatpush.bf16.msra.mxu0 %v6919_v28  ;;  %v7339_v28 = vor.u32 %v8576_v10, %v7338_v9  ;;  %v8058_v9 = vld [vmem:[%s8906_s24 + $0x1368] sm:$0xf]  ;;  %v8756_v10 = vld [vmem:[%s8906_s24 + $0x1378] sm:$0xf0] }
 0x16a   : > { %4922 = vmatpush.bf16.msra.mxu1 %v7079_v42  ;;  %v7639_v42 = vor.u32 %v8651_v13, %v7638_v12 }
 0x16b   : > { %4935 = vmatpush.bf16.msra.mxu2 %v7239_v46  ;;  %v7799_v46 = vor.u32 %v8691_v16, %v7798_v14  ;;  %v7739_v14 = vor.u32 %v8676_v5, %v7738_v0  ;;  %v7558_v16 = vld [vmem:[%s8906_s24 + $0xf80] sm:$0xf]  ;;  %v8616_v0 = vld [vmem:[%s8906_s24 + $0xf18] sm:$0xf0] }
 0x16c   : > { %4948 = vmatpush.bf16.msra.mxu3 %v7399_v20  ;;  %v8119_v20 = vor.u32 %v8771_v26, %v8118_v25  ;;  %v8671_v25 = vld [vmem:[%s8906_s24 + $0x10d0] sm:$0xf0]  ;;  %v7878_v26 = vld [vmem:[%s8906_s24 + $0x1200] sm:$0xf] }
 0x16d   : > { %4910 = vmatpush.bf16.msra.mxu0 %v6899_v39  ;;  %v7939_v39 = vor.u32 %v8726_v34, %v7938_v33  ;;  %v8666_v34 = vld [vmem:[%s8906_s24 + $0x10a8] sm:$0xf0] }
 0x16e   : > { %4923 = vmatpush.bf16.msra.mxu1 %v7059_v43  ;;  %v8641_v43 = vld [vmem:[%s8906_s24 + $0xfe0] sm:$0xf0] }
 0x16f   : > { %4936 = vmatpush.bf16.msra.mxu2 %v7219_v44  ;;  %v7758_v44 = vld [vmem:[%s8906_s24 + $0x1110] sm:$0xf] }
 0x170   : > { %4949 = vmatpush.bf16.msra.mxu3 %v7379_v52  ;;  %v8721_v52 = vld [vmem:[%s8906_s24 + $0x1260] sm:$0xf0]  ;;  %v7759_v59 = vor.u32 %v8681_v48, %v7758_v44  ;;  %v7539_v44 = vor.u32 %v8626_v31, %v7538_v30  ;;  %v8164_v31 = vld [vmem:[%s8906_s24 + $0xfc] sm:$0xf] }
 0x171   : > { %4911 = vmatpush.bf16.msra.mxu0 %v6879_v58  ;;  %v7599_v58 = vor.u32 %v8641_v43, %v7598_v41  ;;  %v7919_v60 = vor.u32 %v8721_v52, %v7918_v51  ;;  %v8746_v41 = vld [vmem:[%s8906_s24 + $0x1328] sm:$0xf0]  ;;  %v7859_v51 = vor.u32 %v8706_v36, %v7858_v35  ;;  %v7518_v52 = vld [vmem:[%s8906_s24 + $0xf30] sm:$0xf]  ;;  %v8244_v35 = vld [vmem:[%s8906_s24 + $0x37c] sm:$0xf] }
 0x172   : > { %4924 = vmatpush.bf16.msra.mxu1 %v7039_v62  ;;  %v7578_v62 = vld [vmem:[%s8906_s24 + $0xfa8] sm:$0xf]  ;;  %v6020_v36 = vld [vmem:[%s8906_s24 + $0x38c] sm:$0xf0] }
 0x173   : > { %4937 = vmatpush.bf16.msra.mxu2 %v7199_v63  ;;  %v8636_v63 = vld [vmem:[%s8906_s24 + $0xfb8] sm:$0xf0] }
 0x174   : > { %4950 = vmatpush.bf16.msra.mxu3 %v7359_v7  ;;  %v8716_v7 = vld [vmem:[%s8906_s24 + $0x1238] sm:$0xf0]  ;;  %v7579_v12 = vor.u32 %v8636_v63, %v7578_v62  ;;  %v7498_v63 = vld [vmem:[%s8906_s24 + $0xf08] sm:$0xf] }
 0x175   : > { %4912 = vmatpush.bf16.msra.mxu0 %v6859_v15  ;;  %v4706_v8 = vpop.f32.mrf.mxu0  ;;  %v7899_v15 = vor.u32 %v8716_v7, %v7898_v6  ;;  %v7658_v6 = vld [vmem:[%s8906_s24 + $0x1048] sm:$0xf]  ;;  %v8656_v7 = vld [vmem:[%s8906_s24 + $0x1058] sm:$0xf0] }
 0x176   : > { %4925 = vmatpush.bf16.msra.mxu1 %v7019_v19  ;;  %v4707_v11 = vadd.f32 %v4706_v8, %v9659_v40  ;;  %v4719_v13 = vpop.f32.mrf.mxu1  ;;  %v8059_v19 = vor.u32 %v8756_v10, %v8058_v9  ;;  %v8711_v40 = vld [vmem:[%s8906_s24 + $0x1210] sm:$0xf0]  ;;  %v7818_v8 = vld [vmem:[%s8906_s24 + $0x1188] sm:$0xf]  ;;  %v8696_v10 = vld [vmem:[%s8906_s24 + $0x1198] sm:$0xf0] }
 0x177   : > { %4938 = vmatpush.bf16.msra.mxu2 %v7179_v24  ;;  %v7879_v29 = vor.u32 %v8711_v40, %v7878_v26  ;;  %v7659_v26 = vor.u32 %v8656_v7, %v7658_v6  ;;  %v7819_v40 = vor.u32 %v8696_v10, %v7818_v8  ;;  %v8194_v6 = vld [vmem:[%s8906_s24 + $0x1ec] sm:$0xf]  ;;  %v5820_v8 = vld [vmem:[%s8906_s24 + $0x1fc] sm:$0xf0] }
 0x178   : > { %4951 = vmatpush.bf16.msra.mxu3 %v7339_v28  ;;  %4913 = vmatmul.bf16.vlgmr.msra.gmra.mxu0 %v8807_v45  ;;  %v4720_v24 = vadd.f32 %v4719_v13, %v4707_v11  ;;  %v8038_v28 = vld [vmem:[%s8906_s24 + $0x1340] sm:$0xf]  ;;  %v7978_v11 = vld [vmem:[%s8906_s24 + $0x12c8] sm:$0xf] }
 0x179   : > { %4957 = vmatpush.bf16.msrb.mxu0 %v7639_v42  ;;  %4926 = vmatmul.bf16.vlgmr.msra.gmra.mxu1 %v8809_v54  ;;  %v8751_v42 = vld [vmem:[%s8906_s24 + $0x1350] sm:$0xf0]  ;;  %v7678_v54 = vld [vmem:[%s8906_s24 + $0x1070] sm:$0xf]  ;;  %v5980_v10 = vld [vmem:[%s8906_s24 + $0x33c] sm:$0xf0] }
 0x17a   : > { %4970 = vmatpush.bf16.msrb.mxu1 %v7799_v46  ;;  %4939 = vmatmul.bf16.vlgmr.msra.gmra.mxu2 %v8808_v53  ;;  %v7559_v46 = vor.u32 %v8631_v17, %v7558_v16  ;;  %v8039_v32 = vor.u32 %v8751_v42, %v8038_v28  ;;  %v8621_v53 = vld [vmem:[%s8906_s24 + $0xf40] sm:$0xf0]  ;;  %v6200_v42 = vld [vmem:[%s8906_s24 + $0x4f4] sm:$0xf0] }
 0x17b   : > { %4983 = vmatpush.bf16.msrb.mxu2 %v7959_v49  ;;  %4952 = vmatmul.bf16.vlgmr.msra.gmra.mxu3 %v8810_v57  ;;  %v7719_v49 = vor.u32 %v8671_v25, %v7718_v18  ;;  %v7838_v57 = vld [vmem:[%s8906_s24 + $0x11b0] sm:$0xf]  ;;  %v7519_v62 = vor.u32 %v8621_v53, %v7518_v52  ;;  %v8209_v16 = vld [vmem:[%s8906_s24 + $0x264] sm:$0xf]  ;;  %v7499_v18 = vor.u32 %v8616_v0, %v7498_v63  ;;  %v6040_v25 = vld [vmem:[%s8906_s24 + $0x3b4] sm:$0xf0] }
 0x17c   : > { %4996 = vmatpush.bf16.msrb.mxu3 %v8119_v20  ;;  %v7698_v20 = vld [vmem:[%s8906_s24 + $0x1098] sm:$0xf]  ;;  %v8289_v28 = vld [vmem:[%s8906_s24 + $0x4e4] sm:$0xf]  ;;  %v5840_v53 = vld [vmem:[%s8906_s24 + $0x224] sm:$0xf0] }
 0x17d   : > { %4958 = vmatpush.bf16.msrb.mxu0 %v7619_v37  ;;  %v4732_v33 = vpop.f32.mrf.mxu2  ;;  %v4708_v43 = vpop.f32.mrf.mxu0  ;;  %v7699_v48 = vor.u32 %v8666_v34, %v7698_v20  ;;  %v5700_v20 = vld [vmem:[%s8906_s24 + $0x10c] sm:$0xf0] }
 0x17e   : > { %4971 = vmatpush.bf16.msrb.mxu1 %v7779_v38  ;;  %v4733_v37 = vadd.f32 %v4732_v33, %v4720_v24  ;;  %v4745_v38 = vpop.f32.mrf.mxu3  ;;  %v4721_v45 = vpop.f32.mrf.mxu1  ;;  %v8249_v24 = vld [vmem:[%s8906_s24 + $0x3a4] sm:$0xf]  ;;  %v6203_v33 = vor.u32 %v8289_v28, %v6200_v42  ;;  %v5860_v34 = vld [vmem:[%s8906_s24 + $0x24c] sm:$0xf0]  ;;  %v6023_v43 = vor.u32 %v8244_v35, %v6020_v36  ;;  %v5800_v28 = vld [vmem:[%s8906_s24 + $0x1d4] sm:$0xf0] }
 0x17f   : > { %4984 = vmatpush.bf16.msrb.mxu2 %v7939_v39  ;;  %v8018_v39 = vld [vmem:[%s8906_s24 + $0x1318] sm:$0xf]  ;;  %v6043_v30 = vor.u32 %v8249_v24, %v6040_v25  ;;  %v5680_v45 = vld [vmem:[%s8906_s24 + $0xe4] sm:$0xf0]  ;;  %v8189_v25 = vld [vmem:[%s8906_s24 + $0x1c4] sm:$0xf] }
 0x180   : > { %4997 = vmatpush.bf16.msrb.mxu3 %v8099_v47  ;;  %v9726_v47 = vadd.f32 %v4745_v38, %v4733_v37  ;;  %v8019_v55 = vor.u32 %v8746_v41, %v8018_v39  ;;  %v8284_v37 = vld [vmem:[%s8906_s24 + $0x4bc] sm:$0xf]  ;;  %v6180_v38 = vld [vmem:[%s8906_s24 + $0x4cc] sm:$0xf0]  ;;  %v5703_v39 = vor.u32 %v8164_v31, %v5700_v20  ;;  %v5640_v24 = vld [vmem:[%s8906_s24 + $0x94] sm:$0xf0] }
 0x181   : > { %4959 = vmatpush.bf16.msrb.mxu0 %v7599_v58  ;;  %v8701_v58 = vld [vmem:[%s8906_s24 + $0x11c0] sm:$0xf0]  ;;  %v6183_v52 = vor.u32 %v8284_v37, %v6180_v38  ;;  %v8144_v20 = vld [vmem:[%s8906_s24 + $0x5c] sm:$0xf]  ;;  %v5780_v36 = vld [vmem:[%s8906_s24 + $0x1ac] sm:$0xf0] }
 0x182   : > { %4972 = vmatpush.bf16.msrb.mxu1 %v7759_v59  ;;  %v7998_v59 = vld [vmem:[%s8906_s24 + $0x12f0] sm:$0xf]  ;;  %v7839_v5 = vor.u32 %v8701_v58, %v7838_v57  ;;  %v8279_v58 = vld [vmem:[%s8906_s24 + $0x494] sm:$0xf]  ;;  %v8229_v42 = vld [vmem:[%s8906_s24 + $0x304] sm:$0xf] }
 0x183   : > { %4985 = vmatpush.bf16.msrb.mxu2 %v7919_v60  ;;  %v8741_v60 = vld [vmem:[%s8906_s24 + $0x1300] sm:$0xf0]  ;;  %v8813_v57 = vld [vmem:[#allocation1 + $0x2d] sm:$0xff]  ;;  %v8224_v37 = vld [vmem:[%s8906_s24 + $0x2dc] sm:$0xf] }
 0x184   : > { %4998 = vmatpush.bf16.msrb.mxu3 %v8079_v4  ;;  %v7679_v4 = vor.u32 %v8661_v56, %v7678_v54  ;;  %v7999_v9 = vor.u32 %v8741_v60, %v7998_v59  ;;  %v8239_v54 = vld [vmem:[%s8906_s24 + $0x354] sm:$0xf]  ;;  %v6160_v59 = vld [vmem:[%s8906_s24 + $0x4a4] sm:$0xf0]  ;;  %v8814_v60 = vld [vmem:[#allocation1 + $0x3f] sm:$0xff] }
 0x185   : > { %4960 = vmatpush.bf16.msrb.mxu0 %v7579_v12  ;;  %v8736_v12 = vld [vmem:[%s8906_s24 + $0x12d8] sm:$0xf0]  ;;  %v4734_v13 = vpop.f32.mrf.mxu2  ;;  %v6163_v7 = vor.u32 %v8279_v58, %v6160_v59  ;;  %v5940_v38 = vld [vmem:[%s8906_s24 + $0x2ec] sm:$0xf0]  ;;  %v5760_v59 = vld [vmem:[%s8906_s24 + $0x184] sm:$0xf0] }
 0x186   : > { %4973 = vmatpush.bf16.msrb.mxu1 %v7739_v14  ;;  %v8169_v14 = vld [vmem:[%s8906_s24 + $0x124] sm:$0xf]  ;;  %v4747_v17 = vpop.f32.mrf.mxu3  ;;  %v8812_v56 = vld [vmem:[#allocation1 + $0x36] sm:$0xff]  ;;  %v6140_v13 = vld [vmem:[%s8906_s24 + $0x47c] sm:$0xf0] }
 0x187   : > { %4986 = vmatpush.bf16.msrb.mxu2 %v7899_v15  ;;  %v5720_v15 = vld [vmem:[%s8906_s24 + $0x134] sm:$0xf0]  ;;  %v5823_v17 = vor.u32 %v8194_v6, %v5820_v8  ;;  %v8134_v6 = vld [vmem:[%s8906_s24 + $0xc] sm:$0xf] }
 0x188   : > { %4999 = vmatpush.bf16.msrb.mxu3 %v8059_v19  ;;  %v5880_v19 = vld [vmem:[%s8906_s24 + $0x274] sm:$0xf0] }
 0x189   : > { %4961 = vmatpush.bf16.msrb.mxu0 %v7559_v46  ;;  %v7979_v46 = vor.u32 %v8736_v12, %v7978_v11  ;;  %v8274_v12 = vld [vmem:[%s8906_s24 + $0x46c] sm:$0xf] }
 0x18a   : > { %4974 = vmatpush.bf16.msrb.mxu1 %v7719_v49  ;;  %v5723_v49 = vor.u32 %v8169_v14, %v5720_v15 }
 0x18b   : > { %4987 = vmatpush.bf16.msrb.mxu2 %v7879_v29  ;;  %v5883_v29 = vor.u32 %v8209_v16, %v5880_v19  ;;  %v8149_v19 = vld [vmem:[%s8906_s24 + $0x84] sm:$0xf] }
 0x18c   : > { %5000 = vmatpush.bf16.msrb.mxu3 %v8039_v32  ;;  %v8204_v32 = vld [vmem:[%s8906_s24 + $0x23c] sm:$0xf] }
 0x18d   : > { %4962 = vmatpush.bf16.msrb.mxu0 %v7539_v44  ;;  %v5863_v41 = vor.u32 %v8204_v32, %v5860_v34  ;;  %v8159_v44 = vld [vmem:[%s8906_s24 + $0xd4] sm:$0xf]  ;;  %v5620_v32 = vld [vmem:[%s8906_s24 + $0x6c] sm:$0xf0] }
 0x18e   : > { %4975 = vmatpush.bf16.msrb.mxu1 %v7699_v48  ;;  %v8199_v48 = vld [vmem:[%s8906_s24 + $0x214] sm:$0xf] }
 0x18f   : > { %4988 = vmatpush.bf16.msrb.mxu2 %v7859_v51  ;;  %v8811_v51 = vld [vmem:[#allocation1 + $0x24] sm:$0xff]  ;;  %v5843_v63 = vor.u32 %v8199_v48, %v5840_v53  ;;  %v5623_v48 = vor.u32 %v8144_v20, %v5620_v32 }
 0x190   : > { %5001 = vmatpush.bf16.msrb.mxu3 %v8019_v55  ;;  %v6000_v55 = vld [vmem:[%s8906_s24 + $0x364] sm:$0xf0] }
 0x191   : > { %4963 = vmatpush.bf16.msrb.mxu0 %v7519_v62  ;;  %v5683_v62 = vor.u32 %v8159_v44, %v5680_v45  ;;  %v6003_v0 = vor.u32 %v8239_v54, %v6000_v55  ;;  %v6100_v44 = vld [vmem:[%s8906_s24 + $0x42c] sm:$0xf0]  ;;  %v5943_v54 = vor.u32 %v8224_v37, %v5940_v38  ;;  %v8139_v55 = vld [vmem:[%s8906_s24 + $0x34] sm:$0xf]  ;;  %v8404_v38 = vld [vmem:[%s8906_s24 + $0x87c] sm:$0xf] }
 0x192   : > { %4976 = vmatpush.bf16.msrb.mxu1 %v7679_v4  ;;  %v8154_v4 = vld [vmem:[%s8906_s24 + $0xac] sm:$0xf]  ;;  %v6500_v37 = vld [vmem:[%s8906_s24 + $0x74c] sm:$0xf0] }
 0x193   : > { %4989 = vmatpush.bf16.msrb.mxu2 %v7839_v5  ;;  %v5660_v5 = vld [vmem:[%s8906_s24 + $0xbc] sm:$0xf0] }
 0x194   : > { %5002 = vmatpush.bf16.msrb.mxu3 %v7999_v9  ;;  %v8234_v9 = vld [vmem:[%s8906_s24 + $0x32c] sm:$0xf]  ;;  %v5663_v15 = vor.u32 %v8154_v4, %v5660_v5  ;;  %v6080_v4 = vld [vmem:[%s8906_s24 + $0x404] sm:$0xf0] }
 0x195   : > { %4964 = vmatpush.bf16.msrb.mxu0 %v7499_v18  ;;  %v4758_v11 = vpop.f32.mrf.mxu0  ;;  %v5983_v18 = vor.u32 %v8234_v9, %v5980_v10 }
 0x196   : > { %4977 = vmatpush.bf16.msrb.mxu1 %v7659_v26  ;;  %v4759_v14 = vadd.f32 %v4758_v11, %v9726_v47  ;;  %v4771_v16 = vpop.f32.mrf.mxu1  ;;  %v6143_v26 = vor.u32 %v8274_v12, %v6140_v13  ;;  %v5960_v47 = vld [vmem:[%s8906_s24 + $0x314] sm:$0xf0]  ;;  %v8174_v11 = vld [vmem:[%s8906_s24 + $0x14c] sm:$0xf]  ;;  %v5740_v12 = vld [vmem:[%s8906_s24 + $0x15c] sm:$0xf0] }
 0x197   : > { %4990 = vmatpush.bf16.msrb.mxu2 %v7819_v40  ;;  %v5963_v31 = vor.u32 %v8229_v42, %v5960_v47  ;;  %v8214_v13 = vld [vmem:[%s8906_s24 + $0x28c] sm:$0xf]  ;;  %v6680_v42 = vld [vmem:[%s8906_s24 + $0x8b4] sm:$0xf0]  ;;  %v5743_v47 = vor.u32 %v8174_v11, %v5740_v12  ;;  %v6780_v12 = vld [vmem:[%s8906_s24 + $0x97c] sm:$0xf0] }
 0x198   : > { %5003 = vmatpush.bf16.msrb.mxu3 %v7979_v46  ;;  %4965 = vmatmul.bf16.vlgmr.msrb.gmra.mxu0 %v8811_v51  ;;  %v4772_v40 = vadd.f32 %v4771_v16, %v4759_v14  ;;  %v8269_v46 = vld [vmem:[%s8906_s24 + $0x444] sm:$0xf]  ;;  %v8254_v16 = vld [vmem:[%s8906_s24 + $0x3cc] sm:$0xf] }
 0x199   : > { %5009 = vmatpush.bf16.msra.mxu0 %v5723_v49  ;;  %4978 = vmatmul.bf16.vlgmr.msrb.gmra.mxu1 %v8813_v57  ;;  %v6120_v49 = vld [vmem:[%s8906_s24 + $0x454] sm:$0xf0]  ;;  %v8179_v57 = vld [vmem:[%s8906_s24 + $0x174] sm:$0xf]  ;;  %v8434_v11 = vld [vmem:[%s8906_s24 + $0x96c] sm:$0xf] }
 0x19a   : > { %5022 = vmatpush.bf16.msra.mxu1 %v5883_v29  ;;  %4991 = vmatmul.bf16.vlgmr.msrb.gmra.mxu2 %v8812_v56  ;;  %v5643_v29 = vor.u32 %v8149_v19, %v5640_v24  ;;  %v6123_v34 = vor.u32 %v8269_v46, %v6120_v49  ;;  %v5600_v56 = vld [vmem:[%s8906_s24 + $0x44] sm:$0xf0]  ;;  %v5763_v9 = vor.u32 %v8179_v57, %v5760_v59  ;;  %v6360_v19 = vld [vmem:[%s8906_s24 + $0x634] sm:$0xf0]  ;;  %v8369_v24 = vld [vmem:[%s8906_s24 + $0x764] sm:$0xf] }
 0x19b   : > { %5035 = vmatpush.bf16.msra.mxu2 %v6043_v30  ;;  %5004 = vmatmul.bf16.vlgmr.msrb.gmra.mxu3 %v8814_v60  ;;  %v5803_v30 = vor.u32 %v8189_v25, %v5800_v28  ;;  %v8219_v60 = vld [vmem:[%s8906_s24 + $0x2b4] sm:$0xf]  ;;  %v5603_v5 = vor.u32 %v8139_v55, %v5600_v56  ;;  %v8409_v28 = vld [vmem:[%s8906_s24 + $0x8a4] sm:$0xf]  ;;  %v6480_v55 = vld [vmem:[%s8906_s24 + $0x724] sm:$0xf0] }
 0x19c   : > { %5048 = vmatpush.bf16.msra.mxu3 %v6203_v33  ;;  %v8184_v33 = vld [vmem:[%s8906_s24 + $0x19c] sm:$0xf]  ;;  %v8449_v49 = vld [vmem:[%s8906_s24 + $0x9e4] sm:$0xf]  ;;  %v6683_v32 = vor.u32 %v8409_v28, %v6680_v42  ;;  %v8399_v56 = vld [vmem:[%s8906_s24 + $0x854] sm:$0xf] }
 0x19d   : > { %5010 = vmatpush.bf16.msra.mxu0 %v5703_v39  ;;  %v4784_v35 = vpop.f32.mrf.mxu2  ;;  %v4760_v45 = vpop.f32.mrf.mxu0  ;;  %v5783_v53 = vor.u32 %v8184_v33, %v5780_v36  ;;  %v8324_v33 = vld [vmem:[%s8906_s24 + $0x5fc] sm:$0xf]  ;;  %v6640_v57 = vld [vmem:[%s8906_s24 + $0x864] sm:$0xf0]  ;;  %v8429_v42 = vld [vmem:[%s8906_s24 + $0x944] sm:$0xf] }
 0x19e   : > { %5023 = vmatpush.bf16.msra.mxu1 %v5863_v41  ;;  %v4785_v39 = vadd.f32 %v4784_v35, %v4772_v40  ;;  %v4797_v41 = vpop.f32.mrf.mxu3  ;;  %v4773_v51 = vpop.f32.mrf.mxu1  ;;  %v6520_v40 = vld [vmem:[%s8906_s24 + $0x774] sm:$0xf0]  ;;  %v8364_v35 = vld [vmem:[%s8906_s24 + $0x73c] sm:$0xf]  ;;  %v6800_v59 = vld [vmem:[%s8906_s24 + $0x9a4] sm:$0xf0] }
 0x19f   : > { %5036 = vmatpush.bf16.msra.mxu2 %v6023_v43  ;;  %v8264_v43 = vld [vmem:[%s8906_s24 + $0x41c] sm:$0xf]  ;;  %v6523_v20 = vor.u32 %v8369_v24, %v6520_v40  ;;  %v6503_v45 = vor.u32 %v8364_v35, %v6500_v37  ;;  %v8319_v51 = vld [vmem:[%s8906_s24 + $0x5d4] sm:$0xf]  ;;  %v6783_v24 = vor.u32 %v8434_v11, %v6780_v12  ;;  %v6600_v40 = vld [vmem:[%s8906_s24 + $0x814] sm:$0xf0] }
 0x1a0   : > { %5049 = vmatpush.bf16.msra.mxu3 %v6183_v52  ;;  %v4798_v52 = vadd.f32 %v4797_v41, %v4785_v39  ;;  %v6103_v58 = vor.u32 %v8264_v43, %v6100_v44  ;;  %v6660_v39 = vld [vmem:[%s8906_s24 + $0x88c] sm:$0xf0]  ;;  %v8444_v41 = vld [vmem:[%s8906_s24 + $0x9bc] sm:$0xf] }
 0x1a1   : > { %5011 = vmatpush.bf16.msra.mxu0 %v5683_v62  ;;  %v5920_v62 = vld [vmem:[%s8906_s24 + $0x2c4] sm:$0xf0]  ;;  %v6820_v43 = vld [vmem:[%s8906_s24 + $0x9cc] sm:$0xf0]  ;;  %v8384_v35 = vld [vmem:[%s8906_s24 + $0x7dc] sm:$0xf] }
 0x1a2   : > { %5024 = vmatpush.bf16.msra.mxu1 %v5843_v63  ;;  %v5429_v63 = vrot.slane %v4798_v52, 6  ;;  %v5923_v10 = vor.u32 %v8219_v60, %v5920_v62  ;;  %v6320_v52 = vld [vmem:[%s8906_s24 + $0x5e4] sm:$0xf0] }
 0x1a3   : > { %5037 = vmatpush.bf16.msra.mxu2 %v6003_v0  ;;  %v8259_v0 = vld [vmem:[%s8906_s24 + $0x3f4] sm:$0xf]  ;;  %v6323_v60 = vor.u32 %v8319_v51, %v6320_v52 }
 0x1a4   : > { %5050 = vmatpush.bf16.msra.mxu3 %v6163_v7  ;;  %v5580_v7 = vld [vmem:[%s8906_s24 + $0x1c] sm:$0xf0]  ;;  %v9805_v8 = vsel %vm5432_vm0, %v9518_v50, %v5429_v63  ;;  %v6083_v14 = vor.u32 %v8259_v0, %v6080_v4  ;;  %v6643_v63 = vor.u32 %v8399_v56, %v6640_v57  ;;  %v8314_v0 = vld [vmem:[%s8906_s24 + $0x5ac] sm:$0xf]  ;;  %v8299_v52 = vld [vmem:[%s8906_s24 + $0x534] sm:$0xf] }
 0x1a5   : > { %5012 = vmatpush.bf16.msra.mxu0 %v5663_v15  ;;  %v5900_v15 = vld [vmem:[%s8906_s24 + $0x29c] sm:$0xf0]  ;;  %v4786_v50 = vpop.f32.mrf.mxu2  ;;  %v6400_v57 = vld [vmem:[%s8906_s24 + $0x684] sm:$0xf0] }
 0x1a6   : > { %5025 = vmatpush.bf16.msra.mxu1 %v5823_v17  ;;  %v6060_v17 = vld [vmem:[%s8906_s24 + $0x3dc] sm:$0xf0]  ;;  %v4799_v25 = vpop.f32.mrf.mxu3  ;;  %v5903_v46 = vor.u32 %v8214_v13, %v5900_v15  ;;  %v6280_v50 = vld [vmem:[%s8906_s24 + $0x594] sm:$0xf0] }
 0x1a7   : > { %5038 = vmatpush.bf16.msra.mxu2 %v5983_v18  ;;  %v8329_v18 = vld [vmem:[%s8906_s24 + $0x624] sm:$0xf]  ;;  %v6300_v4 = vld [vmem:[%s8906_s24 + $0x5bc] sm:$0xf0]  ;;  %v6440_v25 = vld [vmem:[%s8906_s24 + $0x6d4] sm:$0xf0] }
 0x1a8   : > { %5051 = vmatpush.bf16.msra.mxu3 %v6143_v26  ;;  %v5583_v26 = vor.u32 %v8134_v6, %v5580_v7  ;;  %v6460_v7 = vld [vmem:[%s8906_s24 + $0x6fc] sm:$0xf0]  ;;  %v6303_v13 = vor.u32 %v8314_v0, %v6300_v4  ;;  %v8294_v0 = vld [vmem:[%s8906_s24 + $0x50c] sm:$0xf] }
 0x1a9   : > { %5013 = vmatpush.bf16.msra.mxu0 %v5643_v29  ;;  %v6840_v29 = vld [vmem:[%s8906_s24 + $0x9f4] sm:$0xf0]  ;;  %v6220_v4 = vld [vmem:[%s8906_s24 + $0x51c] sm:$0xf0] }
 0x1aa   : > { %5026 = vmatpush.bf16.msra.mxu1 %v5803_v30  ;;  %v6063_v30 = vor.u32 %v8254_v16, %v6060_v17  ;;  %v6843_v36 = vor.u32 %v8449_v49, %v6840_v29  ;;  %v8309_v17 = vld [vmem:[%s8906_s24 + $0x584] sm:$0xf] }
 0x1ab   : > { %5039 = vmatpush.bf16.msra.mxu2 %v5963_v31  ;;  %v6363_v31 = vor.u32 %v8329_v18, %v6360_v19  ;;  %v8349_v18 = vld [vmem:[%s8906_s24 + $0x6c4] sm:$0xf] }
 0x1ac   : > { %5052 = vmatpush.bf16.msra.mxu3 %v6123_v34  ;;  %v6340_v34 = vld [vmem:[%s8906_s24 + $0x60c] sm:$0xf0]  ;;  %v6443_v49 = vor.u32 %v8349_v18, %v6440_v25  ;;  %v8529_v18 = vld [vmem:[%s8906_s24 + $0xc64] sm:$0xf] }
 0x1ad   : > { %5014 = vmatpush.bf16.msra.mxu0 %v5623_v48  ;;  %v6343_v44 = vor.u32 %v8324_v33, %v6340_v34  ;;  %v6663_v48 = vor.u32 %v8404_v38, %v6660_v39  ;;  %v6420_v34 = vld [vmem:[%s8906_s24 + $0x6ac] sm:$0xf0]  ;;  %v8424_v39 = vld [vmem:[%s8906_s24 + $0x91c] sm:$0xf]  ;;  %v8569_v25 = vld [vmem:[%s8906_s24 + $0xda4] sm:$0xf] }
 0x1ae   : > { %5027 = vmatpush.bf16.msra.mxu1 %v5783_v53  ;;  %v8359_v53 = vld [vmem:[%s8906_s24 + $0x714] sm:$0xf] }
 0x1af   : > { %5040 = vmatpush.bf16.msra.mxu2 %v5943_v54  ;;  %v6823_v54 = vor.u32 %v8444_v41, %v6820_v43  ;;  %v6483_v62 = vor.u32 %v8359_v53, %v6480_v55  ;;  %v6740_v41 = vld [vmem:[%s8906_s24 + $0x92c] sm:$0xf0]  ;;  %v6240_v53 = vld [vmem:[%s8906_s24 + $0x544] sm:$0xf0] }
 0x1b0   : > { %5053 = vmatpush.bf16.msra.mxu3 %v6103_v58  ;;  %v8439_v58 = vld [vmem:[%s8906_s24 + $0x994] sm:$0xf]  ;;  %v6743_v56 = vor.u32 %v8424_v39, %v6740_v41 }
 0x1b1   : > { %5015 = vmatpush.bf16.msra.mxu0 %v5603_v5  ;;  %v8354_v5 = vld [vmem:[%s8906_s24 + $0x6ec] sm:$0xf]  ;;  %v6803_v6 = vor.u32 %v8439_v58, %v6800_v59  ;;  %v8379_v58 = vld [vmem:[%s8906_s24 + $0x7b4] sm:$0xf]  ;;  %v6560_v59 = vld [vmem:[%s8906_s24 + $0x7c4] sm:$0xf0] }
 0x1b2   : > { %5028 = vmatpush.bf16.msra.mxu1 %v5763_v9  ;;  %v8394_v9 = vld [vmem:[%s8906_s24 + $0x82c] sm:$0xf]  ;;  %v6463_v15 = vor.u32 %v8354_v5, %v6460_v7 }
 0x1b3   : > { %5041 = vmatpush.bf16.msra.mxu2 %v5923_v10  ;;  %v6620_v10 = vld [vmem:[%s8906_s24 + $0x83c] sm:$0xf0]  ;;  %v8334_v7 = vld [vmem:[%s8906_s24 + $0x64c] sm:$0xf] }
 0x1b4   : > { %5054 = vmatpush.bf16.msra.mxu3 %v6083_v14  ;;  %v6623_v16 = vor.u32 %v8394_v9, %v6620_v10  ;;  %v6380_v9 = vld [vmem:[%s8906_s24 + $0x65c] sm:$0xf0]  ;;  %v8374_v10 = vld [vmem:[%s8906_s24 + $0x78c] sm:$0xf] }
 0x1b5   : > { %5016 = vmatpush.bf16.msra.mxu0 %v5583_v26  ;;  %v4810_v14 = vpop.f32.mrf.mxu0  ;;  %v8389_v26 = vld [vmem:[%s8906_s24 + $0x804] sm:$0xf] }
 0x1b6   : > { %5029 = vmatpush.bf16.msra.mxu1 %v5743_v47  ;;  %v4823_v19 = vpop.f32.mrf.mxu1  ;;  %v6760_v47 = vld [vmem:[%s8906_s24 + $0x954] sm:$0xf0]  ;;  %v6603_v29 = vor.u32 %v8389_v26, %v6600_v40  ;;  %v6383_v40 = vor.u32 %v8334_v7, %v6380_v9  ;;  %v7260_v7 = vld [vmem:[%s8906_s24 + $0xd3c] sm:$0xf0]  ;;  %v8594_v9 = vld [vmem:[%s8906_s24 + $0xe6c] sm:$0xf] }
 0x1b7   : > { %5042 = vmatpush.bf16.msra.mxu2 %v5903_v46  ;;  %v4824_v28 = vadd.f32 %v4823_v19, %v4810_v14  ;;  %v6283_v46 = vor.u32 %v8309_v17, %v6280_v50  ;;  %v6763_v33 = vor.u32 %v8429_v42, %v6760_v47  ;;  %v8414_v14 = vld [vmem:[%s8906_s24 + $0x8cc] sm:$0xf]  ;;  %v8489_v17 = vld [vmem:[%s8906_s24 + $0xb24] sm:$0xf]  ;;  %v7000_v50 = vld [vmem:[%s8906_s24 + $0xb34] sm:$0xf0]  ;;  %v6223_v19 = vor.u32 %v8294_v0, %v6220_v4 }
 0x1b8   : > { %5055 = vmatpush.bf16.msra.mxu3 %v6063_v30  ;;  %5017 = vmatmul.bf16.vlgmr.msra.gmra.mxu0 %v9018_v22  ;;  %v8304_v30 = vld [vmem:[%s8906_s24 + $0x55c] sm:$0xf]  ;;  %v7320_v26 = vld [vmem:[%s8906_s24 + $0xdb4] sm:$0xf0]  ;;  %v8609_v42 = vld [vmem:[%s8906_s24 + $0xee4] sm:$0xf] }
 0x1b9   : > { %5061 = vmatpush.bf16.msrb.mxu0 %v6363_v31  ;;  %5030 = vmatmul.bf16.vlgmr.msra.gmra.mxu1 %v9025_v27  ;;  %v6260_v31 = vld [vmem:[%s8906_s24 + $0x56c] sm:$0xf0]  ;;  %v7480_v47 = vld [vmem:[%s8906_s24 + $0xef4] sm:$0xf0]  ;;  %v8514_v0 = vld [vmem:[%s8906_s24 + $0xbec] sm:$0xf] }
 0x1ba   : > { %5074 = vmatpush.bf16.msrb.mxu1 %v6523_v20  ;;  %5043 = vmatmul.bf16.vlgmr.msra.gmra.mxu2 %v9016_v21  ;;  %v8344_v20 = vld [vmem:[%s8906_s24 + $0x69c] sm:$0xf]  ;;  %v6263_v43 = vor.u32 %v8304_v30, %v6260_v31  ;;  %v7323_v30 = vor.u32 %v8569_v25, %v7320_v26  ;;  %v8549_v25 = vld [vmem:[%s8906_s24 + $0xd04] sm:$0xf]  ;;  %v7240_v26 = vld [vmem:[%s8906_s24 + $0xd14] sm:$0xf0] }
 0x1bb   : > { %5087 = vmatpush.bf16.msrb.mxu2 %v6683_v32  ;;  %5056 = vmatmul.bf16.vlgmr.msra.gmra.mxu3 %v9020_v23  ;;  %v8484_v31 = vld [vmem:[%s8906_s24 + $0xafc] sm:$0xf] }
 0x1bc   : > { %5100 = vmatpush.bf16.msrb.mxu3 %v6843_v36  ;;  %v6580_v36 = vld [vmem:[%s8906_s24 + $0x7ec] sm:$0xf0] }
 0x1bd   : > { %5062 = vmatpush.bf16.msrb.mxu0 %v6343_v44  ;;  %v4836_v32 = vpop.f32.mrf.mxu2  ;;  %v6583_v51 = vor.u32 %v8384_v35, %v6580_v36  ;;  %v8564_v35 = vld [vmem:[%s8906_s24 + $0xd7c] sm:$0xf]  ;;  %v7300_v36 = vld [vmem:[%s8906_s24 + $0xd8c] sm:$0xf0] }
 0x1be   : > { %5075 = vmatpush.bf16.msrb.mxu1 %v6503_v45  ;;  %v4837_v37 = vadd.f32 %v4836_v32, %v4824_v28  ;;  %v4849_v38 = vpop.f32.mrf.mxu3  ;;  %v4812_v45 = vpop.f32.mrf.mxu0  ;;  %v8524_v32 = vld [vmem:[%s8906_s24 + $0xc3c] sm:$0xf] }
 0x1bf   : > { %5088 = vmatpush.bf16.msrb.mxu2 %v6663_v48  ;;  %v6423_v48 = vor.u32 %v8344_v20, %v6420_v34  ;;  %v4825_v55 = vpop.f32.mrf.mxu1  ;;  %v6980_v20 = vld [vmem:[%s8906_s24 + $0xb0c] sm:$0xf0]  ;;  %v8479_v45 = vld [vmem:[%s8906_s24 + $0xad4] sm:$0xf] }
 0x1c0   : > { %5101 = vmatpush.bf16.msrb.mxu3 %v6823_v54  ;;  %v9865_v44 = vadd.f32 %v4849_v38, %v4837_v37  ;;  %v8339_v54 = vld [vmem:[%s8906_s24 + $0x674] sm:$0xf]  ;;  %v7140_v34 = vld [vmem:[%s8906_s24 + $0xc4c] sm:$0xf0]  ;;  %v8604_v37 = vld [vmem:[%s8906_s24 + $0xebc] sm:$0xf]  ;;  %v6983_v39 = vor.u32 %v8484_v31, %v6980_v20 }
 0x1c1   : > { %5063 = vmatpush.bf16.msrb.mxu0 %v6323_v60  ;;  %v8419_v60 = vld [vmem:[%s8906_s24 + $0x8f4] sm:$0xf]  ;;  %v6403_v5 = vor.u32 %v8339_v54, %v6400_v57  ;;  %v7460_v38 = vld [vmem:[%s8906_s24 + $0xecc] sm:$0xf0]  ;;  %v7143_v41 = vor.u32 %v8524_v32, %v7140_v34  ;;  %v7280_v55 = vld [vmem:[%s8906_s24 + $0xd64] sm:$0xf0] }
 0x1c2   : > { %5076 = vmatpush.bf16.msrb.mxu1 %v6483_v62  ;;  %v6720_v62 = vld [vmem:[%s8906_s24 + $0x904] sm:$0xf0]  ;;  %v8559_v54 = vld [vmem:[%s8906_s24 + $0xd54] sm:$0xf]  ;;  %v7060_v32 = vld [vmem:[%s8906_s24 + $0xbac] sm:$0xf0] }
 0x1c3   : > { %5089 = vmatpush.bf16.msrb.mxu2 %v6643_v63  ;;  %v6243_v63 = vor.u32 %v8299_v52, %v6240_v53  ;;  %v6723_v12 = vor.u32 %v8419_v60, %v6720_v62  ;;  %v7463_v52 = vor.u32 %v8604_v37, %v7460_v38  ;;  %v7120_v53 = vld [vmem:[%s8906_s24 + $0xc24] sm:$0xf0]  ;;  %v7283_v60 = vor.u32 %v8559_v54, %v7280_v55  ;;  %v8474_v62 = vld [vmem:[%s8906_s24 + $0xaac] sm:$0xf]  ;;  %v7220_v34 = vld [vmem:[%s8906_s24 + $0xcec] sm:$0xf0] }
 0x1c4   : > { %5102 = vmatpush.bf16.msrb.mxu3 %v6803_v6  ;;  %v6563_v6 = vor.u32 %v8379_v58, %v6560_v59  ;;  %v7440_v57 = vld [vmem:[%s8906_s24 + $0xea4] sm:$0xf0]  ;;  %v8584_v37 = vld [vmem:[%s8906_s24 + $0xe1c] sm:$0xf]  ;;  %v7380_v38 = vld [vmem:[%s8906_s24 + $0xe2c] sm:$0xf0] }
 0x1c5   : > { %5064 = vmatpush.bf16.msrb.mxu0 %v6303_v13  ;;  %v4838_v11 = vpop.f32.mrf.mxu2  ;;  %v6540_v13 = vld [vmem:[%s8906_s24 + $0x79c] sm:$0xf0]  ;;  %v7383_v55 = vor.u32 %v8584_v37, %v7380_v38 }
 0x1c6   : > { %5077 = vmatpush.bf16.msrb.mxu1 %v6463_v15  ;;  %v6700_v15 = vld [vmem:[%s8906_s24 + $0x8dc] sm:$0xf0]  ;;  %v6543_v28 = vor.u32 %v8374_v10, %v6540_v13 }
 0x1c7   : > { %5090 = vmatpush.bf16.msrb.mxu2 %v6623_v16  ;;  %v4851_v16 = vpop.f32.mrf.mxu3  ;;  %v7420_v10 = vld [vmem:[%s8906_s24 + $0xe7c] sm:$0xf0] }
 0x1c8   : > { %5103 = vmatpush.bf16.msrb.mxu3 %v6783_v24  ;;  %v7160_v24 = vld [vmem:[%s8906_s24 + $0xc74] sm:$0xf0] }
 0x1c9   : > { %5065 = vmatpush.bf16.msrb.mxu0 %v6283_v46  ;;  %v6703_v46 = vor.u32 %v8414_v14, %v6700_v15  ;;  %v8469_v15 = vld [vmem:[%s8906_s24 + $0xa84] sm:$0xf]  ;;  %v6920_v16 = vld [vmem:[%s8906_s24 + $0xa94] sm:$0xf0] }
 0x1ca   : > { %5078 = vmatpush.bf16.msrb.mxu1 %v6443_v49  ;;  %v7003_v49 = vor.u32 %v8489_v17, %v7000_v50  ;;  %v8509_v17 = vld [vmem:[%s8906_s24 + $0xbc4] sm:$0xf] }
 0x1cb   : > { %5091 = vmatpush.bf16.msrb.mxu2 %v6603_v29  ;;  %v7163_v29 = vor.u32 %v8529_v18, %v7160_v24  ;;  %v7080_v24 = vld [vmem:[%s8906_s24 + $0xbd4] sm:$0xf0] }
 0x1cc   : > { %5104 = vmatpush.bf16.msrb.mxu3 %v6763_v33  ;;  %v7483_v33 = vor.u32 %v8609_v42, %v7480_v47  ;;  %v6923_v47 = vor.u32 %v8469_v15, %v6920_v16  ;;  %v8649_v16 = vld [vmem:[%s8906_s24 + $0x1024] sm:$0xf] }
 0x1cd   : > { %5066 = vmatpush.bf16.msrb.mxu0 %v6263_v43  ;;  %v7303_v43 = vor.u32 %v8564_v35, %v7300_v36 }
 0x1ce   : > { %5079 = vmatpush.bf16.msrb.mxu1 %v6423_v48  ;;  %v6960_v48 = vld [vmem:[%s8906_s24 + $0xae4] sm:$0xf0] }
 0x1cf   : > { %5092 = vmatpush.bf16.msrb.mxu2 %v6583_v51  ;;  %v8519_v51 = vld [vmem:[%s8906_s24 + $0xc14] sm:$0xf]  ;;  %v6963_v58 = vor.u32 %v8479_v45, %v6960_v48 }
 0x1d0   : > { %5105 = vmatpush.bf16.msrb.mxu3 %v6743_v56  ;;  %v8599_v56 = vld [vmem:[%s8906_s24 + $0xe94] sm:$0xf]  ;;  %v7123_v59 = vor.u32 %v8519_v51, %v7120_v53 }
 0x1d1   : > { %5067 = vmatpush.bf16.msrb.mxu0 %v6243_v63  ;;  %v6940_v63 = vld [vmem:[%s8906_s24 + $0xabc] sm:$0xf0]  ;;  %v7443_v4 = vor.u32 %v8599_v56, %v7440_v57  ;;  %v8459_v51 = vld [vmem:[%s8906_s24 + $0xa34] sm:$0xf]  ;;  %v7040_v56 = vld [vmem:[%s8906_s24 + $0xb84] sm:$0xf0] }
 0x1d2   : > { %5080 = vmatpush.bf16.msrb.mxu1 %v6403_v5  ;;  %v7100_v5 = vld [vmem:[%s8906_s24 + $0xbfc] sm:$0xf0]  ;;  %v6943_v11 = vor.u32 %v8474_v62, %v6940_v63  ;;  %v8499_v53 = vld [vmem:[%s8906_s24 + $0xb74] sm:$0xf]  ;;  %v8454_v63 = vld [vmem:[%s8906_s24 + $0xa0c] sm:$0xf] }
 0x1d3   : > { %5093 = vmatpush.bf16.msrb.mxu2 %v6563_v6  ;;  %v8554_v6 = vld [vmem:[%s8906_s24 + $0xd2c] sm:$0xf]  ;;  %v7103_v13 = vor.u32 %v8514_v0, %v7100_v5  ;;  %v8539_v57 = vld [vmem:[%s8906_s24 + $0xcb4] sm:$0xf]  ;;  %v6860_v0 = vld [vmem:[%s8906_s24 + $0xa1c] sm:$0xf0] }
 0x1d4   : > { %5106 = vmatpush.bf16.msrb.mxu3 %v6723_v12  ;;  %v7263_v14 = vor.u32 %v8554_v6, %v7260_v7  ;;  %v8494_v6 = vld [vmem:[%s8906_s24 + $0xb4c] sm:$0xf]  ;;  %v7020_v7 = vld [vmem:[%s8906_s24 + $0xb5c] sm:$0xf0] }
 0x1d5   : > { %5068 = vmatpush.bf16.msrb.mxu0 %v6223_v19  ;;  %v4862_v12 = vpop.f32.mrf.mxu0  ;;  %v7423_v19 = vor.u32 %v8594_v9, %v7420_v10  ;;  %v8534_v9 = vld [vmem:[%s8906_s24 + $0xc8c] sm:$0xf] }
 0x1d6   : > { %5081 = vmatpush.bf16.msrb.mxu1 %v6383_v40  ;;  %v4863_v50 = vadd.f32 %v4862_v12, %v9865_v44  ;;  %v4875_v18 = vpop.f32.mrf.mxu1  ;;  %v8589_v40 = vld [vmem:[%s8906_s24 + $0xe44] sm:$0xf]  ;;  %v7083_v44 = vor.u32 %v8509_v17, %v7080_v24  ;;  %v7180_v12 = vld [vmem:[%s8906_s24 + $0xc9c] sm:$0xf0]  ;;  %v7640_v17 = vld [vmem:[%s8906_s24 + $0x1034] sm:$0xf0] }
 0x1d7   : > { %5094 = vmatpush.bf16.msrb.mxu2 %v6543_v28  ;;  %v7400_v28 = vld [vmem:[%s8906_s24 + $0xe54] sm:$0xf0]  ;;  %v8729_v24 = vld [vmem:[%s8906_s24 + $0x12a4] sm:$0xf] }
 0x1d8   : > { %5107 = vmatpush.bf16.msrb.mxu3 %v6703_v46  ;;  %5069 = vmatmul.bf16.vlgmr.msrb.gmra.mxu0 %v9057_v1  ;;  %v4876_v42 = vadd.f32 %v4875_v18, %v4863_v50  ;;  %v7243_v46 = vor.u32 %v8549_v25, %v7240_v26  ;;  %v7403_v20 = vor.u32 %v8589_v40, %v7400_v28  ;;  %v8689_v50 = vld [vmem:[%s8906_s24 + $0x1164] sm:$0xf]  ;;  %v7960_v25 = vld [vmem:[%s8906_s24 + $0x12b4] sm:$0xf0] }
 0x1d9   : > { %5113 = vmatpush.bf16.msra.mxu0 %v7003_v49  ;;  %5082 = vmatmul.bf16.vlgmr.msrb.gmra.mxu1 %v9061_v3  ;;  %v8464_v49 = vld [vmem:[%s8906_s24 + $0xa5c] sm:$0xf]  ;;  %v6863_v18 = vor.u32 %v8454_v63, %v6860_v0  ;;  %v7023_v26 = vor.u32 %v8494_v6, %v7020_v7  ;;  %v7183_v40 = vor.u32 %v8534_v9, %v7180_v12  ;;  %v8769_v28 = vld [vmem:[%s8906_s24 + $0x13e4] sm:$0xf]  ;;  %v8674_v6 = vld [vmem:[%s8906_s24 + $0x10ec] sm:$0xf] }
 0x1da   : > { %5126 = vmatpush.bf16.msra.mxu1 %v7163_v29  ;;  %5095 = vmatmul.bf16.vlgmr.msrb.gmra.mxu2 %v9054_v61  ;;  %v6900_v29 = vld [vmem:[%s8906_s24 + $0xa6c] sm:$0xf0]  ;;  %v7740_v9 = vld [vmem:[%s8906_s24 + $0x10fc] sm:$0xf0] }
 0x1db   : > { %5139 = vmatpush.bf16.msra.mxu2 %v7323_v30  ;;  %5108 = vmatmul.bf16.vlgmr.msrb.gmra.mxu3 %v9059_v2  ;;  %v8504_v30 = vld [vmem:[%s8906_s24 + $0xb9c] sm:$0xf] }
 0x1dc   : > { %5152 = vmatpush.bf16.msra.mxu3 %v7483_v33  ;;  %v8544_v33 = vld [vmem:[%s8906_s24 + $0xcdc] sm:$0xf]  ;;  %v7063_v45 = vor.u32 %v8504_v30, %v7060_v32  ;;  %v7620_v30 = vld [vmem:[%s8906_s24 + $0x100c] sm:$0xf0] }
 0x1dd   : > { %5114 = vmatpush.bf16.msra.mxu0 %v6983_v39  ;;  %v4888_v31 = vpop.f32.mrf.mxu2  ;;  %v6903_v39 = vor.u32 %v8464_v49, %v6900_v29  ;;  %v7223_v48 = vor.u32 %v8544_v33, %v7220_v34  ;;  %v7963_v49 = vor.u32 %v8729_v24, %v7960_v25  ;;  %v8644_v29 = vld [vmem:[%s8906_s24 + $0xffc] sm:$0xf]  ;;  %v7780_v32 = vld [vmem:[%s8906_s24 + $0x114c] sm:$0xf0]  ;;  %v7560_v24 = vld [vmem:[%s8906_s24 + $0xf94] sm:$0xf0] }
 0x1de   : > { %5127 = vmatpush.bf16.msra.mxu1 %v7143_v41  ;;  %v4889_v35 = vadd.f32 %v4888_v31, %v4876_v42  ;;  %v4901_v36 = vpop.f32.mrf.mxu3  ;;  %v4877_v54 = vpop.f32.mrf.mxu1  ;;  %v8120_v42 = vld [vmem:[%s8906_s24 + $0x13f4] sm:$0xf0]  ;;  %v8684_v31 = vld [vmem:[%s8906_s24 + $0x113c] sm:$0xf]  ;;  %v7940_v34 = vld [vmem:[%s8906_s24 + $0x128c] sm:$0xf0]  ;;  %v7623_v37 = vor.u32 %v8644_v29, %v7620_v30 }
 0x1df   : > { %5140 = vmatpush.bf16.msra.mxu2 %v7303_v43  ;;  %v4864_v43 = vpop.f32.mrf.mxu0  ;;  %v8724_v33 = vld [vmem:[%s8906_s24 + $0x127c] sm:$0xf]  ;;  %v7783_v38 = vor.u32 %v8684_v31, %v7780_v32  ;;  %v8719_v54 = vld [vmem:[%s8906_s24 + $0x1254] sm:$0xf]  ;;  %v8669_v25 = vld [vmem:[%s8906_s24 + $0x10c4] sm:$0xf] }
 0x1e0   : > { %5153 = vmatpush.bf16.msra.mxu3 %v7463_v52  ;;  %v9936_v41 = vadd.f32 %v4901_v36, %v4889_v35  ;;  %v6880_v52 = vld [vmem:[%s8906_s24 + $0xa44] sm:$0xf0]  ;;  %v8764_v35 = vld [vmem:[%s8906_s24 + $0x13bc] sm:$0xf]  ;;  %v8100_v36 = vld [vmem:[%s8906_s24 + $0x13cc] sm:$0xf0] }
 0x1e1   : > { %5115 = vmatpush.bf16.msra.mxu0 %v6963_v58  ;;  %v7200_v58 = vld [vmem:[%s8906_s24 + $0xcc4] sm:$0xf0]  ;;  %v6883_v62 = vor.u32 %v8459_v51, %v6880_v52  ;;  %v8639_v43 = vld [vmem:[%s8906_s24 + $0xfd4] sm:$0xf]  ;;  %v8815_v51 = vld [vmem:[#allocation1] sm:$0xff]  ;;  %v8103_v52 = vor.u32 %v8764_v35, %v8100_v36 }
 0x1e2   : > { %5128 = vmatpush.bf16.msra.mxu1 %v7123_v59  ;;  %v8579_v59 = vld [vmem:[%s8906_s24 + $0xdf4] sm:$0xf]  ;;  %v7203_v5 = vor.u32 %v8539_v57, %v7200_v58  ;;  %v8817_v57 = vld [vmem:[#allocation1 + $0x9] sm:$0xff]  ;;  %v8624_v30 = vld [vmem:[%s8906_s24 + $0xf5c] sm:$0xf] }
 0x1e3   : > { %5141 = vmatpush.bf16.msra.mxu2 %v7283_v60  ;;  %v7360_v60 = vld [vmem:[%s8906_s24 + $0xe04] sm:$0xf0]  ;;  %v8759_v58 = vld [vmem:[%s8906_s24 + $0x1394] sm:$0xf]  ;;  %v7540_v31 = vld [vmem:[%s8906_s24 + $0xf6c] sm:$0xf0] }
 0x1e4   : > { %5154 = vmatpush.bf16.msra.mxu3 %v7443_v4  ;;  %v7043_v4 = vor.u32 %v8499_v53, %v7040_v56  ;;  %v7760_v53 = vld [vmem:[%s8906_s24 + $0x1124] sm:$0xf0]  ;;  %v8816_v56 = vld [vmem:[#allocation1 + $0x12] sm:$0xff]  ;;  %v8704_v35 = vld [vmem:[%s8906_s24 + $0x11dc] sm:$0xf] }
 0x1e5   : > { %5116 = vmatpush.bf16.msra.mxu0 %v6943_v11  ;;  %v4890_v10 = vpop.f32.mrf.mxu2  ;;  %v7363_v11 = vor.u32 %v8579_v59, %v7360_v60  ;;  %v8080_v59 = vld [vmem:[%s8906_s24 + $0x13a4] sm:$0xf0]  ;;  %v8818_v60 = vld [vmem:[#allocation1 + $0x1b] sm:$0xff]  ;;  %v7860_v36 = vld [vmem:[%s8906_s24 + $0x11ec] sm:$0xf0] }
 0x1e6   : > { %5129 = vmatpush.bf16.msra.mxu1 %v7103_v13  ;;  %v8574_v13 = vld [vmem:[%s8906_s24 + $0xdcc] sm:$0xf]  ;;  %v4903_v15 = vpop.f32.mrf.mxu3  ;;  %v8083_v7 = vor.u32 %v8759_v58, %v8080_v59  ;;  %v7680_v59 = vld [vmem:[%s8906_s24 + $0x1084] sm:$0xf0] }
 0x1e7   : > { %5142 = vmatpush.bf16.msra.mxu2 %v7263_v14  ;;  %v7340_v14 = vld [vmem:[%s8906_s24 + $0xddc] sm:$0xf0]  ;;  %v8714_v10 = vld [vmem:[%s8906_s24 + $0x122c] sm:$0xf] }
 0x1e8   : > { %5155 = vmatpush.bf16.msra.mxu3 %v7423_v19  ;;  %v7800_v19 = vld [vmem:[%s8906_s24 + $0x1174] sm:$0xf0] }
 0x1e9   : > { %5117 = vmatpush.bf16.msra.mxu0 %v6923_v47  ;;  %v7343_v47 = vor.u32 %v8574_v13, %v7340_v14  ;;  %v8754_v13 = vld [vmem:[%s8906_s24 + $0x136c] sm:$0xf]  ;;  %v8060_v14 = vld [vmem:[%s8906_s24 + $0x137c] sm:$0xf0] }
 0x1ea   : > { %5130 = vmatpush.bf16.msra.mxu1 %v7083_v44  ;;  %v7643_v44 = vor.u32 %v8649_v16, %v7640_v17 }
 0x1eb   : > { %5143 = vmatpush.bf16.msra.mxu2 %v7243_v46  ;;  %v7803_v46 = vor.u32 %v8689_v50, %v7800_v19  ;;  %v7743_v50 = vor.u32 %v8674_v6, %v7740_v9  ;;  %v8629_v19 = vld [vmem:[%s8906_s24 + $0xf84] sm:$0xf]  ;;  %v7500_v6 = vld [vmem:[%s8906_s24 + $0xf1c] sm:$0xf0] }
 0x1ec   : > { %5156 = vmatpush.bf16.msra.mxu3 %v7403_v20  ;;  %v8123_v20 = vor.u32 %v8769_v28, %v8120_v42  ;;  %v7720_v28 = vld [vmem:[%s8906_s24 + $0x10d4] sm:$0xf0]  ;;  %v8709_v42 = vld [vmem:[%s8906_s24 + $0x1204] sm:$0xf] }
 0x1ed   : > { %5118 = vmatpush.bf16.msra.mxu0 %v6903_v39  ;;  %v7943_v39 = vor.u32 %v8724_v33, %v7940_v34  ;;  %v7700_v34 = vld [vmem:[%s8906_s24 + $0x10ac] sm:$0xf0] }
 0x1ee   : > { %5131 = vmatpush.bf16.msra.mxu1 %v7063_v45  ;;  %v7600_v45 = vld [vmem:[%s8906_s24 + $0xfe4] sm:$0xf0] }
 0x1ef   : > { %5144 = vmatpush.bf16.msra.mxu2 %v7223_v48  ;;  %v8679_v48 = vld [vmem:[%s8906_s24 + $0x1114] sm:$0xf] }
 0x1f0   : > { %5157 = vmatpush.bf16.msra.mxu3 %v7383_v55  ;;  %v7920_v55 = vld [vmem:[%s8906_s24 + $0x1264] sm:$0xf0]  ;;  %v7763_v63 = vor.u32 %v8679_v48, %v7760_v53  ;;  %v7543_v48 = vor.u32 %v8624_v30, %v7540_v31  ;;  %v5706_v31 = vld [vmem:[%s8906_s24 + $0x100] sm:$0xf] }
 0x1f1   : > { %5119 = vmatpush.bf16.msra.mxu0 %v6883_v62  ;;  %v7603_v62 = vor.u32 %v8639_v43, %v7600_v45  ;;  %v7923_v0 = vor.u32 %v8719_v54, %v7920_v55  ;;  %v8020_v43 = vld [vmem:[%s8906_s24 + $0x132c] sm:$0xf0]  ;;  %v7863_v54 = vor.u32 %v8704_v35, %v7860_v36  ;;  %v8619_v55 = vld [vmem:[%s8906_s24 + $0xf34] sm:$0xf]  ;;  %v6026_v35 = vld [vmem:[%s8906_s24 + $0x380] sm:$0xf] }
 0x1f2   : > { %5132 = vmatpush.bf16.msra.mxu1 %v7043_v4  ;;  %v8634_v4 = vld [vmem:[%s8906_s24 + $0xfac] sm:$0xf]  ;;  %v8247_v36 = vld [vmem:[%s8906_s24 + $0x390] sm:$0xf0] }
 0x1f3   : > { %5145 = vmatpush.bf16.msra.mxu2 %v7203_v5  ;;  %v7580_v5 = vld [vmem:[%s8906_s24 + $0xfbc] sm:$0xf0] }
 0x1f4   : > { %5158 = vmatpush.bf16.msra.mxu3 %v7363_v11  ;;  %v7900_v11 = vld [vmem:[%s8906_s24 + $0x123c] sm:$0xf0]  ;;  %v7583_v16 = vor.u32 %v8634_v4, %v7580_v5  ;;  %v8614_v5 = vld [vmem:[%s8906_s24 + $0xf0c] sm:$0xf] }
 0x1f5   : > { %5120 = vmatpush.bf16.msra.mxu0 %v6863_v18  ;;  %v4914_v12 = vpop.f32.mrf.mxu0  ;;  %v7903_v18 = vor.u32 %v8714_v10, %v7900_v11  ;;  %v8654_v10 = vld [vmem:[%s8906_s24 + $0x104c] sm:$0xf]  ;;  %v7660_v11 = vld [vmem:[%s8906_s24 + $0x105c] sm:$0xf0] }
 0x1f6   : > { %5133 = vmatpush.bf16.msra.mxu1 %v7023_v26  ;;  %v4915_v15 = vadd.f32 %v4914_v12, %v9936_v41  ;;  %v4927_v17 = vpop.f32.mrf.mxu1  ;;  %v8063_v26 = vor.u32 %v8754_v13, %v8060_v14  ;;  %v7880_v41 = vld [vmem:[%s8906_s24 + $0x1214] sm:$0xf0]  ;;  %v8694_v12 = vld [vmem:[%s8906_s24 + $0x118c] sm:$0xf]  ;;  %v7820_v14 = vld [vmem:[%s8906_s24 + $0x119c] sm:$0xf0] }
 0x1f7   : > { %5146 = vmatpush.bf16.msra.mxu2 %v7183_v40  ;;  %v7883_v29 = vor.u32 %v8709_v42, %v7880_v41  ;;  %v7663_v42 = vor.u32 %v8654_v10, %v7660_v11  ;;  %v7823_v41 = vor.u32 %v8694_v12, %v7820_v14  ;;  %v5826_v10 = vld [vmem:[%s8906_s24 + $0x1f0] sm:$0xf]  ;;  %v8197_v12 = vld [vmem:[%s8906_s24 + $0x200] sm:$0xf0] }
 0x1f8   : > { %5159 = vmatpush.bf16.msra.mxu3 %v7343_v47  ;;  %5121 = vmatmul.bf16.vlgmr.msra.gmra.mxu0 %v8815_v51  ;;  %v4928_v40 = vadd.f32 %v4927_v17, %v4915_v15  ;;  %v8749_v47 = vld [vmem:[%s8906_s24 + $0x1344] sm:$0xf]  ;;  %v8734_v15 = vld [vmem:[%s8906_s24 + $0x12cc] sm:$0xf] }
 0x1f9   : > { %5165 = vmatpush.bf16.msrb.mxu0 %v7643_v44  ;;  %5134 = vmatmul.bf16.vlgmr.msra.gmra.mxu1 %v8817_v57  ;;  %v8040_v44 = vld [vmem:[%s8906_s24 + $0x1354] sm:$0xf0]  ;;  %v8659_v57 = vld [vmem:[%s8906_s24 + $0x1074] sm:$0xf]  ;;  %v8237_v14 = vld [vmem:[%s8906_s24 + $0x340] sm:$0xf0] }
 0x1fa   : > { %5178 = vmatpush.bf16.msrb.mxu1 %v7803_v46  ;;  %5147 = vmatmul.bf16.vlgmr.msra.gmra.mxu2 %v8816_v56  ;;  %v7563_v46 = vor.u32 %v8629_v19, %v7560_v24  ;;  %v8043_v32 = vor.u32 %v8749_v47, %v8040_v44  ;;  %v7520_v56 = vld [vmem:[%s8906_s24 + $0xf44] sm:$0xf0]  ;;  %v8292_v44 = vld [vmem:[%s8906_s24 + $0x4f8] sm:$0xf0] }
 0x1fb   : > { %5191 = vmatpush.bf16.msrb.mxu2 %v7963_v49  ;;  %5160 = vmatmul.bf16.vlgmr.msra.gmra.mxu3 %v8818_v60  ;;  %v7723_v49 = vor.u32 %v8669_v25, %v7720_v28  ;;  %v8699_v60 = vld [vmem:[%s8906_s24 + $0x11b4] sm:$0xf]  ;;  %v7523_v4 = vor.u32 %v8619_v55, %v7520_v56  ;;  %v5886_v19 = vld [vmem:[%s8906_s24 + $0x268] sm:$0xf]  ;;  %v7503_v25 = vor.u32 %v8614_v5, %v7500_v6  ;;  %v8252_v28 = vld [vmem:[%s8906_s24 + $0x3b8] sm:$0xf0] }
 0x1fc   : > { %5204 = vmatpush.bf16.msrb.mxu3 %v8123_v20  ;;  %v8664_v20 = vld [vmem:[%s8906_s24 + $0x109c] sm:$0xf]  ;;  %v6206_v47 = vld [vmem:[%s8906_s24 + $0x4e8] sm:$0xf]  ;;  %v8202_v56 = vld [vmem:[%s8906_s24 + $0x228] sm:$0xf0] }
 0x1fd   : > { %5166 = vmatpush.bf16.msrb.mxu0 %v7623_v37  ;;  %v4940_v33 = vpop.f32.mrf.mxu2  ;;  %v4916_v45 = vpop.f32.mrf.mxu0  ;;  %v7703_v53 = vor.u32 %v8664_v20, %v7700_v34  ;;  %v8167_v20 = vld [vmem:[%s8906_s24 + $0x110] sm:$0xf0] }
 0x1fe   : > { %5179 = vmatpush.bf16.msrb.mxu1 %v7783_v38  ;;  %v4941_v37 = vadd.f32 %v4940_v33, %v4928_v40  ;;  %v4953_v38 = vpop.f32.mrf.mxu3  ;;  %v4929_v51 = vpop.f32.mrf.mxu1  ;;  %v6046_v40 = vld [vmem:[%s8906_s24 + $0x3a8] sm:$0xf]  ;;  %v6207_v33 = vor.u32 %v8292_v44, %v6206_v47  ;;  %v8207_v34 = vld [vmem:[%s8906_s24 + $0x250] sm:$0xf0]  ;;  %v6027_v45 = vor.u32 %v8247_v36, %v6026_v35  ;;  %v8192_v47 = vld [vmem:[%s8906_s24 + $0x1d8] sm:$0xf0] }
 0x1ff   : > { %5192 = vmatpush.bf16.msrb.mxu2 %v7943_v39  ;;  %v8744_v39 = vld [vmem:[%s8906_s24 + $0x131c] sm:$0xf]  ;;  %v6047_v30 = vor.u32 %v8252_v28, %v6046_v40  ;;  %v8162_v51 = vld [vmem:[%s8906_s24 + $0xe8] sm:$0xf0]  ;;  %v5806_v28 = vld [vmem:[%s8906_s24 + $0x1c8] sm:$0xf] }
 0x200   : > { %5205 = vmatpush.bf16.msrb.mxu3 %v8103_v52  ;;  %v10003_v52 = vadd.f32 %v4953_v38, %v4941_v37  ;;  %v8023_v58 = vor.u32 %v8744_v39, %v8020_v43  ;;  %v6186_v37 = vld [vmem:[%s8906_s24 + $0x4c0] sm:$0xf]  ;;  %v8287_v38 = vld [vmem:[%s8906_s24 + $0x4d0] sm:$0xf0]  ;;  %v5707_v39 = vor.u32 %v8167_v20, %v5706_v31  ;;  %v8152_v40 = vld [vmem:[%s8906_s24 + $0x98] sm:$0xf0] }
 0x201   : > { %5167 = vmatpush.bf16.msrb.mxu0 %v7603_v62  ;;  %v7840_v62 = vld [vmem:[%s8906_s24 + $0x11c4] sm:$0xf0]  ;;  %v6187_v55 = vor.u32 %v8287_v38, %v6186_v37  ;;  %v5626_v20 = vld [vmem:[%s8906_s24 + $0x60] sm:$0xf]  ;;  %v8187_v36 = vld [vmem:[%s8906_s24 + $0x1b0] sm:$0xf0] }
 0x202   : > { %5180 = vmatpush.bf16.msrb.mxu1 %v7763_v63  ;;  %v8739_v63 = vld [vmem:[%s8906_s24 + $0x12f4] sm:$0xf]  ;;  %v7843_v9 = vor.u32 %v8699_v60, %v7840_v62  ;;  %v6166_v62 = vld [vmem:[%s8906_s24 + $0x498] sm:$0xf]  ;;  %v5966_v44 = vld [vmem:[%s8906_s24 + $0x308] sm:$0xf] }
 0x203   : > { %5193 = vmatpush.bf16.msrb.mxu2 %v7923_v0  ;;  %v8000_v0 = vld [vmem:[%s8906_s24 + $0x1304] sm:$0xf0]  ;;  %v8821_v60 = vld [vmem:[#allocation1 + $0x2d] sm:$0xff]  ;;  %v5946_v37 = vld [vmem:[%s8906_s24 + $0x2e0] sm:$0xf] }
 0x204   : > { %5206 = vmatpush.bf16.msrb.mxu3 %v8083_v7  ;;  %v7683_v7 = vor.u32 %v8659_v57, %v7680_v59  ;;  %v8003_v13 = vor.u32 %v8739_v63, %v8000_v0  ;;  %v6006_v57 = vld [vmem:[%s8906_s24 + $0x358] sm:$0xf]  ;;  %v8282_v63 = vld [vmem:[%s8906_s24 + $0x4a8] sm:$0xf0]  ;;  %v8822_v0 = vld [vmem:[#allocation1 + $0x3f] sm:$0xff] }
 0x205   : > { %5168 = vmatpush.bf16.msrb.mxu0 %v7583_v16  ;;  %v7980_v16 = vld [vmem:[%s8906_s24 + $0x12dc] sm:$0xf0]  ;;  %v4942_v17 = vpop.f32.mrf.mxu2  ;;  %v8820_v59 = vld [vmem:[#allocation1 + $0x36] sm:$0xff]  ;;  %v6167_v11 = vor.u32 %v8282_v63, %v6166_v62  ;;  %v8182_v63 = vld [vmem:[%s8906_s24 + $0x188] sm:$0xf0] }
 0x206   : > { %5181 = vmatpush.bf16.msrb.mxu1 %v7743_v50  ;;  %v5726_v50 = vld [vmem:[%s8906_s24 + $0x128] sm:$0xf]  ;;  %v4955_v24 = vpop.f32.mrf.mxu3  ;;  %v8277_v17 = vld [vmem:[%s8906_s24 + $0x480] sm:$0xf0]  ;;  %v8227_v38 = vld [vmem:[%s8906_s24 + $0x2f0] sm:$0xf0] }
 0x207   : > { %5194 = vmatpush.bf16.msrb.mxu2 %v7903_v18  ;;  %v8172_v18 = vld [vmem:[%s8906_s24 + $0x138] sm:$0xf0]  ;;  %v5827_v24 = vor.u32 %v8197_v12, %v5826_v10  ;;  %v8137_v10 = vld [vmem:[%s8906_s24 + $0x20] sm:$0xf0] }
 0x208   : > { %5207 = vmatpush.bf16.msrb.mxu3 %v8063_v26  ;;  %v8212_v26 = vld [vmem:[%s8906_s24 + $0x278] sm:$0xf0] }
 0x209   : > { %5169 = vmatpush.bf16.msrb.mxu0 %v7563_v46  ;;  %v7983_v46 = vor.u32 %v8734_v15, %v7980_v16  ;;  %v6146_v16 = vld [vmem:[%s8906_s24 + $0x470] sm:$0xf] }
 0x20a   : > { %5182 = vmatpush.bf16.msrb.mxu1 %v7723_v49  ;;  %v5727_v49 = vor.u32 %v8172_v18, %v5726_v50 }
 0x20b   : > { %5195 = vmatpush.bf16.msrb.mxu2 %v7883_v29  ;;  %v5887_v29 = vor.u32 %v8212_v26, %v5886_v19  ;;  %v5646_v26 = vld [vmem:[%s8906_s24 + $0x88] sm:$0xf] }
 0x20c   : > { %5208 = vmatpush.bf16.msrb.mxu3 %v8043_v32  ;;  %v5866_v32 = vld [vmem:[%s8906_s24 + $0x240] sm:$0xf] }
 0x20d   : > { %5170 = vmatpush.bf16.msrb.mxu0 %v7543_v48  ;;  %v5867_v43 = vor.u32 %v8207_v34, %v5866_v32  ;;  %v5686_v48 = vld [vmem:[%s8906_s24 + $0xd8] sm:$0xf]  ;;  %v8147_v32 = vld [vmem:[%s8906_s24 + $0x70] sm:$0xf0] }
 0x20e   : > { %5183 = vmatpush.bf16.msrb.mxu1 %v7703_v53  ;;  %v5846_v53 = vld [vmem:[%s8906_s24 + $0x218] sm:$0xf] }
 0x20f   : > { %5196 = vmatpush.bf16.msrb.mxu2 %v7863_v54  ;;  %v8819_v54 = vld [vmem:[#allocation1 + $0x24] sm:$0xff]  ;;  %v5847_v5 = vor.u32 %v8202_v56, %v5846_v53  ;;  %v5627_v53 = vor.u32 %v8147_v32, %v5626_v20  ;;  %v6346_v32 = vld [vmem:[%s8906_s24 + $0x600] sm:$0xf] }
 0x210   : > { %5209 = vmatpush.bf16.msrb.mxu3 %v8023_v58  ;;  %v8242_v58 = vld [vmem:[%s8906_s24 + $0x368] sm:$0xf0] }
 0x211   : > { %5171 = vmatpush.bf16.msrb.mxu0 %v7523_v4  ;;  %v5687_v4 = vor.u32 %v8162_v51, %v5686_v48  ;;  %v6007_v6 = vor.u32 %v8242_v58, %v6006_v57  ;;  %v8267_v48 = vld [vmem:[%s8906_s24 + $0x430] sm:$0xf0]  ;;  %v5947_v57 = vor.u32 %v8227_v38, %v5946_v37  ;;  %v5606_v58 = vld [vmem:[%s8906_s24 + $0x38] sm:$0xf]  ;;  %v6666_v37 = vld [vmem:[%s8906_s24 + $0x880] sm:$0xf] }
 0x212   : > { %5184 = vmatpush.bf16.msrb.mxu1 %v7683_v7  ;;  %v5666_v7 = vld [vmem:[%s8906_s24 + $0xb0] sm:$0xf]  ;;  %v8407_v38 = vld [vmem:[%s8906_s24 + $0x890] sm:$0xf0] }
 0x213   : > { %5197 = vmatpush.bf16.msrb.mxu2 %v7843_v9  ;;  %v8157_v9 = vld [vmem:[%s8906_s24 + $0xc0] sm:$0xf0] }
 0x214   : > { %5210 = vmatpush.bf16.msrb.mxu3 %v8003_v13  ;;  %v5986_v13 = vld [vmem:[%s8906_s24 + $0x330] sm:$0xf]  ;;  %v5667_v18 = vor.u32 %v8157_v9, %v5666_v7 }
 0x215   : > { %5172 = vmatpush.bf16.msrb.mxu0 %v7503_v25  ;;  %v4966_v15 = vpop.f32.mrf.mxu0  ;;  %v5987_v25 = vor.u32 %v8237_v14, %v5986_v13  ;;  %v5586_v9 = vld [vmem:[%s8906_s24 + $0x10] sm:$0xf]  ;;  %v8177_v14 = vld [vmem:[%s8906_s24 + $0x160] sm:$0xf0] }
 0x216   : > { %5185 = vmatpush.bf16.msrb.mxu1 %v7663_v42  ;;  %v4967_v50 = vadd.f32 %v4966_v15, %v10003_v52  ;;  %v4979_v19 = vpop.f32.mrf.mxu1  ;;  %v6147_v42 = vor.u32 %v8277_v17, %v6146_v16  ;;  %v8232_v52 = vld [vmem:[%s8906_s24 + $0x318] sm:$0xf0]  ;;  %v5746_v13 = vld [vmem:[%s8906_s24 + $0x150] sm:$0xf]  ;;  %v8217_v17 = vld [vmem:[%s8906_s24 + $0x2a0] sm:$0xf0] }
 0x217   : > { %5198 = vmatpush.bf16.msrb.mxu2 %v7823_v41  ;;  %v5967_v31 = vor.u32 %v8232_v52, %v5966_v44  ;;  %v5906_v15 = vld [vmem:[%s8906_s24 + $0x290] sm:$0xf]  ;;  %v5747_v44 = vor.u32 %v8177_v14, %v5746_v13 }
 0x218   : > { %5211 = vmatpush.bf16.msrb.mxu3 %v7983_v46  ;;  %5173 = vmatmul.bf16.vlgmr.msrb.gmra.mxu0 %v8819_v54  ;;  %v4980_v41 = vadd.f32 %v4979_v19, %v4967_v50  ;;  %v6126_v46 = vld [vmem:[%s8906_s24 + $0x448] sm:$0xf]  ;;  %v6066_v50 = vld [vmem:[%s8906_s24 + $0x3d0] sm:$0xf]  ;;  %v5907_v52 = vor.u32 %v8217_v17, %v5906_v15  ;;  %v8312_v17 = vld [vmem:[%s8906_s24 + $0x598] sm:$0xf0] }
 0x219   : > { %5217 = vmatpush.bf16.msra.mxu0 %v5727_v49  ;;  %5186 = vmatmul.bf16.vlgmr.msrb.gmra.mxu1 %v8821_v60  ;;  %v8272_v49 = vld [vmem:[%s8906_s24 + $0x458] sm:$0xf0]  ;;  %v5766_v60 = vld [vmem:[%s8906_s24 + $0x178] sm:$0xf] }
 0x21a   : > { %5230 = vmatpush.bf16.msra.mxu1 %v5887_v29  ;;  %5199 = vmatmul.bf16.vlgmr.msrb.gmra.mxu2 %v8820_v59  ;;  %v5647_v29 = vor.u32 %v8152_v40, %v5646_v26  ;;  %v6127_v34 = vor.u32 %v8272_v49, %v6126_v46  ;;  %v8142_v59 = vld [vmem:[%s8906_s24 + $0x48] sm:$0xf0]  ;;  %v6526_v26 = vld [vmem:[%s8906_s24 + $0x768] sm:$0xf]  ;;  %v8452_v49 = vld [vmem:[%s8906_s24 + $0x9f8] sm:$0xf0] }
 0x21b   : > { %5243 = vmatpush.bf16.msra.mxu2 %v6047_v30  ;;  %5212 = vmatmul.bf16.vlgmr.msrb.gmra.mxu3 %v8822_v0  ;;  %v5807_v30 = vor.u32 %v8192_v47, %v5806_v28  ;;  %v5926_v0 = vld [vmem:[%s8906_s24 + $0x2b8] sm:$0xf]  ;;  %v5607_v7 = vor.u32 %v8142_v59, %v5606_v58  ;;  %v5587_v28 = vor.u32 %v8137_v10, %v5586_v9  ;;  %v8412_v47 = vld [vmem:[%s8906_s24 + $0x8b8] sm:$0xf0]  ;;  %v6846_v46 = vld [vmem:[%s8906_s24 + $0x9e8] sm:$0xf] }
 0x21c   : > { %5256 = vmatpush.bf16.msra.mxu3 %v6207_v33  ;;  %v5786_v33 = vld [vmem:[%s8906_s24 + $0x1a0] sm:$0xf]  ;;  %v8362_v58 = vld [vmem:[%s8906_s24 + $0x728] sm:$0xf0]  ;;  %v6646_v59 = vld [vmem:[%s8906_s24 + $0x858] sm:$0xf] }
 0x21d   : > { %5218 = vmatpush.bf16.msra.mxu0 %v5707_v39  ;;  %v4992_v35 = vpop.f32.mrf.mxu2  ;;  %v4968_v51 = vpop.f32.mrf.mxu0  ;;  %v5787_v56 = vor.u32 %v8187_v36, %v5786_v33  ;;  %v8327_v33 = vld [vmem:[%s8906_s24 + $0x610] sm:$0xf0]  ;;  %v8357_v9 = vld [vmem:[%s8906_s24 + $0x700] sm:$0xf0] }
 0x21e   : > { %5231 = vmatpush.bf16.msra.mxu1 %v5867_v43  ;;  %v4993_v39 = vadd.f32 %v4992_v35, %v4980_v41  ;;  %v5005_v43 = vpop.f32.mrf.mxu3  ;;  %v4981_v54 = vpop.f32.mrf.mxu1  ;;  %v6686_v41 = vld [vmem:[%s8906_s24 + $0x8a8] sm:$0xf]  ;;  %v6847_v35 = vor.u32 %v8452_v49, %v6846_v46  ;;  %v8367_v36 = vld [vmem:[%s8906_s24 + $0x750] sm:$0xf0]  ;;  %v6667_v51 = vor.u32 %v8407_v38, %v6666_v37  ;;  %v8397_v10 = vld [vmem:[%s8906_s24 + $0x840] sm:$0xf0] }
 0x21f   : > { %5244 = vmatpush.bf16.msra.mxu2 %v6027_v45  ;;  %v6106_v45 = vld [vmem:[%s8906_s24 + $0x420] sm:$0xf]  ;;  %v6687_v20 = vor.u32 %v8412_v47, %v6686_v41  ;;  %v8322_v54 = vld [vmem:[%s8906_s24 + $0x5e8] sm:$0xf0]  ;;  %v8307_v46 = vld [vmem:[%s8906_s24 + $0x570] sm:$0xf0] }
 0x220   : > { %5257 = vmatpush.bf16.msra.mxu3 %v6187_v55  ;;  %v10070_v55 = vadd.f32 %v5005_v43, %v4993_v39  ;;  %v6107_v62 = vor.u32 %v8267_v48, %v6106_v45  ;;  %v6826_v39 = vld [vmem:[%s8906_s24 + $0x9c0] sm:$0xf]  ;;  %v8447_v43 = vld [vmem:[%s8906_s24 + $0x9d0] sm:$0xf0]  ;;  %v6347_v45 = vor.u32 %v8327_v33, %v6346_v32 }
 0x221   : > { %5219 = vmatpush.bf16.msra.mxu0 %v5687_v4  ;;  %v8222_v4 = vld [vmem:[%s8906_s24 + $0x2c8] sm:$0xf0]  ;;  %v6426_v49 = vld [vmem:[%s8906_s24 + $0x6a0] sm:$0xf]  ;;  %v8387_v32 = vld [vmem:[%s8906_s24 + $0x7f0] sm:$0xf0] }
 0x222   : > { %5232 = vmatpush.bf16.msra.mxu1 %v5847_v5  ;;  %v6086_v5 = vld [vmem:[%s8906_s24 + $0x3f8] sm:$0xf]  ;;  %v5927_v12 = vor.u32 %v8222_v4, %v5926_v0 }
 0x223   : > { %5245 = vmatpush.bf16.msra.mxu2 %v6007_v6  ;;  %v8262_v6 = vld [vmem:[%s8906_s24 + $0x408] sm:$0xf0] }
 0x224   : > { %5258 = vmatpush.bf16.msra.mxu3 %v6167_v11  ;;  %v5767_v11 = vor.u32 %v8182_v63, %v5766_v60  ;;  %v6087_v16 = vor.u32 %v8262_v6, %v6086_v5  ;;  %v8402_v60 = vld [vmem:[%s8906_s24 + $0x868] sm:$0xf0]  ;;  %v8317_v6 = vld [vmem:[%s8906_s24 + $0x5c0] sm:$0xf0] }
 0x225   : > { %5220 = vmatpush.bf16.msra.mxu0 %v5667_v18  ;;  %v8257_v18 = vld [vmem:[%s8906_s24 + $0x3e0] sm:$0xf0]  ;;  %v4994_v19 = vpop.f32.mrf.mxu2  ;;  %v8442_v63 = vld [vmem:[%s8906_s24 + $0x9a8] sm:$0xf0]  ;;  %v6647_v5 = vor.u32 %v8402_v60, %v6646_v59  ;;  %v6726_v60 = vld [vmem:[%s8906_s24 + $0x8f8] sm:$0xf] }
 0x226   : > { %5233 = vmatpush.bf16.msra.mxu1 %v5827_v24  ;;  %v6366_v24 = vld [vmem:[%s8906_s24 + $0x628] sm:$0xf]  ;;  %v5007_v40 = vpop.f32.mrf.mxu3  ;;  %v8382_v59 = vld [vmem:[%s8906_s24 + $0x7c8] sm:$0xf0] }
 0x227   : > { %5246 = vmatpush.bf16.msra.mxu2 %v5987_v25  ;;  %v8332_v25 = vld [vmem:[%s8906_s24 + $0x638] sm:$0xf0] }
 0x228   : > { %5259 = vmatpush.bf16.msra.mxu3 %v6147_v42  ;;  %v8372_v42 = vld [vmem:[%s8906_s24 + $0x778] sm:$0xf0] }
 0x229   : > { %5221 = vmatpush.bf16.msra.mxu0 %v5647_v29  ;;  %v6067_v29 = vor.u32 %v8257_v18, %v6066_v50  ;;  %v6446_v50 = vld [vmem:[%s8906_s24 + $0x6c8] sm:$0xf] }
 0x22a   : > { %5234 = vmatpush.bf16.msra.mxu1 %v5807_v30  ;;  %v6367_v30 = vor.u32 %v8332_v25, %v6366_v24  ;;  %v8352_v24 = vld [vmem:[%s8906_s24 + $0x6d8] sm:$0xf0]  ;;  %v6606_v25 = vld [vmem:[%s8906_s24 + $0x808] sm:$0xf] }
 0x22b   : > { %5247 = vmatpush.bf16.msra.mxu2 %v5967_v31  ;;  %v6527_v31 = vor.u32 %v8372_v42, %v6526_v26  ;;  %v8392_v26 = vld [vmem:[%s8906_s24 + $0x818] sm:$0xf0]  ;;  %v6447_v47 = vor.u32 %v8352_v24, %v6446_v50  ;;  %v7326_v50 = vld [vmem:[%s8906_s24 + $0xda8] sm:$0xf] }
 0x22c   : > { %5260 = vmatpush.bf16.msra.mxu3 %v6127_v34  ;;  %v6506_v34 = vld [vmem:[%s8906_s24 + $0x740] sm:$0xf]  ;;  %v8432_v42 = vld [vmem:[%s8906_s24 + $0x958] sm:$0xf0] }
 0x22d   : > { %5222 = vmatpush.bf16.msra.mxu0 %v5627_v53  ;;  %v6507_v48 = vor.u32 %v8367_v36, %v6506_v34  ;;  %v6326_v53 = vld [vmem:[%s8906_s24 + $0x5d8] sm:$0xf]  ;;  %v8427_v36 = vld [vmem:[%s8906_s24 + $0x930] sm:$0xf0] }
 0x22e   : > { %5235 = vmatpush.bf16.msra.mxu1 %v5787_v56  ;;  %v6486_v56 = vld [vmem:[%s8906_s24 + $0x718] sm:$0xf]  ;;  %v6327_v0 = vor.u32 %v8322_v54, %v6326_v53 }
 0x22f   : > { %5248 = vmatpush.bf16.msra.mxu2 %v5947_v57  ;;  %v6827_v57 = vor.u32 %v8447_v43, %v6826_v39  ;;  %v6487_v4 = vor.u32 %v8362_v58, %v6486_v56  ;;  %v6406_v53 = vld [vmem:[%s8906_s24 + $0x678] sm:$0xf] }
 0x230   : > { %5261 = vmatpush.bf16.msra.mxu3 %v6107_v62  ;;  %v6806_v62 = vld [vmem:[%s8906_s24 + $0x998] sm:$0xf] }
 0x231   : > { %5223 = vmatpush.bf16.msra.mxu0 %v5607_v7  ;;  %v6466_v7 = vld [vmem:[%s8906_s24 + $0x6f0] sm:$0xf]  ;;  %v6566_v58 = vld [vmem:[%s8906_s24 + $0x7b8] sm:$0xf] }
 0x232   : > { %5236 = vmatpush.bf16.msra.mxu1 %v5767_v11  ;;  %v6786_v11 = vld [vmem:[%s8906_s24 + $0x970] sm:$0xf]  ;;  %v6467_v14 = vor.u32 %v8357_v9, %v6466_v7  ;;  %v8337_v7 = vld [vmem:[%s8906_s24 + $0x660] sm:$0xf0] }
 0x233   : > { %5249 = vmatpush.bf16.msra.mxu2 %v5927_v12  ;;  %v8437_v12 = vld [vmem:[%s8906_s24 + $0x980] sm:$0xf0] }
 0x234   : > { %5262 = vmatpush.bf16.msra.mxu3 %v6087_v16  ;;  %v6286_v16 = vld [vmem:[%s8906_s24 + $0x588] sm:$0xf]  ;;  %v6787_v19 = vor.u32 %v8437_v12, %v6786_v11  ;;  %v6706_v11 = vld [vmem:[%s8906_s24 + $0x8d0] sm:$0xf]  ;;  %v8417_v12 = vld [vmem:[%s8906_s24 + $0x8e0] sm:$0xf0] }
 0x235   : > { %5224 = vmatpush.bf16.msra.mxu0 %v5587_v28  ;;  %v5018_v13 = vpop.f32.mrf.mxu0  ;;  %v6766_v28 = vld [vmem:[%s8906_s24 + $0x948] sm:$0xf]  ;;  %v6287_v41 = vor.u32 %v8312_v17, %v6286_v16  ;;  %v8532_v17 = vld [vmem:[%s8906_s24 + $0xc78] sm:$0xf0] }
 0x236   : > { %5237 = vmatpush.bf16.msra.mxu1 %v5747_v44  ;;  %v5031_v18 = vpop.f32.mrf.mxu1  ;;  %v6607_v44 = vor.u32 %v8392_v26, %v6606_v25  ;;  %v7486_v25 = vld [vmem:[%s8906_s24 + $0xee8] sm:$0xf]  ;;  %v8612_v26 = vld [vmem:[%s8906_s24 + $0xef8] sm:$0xf0] }
 0x237   : > { %5250 = vmatpush.bf16.msra.mxu2 %v5907_v52  ;;  %v5032_v40 = vadd.f32 %v5031_v18, %v5018_v13  ;;  %v6266_v52 = vld [vmem:[%s8906_s24 + $0x560] sm:$0xf]  ;;  %v7006_v13 = vld [vmem:[%s8906_s24 + $0xb28] sm:$0xf]  ;;  %v8572_v18 = vld [vmem:[%s8906_s24 + $0xdb8] sm:$0xf0] }
 0x238   : > { %5263 = vmatpush.bf16.msra.mxu3 %v6067_v29  ;;  %5225 = vmatmul.bf16.vlgmr.msra.gmra.mxu0 %v9018_v22  ;;  %v6807_v22 = vor.u32 %v8442_v63, %v6806_v62  ;;  %v6267_v37 = vor.u32 %v8307_v46, %v6266_v52  ;;  %v8422_v62 = vld [vmem:[%s8906_s24 + $0x908] sm:$0xf0]  ;;  %v7146_v52 = vld [vmem:[%s8906_s24 + $0xc40] sm:$0xf]  ;;  %v7487_v46 = vor.u32 %v8612_v26, %v7486_v25  ;;  %v8507_v25 = vld [vmem:[%s8906_s24 + $0xbb0] sm:$0xf0] }
 0x239   : > { %5269 = vmatpush.bf16.msrb.mxu0 %v6367_v30  ;;  %5238 = vmatmul.bf16.vlgmr.msra.gmra.mxu1 %v9025_v27  ;;  %v6767_v30 = vor.u32 %v8432_v42, %v6766_v28  ;;  %v7226_v26 = vld [vmem:[%s8906_s24 + $0xce0] sm:$0xf] }
 0x23a   : > { %5282 = vmatpush.bf16.msrb.mxu1 %v6527_v31  ;;  %5251 = vmatmul.bf16.vlgmr.msra.gmra.mxu2 %v9016_v21  ;;  %v6306_v21 = vld [vmem:[%s8906_s24 + $0x5b0] sm:$0xf]  ;;  %v8347_v31 = vld [vmem:[%s8906_s24 + $0x6b0] sm:$0xf0] }
 0x23b   : > { %5295 = vmatpush.bf16.msrb.mxu2 %v6687_v20  ;;  %5264 = vmatmul.bf16.vlgmr.msra.gmra.mxu3 %v9020_v23  ;;  %v6626_v23 = vld [vmem:[%s8906_s24 + $0x830] sm:$0xf]  ;;  %v6307_v27 = vor.u32 %v8317_v6, %v6306_v21  ;;  %v6586_v20 = vld [vmem:[%s8906_s24 + $0x7e0] sm:$0xf]  ;;  %v6427_v43 = vor.u32 %v8347_v31, %v6426_v49  ;;  %v6567_v21 = vor.u32 %v8382_v59, %v6566_v58  ;;  %v8527_v49 = vld [vmem:[%s8906_s24 + $0xc50] sm:$0xf0] }
 0x23c   : > { %5308 = vmatpush.bf16.msrb.mxu3 %v6847_v35  ;;  %v6627_v15 = vor.u32 %v8397_v10, %v6626_v23  ;;  %v6746_v35 = vld [vmem:[%s8906_s24 + $0x920] sm:$0xf]  ;;  %v6386_v6 = vld [vmem:[%s8906_s24 + $0x650] sm:$0xf]  ;;  %v6727_v23 = vor.u32 %v8422_v62, %v6726_v60  ;;  %v8377_v10 = vld [vmem:[%s8906_s24 + $0x7a0] sm:$0xf0] }
 0x23d   : > { %5270 = vmatpush.bf16.msrb.mxu0 %v6347_v45  ;;  %v5044_v29 = vpop.f32.mrf.mxu2  ;;  %v5020_v39 = vpop.f32.mrf.mxu0  ;;  %v6587_v45 = vor.u32 %v8387_v32, %v6586_v20  ;;  %v6747_v56 = vor.u32 %v8427_v36, %v6746_v35  ;;  %v7466_v31 = vld [vmem:[%s8906_s24 + $0xec0] sm:$0xf]  ;;  %v8607_v20 = vld [vmem:[%s8906_s24 + $0xed0] sm:$0xf0]  ;;  %v6966_v35 = vld [vmem:[%s8906_s24 + $0xad8] sm:$0xf] }
 0x23e   : > { %5283 = vmatpush.bf16.msrb.mxu1 %v6507_v48  ;;  %v5045_v33 = vadd.f32 %v5044_v29, %v5032_v40  ;;  %v5057_v34 = vpop.f32.mrf.mxu3  ;;  %v6246_v48 = vld [vmem:[%s8906_s24 + $0x538] sm:$0xf]  ;;  %v5033_v54 = vpop.f32.mrf.mxu1  ;;  %v6707_v40 = vor.u32 %v8417_v12, %v6706_v11  ;;  %v7306_v29 = vld [vmem:[%s8906_s24 + $0xd80] sm:$0xf]  ;;  %v8482_v36 = vld [vmem:[%s8906_s24 + $0xae8] sm:$0xf0]  ;;  %v7467_v39 = vor.u32 %v8607_v20, %v7466_v31 }
 0x23f   : > { %5296 = vmatpush.bf16.msrb.mxu2 %v6667_v51  ;;  %v8302_v51 = vld [vmem:[%s8906_s24 + $0x548] sm:$0xf0]  ;;  %v6967_v54 = vor.u32 %v8482_v36, %v6966_v35  ;;  %v8477_v58 = vld [vmem:[%s8906_s24 + $0xac0] sm:$0xf0]  ;;  %v7266_v60 = vld [vmem:[%s8906_s24 + $0xd30] sm:$0xf] }
 0x240   : > { %5309 = vmatpush.bf16.msrb.mxu3 %v6827_v57  ;;  %v10140_v38 = vadd.f32 %v5057_v34, %v5045_v33  ;;  %v8342_v57 = vld [vmem:[%s8906_s24 + $0x688] sm:$0xf0]  ;;  %v6247_v63 = vor.u32 %v8302_v51, %v6246_v48  ;;  %v7147_v33 = vor.u32 %v8527_v49, %v7146_v52  ;;  %v7446_v51 = vld [vmem:[%s8906_s24 + $0xe98] sm:$0xf]  ;;  %v8517_v59 = vld [vmem:[%s8906_s24 + $0xc00] sm:$0xf0] }
 0x241   : > { %5271 = vmatpush.bf16.msrb.mxu0 %v6327_v0  ;;  %v6226_v0 = vld [vmem:[%s8906_s24 + $0x510] sm:$0xf]  ;;  %v8562_v48 = vld [vmem:[%s8906_s24 + $0xd68] sm:$0xf0]  ;;  %v8557_v62 = vld [vmem:[%s8906_s24 + $0xd40] sm:$0xf0] }
 0x242   : > { %5284 = vmatpush.bf16.msrb.mxu1 %v6487_v4  ;;  %v8297_v4 = vld [vmem:[%s8906_s24 + $0x520] sm:$0xf0]  ;;  %v7246_v11 = vld [vmem:[%s8906_s24 + $0xd08] sm:$0xf]  ;;  %v8552_v12 = vld [vmem:[%s8906_s24 + $0xd18] sm:$0xf0] }
 0x243   : > { %5297 = vmatpush.bf16.msrb.mxu2 %v6647_v5  ;;  %v6407_v5 = vor.u32 %v8342_v57, %v6406_v53  ;;  %v6227_v16 = vor.u32 %v8297_v4, %v6226_v0  ;;  %v8602_v53 = vld [vmem:[%s8906_s24 + $0xea8] sm:$0xf0]  ;;  %v6946_v57 = vld [vmem:[%s8906_s24 + $0xab0] sm:$0xf]  ;;  %v8597_v0 = vld [vmem:[%s8906_s24 + $0xe80] sm:$0xf0] }
 0x244   : > { %5310 = vmatpush.bf16.msrb.mxu3 %v6807_v22  ;;  %v6546_v22 = vld [vmem:[%s8906_s24 + $0x790] sm:$0xf]  ;;  %v6886_v49 = vld [vmem:[%s8906_s24 + $0xa38] sm:$0xf]  ;;  %v8582_v36 = vld [vmem:[%s8906_s24 + $0xe08] sm:$0xf0] }
 0x245   : > { %5272 = vmatpush.bf16.msrb.mxu0 %v6307_v27  ;;  %v5046_v9 = vpop.f32.mrf.mxu2  ;;  %v6547_v24 = vor.u32 %v8377_v10, %v6546_v22  ;;  %v7086_v22 = vld [vmem:[%s8906_s24 + $0xbc8] sm:$0xf]  ;;  %v8512_v10 = vld [vmem:[%s8906_s24 + $0xbd8] sm:$0xf0]  ;;  %v7366_v35 = vld [vmem:[%s8906_s24 + $0xdf8] sm:$0xf] }
 0x246   : > { %5285 = vmatpush.bf16.msrb.mxu1 %v6467_v14  ;;  %v5059_v27 = vpop.f32.mrf.mxu3  ;;  %v8492_v14 = vld [vmem:[%s8906_s24 + $0xb38] sm:$0xf0] }
 0x247   : > { %5298 = vmatpush.bf16.msrb.mxu2 %v6627_v15  ;;  %v7166_v15 = vld [vmem:[%s8906_s24 + $0xc68] sm:$0xf]  ;;  %v7007_v28 = vor.u32 %v8492_v14, %v7006_v13  ;;  %v8592_v13 = vld [vmem:[%s8906_s24 + $0xe58] sm:$0xf0] }
 0x248   : > { %5311 = vmatpush.bf16.msrb.mxu3 %v6787_v19  ;;  %v6387_v19 = vor.u32 %v8337_v7, %v6386_v6  ;;  %v7167_v42 = vor.u32 %v8532_v17, %v7166_v15  ;;  %v6926_v6 = vld [vmem:[%s8906_s24 + $0xa88] sm:$0xf]  ;;  %v8472_v7 = vld [vmem:[%s8906_s24 + $0xa98] sm:$0xf0]  ;;  %v7087_v15 = vor.u32 %v8512_v10, %v7086_v22  ;;  %v6906_v17 = vld [vmem:[%s8906_s24 + $0xa60] sm:$0xf] }
 0x249   : > { %5273 = vmatpush.bf16.msrb.mxu0 %v6287_v41  ;;  %v7327_v41 = vor.u32 %v8572_v18, %v7326_v50  ;;  %v7406_v27 = vld [vmem:[%s8906_s24 + $0xe48] sm:$0xf]  ;;  %v6927_v14 = vor.u32 %v8472_v7, %v6926_v6  ;;  %v8467_v50 = vld [vmem:[%s8906_s24 + $0xa70] sm:$0xf0]  ;;  %v7066_v18 = vld [vmem:[%s8906_s24 + $0xba0] sm:$0xf] }
 0x24a   : > { %5286 = vmatpush.bf16.msrb.mxu1 %v6447_v47  ;;  %v6986_v47 = vld [vmem:[%s8906_s24 + $0xb00] sm:$0xf]  ;;  %v7067_v52 = vor.u32 %v8507_v25, %v7066_v18  ;;  %v8126_v7 = vld [vmem:[%s8906_s24 + $0x13e8] sm:$0xf]  ;;  %v8772_v22 = vld [vmem:[%s8906_s24 + $0x13f8] sm:$0xf0] }
 0x24b   : > { %5299 = vmatpush.bf16.msrb.mxu2 %v6607_v44  ;;  %v8487_v44 = vld [vmem:[%s8906_s24 + $0xb10] sm:$0xf0]  ;;  %v8106_v18 = vld [vmem:[%s8906_s24 + $0x13c0] sm:$0xf] }
 0x24c   : > { %5312 = vmatpush.bf16.msrb.mxu3 %v6767_v30  ;;  %v8567_v30 = vld [vmem:[%s8906_s24 + $0xd90] sm:$0xf0]  ;;  %v6987_v32 = vor.u32 %v8487_v44, %v6986_v47  ;;  %v6907_v47 = vor.u32 %v8467_v50, %v6906_v17  ;;  %v7946_v17 = vld [vmem:[%s8906_s24 + $0x1280] sm:$0xf] }
 0x24d   : > { %5274 = vmatpush.bf16.msrb.mxu0 %v6267_v37  ;;  %v7307_v34 = vor.u32 %v8567_v30, %v7306_v29  ;;  %v7126_v37 = vld [vmem:[%s8906_s24 + $0xc18] sm:$0xf]  ;;  %v8462_v29 = vld [vmem:[%s8906_s24 + $0xa48] sm:$0xf0]  ;;  %v8727_v50 = vld [vmem:[%s8906_s24 + $0x1290] sm:$0xf0] }
 0x24e   : > { %5287 = vmatpush.bf16.msrb.mxu1 %v6427_v43  ;;  %v8522_v43 = vld [vmem:[%s8906_s24 + $0xc28] sm:$0xf0]  ;;  %v7046_v30 = vld [vmem:[%s8906_s24 + $0xb78] sm:$0xf] }
 0x24f   : > { %5300 = vmatpush.bf16.msrb.mxu2 %v6587_v45  ;;  %v7286_v45 = vld [vmem:[%s8906_s24 + $0xd58] sm:$0xf] }
 0x250   : > { %5313 = vmatpush.bf16.msrb.mxu3 %v6747_v56  ;;  %v7287_v56 = vor.u32 %v8562_v48, %v7286_v45 }
 0x251   : > { %5275 = vmatpush.bf16.msrb.mxu0 %v6247_v63  ;;  %v7426_v63 = vld [vmem:[%s8906_s24 + $0xe70] sm:$0xf] }
 0x252   : > { %5288 = vmatpush.bf16.msrb.mxu1 %v6407_v5 }
 0x253   : > { %5301 = vmatpush.bf16.msrb.mxu2 %v6567_v21  ;;  %v7267_v21 = vor.u32 %v8557_v62, %v7266_v60  ;;  %v8652_v60 = vld [vmem:[%s8906_s24 + $0x1038] sm:$0xf0]  ;;  %v7806_v62 = vld [vmem:[%s8906_s24 + $0x1168] sm:$0xf] }
 0x254   : > { %5314 = vmatpush.bf16.msrb.mxu3 %v6727_v23  ;;  %v7427_v23 = vor.u32 %v8597_v0, %v7426_v63  ;;  %v8692_v0 = vld [vmem:[%s8906_s24 + $0x1178] sm:$0xf0] }
 0x255   : > { %5276 = vmatpush.bf16.msrb.mxu0 %v6227_v16  ;;  %v10194_v4 = vpop.f32.mrf.mxu0  ;;  %v7247_v16 = vor.u32 %v8552_v12, %v7246_v11  ;;  %v7807_v11 = vor.u32 %v8692_v0, %v7806_v62  ;;  %v7726_v62 = vld [vmem:[%s8906_s24 + $0x10c8] sm:$0xf]  ;;  %v8672_v0 = vld [vmem:[%s8906_s24 + $0x10d8] sm:$0xf0] }
 0x256   : > { %5289 = vmatpush.bf16.msrb.mxu1 %v6387_v19  ;;  %v10199_v9 = vpop.f32.mrf.mxu1 }
 0x257   : > { %5302 = vmatpush.bf16.msrb.mxu2 %v6547_v24  ;;  %v7407_v24 = vor.u32 %v8592_v13, %v7406_v27  ;;  %v7626_v27 = vld [vmem:[%s8906_s24 + $0x1000] sm:$0xf]  ;;  %v8647_v13 = vld [vmem:[%s8906_s24 + $0x1010] sm:$0xf0] }
 0x258   : > { %5315 = vmatpush.bf16.msrb.mxu3 %v6707_v40  ;;  %5277 = vmatmul.bf16.vlgmr.msrb.gmra.mxu0 %v9057_v1  ;;  %v7106_v1 = vld [vmem:[%s8906_s24 + $0xbf0] sm:$0xf]  ;;  %v8547_v40 = vld [vmem:[%s8906_s24 + $0xcf0] sm:$0xf0]  ;;  %v7627_v25 = vor.u32 %v8647_v13, %v7626_v27  ;;  %v7706_v27 = vld [vmem:[%s8906_s24 + $0x10a0] sm:$0xf] }
 0x259   : > { %5321 = vmatpush.bf16.msra.mxu0 %v7007_v28  ;;  %5290 = vmatmul.bf16.vlgmr.msrb.gmra.mxu1 %v9061_v3  ;;  %v6947_v3 = vor.u32 %v8477_v58, %v6946_v57  ;;  %v7107_v5 = vor.u32 %v8517_v59, %v7106_v1  ;;  %v8537_v57 = vld [vmem:[%s8906_s24 + $0xca0] sm:$0xf0]  ;;  %v7346_v58 = vld [vmem:[%s8906_s24 + $0xdd0] sm:$0xf]  ;;  %v7646_v59 = vld [vmem:[%s8906_s24 + $0x1028] sm:$0xf] }
 0x25a   : > { %5334 = vmatpush.bf16.msra.mxu1 %v7167_v42  ;;  %5303 = vmatmul.bf16.vlgmr.msrb.gmra.mxu2 %v9054_v61  ;;  %v7127_v61 = vor.u32 %v8522_v43, %v7126_v37  ;;  %v7386_v42 = vld [vmem:[%s8906_s24 + $0xe20] sm:$0xf]  ;;  %v6887_v37 = vor.u32 %v8462_v29, %v6886_v49  ;;  %v8457_v43 = vld [vmem:[%s8906_s24 + $0xa20] sm:$0xf0]  ;;  %v7647_v10 = vor.u32 %v8652_v60, %v7646_v59  ;;  %v7926_v49 = vld [vmem:[%s8906_s24 + $0x1258] sm:$0xf] }
 0x25b   : > { %5347 = vmatpush.bf16.msra.mxu2 %v7327_v41  ;;  %5316 = vmatmul.bf16.vlgmr.msrb.gmra.mxu3 %v9059_v2  ;;  %v7447_v2 = vor.u32 %v8602_v53, %v7446_v51  ;;  %v8587_v41 = vld [vmem:[%s8906_s24 + $0xe30] sm:$0xf0]  ;;  %v7026_v51 = vld [vmem:[%s8906_s24 + $0xb50] sm:$0xf]  ;;  %v8497_v53 = vld [vmem:[%s8906_s24 + $0xb60] sm:$0xf0] }
 0x25c   : > { %5360 = vmatpush.bf16.msra.mxu3 %v7487_v46  ;;  %v7227_v46 = vor.u32 %v8547_v40, %v7226_v26  ;;  %v7387_v20 = vor.u32 %v8587_v41, %v7386_v42  ;;  %v8577_v1 = vld [vmem:[%s8906_s24 + $0xde0] sm:$0xf0]  ;;  %v7947_v40 = vor.u32 %v8727_v50, %v7946_v17  ;;  %v7606_v42 = vld [vmem:[%s8906_s24 + $0xfd8] sm:$0xf]  ;;  %v8642_v41 = vld [vmem:[%s8906_s24 + $0xfe8] sm:$0xf0] }
 0x25d   : > { %5322 = vmatpush.bf16.msra.mxu0 %v6987_v32  ;;  %v10209_v19 = vpop.f32.mrf.mxu2  ;;  %v5072_v44 = vpop.f32.mrf.mxu0  ;;  %v8502_v32 = vld [vmem:[%s8906_s24 + $0xb88] sm:$0xf0]  ;;  %v7566_v59 = vld [vmem:[%s8906_s24 + $0xf88] sm:$0xf]  ;;  %v8632_v60 = vld [vmem:[%s8906_s24 + $0xf98] sm:$0xf0] }
 0x25e   : > { %5335 = vmatpush.bf16.msra.mxu1 %v7147_v33  ;;  %v10214_v28 = vpop.f32.mrf.mxu3  ;;  %v5085_v31 = vpop.f32.mrf.mxu1  ;;  %v7206_v33 = vld [vmem:[%s8906_s24 + $0xcb8] sm:$0xf]  ;;  %v7047_v45 = vor.u32 %v8502_v32, %v7046_v30  ;;  %v8823_v44 = vld [vmem:[#allocation1] sm:$0xff]  ;;  %v8722_v29 = vld [vmem:[%s8906_s24 + $0x1268] sm:$0xf0] }
 0x25f   : > { %5348 = vmatpush.bf16.msra.mxu2 %v7307_v34  ;;  %v8542_v34 = vld [vmem:[%s8906_s24 + $0xcc8] sm:$0xf0]  ;;  %v8824_v30 = vld [vmem:[#allocation1 + $0x12] sm:$0xff] }
 0x260   : > { %5361 = vmatpush.bf16.msra.mxu3 %v7467_v39  ;;  %v6866_v39 = vld [vmem:[%s8906_s24 + $0xa10] sm:$0xf]  ;;  %v7207_v48 = vor.u32 %v8542_v34, %v7206_v33  ;;  %v8762_v32 = vld [vmem:[%s8906_s24 + $0x13a8] sm:$0xf0]  ;;  %v8826_v33 = vld [vmem:[#allocation1 + $0x1b] sm:$0xff]  ;;  %v7607_v34 = vor.u32 %v8642_v41, %v7606_v42 }
 0x261   : > { %5323 = vmatpush.bf16.msra.mxu0 %v6967_v54  ;;  %v7186_v54 = vld [vmem:[%s8906_s24 + $0xc90] sm:$0xf]  ;;  %v6867_v63 = vor.u32 %v8457_v43, %v6866_v39  ;;  %v8637_v39 = vld [vmem:[%s8906_s24 + $0xfc0] sm:$0xf0]  ;;  %v8707_v17 = vld [vmem:[%s8906_s24 + $0x11f0] sm:$0xf0] }
 0x262   : > { %5336 = vmatpush.bf16.msra.mxu1 %v7127_v61  ;;  %v7187_v6 = vor.u32 %v8537_v57, %v7186_v54  ;;  %v8825_v31 = vld [vmem:[#allocation1 + $0x9] sm:$0xff]  ;;  %v7526_v41 = vld [vmem:[%s8906_s24 + $0xf38] sm:$0xf] }
 0x263   : > { %5349 = vmatpush.bf16.msra.mxu2 %v7287_v56  ;;  %v7367_v56 = vor.u32 %v8582_v36, %v7366_v35  ;;  %v7927_v36 = vor.u32 %v8722_v29, %v7926_v49  ;;  %v7746_v43 = vld [vmem:[%s8906_s24 + $0x10f0] sm:$0xf]  ;;  %v7846_v49 = vld [vmem:[%s8906_s24 + $0x11b8] sm:$0xf]  ;;  %v8702_v29 = vld [vmem:[%s8906_s24 + $0x11c8] sm:$0xf0] }
 0x264   : > { %5362 = vmatpush.bf16.msra.mxu3 %v7447_v2 }
 0x265   : > { %5324 = vmatpush.bf16.msra.mxu0 %v6947_v3  ;;  %v5098_v61 = vpop.f32.mrf.mxu2  ;;  %v7966_v3 = vld [vmem:[%s8906_s24 + $0x12a8] sm:$0xf] }
 0x266   : > { %5337 = vmatpush.bf16.msra.mxu1 %v7107_v5  ;;  %v5111_v2 = vpop.f32.mrf.mxu3  ;;  %v8732_v5 = vld [vmem:[%s8906_s24 + $0x12b8] sm:$0xf0]  ;;  %v8066_v61 = vld [vmem:[%s8906_s24 + $0x1370] sm:$0xf] }
 0x267   : > { %5350 = vmatpush.bf16.msra.mxu2 %v7267_v21  ;;  %v7027_v21 = vor.u32 %v8497_v53, %v7026_v51  ;;  %v7967_v12 = vor.u32 %v8732_v5, %v7966_v3  ;;  %v7906_v51 = vld [vmem:[%s8906_s24 + $0x1230] sm:$0xf]  ;;  %v8717_v53 = vld [vmem:[%s8906_s24 + $0x1240] sm:$0xf0]  ;;  %v7886_v3 = vld [vmem:[%s8906_s24 + $0x1208] sm:$0xf] }
 0x268   : > { %5363 = vmatpush.bf16.msra.mxu3 %v7427_v23  ;;  %v7347_v23 = vor.u32 %v8577_v1, %v7346_v58  ;;  %v7907_v2 = vor.u32 %v8717_v53, %v7906_v51  ;;  %v8712_v5 = vld [vmem:[%s8906_s24 + $0x1218] sm:$0xf0]  ;;  %v7986_v51 = vld [vmem:[%s8906_s24 + $0x12d0] sm:$0xf]  ;;  %v8737_v53 = vld [vmem:[%s8906_s24 + $0x12e0] sm:$0xf0] }
 0x269   : > { %5325 = vmatpush.bf16.msra.mxu0 %v6927_v14  ;;  %v7786_v14 = vld [vmem:[%s8906_s24 + $0x1140] sm:$0xf] }
 0x26a   : > { %5338 = vmatpush.bf16.msra.mxu1 %v7087_v15  ;;  %v8127_v15 = vor.u32 %v8772_v22, %v8126_v7  ;;  %v7567_v7 = vor.u32 %v8632_v60, %v7566_v59  ;;  %v5071_v22 = vadd.f32 %v10194_v4, %v10140_v38  ;;  %v8026_v38 = vld [vmem:[%s8906_s24 + $0x1320] sm:$0xf]  ;;  %v8747_v4 = vld [vmem:[%s8906_s24 + $0x1330] sm:$0xf0] }
 0x26b   : > { %5351 = vmatpush.bf16.msra.mxu2 %v7247_v16  ;;  %v8687_v16 = vld [vmem:[%s8906_s24 + $0x1150] sm:$0xf0] }
 0x26c   : > { %5364 = vmatpush.bf16.msra.mxu3 %v7407_v24  ;;  %v8767_v24 = vld [vmem:[%s8906_s24 + $0x13d0] sm:$0xf0]  ;;  %v7787_v26 = vor.u32 %v8687_v16, %v7786_v14  ;;  %v7866_v16 = vld [vmem:[%s8906_s24 + $0x11e0] sm:$0xf] }
 0x26d   : > { %5326 = vmatpush.bf16.msra.mxu0 %v6907_v47  ;;  %v7766_v47 = vld [vmem:[%s8906_s24 + $0x1118] sm:$0xf]  ;;  %v7867_v42 = vor.u32 %v8707_v17, %v7866_v16 }
 0x26e   : > { %5339 = vmatpush.bf16.msra.mxu1 %v7067_v52  ;;  %v8107_v52 = vor.u32 %v8767_v24, %v8106_v18 }
 0x26f   : > { %5352 = vmatpush.bf16.msra.mxu2 %v7227_v46  ;;  %v8682_v46 = vld [vmem:[%s8906_s24 + $0x1128] sm:$0xf0] }
 0x270   : > { %5365 = vmatpush.bf16.msra.mxu3 %v7387_v20  ;;  %v8086_v20 = vld [vmem:[%s8906_s24 + $0x1398] sm:$0xf]  ;;  %v7767_v35 = vor.u32 %v8682_v46, %v7766_v47  ;;  %v8622_v47 = vld [vmem:[%s8906_s24 + $0xf48] sm:$0xf0] }
 0x271   : > { %5327 = vmatpush.bf16.msra.mxu0 %v6887_v37  ;;  %v7586_v37 = vld [vmem:[%s8906_s24 + $0xfb0] sm:$0xf]  ;;  %v8662_v46 = vld [vmem:[%s8906_s24 + $0x1088] sm:$0xf0] }
 0x272   : > { %5340 = vmatpush.bf16.msra.mxu1 %v7047_v45  ;;  %v8087_v45 = vor.u32 %v8762_v32, %v8086_v20  ;;  %v7587_v57 = vor.u32 %v8637_v39, %v7586_v37  ;;  %v8657_v39 = vld [vmem:[%s8906_s24 + $0x1060] sm:$0xf0] }
 0x273   : > { %5353 = vmatpush.bf16.msra.mxu2 %v7207_v48  ;;  %v8677_v48 = vld [vmem:[%s8906_s24 + $0x1100] sm:$0xf0] }
 0x274   : > { %5366 = vmatpush.bf16.msra.mxu3 %v7367_v56  ;;  %v8757_v56 = vld [vmem:[%s8906_s24 + $0x1380] sm:$0xf0]  ;;  %v7747_v1 = vor.u32 %v8677_v48, %v7746_v43  ;;  %v7826_v43 = vld [vmem:[%s8906_s24 + $0x1190] sm:$0xf] }
 0x275   : > { %5328 = vmatpush.bf16.msra.mxu0 %v6867_v63  ;;  %v10264_v54 = vpop.f32.mrf.mxu0  ;;  %v8067_v63 = vor.u32 %v8757_v56, %v8066_v61 }
 0x276   : > { %5341 = vmatpush.bf16.msra.mxu1 %v7027_v21  ;;  %v10268_v58 = vpop.f32.mrf.mxu1  ;;  %v8046_v21 = vld [vmem:[%s8906_s24 + $0x1348] sm:$0xf] }
 0x277   : > { %5354 = vmatpush.bf16.msra.mxu2 %v7187_v6  ;;  %v8752_v6 = vld [vmem:[%s8906_s24 + $0x1358] sm:$0xf0] }
 0x278   : > { %5367 = vmatpush.bf16.msra.mxu3 %v7347_v23  ;;  %5329 = vmatmul.bf16.vlgmr.msra.gmra.mxu0 %v8823_v44  ;;  %v7727_v23 = vor.u32 %v8672_v0, %v7726_v62  ;;  %v8047_v13 = vor.u32 %v8752_v6, %v8046_v21  ;;  %v7686_v44 = vld [vmem:[%s8906_s24 + $0x1078] sm:$0xf]  ;;  %v8827_v62 = vld [vmem:[#allocation1 + $0x24] sm:$0xff] }
 0x279   : > { %5373 = vmatpush.bf16.msrb.mxu0 %v7647_v10  ;;  %5342 = vmatmul.bf16.vlgmr.msra.gmra.mxu1 %v8825_v31  ;;  %v7887_v10 = vor.u32 %v8712_v5, %v7886_v3  ;;  %v7527_v31 = vor.u32 %v8622_v47, %v7526_v41  ;;  %v7687_v32 = vor.u32 %v8662_v46, %v7686_v44  ;;  %v8829_v0 = vld [vmem:[#allocation1 + $0x36] sm:$0xff]  ;;  %v8830_v3 = vld [vmem:[#allocation1 + $0x3f] sm:$0xff] }
 0x27a   : > { %5386 = vmatpush.bf16.msrb.mxu1 %v7807_v11  ;;  %5355 = vmatmul.bf16.vlgmr.msra.gmra.mxu2 %v8824_v30  ;;  %v7546_v11 = vld [vmem:[%s8906_s24 + $0xf60] sm:$0xf]  ;;  %v8006_v30 = vld [vmem:[%s8906_s24 + $0x12f8] sm:$0xf] }
 0x27b   : > { %5399 = vmatpush.bf16.msrb.mxu2 %v7967_v12  ;;  %5368 = vmatmul.bf16.vlgmr.msra.gmra.mxu3 %v8826_v33  ;;  %v8627_v12 = vld [vmem:[%s8906_s24 + $0xf70] sm:$0xf0]  ;;  %v7847_v33 = vor.u32 %v8702_v29, %v7846_v49 }
 0x27c   : > { %5412 = vmatpush.bf16.msrb.mxu3 %v8127_v15  ;;  %v8667_v15 = vld [vmem:[%s8906_s24 + $0x10b0] sm:$0xf0]  ;;  %v7547_v24 = vor.u32 %v8627_v12, %v7546_v11 }
 0x27d   : > { %5374 = vmatpush.bf16.msrb.mxu0 %v7627_v25  ;;  %v10283_v14 = vpop.f32.mrf.mxu2  ;;  %v5124_v18 = vpop.f32.mrf.mxu0 }
 0x27e   : > { %5387 = vmatpush.bf16.msrb.mxu1 %v7787_v26  ;;  %v10288_v50 = vpop.f32.mrf.mxu3  ;;  %v5137_v25 = vpop.f32.mrf.mxu1  ;;  %v5084_v26 = vadd.f32 %v10199_v9, %v5071_v22  ;;  %v8742_v9 = vld [vmem:[%s8906_s24 + $0x1308] sm:$0xf0] }
 0x27f   : > { %5400 = vmatpush.bf16.msrb.mxu2 %v7947_v40  ;;  %v7707_v40 = vor.u32 %v8667_v15, %v7706_v27  ;;  %v8007_v37 = vor.u32 %v8742_v9, %v8006_v30  ;;  %v5430_v27 = vrot.slane %v10070_v55, 4 }
 0x280   : > { %5413 = vmatpush.bf16.msrb.mxu3 %v8107_v52  ;;  %v8027_v52 = vor.u32 %v8747_v4, %v8026_v38  ;;  %v5097_v20 = vadd.f32 %v10209_v19, %v5084_v26 }
 0x281   : > { %5375 = vmatpush.bf16.msrb.mxu0 %v7607_v34  ;;  %v7506_v34 = vld [vmem:[%s8906_s24 + $0xf10] sm:$0xf] }
 0x282   : > { %5388 = vmatpush.bf16.msrb.mxu1 %v7767_v35  ;;  %v8617_v35 = vld [vmem:[%s8906_s24 + $0xf20] sm:$0xf0]  ;;  %v5110_v19 = vadd.f32 %v10214_v28, %v5097_v20 }
 0x283   : > { %5401 = vmatpush.bf16.msrb.mxu2 %v7927_v36  ;;  %v7666_v36 = vld [vmem:[%s8906_s24 + $0x1050] sm:$0xf]  ;;  %v7507_v56 = vor.u32 %v8617_v35, %v7506_v34 }
 0x284   : > { %5414 = vmatpush.bf16.msrb.mxu3 %v8087_v45  ;;  %v8697_v45 = vld [vmem:[%s8906_s24 + $0x11a0] sm:$0xf0]  ;;  %v5123_v59 = vadd.f32 %v10264_v54, %v5110_v19 }
 0x285   : > { %5376 = vmatpush.bf16.msrb.mxu0 %v7587_v57  ;;  %v5150_v48 = vpop.f32.mrf.mxu2  ;;  %v7667_v57 = vor.u32 %v8657_v39, %v7666_v36 }
 0x286   : > { %5389 = vmatpush.bf16.msrb.mxu1 %v7747_v1  ;;  %v5163_v61 = vpop.f32.mrf.mxu3  ;;  %v7827_v1 = vor.u32 %v8697_v45, %v7826_v43  ;;  %v5136_v60 = vadd.f32 %v10268_v58, %v5123_v59 }
 0x287   : > { %5402 = vmatpush.bf16.msrb.mxu2 %v7907_v2  ;;  %v7987_v2 = vor.u32 %v8737_v53, %v7986_v51 }
 0x288   : > { %5415 = vmatpush.bf16.msrb.mxu3 %v8067_v63  ;;  %v8828_v63 = vld [vmem:[#allocation1 + $0x2d] sm:$0xff]  ;;  %v5149_v28 = vadd.f32 %v10283_v14, %v5136_v60  ;;  %v249_v14 = vld [vmem:[%s10362_s3] sm:$0xff] }
 0x289   : > { %5377 = vmatpush.bf16.msrb.mxu0 %v7567_v7 }
 0x28a   : > { %5390 = vmatpush.bf16.msrb.mxu1 %v7727_v23  ;;  %v5162_v5 = vadd.f32 %v10288_v50, %v5149_v28  ;;  %v250_v28 = vld [vmem:[%s10362_s3 + $0x8] sm:$0x3] }
 0x28b   : > { %5403 = vmatpush.bf16.msrb.mxu2 %v7887_v10 }
 0x28c   : > { %5416 = vmatpush.bf16.msrb.mxu3 %v8047_v13 }
 0x28d   : > { %5378 = vmatpush.bf16.msrb.mxu0 %v7547_v24 }
 0x28e   : > { %5391 = vmatpush.bf16.msrb.mxu1 %v7707_v40 }
 0x28f   : > { %5404 = vmatpush.bf16.msrb.mxu2 %v7867_v42 }
 0x290   : > { %5417 = vmatpush.bf16.msrb.mxu3 %v8027_v52 }
 0x291   : > { %5379 = vmatpush.bf16.msrb.mxu0 %v7527_v31 }
 0x292   : > { %5392 = vmatpush.bf16.msrb.mxu1 %v7687_v32 }
 0x293   : > { %5405 = vmatpush.bf16.msrb.mxu2 %v7847_v33 }
 0x294   : > { %5418 = vmatpush.bf16.msrb.mxu3 %v8007_v37 }
 0x295   : > { %5380 = vmatpush.bf16.msrb.mxu0 %v7507_v56  ;;  %v5174_v21 = vpop.f32.mrf.mxu0 }
 0x296   : > { %5393 = vmatpush.bf16.msrb.mxu1 %v7667_v57  ;;  %v5187_v54 = vpop.f32.mrf.mxu1  ;;  %v5175_v6 = vadd.f32 %v5174_v21, %v5162_v5 }
 0x297   : > { %5406 = vmatpush.bf16.msrb.mxu2 %v7827_v1 }
 0x298   : > { %5419 = vmatpush.bf16.msrb.mxu3 %v7987_v2  ;;  %5381 = vmatmul.bf16.vlgmr.msrb.gmra.mxu0 %v8827_v62  ;;  %v5188_v7 = vadd.f32 %v5187_v54, %v5175_v6 }
 0x299   : > { %5394 = vmatmul.bf16.vlgmr.msrb.gmra.mxu1 %v8828_v63 }
 0x29a   : > { %5407 = vmatmul.bf16.vlgmr.msrb.gmra.mxu2 %v8829_v0 }
 0x29b   : > { %5420 = vmatmul.bf16.vlgmr.msrb.gmra.mxu3 %v8830_v3 }
 0x29d   : > { %v5200_v22 = vpop.f32.mrf.mxu2  ;;  %v5176_v58 = vpop.f32.mrf.mxu0 }
 0x29e   : > { %v5201_v23 = vadd.f32 %v5200_v22, %v5188_v7  ;;  %v5213_v10 = vpop.f32.mrf.mxu3  ;;  %v5189_v11 = vpop.f32.mrf.mxu1 }
 0x2a0   : > { %v5214_v12 = vadd.f32 %v5213_v10, %v5201_v23 }
 0x2a2   : > { %v5431_v13 = vrot.slane %v5214_v12, 2 }
 0x2a4   : > { %v5435_v15 = vsel %vm5434_vm1, %v5430_v27, %v5431_v13 }
 0x2a5   : > { %v5437_v16 = vsel %vm5436_vm2, %v9805_v8, %v5435_v15  ;;  %v5202_v17 = vpop.f32.mrf.mxu2 }
 0x2a6   : > { %v5439_v50 = vadd.f32 %v5437_v16, %v249_v14  ;;  %v5215_v38 = vpop.f32.mrf.mxu3 }
 0x2a8   : > { %5441 = vst [vmem:[%s10362_s3] sm:$0xff] %v5439_v50 }
 0x2b5   : > { %v5226_v4 = vpop.f32.mrf.mxu0 }
 0x2b6   : > { %v5239_v55 = vpop.f32.mrf.mxu1 }
 0x2b7   : > { %v5240_v18 = vadd.f32 %v5239_v55, %v5226_v4 }
 0x2bd   : > { %v5252_v24 = vpop.f32.mrf.mxu2  ;;  %v5228_v42 = vpop.f32.mrf.mxu0 }
 0x2be   : > { %v5253_v25 = vadd.f32 %v5252_v24, %v5240_v18  ;;  %v5265_v26 = vpop.f32.mrf.mxu3  ;;  %v5241_v41 = vpop.f32.mrf.mxu1 }
 0x2c0   : > { %v5266_v40 = vadd.f32 %v5265_v26, %v5253_v25 }
 0x2c5   : > { %v5254_v47 = vpop.f32.mrf.mxu2 }
 0x2c6   : > { %v5267_v44 = vpop.f32.mrf.mxu3 }
 0x2d5   : > { %v5278_v52 = vpop.f32.mrf.mxu0 }
 0x2d6   : > { %v5291_v8 = vpop.f32.mrf.mxu1  ;;  %v5279_v33 = vadd.f32 %v5278_v52, %v5266_v40 }
 0x2d8   : > { %v5292_v37 = vadd.f32 %v5291_v8, %v5279_v33 }
 0x2dd   : > { %v5304_v46 = vpop.f32.mrf.mxu2  ;;  %v5280_v29 = vpop.f32.mrf.mxu0 }
 0x2de   : > { %v5317_v49 = vpop.f32.mrf.mxu3  ;;  %v5293_v30 = vpop.f32.mrf.mxu1  ;;  %v5305_v43 = vadd.f32 %v5304_v46, %v5292_v37 }
 0x2e0   : > { %v5318_v51 = vadd.f32 %v5317_v49, %v5305_v43 }
 0x2e5   : > { %v5306_v9 = vpop.f32.mrf.mxu2 }
 0x2e6   : > { %v5319_v31 = vpop.f32.mrf.mxu3 }
 0x2f5   : > { %v5330_v20 = vpop.f32.mrf.mxu0 }
 0x2f6   : > { %v5343_v32 = vpop.f32.mrf.mxu1  ;;  %v5331_v53 = vadd.f32 %v5330_v20, %v5318_v51 }
 0x2f8   : > { %v5344_v61 = vadd.f32 %v5343_v32, %v5331_v53 }
 0x2fd   : > { %v5356_v34 = vpop.f32.mrf.mxu2  ;;  %v5332_v36 = vpop.f32.mrf.mxu0 }
 0x2fe   : > { %v5369_v35 = vpop.f32.mrf.mxu3  ;;  %v5345_v39 = vpop.f32.mrf.mxu1  ;;  %v5357_v56 = vadd.f32 %v5356_v34, %v5344_v61 }
 0x300   : > { %v5370_v19 = vadd.f32 %v5369_v35, %v5357_v56 }
 0x305   : > { %v5358_v45 = vpop.f32.mrf.mxu2 }
 0x306   : > { %v5371_v48 = vpop.f32.mrf.mxu3 }
 0x315   : > { %v5382_v57 = vpop.f32.mrf.mxu0 }
 0x316   : > { %v5395_v1 = vpop.f32.mrf.mxu1  ;;  %v5383_v2 = vadd.f32 %v5382_v57, %v5370_v19 }
 0x318   : > { %v5396_v59 = vadd.f32 %v5395_v1, %v5383_v2 }
 0x31d   : > { %v5408_v60 = vpop.f32.mrf.mxu2  ;;  %v5384_v0 = vpop.f32.mrf.mxu0 }
 0x31e   : > { %v5409_v62 = vadd.f32 %v5408_v60, %v5396_v59  ;;  %v5421_v63 = vpop.f32.mrf.mxu3  ;;  %v5397_v3 = vpop.f32.mrf.mxu1 }
 0x320   : > { %v5422_v5 = vadd.f32 %v5421_v63, %v5409_v62 }
 0x322   : > { %v5440_v21 = vadd.f32 %v5422_v5, %v250_v28  ;;  %5446 = sbr.rel (%p8128_p7) target bundleno = 819 (0x333), region = 40 }
 0x324   : > { %5442 = vst [vmem:[%s10362_s3 + $0x8] sm:$0x3] %v5440_v21 }
 0x325   : > { %v5410_v54 = vpop.f32.mrf.mxu2 }
 0x326   : > { %v5423_v6 = vpop.f32.mrf.mxu3 }
 0x327   : > { %v5449_v7 = vld [vmem:[%s10361_s2] sm:$0x1f] }
 0x328   : > { %v5451_v22 = vperm.slane %v5449_v7, 0  ;;  %v5452_v23 = vperm.slane %v5449_v7, 1  ;;  %v5453_v10 = vperm.slane %v5449_v7, 2  ;;  %v5454_v58 = vperm.slane %v5449_v7, 3  ;;  %v5447_v15 = vld [vmem:[%s10362_s3] sm:$0xff] }
 0x329   : > { %v5455_v12 = vperm.slane %v5449_v7, 4 }
 0x32a   : > { %v5457_v27 = vrot.slane %v5452_v23, 6  ;;  %v5458_v13 = vrot.slane %v5453_v10, 4  ;;  %v5459_v14 = vrot.slane %v5454_v58, 2 }
 0x32b   : > { %v5448_v11 = vld [vmem:[%s10362_s3 + $0x8] sm:$0x3] }
 0x32c   : > { %v5465_v16 = vadd.f32 %v5455_v12, %v5448_v11  ;;  %v5460_v17 = vsel %vm5432_vm0, %v5451_v22, %v5457_v27  ;;  %v5461_v50 = vsel %vm5434_vm1, %v5458_v13, %v5459_v14 }
 0x32d   : > { %v5462_v38 = vsel %vm5436_vm2, %v5460_v17, %v5461_v50 }
 0x32e   : > { %v5467_v4 = vmax.f32 %v5465_v16, 0.0  ;;  %v5464_v55 = vadd.f32 %v5462_v38, %v5447_v15 }
 0x330   : > { %5469 = vst [vmem:[%s10362_s3 + $0x8] sm:$0x3] %v5467_v4  ;;  %v5466_v18 = vmax.f32 %v5464_v55, 0.0 }
 0x332   : > { %5468 = vst [vmem:[%s10362_s3] sm:$0xff] %v5466_v18 }
 0x333 PF: > { %s13_s14 = sadd.s32 1, %s8853_s14   ;;  %s10363_s12 = smov %s8849_s13 }
 0x334   : > { %p10_p8 = scmp.ge.s32.totalorder %s13_s14, 6   ;;  %s10364_s13 = smov %s10366_s15 }
 0x336   :  { %12 = sbr.rel (!%p10_p8) target bundleno = 2 (0x2), region = 76 }

</bundles_post_ra>
